<compile_context>
chip_gen: v6e
topology: v6e:2x2x1
jax: 0.10.0
libtpu: 0.0.40
codegen_flags: <defaults>
</compile_context>

<pallas_src>
import jax
import jax.numpy as jnp
from jax.experimental import pallas as pl
from jax.experimental.pallas import tpu as pltpu


_INV_SQRT2 = 0.7071067811865476


def _erf_f32(x):
    # Abramowitz & Stegun 7.1.26 rational approximation, |err| <= 1.5e-7.
    # Uses only VPU mul/add + one EUP exp + one EUP reciprocal.
    p = 0.3275911
    a1, a2, a3, a4, a5 = (0.254829592, -0.284496736, 1.421413741,
                          -1.453152027, 1.061405429)
    sign = jnp.where(x >= 0.0, 1.0, -1.0).astype(jnp.float32)
    ax = jnp.abs(x)
    # EUP reciprocal: takes the divide off the VALU critical path.
    t = pl.reciprocal(1.0 + p * ax, approx=True)
    poly = ((((a5 * t + a4) * t + a3) * t + a2) * t + a1) * t
    return sign * (1.0 - poly * jnp.exp(-ax * ax))


def _gelu_exact_f32(x):
    # Matches PyTorch F.gelu (exact / erf form).
    return 0.5 * x * (1.0 + _erf_f32(x * _INV_SQRT2))


def _geglu_kernel(x_ref, w1_ref, w2_ref, b1_ref, b2_ref, o_ref,
                  acc1_ref, acc2_ref):
    k = pl.program_id(2)

    @pl.when(k == 0)
    def _init():
        # Fold the bias into the accumulator init so the finalize tail (which
        # runs on the same grid step as the last k matmul) is shorter.
        acc1_ref[...] = jnp.broadcast_to(b1_ref[...], acc1_ref.shape)
        acc2_ref[...] = jnp.broadcast_to(b2_ref[...], acc2_ref.shape)

    x = x_ref[...]
    acc1_ref[...] += jnp.dot(x, w1_ref[...], preferred_element_type=jnp.float32)
    acc2_ref[...] += jnp.dot(x, w2_ref[...], preferred_element_type=jnp.float32)

    @pl.when(k == pl.num_programs(2) - 1)
    def _finalize():
        o_ref[...] = (acc1_ref[...] * _gelu_exact_f32(acc2_ref[...])
                      ).astype(o_ref.dtype)


def _geglu_kernel_single_k(x_ref, w1_ref, w2_ref, b1_ref, b2_ref, o_ref):
    # Whole K reduction fits one tile: no scratch accumulators needed.
    x = x_ref[...]
    x1 = jnp.dot(x, w1_ref[...], preferred_element_type=jnp.float32) + b1_ref[...]
    x2 = jnp.dot(x, w2_ref[...], preferred_element_type=jnp.float32) + b2_ref[...]
    o_ref[...] = (x1 * _gelu_exact_f32(x2)).astype(o_ref.dtype)


def _round_up(v, m):
    return (v + m - 1) // m * m


def _pick_tile(target, dim, granule):
    """Largest multiple of `granule`, <= min(target, dim), dividing `dim`."""
    t = max(granule, min(target, dim))
    t = (t // granule) * granule
    while dim % t != 0:
        t -= granule
    return t


def _detect_chip():
    try:
        kind = jax.devices()[0].device_kind.lower()
    except Exception:
        return "unknown"
    if "v5 lite" in kind or "v5e" in kind or "v5lite" in kind:
        return "v5e"
    if "v6" in kind:
        return "v6e"
    if "v7" in kind or "7x" in kind:
        return "v7x"
    return "unknown"


# chip -> (tm, tn, tk, vmem_limit_bytes)  (bf16 MXU path assumptions)
_CHIP_CONFIG = {
    "v5e":     (384, 512, 512, 100 * 1024 * 1024),    # low flops/byte threshold
    "v6e":     (1024, 1024, 512, 100 * 1024 * 1024),  # needs ~670 flops/weight byte
    "v7x":     (512, 1024, 512, 56 * 1024 * 1024),    # 64 MiB VMEM / TC
    "unknown": (512, 512, 512, 64 * 1024 * 1024),
}


def prepare_geglu_params(weight, bias, *, param_dtype=jnp.bfloat16):
    """One-time conversion of PyTorch nn.Linear params to kernel layout.

    weight: (2*out_features, in_features)   bias: (2*out_features,)
    Returns pre-transposed, pre-padded, pre-cast (K, N) weight halves so the
    per-call hot path does no weight layout copies at all.
    """
    two_n, K = weight.shape
    assert two_n % 2 == 0
    N = two_n // 2
    Kp, Np = _round_up(K, 128), _round_up(N, 128)

    w1 = weight[:N].T
    w2 = weight[N:].T
    if (Kp, Np) != (K, N):
        w1 = jnp.pad(w1, ((0, Kp - K), (0, Np - N)))
        w2 = jnp.pad(w2, ((0, Kp - K), (0, Np - N)))
    w1 = w1.astype(param_dtype)
    w2 = w2.astype(param_dtype)

    b1 = jnp.pad(bias[:N].astype(jnp.float32), (0, Np - N)).reshape(1, Np)
    b2 = jnp.pad(bias[N:].astype(jnp.float32), (0, Np - N)).reshape(1, Np)
    return dict(w1=w1, w2=w2, b1=b1, b2=b2, in_features=K, out_features=N)


def geglu_apply(x, params, *, tm=None, tn=None, tk=None,
                out_dtype=None, vmem_limit_bytes=None):
    """Fused GEGLU: (x @ w1 + b1) * gelu_exact(x @ w2 + b2)."""
    w1, w2, b1, b2 = params["w1"], params["w2"], params["b1"], params["b2"]
    K, N = params["in_features"], params["out_features"]
    Kp, Np = w1.shape
    out_dtype = out_dtype or x.dtype

    chip = _detect_chip()
    d_tm, d_tn, d_tk, d_vmem = _CHIP_CONFIG.get(chip, _CHIP_CONFIG["unknown"])
    tm = tm or d_tm
    tn = tn or d_tn
    tk = tk or d_tk
    vmem_limit_bytes = vmem_limit_bytes or d_vmem

    *lead, kx = x.shape
    assert kx == K, (kx, K)
    x2d = x.reshape(-1, K).astype(w1.dtype)
    M = x2d.shape[0]

    # Sublane packing granularity for the M tile (16 for bf16, 8 for f32).
    granule_m = 16 if jnp.dtype(w1.dtype).itemsize < 4 else 8
    Mp = _round_up(M, granule_m)

    # Pick tiles that divide the padded dims exactly (avoids padding x when it
    # is already aligned but not a tile multiple).
    tm = _pick_tile(tm, Mp, granule_m)
    tn = _pick_tile(tn, Np, 128)
    tk = _pick_tile(tk, Kp, 128)

    # v7x has two TensorCores: make sure there are >= 2 parallel output tiles.
    if chip == "v7x" and (Mp // tm) * (Np // tn) < 2:
        if Np >= 256:
            tn = _pick_tile(max(128, tn // 2), Np, 128)
        elif Mp // granule_m >= 2:
            tm = _pick_tile(max(granule_m, tm // 2), Mp, granule_m)

    if (Mp, Kp) != (M, K):
        x2d = jnp.pad(x2d, ((0, Mp - M), (0, Kp - K)))

    itemsize = jnp.dtype(w1.dtype).itemsize
    cost = pl.CostEstimate(
        flops=4 * Mp * Np * Kp,                 # two matmuls, 2 flops / MAC
        transcendentals=Mp * Np,                # one exp per output element
        bytes_accessed=(Mp * Kp * itemsize + 2 * Kp * Np * itemsize
                        + 2 * Np * 4
                        + Mp * Np * jnp.dtype(out_dtype).itemsize),
    )

    n_k = Kp // tk
    if n_k == 1:
        out = pl.pallas_call(
            _geglu_kernel_single_k,
            out_shape=jax.ShapeDtypeStruct((Mp, Np), out_dtype),
            grid_spec=pltpu.PrefetchScalarGridSpec(
                num_scalar_prefetch=0,
                grid=(Mp // tm, Np // tn),
                in_specs=[
                    pl.BlockSpec((tm, Kp), lambda i, j: (i, 0)),   # x
                    pl.BlockSpec((Kp, tn), lambda i, j: (0, j)),   # w1
                    pl.BlockSpec((Kp, tn), lambda i, j: (0, j)),   # w2
                    pl.BlockSpec((1, tn), lambda i, j: (0, j)),    # b1
                    pl.BlockSpec((1, tn), lambda i, j: (0, j)),    # b2
                ],
                out_specs=pl.BlockSpec((tm, tn), lambda i, j: (i, j)),
            ),
            compiler_params=pltpu.CompilerParams(
                dimension_semantics=("parallel", "parallel"),
                vmem_limit_bytes=vmem_limit_bytes,
            ),
            cost_estimate=cost,
        )(x2d, w1, w2, b1, b2)
    else:
        out = pl.pallas_call(
            _geglu_kernel,
            out_shape=jax.ShapeDtypeStruct((Mp, Np), out_dtype),
            grid_spec=pltpu.PrefetchScalarGridSpec(
                num_scalar_prefetch=0,
                grid=(Mp // tm, Np // tn, n_k),
                in_specs=[
                    pl.BlockSpec((tm, tk), lambda i, j, k: (i, k)),   # x
                    pl.BlockSpec((tk, tn), lambda i, j, k: (k, j)),   # w1
                    pl.BlockSpec((tk, tn), lambda i, j, k: (k, j)),   # w2
                    pl.BlockSpec((1, tn), lambda i, j, k: (0, j)),    # b1
                    pl.BlockSpec((1, tn), lambda i, j, k: (0, j)),    # b2
                ],
                out_specs=pl.BlockSpec((tm, tn), lambda i, j, k: (i, j)),
                scratch_shapes=[
                    pltpu.VMEM((tm, tn), jnp.float32),
                    pltpu.VMEM((tm, tn), jnp.float32),
                ],
            ),
            compiler_params=pltpu.CompilerParams(
                dimension_semantics=("parallel", "parallel", "arbitrary"),
                vmem_limit_bytes=vmem_limit_bytes,
            ),
            cost_estimate=cost,
        )(x2d, w1, w2, b1, b2)

    out = out[:M, :N]
    return out.reshape(*lead, N)


def geglu(x, weight, bias, *, param_dtype=jnp.bfloat16, **apply_kwargs):
    """Convenience wrapper for PyTorch nn.Linear layout.

    In a real model call `prepare_geglu_params` once at init and reuse the
    result; this wrapper re-preps every call (fine for tests/one-offs).
    """
    params = prepare_geglu_params(weight, bias, param_dtype=param_dtype)
    return geglu_apply(x, params, **apply_kwargs)


if __name__ == "__main__":
    key = jax.random.PRNGKey(0)
    kx, kw, kb = jax.random.split(key, 3)

    # Small-but-representative GEGLU shapes: 2 x 128 tokens, 1024 -> 512.
    B, T, in_features, out_features = 2, 128, 1024, 512
    x = jax.random.normal(kx, (B, T, in_features), jnp.float32)
    weight = 0.02 * jax.random.normal(
        kw, (2 * out_features, in_features), jnp.float32)
    bias = 0.02 * jax.random.normal(kb, (2 * out_features,), jnp.float32)

    # Reference: exact erf-GELU GEGLU with highest-precision f32 matmul.
    x_proj = jnp.einsum("btk,nk->btn", x, weight,
                        precision=jax.lax.Precision.HIGHEST) + bias
    r1, r2 = jnp.split(x_proj, 2, axis=-1)
    ref = r1 * jax.nn.gelu(r2, approximate=False)

    # 1) Default path: params prepared once (bf16 MXU, f32 accumulation),
    #    chip-specific tiles, multi-step K reduction.
    params_bf16 = prepare_geglu_params(weight, bias)  # one-time layout/cast
    out = geglu_apply(x, params_bf16)
    jax.block_until_ready(out)
    assert out.shape == (B, T, out_features), out.shape
    assert bool(jnp.allclose(out, ref, rtol=5e-2, atol=5e-2)), \
        float(jnp.max(jnp.abs(out - ref)))

    # 2) f32 param path with small explicit tiles: exercises all three grid
    #    axes (M, N and the K reduction) at tighter tolerance.
    out_f32 = geglu(x, weight, bias, param_dtype=jnp.float32,
                    tm=128, tn=256, tk=256)
    jax.block_until_ready(out_f32)
    assert bool(jnp.allclose(out_f32, ref, rtol=1e-2, atol=1e-2)), \
        float(jnp.max(jnp.abs(out_f32 - ref)))

    # 3) Single-K-step fast path (tk == K): scratch-free kernel.
    out_1k = geglu_apply(x, params_bf16, tk=1024)
    jax.block_until_ready(out_1k)
    assert bool(jnp.allclose(out_1k, ref, rtol=5e-2, atol=5e-2)), \
        float(jnp.max(jnp.abs(out_1k - ref)))

    print("KERNEL_OK")
</pallas_src>

<mosaic_0001>
module attributes {stable_mosaic.version = 11 : i64} {
  func.func @_geglu_kernel(%arg0: i32, %arg1: i32, %arg2: i32, %arg3: memref<256x512xbf16, #tpu.memory_space<vmem>>, %arg4: memref<512x512xbf16, #tpu.memory_space<vmem>>, %arg5: memref<512x512xbf16, #tpu.memory_space<vmem>>, %arg6: memref<1x512xf32, #tpu.memory_space<vmem>>, %arg7: memref<1x512xf32, #tpu.memory_space<vmem>>, %arg8: memref<256x512xf32, #tpu.memory_space<vmem>>, %arg9: memref<256x512xf32, #tpu.memory_space<vmem>>, %arg10: memref<256x512xf32, #tpu.memory_space<vmem>>) attributes {dimension_semantics = [#tpu.dimension_semantics<parallel>, #tpu.dimension_semantics<parallel>, #tpu.dimension_semantics<arbitrary>], iteration_bounds = array<i64: 1, 1, 2>, scalar_prefetch = 0 : i64, scratch_operands = 2 : i64, tpu.core_type = #tpu.core_type<tc>, window_params = [{transform_indices = @transform_0, window_bounds = array<i64: 256, 512>}, {transform_indices = @transform_1, window_bounds = array<i64: 512, 512>}, {transform_indices = @transform_2, window_bounds = array<i64: 512, 512>}, {transform_indices = @transform_3, window_bounds = array<i64: 1, 512>}, {transform_indices = @transform_4, window_bounds = array<i64: 1, 512>}, {transform_indices = @transform_5, window_bounds = array<i64: 256, 512>}]} {
    %c0_i32 = arith.constant 0 : i32
    %0 = arith.cmpi eq, %arg2, %c0_i32 : i32
    %1 = arith.extui %0 : i1 to i32
    %c0_i32_0 = arith.constant 0 : i32
    %2 = arith.cmpi ne, %1, %c0_i32_0 : i32
    scf.if %2 {
      %c0_16 = arith.constant 0 : index
      %c0_17 = arith.constant 0 : index
      %17 = vector.load %arg6[%c0_16, %c0_17] : memref<1x512xf32, #tpu.memory_space<vmem>>, vector<1x512xf32>
      %18 = vector.shape_cast %17 : vector<1x512xf32> to vector<1x512xf32>
      %19 = vector.broadcast %18 : vector<1x512xf32> to vector<256x512xf32>
      %c0_18 = arith.constant 0 : index
      %c0_19 = arith.constant 0 : index
      %20 = vector.load %arg9[%c0_18, %c0_19] : memref<256x512xf32, #tpu.memory_space<vmem>>, vector<256x512xf32>
      tpu.vector_store %arg9[%c0_18, %c0_19], %19 {strides = array<i32>} : memref<256x512xf32, #tpu.memory_space<vmem>>, vector<256x512xf32>,
      %c0_20 = arith.constant 0 : index
      %c0_21 = arith.constant 0 : index
      %21 = vector.load %arg7[%c0_20, %c0_21] : memref<1x512xf32, #tpu.memory_space<vmem>>, vector<1x512xf32>
      %22 = vector.shape_cast %21 : vector<1x512xf32> to vector<1x512xf32>
      %23 = vector.broadcast %22 : vector<1x512xf32> to vector<256x512xf32>
      %c0_22 = arith.constant 0 : index
      %c0_23 = arith.constant 0 : index
      %24 = vector.load %arg10[%c0_22, %c0_23] : memref<256x512xf32, #tpu.memory_space<vmem>>, vector<256x512xf32>
      tpu.vector_store %arg10[%c0_22, %c0_23], %23 {strides = array<i32>} : memref<256x512xf32, #tpu.memory_space<vmem>>, vector<256x512xf32>,
    } else {
    }
    %c0 = arith.constant 0 : index
    %c0_1 = arith.constant 0 : index
    %3 = vector.load %arg3[%c0, %c0_1] : memref<256x512xbf16, #tpu.memory_space<vmem>>, vector<256x512xbf16>
    %c0_2 = arith.constant 0 : index
    %c0_3 = arith.constant 0 : index
    %4 = vector.load %arg9[%c0_2, %c0_3] : memref<256x512xf32, #tpu.memory_space<vmem>>, vector<256x512xf32>
    %c0_4 = arith.constant 0 : index
    %c0_5 = arith.constant 0 : index
    %5 = vector.load %arg4[%c0_4, %c0_5] : memref<512x512xbf16, #tpu.memory_space<vmem>>, vector<512x512xbf16>
    %cst = arith.constant dense<0.000000e+00> : vector<256x512xf32>
    %6 = tpu.matmul %3, %5, %cst {dimension_numbers = #tpu.dot_dimension_numbers<[1], [0], [0], [1], [0, 0, 1, 1], [], []>} : vector<256x512xbf16>, vector<512x512xbf16>, vector<256x512xf32> -> vector<256x512xf32>
    %7 = arith.addf %4, %6 : vector<256x512xf32>
    %c0_6 = arith.constant 0 : index
    %c0_7 = arith.constant 0 : index
    %8 = vector.load %arg9[%c0_6, %c0_7] : memref<256x512xf32, #tpu.memory_space<vmem>>, vector<256x512xf32>
    tpu.vector_store %arg9[%c0_6, %c0_7], %7 {strides = array<i32>} : memref<256x512xf32, #tpu.memory_space<vmem>>, vector<256x512xf32>,
    %c0_8 = arith.constant 0 : index
    %c0_9 = arith.constant 0 : index
    %9 = vector.load %arg10[%c0_8, %c0_9] : memref<256x512xf32, #tpu.memory_space<vmem>>, vector<256x512xf32>
    %c0_10 = arith.constant 0 : index
    %c0_11 = arith.constant 0 : index
    %10 = vector.load %arg5[%c0_10, %c0_11] : memref<512x512xbf16, #tpu.memory_space<vmem>>, vector<512x512xbf16>
    %cst_12 = arith.constant dense<0.000000e+00> : vector<256x512xf32>
    %11 = tpu.matmul %3, %10, %cst_12 {dimension_numbers = #tpu.dot_dimension_numbers<[1], [0], [0], [1], [0, 0, 1, 1], [], []>} : vector<256x512xbf16>, vector<512x512xbf16>, vector<256x512xf32> -> vector<256x512xf32>
    %12 = arith.addf %9, %11 : vector<256x512xf32>
    %c0_13 = arith.constant 0 : index
    %c0_14 = arith.constant 0 : index
    %13 = vector.load %arg10[%c0_13, %c0_14] : memref<256x512xf32, #tpu.memory_space<vmem>>, vector<256x512xf32>
    tpu.vector_store %arg10[%c0_13, %c0_14], %12 {strides = array<i32>} : memref<256x512xf32, #tpu.memory_space<vmem>>, vector<256x512xf32>,
    %c1_i32 = arith.constant 1 : i32
    %14 = arith.cmpi eq, %arg2, %c1_i32 : i32
    %15 = arith.extui %14 : i1 to i32
    %c0_i32_15 = arith.constant 0 : i32
    %16 = arith.cmpi ne, %15, %c0_i32_15 : i32
    scf.if %16 {
      %c0_16 = arith.constant 0 : index
      %c0_17 = arith.constant 0 : index
      %17 = vector.load %arg9[%c0_16, %c0_17] : memref<256x512xf32, #tpu.memory_space<vmem>>, vector<256x512xf32>
      %c0_18 = arith.constant 0 : index
      %c0_19 = arith.constant 0 : index
      %18 = vector.load %arg10[%c0_18, %c0_19] : memref<256x512xf32, #tpu.memory_space<vmem>>, vector<256x512xf32>
      %cst_20 = arith.constant 5.000000e-01 : f32
      %19 = vector.broadcast %cst_20 : f32 to vector<256x512xf32>
      %20 = arith.mulf %19, %18 : vector<256x512xf32>
      %cst_21 = arith.constant 0.707106769 : f32
      %21 = vector.broadcast %cst_21 : f32 to vector<256x512xf32>
      %22 = arith.mulf %18, %21 : vector<256x512xf32>
      %cst_22 = arith.constant 0.000000e+00 : f32
      %23 = vector.broadcast %cst_22 : f32 to vector<256x512xf32>
      %24 = arith.cmpf oge, %22, %23 : vector<256x512xf32>
      %cst_23 = arith.constant 1.000000e+00 : f32
      %cst_24 = arith.constant -1.000000e+00 : f32
      %25 = vector.broadcast %cst_23 : f32 to vector<256x512xf32>
      %26 = vector.broadcast %cst_24 : f32 to vector<256x512xf32>
      %27 = arith.select %24, %25, %26 : vector<256x512xi1>, vector<256x512xf32>
      %28 = math.absf %22 : vector<256x512xf32>
      %cst_25 = arith.constant 0.327591091 : f32
      %29 = vector.broadcast %cst_25 : f32 to vector<256x512xf32>
      %30 = arith.mulf %29, %28 : vector<256x512xf32>
      %cst_26 = arith.constant 1.000000e+00 : f32
      %31 = vector.broadcast %cst_26 : f32 to vector<256x512xf32>
      %32 = arith.addf %31, %30 : vector<256x512xf32>
      %33 = tpu.reciprocal %32 {approx = true} : vector<256x512xf32> -> vector<256x512xf32>
      %cst_27 = arith.constant 1.06140542 : f32
      %34 = vector.broadcast %cst_27 : f32 to vector<256x512xf32>
      %35 = arith.mulf %34, %33 : vector<256x512xf32>
      %cst_28 = arith.constant -1.45315206 : f32
      %36 = vector.broadcast %cst_28 : f32 to vector<256x512xf32>
      %37 = arith.addf %35, %36 : vector<256x512xf32>
      %38 = arith.mulf %37, %33 : vector<256x512xf32>
      %cst_29 = arith.constant 1.42141378 : f32
      %39 = vector.broadcast %cst_29 : f32 to vector<256x512xf32>
      %40 = arith.addf %38, %39 : vector<256x512xf32>
      %41 = arith.mulf %40, %33 : vector<256x512xf32>
      %cst_30 = arith.constant -0.284496725 : f32
      %42 = vector.broadcast %cst_30 : f32 to vector<256x512xf32>
      %43 = arith.addf %41, %42 : vector<256x512xf32>
      %44 = arith.mulf %43, %33 : vector<256x512xf32>
      %cst_31 = arith.constant 0.254829586 : f32
      %45 = vector.broadcast %cst_31 : f32 to vector<256x512xf32>
      %46 = arith.addf %44, %45 : vector<256x512xf32>
      %47 = arith.mulf %46, %33 : vector<256x512xf32>
      %cst_32 = arith.constant 0.000000e+00 : f32
      %48 = vector.broadcast %cst_32 : f32 to vector<256x512xf32>
      %49 = arith.subf %48, %28 : vector<256x512xf32>
      %50 = arith.mulf %49, %28 : vector<256x512xf32>
      %51 = math.exp %50 : vector<256x512xf32>
      %52 = arith.mulf %47, %51 : vector<256x512xf32>
      %cst_33 = arith.constant 1.000000e+00 : f32
      %53 = vector.broadcast %cst_33 : f32 to vector<256x512xf32>
      %54 = arith.subf %53, %52 : vector<256x512xf32>
      %55 = arith.mulf %27, %54 : vector<256x512xf32>
      %cst_34 = arith.constant 1.000000e+00 : f32
      %56 = vector.broadcast %cst_34 : f32 to vector<256x512xf32>
      %57 = arith.addf %56, %55 : vector<256x512xf32>
      %58 = arith.mulf %20, %57 : vector<256x512xf32>
      %59 = arith.mulf %17, %58 : vector<256x512xf32>
      %c0_35 = arith.constant 0 : index
      %c0_36 = arith.constant 0 : index
      %60 = vector.load %arg8[%c0_35, %c0_36] : memref<256x512xf32, #tpu.memory_space<vmem>>, vector<256x512xf32>
      tpu.vector_store %arg8[%c0_35, %c0_36], %59 {strides = array<i32>} : memref<256x512xf32, #tpu.memory_space<vmem>>, vector<256x512xf32>,
    } else {
    }
    return
  }
  func.func @transform_0(%arg0: i32, %arg1: i32, %arg2: i32) -> (i32, i32) {
    %c0_i32 = arith.constant 0 : i32
    return %arg0, %arg2 : i32, i32
  }
  func.func @transform_1(%arg0: i32, %arg1: i32, %arg2: i32) -> (i32, i32) {
    %c0_i32 = arith.constant 0 : i32
    return %arg2, %arg1 : i32, i32
  }
  func.func @transform_2(%arg0: i32, %arg1: i32, %arg2: i32) -> (i32, i32) {
    %c0_i32 = arith.constant 0 : i32
    return %arg2, %arg1 : i32, i32
  }
  func.func @transform_3(%arg0: i32, %arg1: i32, %arg2: i32) -> (i32, i32) {
    %c0_i32 = arith.constant 0 : i32
    %c0_i32_0 = arith.constant 0 : i32
    return %c0_i32, %arg1 : i32, i32
  }
  func.func @transform_4(%arg0: i32, %arg1: i32, %arg2: i32) -> (i32, i32) {
    %c0_i32 = arith.constant 0 : i32
    %c0_i32_0 = arith.constant 0 : i32
    return %c0_i32, %arg1 : i32, i32
  }
  func.func @transform_5(%arg0: i32, %arg1: i32, %arg2: i32) -> (i32, i32) {
    %c0_i32 = arith.constant 0 : i32
    return %arg0, %arg1 : i32, i32
  }
}

</mosaic_0001>

<bundles_post_ra>
// kernel: tpu_custom_call.1
= control target key start
LH: loop header
LB: loop body
LE: loop exit
PB: predicated region body
PF: predicated region fallthrough
CT: control target
= control target key end

     0   :  { %10 = vsyncpa [#allocation5], 0  ;;  %s14622_s0 = inlined_call_operand.hbm [shape: bf16[256,1024], index: 0, kind: input, shape index: {}]   ;;  %s14623_s1 = inlined_call_operand.hbm [shape: bf16[1024,512], index: 1, kind: input, shape index: {}]   ;;  %s14624_s2 = inlined_call_operand.hbm [shape: bf16[1024,512], index: 2, kind: input, shape index: {}]   ;;  %s14625_s3 = inlined_call_operand.vmem [shape: f32[1,512], index: 3, kind: input, shape index: {}]   ;;  %s14626_s4 = inlined_call_operand.hbm [shape: f32[1,512], index: 4, kind: input, shape index: {}]   ;;  %s14627_s5 = inlined_call_operand.hbm [shape: f32[256,512], index: 5, kind: output, shape index: {}]  }
   0x1   :  { %12 = vsyncpa [#allocation5 + $0x1], 0 }
   0x2   :  { %13 = vsyncpa [#allocation8], 0 }
   0x3   :  { %15 = vsyncpa [#allocation8 + $0x1], 0 }
   0x4   :  { %16 = vsyncpa [#allocation11], 0 }
   0x5   :  { %17 = vsyncpa [#allocation6], 0  ;;  %s10690_s18 = smov 0   ;;  %s10692_s19 = smov 0  }
   0x6   :  { %s10694_s20 = smov 0   ;;  %s10696_s21 = smov 0  }
   0x7   :  { %s10698_s22 = smov 0   ;;  %s10700_s23 = smov 0  }
   0x8 LB: > { %s35_s24 = sadd.s32 1, %s10643_s22  ;;  %s51_s25 = sadd.s32 1, %s10635_s20  ;;  %s10647_s23 = sphi %s10700_s23, %s23_s23   ;;  %s10643_s22 = sphi %s10698_s22, %s14675_s22   ;;  %s10639_s21 = sphi %s10696_s21, %s14674_s21   ;;  %s10635_s20 = sphi %s10694_s20, %s14673_s20   ;;  %s10631_s19 = sphi %s10692_s19, %s14672_s19   ;;  %s10627_s18 = sphi %s10690_s18, %s14671_s18  }
   0x9   : > { %p36_p0 = scmp.ge.s32.totalorder %s35_s24, 2  ;;  %p58_p1 = scmp.ne.s32.totalorder %s10635_s20, %s10631_s19 }
   0xa   : > { %p59_p2 = scmp.eq.s32.totalorder %s10647_s23, 0  ;;  %p9317_p4 = scmp.lt.s32.totalorder %s10647_s23, 2 }
   0xb   : > { %s14677_s24 = smov (%p36_p0, %s35_s24), 0  ;;  %s10731_s27 = sand.u32 1, %s10635_s20  }
   0xc   : > { %p60_p3 = por %p59_p2, %p58_p1  ;;  %s47_s26 = ssub.s32 %s10643_s22, %s14677_s24 }
   0xd   : > { %p49_p5 = scmp.eq.s32.totalorder %s47_s26, 0  ;;  %s270_s30 = sand.u32 1, %s10647_s23  }
   0xe   : > { %p10733_p6 = pnand %p9317_p4, %p60_p3  ;;  %s8944_s6 = sshll.u32 %s10731_s27, 10 }
   0xf   : > { %s10738_s29 = scalar_select %p49_p5, %s10635_s20, %s51_s25  }
  0x10   : > { %s9285_s7 = sshll.u32 %s10643_s22, 14  ;;  %s274_s11 = scalar_lea.vmem [#allocation7], %s8944_s6 }
  0x11   : > { %s283_s10 = scalar_lea.hbm %s14623_s1, %s9285_s7  ;;  %s284_s12 = sshll.u32 %s274_s11, 4  ;;  %s285_s12 = int_to_ptr.vmem [resolvable:$true] %s284_s12 }
  0x12   : > { %s10746_s13 = scalar_lea.sflag [#allocation8], %s270_s30  ;;  %p10453_p7 = pneg %p10733_p6 }
  0x13   : > { %s10464_s14 = scalar_lea.vmem %s285_s12, 16384  ;;  %s10649_s15 = smov [#allocation7]  }
  0x14   : > { %p10465_p8 = scmp.ne.s32.totalorder %s285_s12, %s10464_s14  ;;  %s10469_s16 = sshll.u32 %s10649_s15, 4  ;;  %s10470_s16 = int_to_ptr.vmem [resolvable:$false] %s10469_s16 }
  0x15   : > { %s10471_s17 = scalar_lea.vmem %s10470_s16, 32768  ;;  %p10472_p11 = scmp.lt.s32.totalorder %s285_s12, %s10470_s16 }
  0x16   : > { %p10467_p9 = pnand %p10465_p8, %p10453_p7  ;;  %p10473_p12 = scmp.lt.s32.totalorder %s10471_s17, %s10464_s14 }
  0x18   : > { %p10468_p10 = pneg %p10467_p9  ;;  %p10474_p13 = por %p10473_p12, %p10472_p11 }
  0x1a   : > { %p10475_p0 = pnand %p10474_p13, %p10468_p10 }
  0x1c   : > { %10478 = shalt.err (!%p10475_p0)
}
  0x1d   : > { %s14628_s25 = smov 256   ;;  %s14630_s26 = smov 16  }
  0x1e   : > { %9312 = dma.hbm_to_vmem [thread:$0]  (!%p10733_p6), %s283_s10, 16384, %s285_s12, %s10746_s13, %s14628_s25, %s14628_s25, %s14630_s26  }
  0x1f   : > { %s10762_s9 = scalar_lea.hbm %s14624_s2, %s9285_s7  ;;  %s298_s11 = scalar_lea.vmem [#allocation9], %s8944_s6 }
  0x20   : > { %s308_s14 = sshll.u32 %s298_s11, 4  ;;  %s10767_s15 = sadd.s32 4294967295, %s10647_s23   ;;  %s10764_s14 = int_to_ptr.vmem [resolvable:$true] %s308_s14 }
  0x21   : > { %p64_p1 = scmp.ne.s32.totalorder %s10631_s19, %s10627_s18  ;;  %p65_p2 = scmp.eq.s32.totalorder %s10767_s15, 0 }
  0x22   : > { %p8937_p3 = scmp.ge.s32.totalorder %s10647_s23, 1  ;;  %p211_p4 = scmp.lt.s32.totalorder %s10647_s23, 3 }
  0x23   : > { %p10776_p5 = por %p65_p2, %p64_p1  ;;  %s10652_s6 = smov [#allocation10]  }
  0x24   : > { %p10780_p8 = pnand %p8937_p3, %p211_p4  ;;  %s235_s12 = sshll.u32 %s10652_s6, 4  ;;  %s236_s12 = int_to_ptr.vmem [resolvable:$true] %s235_s12 }
  0x25   : > { %s8941_s16 = sshll.u32 %s10731_s27, 9  ;;  %s9283_s18 = sshll.u32 %s10643_s22, 8 }
  0x26   : > { %p9302_p9 = pneg %p10780_p8  ;;  %s10797_s11 = scalar_lea.hbm %s14622_s0, %s9283_s18 }
  0x27   : > { %s250_s25 = scalar_lea.vmem [#allocation4], %s8941_s16  ;;  %s10490_s6 = scalar_lea.vmem %s236_s12, 64 }
  0x28   : > { %p10790_p10 = pnand %p9302_p9, %p65_p2  ;;  %s260_s26 = sshll.u32 %s250_s25, 4  ;;  %s10799_s26 = int_to_ptr.vmem [resolvable:$true] %s260_s26 }
  0x29   : > { %p10491_p12 = scmp.ne.s32.totalorder %s236_s12, %s10490_s6  ;;  %p10498_p1 = scmp.lt.s32.totalorder %s236_s12, %s236_s12 }
  0x2a   : > { %p10481_p11 = pneg %p10790_p10  ;;  %p10499_p3 = scmp.lt.s32.totalorder %s10490_s6, %s10490_s6 }
  0x2c   : > { %p10493_p13 = pnand %p10491_p12, %p10481_p11  ;;  %p10500_p4 = por %p10499_p3, %p10498_p1 }
  0x2e   : > { %p10494_p0 = pneg %p10493_p13 }
  0x30   : > { %p10501_p9 = pnand %p10500_p4, %p10494_p0 }
  0x32   : > { %10504 = shalt.err (!%p10501_p9)
}
  0x33   : > { %9305 = dma.hbm_to_vmem [thread:$0]  (!%p10790_p10), %s14626_s4, 64, %s236_s12, [#allocation11]  }
  0x34   : > { %s247_s25 = scalar_lea.sflag [#allocation5], %s10731_s27  ;;  %s10518_s16 = scalar_lea.vmem %s10799_s26, 8192 }
  0x35   : > { %p10519_p11 = scmp.ne.s32.totalorder %s10799_s26, %s10518_s16  ;;  %s10653_s8 = smov [#allocation4]  }
  0x36   : > { %s10523_s6 = sshll.u32 %s10653_s8, 4  ;;  %s10524_s6 = int_to_ptr.vmem [resolvable:$false] %s10523_s6 }
  0x37   : > { %p10521_p12 = pnand %p10519_p11, %p10453_p7  ;;  %s10525_s17 = scalar_lea.vmem %s10524_s6, 16384 }
  0x38   : > { %p10526_p0 = scmp.lt.s32.totalorder %s10799_s26, %s10524_s6  ;;  %p10527_p1 = scmp.lt.s32.totalorder %s10525_s17, %s10518_s16 }
  0x39   : > { %p10522_p13 = pneg %p10521_p12 }
  0x3a   : > { %p10528_p3 = por %p10527_p1, %p10526_p0 }
  0x3c   : > { %p10529_p4 = pnand %p10528_p3, %p10522_p13 }
  0x3e   : > { %10532 = shalt.err (!%p10529_p4)
}
  0x3f   : > { %s10654_s30 = smov 512   ;;  %s14647_s12 = smov 16  }
  0x40   : > { %s14648_s27 = smov 256   ;;  %s10546_s18 = scalar_lea.vmem %s10764_s14, 16384 }
  0x41   : > { %9309 = dma.hbm_to_vmem [thread:$0]  (!%p10733_p6), %s10797_s11, 8192, %s10799_s26, %s247_s25, %s10654_s30, %s14648_s27, %s14647_s12  }
  0x42   : > { %p10547_p10 = scmp.ne.s32.totalorder %s10764_s14, %s10546_s18  ;;  %s10655_s16 = smov [#allocation9]  }
  0x43   : > { %s10551_s8 = sshll.u32 %s10655_s16, 4  ;;  %s10552_s8 = int_to_ptr.vmem [resolvable:$false] %s10551_s8 }
  0x44   : > { %p10549_p9 = pnand %p10547_p10, %p10453_p7  ;;  %s10553_s6 = scalar_lea.vmem %s10552_s8, 32768 }
  0x45   : > { %p10554_p12 = scmp.lt.s32.totalorder %s10764_s14, %s10552_s8  ;;  %p10555_p13 = scmp.lt.s32.totalorder %s10553_s6, %s10546_s18 }
  0x46   : > { %p10550_p11 = pneg %p10549_p9 }
  0x47   : > { %p10556_p0 = por %p10555_p13, %p10554_p12 }
  0x49   : > { %p10557_p1 = pnand %p10556_p0, %p10550_p11 }
  0x4b   : > { %10560 = shalt.err (!%p10557_p1)
}
  0x4c   : > { %9315 = dma.hbm_to_vmem [thread:$0]  (!%p10733_p6), %s10762_s9, 16384, %s10764_s14, %s10746_s13, %s14648_s27, %s14648_s27, %s14647_s12  }
  0x4d   : > { %320 = sbr.rel (%p10780_p8) target bundleno = 1913 (0x779), region = 40 }
  0x52   : > { %s322_s26 = sand.u32 1, %s10631_s19  }
  0x53   : > { %s8953_s11 = sshll.u32 %s322_s26, 9  ;;  %s323_s25 = scalar_lea.sflag [#allocation5], %s322_s26 }
  0x54   : > { %s10838_s17 = scalar_lea.vmem [#allocation4], %s8953_s11 }
  0x55   : > { %10610 = dma.done.wait (%p10776_p5), %s323_s25, 8192  }
  0x56   : > { %10612 = vsyncadd (%p10776_p5), %s323_s25, 4294959104  ;;  %s331_s28 = sand.u32 1, %s10767_s15   ;;  %s8954_s30 = sshll.u32 %s322_s26, 10 }
  0x57   : > { %s332_s13 = scalar_lea.sflag [#allocation8], %s331_s28  ;;  %s10845_s9 = scalar_lea.vmem [#allocation7], %s8954_s30 }
  0x58   : > { %10614 = dma.done.wait (%p10776_p5), %s332_s13, 32768  }
  0x59   : > { %10616 = vsyncadd (%p10776_p5), %s332_s13, 4294934528  ;;  %s10851_s14 = scalar_lea.vmem [#allocation9], %s8954_s30 }
  0x5a   : > { %10618 = dma.done.wait (%p65_p2), [#allocation11], 64  }
  0x5b   : > { %10620 = vsyncadd (%p65_p2), [#allocation11], 4294967232  ;;  %p8957_p6 = scmp.ne.s32.totalorder %s10639_s21, 0 }
  0x5d   : > { %401 = sbr.rel (%p8957_p6) target bundleno = 234 (0xea), region = 60 }
  0x62   : > { %v404_v0 = vlaneseq  ;;  %v402_v2 = vld [vmem:[%s14625_s3] sm:$0xf] }
  0x63   : > { %v552_v7 = vld [vmem:[#allocation10] sm:$0xf] }
  0x64   : > { %v405_v1 = vshrl.u32 %v404_v0, 7 }
  0x66   : > { %v406_v3 = vsub.s32 0, %v405_v1  ;;  %v410_v4 = vsub.s32 1, %v405_v1  ;;  %v414_v5 = vsub.s32 2, %v405_v1  ;;  %v418_v6 = vsub.s32 3, %v405_v1 }
  0x68   : > { %v407_v8 = vrot.slane %v402_v2, %v406_v3  ;;  %v10861_v9 = vrot.slane %v402_v2, %v410_v4  ;;  %v10863_v10 = vrot.slane %v402_v2, %v414_v5  ;;  %v10865_v11 = vrot.slane %v402_v2, %v418_v6 }
  0x69   : > { %v10867_v12 = vrot.slane %v552_v7, %v406_v3  ;;  %v10869_v13 = vrot.slane %v552_v7, %v410_v4  ;;  %v10871_v14 = vrot.slane %v552_v7, %v414_v5  ;;  %v10873_v15 = vrot.slane %v552_v7, %v418_v6 }
  0x6a   : > { %424 = vst [vmem:[#allocation2 + $0x2b0] sm:$0xff] %v407_v8  ;;  %428 = vst [vmem:[#allocation2 + $0x50] sm:$0xff] %v407_v8 }
  0x6b   : > { %432 = vst [vmem:[#allocation2 + $0x380] sm:$0xff] %v407_v8  ;;  %436 = vst [vmem:[#allocation2 + $0x320] sm:$0xff] %v407_v8 }
  0x6c   : > { %440 = vst [vmem:[#allocation2 + $0x2e0] sm:$0xff] %v407_v8  ;;  %444 = vst [vmem:[#allocation2 + $0x80] sm:$0xff] %v407_v8 }
  0x6d   : > { %448 = vst [vmem:[#allocation2 + $0x3e8] sm:$0xff] %v407_v8  ;;  %452 = vst [vmem:[#allocation2 + $0x138] sm:$0xff] %v407_v8 }
  0x6e   : > { %456 = vst [vmem:[#allocation2 + $0x100] sm:$0xff] %v407_v8  ;;  %460 = vst [vmem:[#allocation2 + $0x218] sm:$0xff] %v407_v8 }
  0x6f   : > { %464 = vst [vmem:[#allocation2 + $0x2a0] sm:$0xff] %v407_v8  ;;  %468 = vst [vmem:[#allocation2 + $0xb0] sm:$0xff] %v407_v8 }
  0x70   : > { %472 = vst [vmem:[#allocation2 + $0x230] sm:$0xff] %v407_v8  ;;  %476 = vst [vmem:[#allocation2 + $0x208] sm:$0xff] %v407_v8 }
  0x71   : > { %480 = vst [vmem:[#allocation2 + $0x358] sm:$0xff] %v407_v8  ;;  %484 = vst [vmem:[#allocation2 + $0x1d8] sm:$0xff] %v407_v8 }
  0x72   : > { %488 = vst [vmem:[#allocation2 + $0x130] sm:$0xff] %v407_v8  ;;  %492 = vst [vmem:[#allocation2 + $0x70] sm:$0xff] %v407_v8 }
  0x73   : > { %496 = vst [vmem:[#allocation2 + $0x328] sm:$0xff] %v407_v8  ;;  %500 = vst [vmem:[#allocation2 + $0x248] sm:$0xff] %v407_v8 }
  0x74   : > { %504 = vst [vmem:[#allocation2 + $0x288] sm:$0xff] %v407_v8  ;;  %508 = vst [vmem:[#allocation2 + $0x2c8] sm:$0xff] %v407_v8 }
  0x75   : > { %512 = vst [vmem:[#allocation2 + $0x1b0] sm:$0xff] %v407_v8  ;;  %516 = vst [vmem:[#allocation2 + $0x58] sm:$0xff] %v407_v8 }
  0x76   : > { %520 = vst [vmem:[#allocation2 + $0x1f8] sm:$0xff] %v407_v8  ;;  %524 = vst [vmem:[#allocation2 + $0x1a0] sm:$0xff] %v407_v8 }
  0x77   : > { %528 = vst [vmem:[#allocation2 + $0xf0] sm:$0xff] %v407_v8  ;;  %532 = vst [vmem:[#allocation2 + $0x250] sm:$0xff] %v407_v8 }
  0x78   : > { %536 = vst [vmem:[#allocation2 + $0x78] sm:$0xff] %v407_v8  ;;  %540 = vst [vmem:[#allocation2 + $0x278] sm:$0xff] %v407_v8 }
  0x79   : > { %544 = vst [vmem:[#allocation2 + $0x148] sm:$0xff] %v407_v8  ;;  %548 = vst [vmem:[#allocation2 + $0x298] sm:$0xff] %v407_v8 }
  0x7a   : > { %425 = vst [vmem:[#allocation2 + $0x3b0] sm:$0xff] %v10861_v9  ;;  %429 = vst [vmem:[#allocation2 + $0x368] sm:$0xff] %v10861_v9 }
  0x7b   : > { %433 = vst [vmem:[#allocation2 + $0x110] sm:$0xff] %v10861_v9  ;;  %437 = vst [vmem:[#allocation2 + $0x150] sm:$0xff] %v10861_v9 }
  0x7c   : > { %441 = vst [vmem:[#allocation2 + $0x388] sm:$0xff] %v10861_v9  ;;  %445 = vst [vmem:[#allocation2 + $0x1a8] sm:$0xff] %v10861_v9 }
  0x7d   : > { %449 = vst [vmem:[#allocation2 + $0x2f8] sm:$0xff] %v10861_v9  ;;  %453 = vst [vmem:[#allocation2 + $0xc0] sm:$0xff] %v10861_v9 }
  0x7e   : > { %457 = vst [vmem:[#allocation2 + $0x3c0] sm:$0xff] %v10861_v9  ;;  %461 = vst [vmem:[#allocation2 + $0x3f8] sm:$0xff] %v10861_v9 }
  0x7f   : > { %465 = vst [vmem:[#allocation2 + $0x3f0] sm:$0xff] %v10861_v9  ;;  %469 = vst [vmem:[#allocation2 + $0x1e0] sm:$0xff] %v10861_v9 }
  0x80   : > { %473 = vst [vmem:[#allocation2 + $0x240] sm:$0xff] %v10861_v9  ;;  %477 = vst [vmem:[#allocation2 + $0xd0] sm:$0xff] %v10861_v9 }
  0x81   : > { %481 = vst [vmem:[#allocation2 + $0x268] sm:$0xff] %v10861_v9  ;;  %485 = vst [vmem:[#allocation2 + $0x30] sm:$0xff] %v10861_v9 }
  0x82   : > { %489 = vst [vmem:[#allocation2 + $0x200] sm:$0xff] %v10861_v9  ;;  %493 = vst [vmem:[#allocation2 + $0x300] sm:$0xff] %v10861_v9 }
  0x83   : > { %497 = vst [vmem:[#allocation2 + $0x260] sm:$0xff] %v10861_v9  ;;  %501 = vst [vmem:[#allocation2 + $0x40] sm:$0xff] %v10861_v9 }
  0x84   : > { %505 = vst [vmem:[#allocation2 + $0x3a8] sm:$0xff] %v10861_v9  ;;  %509 = vst [vmem:[#allocation2 + $0x210] sm:$0xff] %v10861_v9 }
  0x85   : > { %513 = vst [vmem:[#allocation2 + $0x1c8] sm:$0xff] %v10861_v9  ;;  %517 = vst [vmem:[#allocation2 + $0x120] sm:$0xff] %v10861_v9 }
  0x86   : > { %521 = vst [vmem:[#allocation2 + $0x238] sm:$0xff] %v10861_v9  ;;  %525 = vst [vmem:[#allocation2 + $0xa8] sm:$0xff] %v10861_v9 }
  0x87   : > { %529 = vst [vmem:[#allocation2 + $0x180] sm:$0xff] %v10861_v9  ;;  %533 = vst [vmem:[#allocation2 + $0x378] sm:$0xff] %v10861_v9 }
  0x88   : > { %537 = vst [vmem:[#allocation2 + $0x308] sm:$0xff] %v10861_v9  ;;  %541 = vst [vmem:[#allocation2 + $0x360] sm:$0xff] %v10861_v9 }
  0x89   : > { %545 = vst [vmem:[#allocation2 + $0xf8] sm:$0xff] %v10861_v9  ;;  %549 = vst [vmem:[#allocation2 + $0x270] sm:$0xff] %v10861_v9 }
  0x8a   : > { %426 = vst [vmem:[#allocation2 + $0xd8] sm:$0xff] %v10863_v10  ;;  %430 = vst [vmem:[#allocation2 + $0x330] sm:$0xff] %v10863_v10 }
  0x8b   : > { %434 = vst [vmem:[#allocation2 + $0x118] sm:$0xff] %v10863_v10  ;;  %438 = vst [vmem:[#allocation2 + $0x108] sm:$0xff] %v10863_v10 }
  0x8c   : > { %442 = vst [vmem:[#allocation2 + $0x338] sm:$0xff] %v10863_v10  ;;  %446 = vst [vmem:[#allocation2 + $0x1b8] sm:$0xff] %v10863_v10 }
  0x8d   : > { %450 = vst [vmem:[#allocation2 + $0x290] sm:$0xff] %v10863_v10  ;;  %454 = vst [vmem:[#allocation2 + $0x1c0] sm:$0xff] %v10863_v10 }
  0x8e   : > { %458 = vst [vmem:[#allocation2 + $0x158] sm:$0xff] %v10863_v10  ;;  %462 = vst [vmem:[#allocation2 + $0x8] sm:$0xff] %v10863_v10 }
  0x8f   : > { %466 = vst [vmem:[#allocation2 + $0xa0] sm:$0xff] %v10863_v10  ;;  %470 = vst [vmem:[#allocation2 + $0x1f0] sm:$0xff] %v10863_v10 }
  0x90   : > { %474 = vst [vmem:[#allocation2 + $0x90] sm:$0xff] %v10863_v10  ;;  %478 = vst [vmem:[#allocation2 + $0x88] sm:$0xff] %v10863_v10 }
  0x91   : > { %482 = vst [vmem:[#allocation2 + $0x350] sm:$0xff] %v10863_v10  ;;  %486 = vst [vmem:[#allocation2 + $0x140] sm:$0xff] %v10863_v10 }
  0x92   : > { %490 = vst [vmem:[#allocation2 + $0x318] sm:$0xff] %v10863_v10  ;;  %494 = vst [vmem:[#allocation2 + $0xe0] sm:$0xff] %v10863_v10 }
  0x93   : > { %498 = vst [vmem:[#allocation2 + $0x3b8] sm:$0xff] %v10863_v10  ;;  %502 = vst [vmem:[#allocation2 + $0x20] sm:$0xff] %v10863_v10 }
  0x94   : > { %506 = vst [vmem:[#allocation2 + $0x3c8] sm:$0xff] %v10863_v10  ;;  %510 = vst [vmem:[#allocation2 + $0x3d8] sm:$0xff] %v10863_v10 }
  0x95   : > { %514 = vst [vmem:[#allocation2 + $0x2d0] sm:$0xff] %v10863_v10  ;;  %518 = vst [vmem:[#allocation2 + $0x198] sm:$0xff] %v10863_v10 }
  0x96   : > { %522 = vst [vmem:[#allocation2 + $0x398] sm:$0xff] %v10863_v10  ;;  %526 = vst [vmem:[#allocation2 + $0x258] sm:$0xff] %v10863_v10 }
  0x97   : > { %530 = vst [vmem:[#allocation2 + $0x170] sm:$0xff] %v10863_v10  ;;  %534 = vst [vmem:[#allocation2 + $0xb8] sm:$0xff] %v10863_v10 }
  0x98   : > { %538 = vst [vmem:[#allocation2 + $0x370] sm:$0xff] %v10863_v10  ;;  %542 = vst [vmem:[#allocation2 + $0x228] sm:$0xff] %v10863_v10 }
  0x99   : > { %546 = vst [vmem:[#allocation2 + $0x68] sm:$0xff] %v10863_v10  ;;  %550 = vst [vmem:[#allocation2 + $0x310] sm:$0xff] %v10863_v10 }
  0x9a   : > { %427 = vst [vmem:[#allocation2 + $0x18] sm:$0xff] %v10865_v11  ;;  %431 = vst [vmem:[#allocation2 + $0x48] sm:$0xff] %v10865_v11 }
  0x9b   : > { %435 = vst [vmem:[#allocation2 + $0x98] sm:$0xff] %v10865_v11  ;;  %439 = vst [vmem:[#allocation2 + $0x60] sm:$0xff] %v10865_v11 }
  0x9c   : > { %443 = vst [vmem:[#allocation2 + $0x340] sm:$0xff] %v10865_v11  ;;  %447 = vst [vmem:[#allocation2 + $0x168] sm:$0xff] %v10865_v11 }
  0x9d   : > { %451 = vst [vmem:[#allocation2 + $0x28] sm:$0xff] %v10865_v11  ;;  %455 = vst [vmem:[#allocation2 + $0x280] sm:$0xff] %v10865_v11 }
  0x9e   : > { %459 = vst [vmem:[#allocation2 + $0x3e0] sm:$0xff] %v10865_v11  ;;  %463 = vst [vmem:[#allocation2 + $0x128] sm:$0xff] %v10865_v11 }
  0x9f   : > { %467 = vst [vmem:[#allocation2 + $0x2c0] sm:$0xff] %v10865_v11  ;;  %471 = vst [vmem:[#allocation2 + $0x10] sm:$0xff] %v10865_v11 }
  0xa0   : > { %475 = vst [vmem:[#allocation2 + $0x3a0] sm:$0xff] %v10865_v11  ;;  %479 = vst [vmem:[#allocation2 + $0x2f0] sm:$0xff] %v10865_v11 }
  0xa1   : > { %483 = vst [vmem:[#allocation2 + $0x188] sm:$0xff] %v10865_v11  ;;  %487 = vst [vmem:[#allocation2 + $0x2a8] sm:$0xff] %v10865_v11 }
  0xa2   : > { %491 = vst [vmem:[#allocation2 + $0x220] sm:$0xff] %v10865_v11  ;;  %495 = vst [vmem:[#allocation2 + $0x178] sm:$0xff] %v10865_v11 }
  0xa3   : > { %499 = vst [vmem:[#allocation2 + $0x2b8] sm:$0xff] %v10865_v11  ;;  %503 = vst [vmem:[#allocation2 + $0xe8] sm:$0xff] %v10865_v11 }
  0xa4   : > { %507 = vst [vmem:[#allocation2 + $0x160] sm:$0xff] %v10865_v11  ;;  %511 = vst [vmem:[#allocation2 + $0x1e8] sm:$0xff] %v10865_v11 }
  0xa5   : > { %515 = vst [vmem:[#allocation2 + $0x1d0] sm:$0xff] %v10865_v11  ;;  %519 = vst [vmem:[#allocation2 + $0x2e8] sm:$0xff] %v10865_v11 }
  0xa6   : > { %523 = vst [vmem:[#allocation2 + $0x390] sm:$0xff] %v10865_v11  ;;  %527 = vst [vmem:[#allocation2 + $0x2d8] sm:$0xff] %v10865_v11 }
  0xa7   : > { %531 = vst [vmem:[#allocation2 + $0x3d0] sm:$0xff] %v10865_v11  ;;  %535 = vst [vmem:[#allocation2 + $0x38] sm:$0xff] %v10865_v11 }
  0xa8   : > { %539 = vst [vmem:[#allocation2 + $0xc8] sm:$0xff] %v10865_v11  ;;  %543 = vst [vmem:[#allocation2 + $0x348] sm:$0xff] %v10865_v11 }
  0xa9   : > { %547 = vst [vmem:[#allocation2] sm:$0xff] %v10865_v11  ;;  %551 = vst [vmem:[#allocation2 + $0x190] sm:$0xff] %v10865_v11 }
  0xaa   : > { %574 = vst [vmem:[#allocation3 + $0x2f8] sm:$0xff] %v10867_v12  ;;  %578 = vst [vmem:[#allocation3 + $0x8] sm:$0xff] %v10867_v12 }
  0xab   : > { %582 = vst [vmem:[#allocation3 + $0x208] sm:$0xff] %v10867_v12  ;;  %586 = vst [vmem:[#allocation3 + $0x338] sm:$0xff] %v10867_v12 }
  0xac   : > { %590 = vst [vmem:[#allocation3 + $0x388] sm:$0xff] %v10867_v12  ;;  %594 = vst [vmem:[#allocation3 + $0x148] sm:$0xff] %v10867_v12 }
  0xad   : > { %598 = vst [vmem:[#allocation3 + $0x358] sm:$0xff] %v10867_v12  ;;  %602 = vst [vmem:[#allocation3 + $0xb0] sm:$0xff] %v10867_v12 }
  0xae   : > { %606 = vst [vmem:[#allocation3 + $0x2f0] sm:$0xff] %v10867_v12  ;;  %610 = vst [vmem:[#allocation3 + $0x188] sm:$0xff] %v10867_v12 }
  0xaf   : > { %614 = vst [vmem:[#allocation3 + $0x190] sm:$0xff] %v10867_v12  ;;  %618 = vst [vmem:[#allocation3 + $0x1b8] sm:$0xff] %v10867_v12 }
  0xb0   : > { %622 = vst [vmem:[#allocation3 + $0x80] sm:$0xff] %v10867_v12  ;;  %626 = vst [vmem:[#allocation3 + $0x318] sm:$0xff] %v10867_v12 }
  0xb1   : > { %630 = vst [vmem:[#allocation3 + $0x2d8] sm:$0xff] %v10867_v12  ;;  %634 = vst [vmem:[#allocation3 + $0x3d0] sm:$0xff] %v10867_v12 }
  0xb2   : > { %638 = vst [vmem:[#allocation3 + $0x2a0] sm:$0xff] %v10867_v12  ;;  %642 = vst [vmem:[#allocation3 + $0x2b0] sm:$0xff] %v10867_v12 }
  0xb3   : > { %646 = vst [vmem:[#allocation3 + $0x2d0] sm:$0xff] %v10867_v12  ;;  %650 = vst [vmem:[#allocation3 + $0x90] sm:$0xff] %v10867_v12 }
  0xb4   : > { %654 = vst [vmem:[#allocation3 + $0x108] sm:$0xff] %v10867_v12  ;;  %658 = vst [vmem:[#allocation3 + $0x278] sm:$0xff] %v10867_v12 }
  0xb5   : > { %662 = vst [vmem:[#allocation3 + $0x38] sm:$0xff] %v10867_v12  ;;  %666 = vst [vmem:[#allocation3 + $0x398] sm:$0xff] %v10867_v12 }
  0xb6   : > { %670 = vst [vmem:[#allocation3 + $0x118] sm:$0xff] %v10867_v12  ;;  %674 = vst [vmem:[#allocation3 + $0x370] sm:$0xff] %v10867_v12 }
  0xb7   : > { %678 = vst [vmem:[#allocation3 + $0x390] sm:$0xff] %v10867_v12  ;;  %682 = vst [vmem:[#allocation3 + $0x40] sm:$0xff] %v10867_v12 }
  0xb8   : > { %686 = vst [vmem:[#allocation3 + $0x2a8] sm:$0xff] %v10867_v12  ;;  %690 = vst [vmem:[#allocation3 + $0xb8] sm:$0xff] %v10867_v12 }
  0xb9   : > { %694 = vst [vmem:[#allocation3 + $0x100] sm:$0xff] %v10867_v12  ;;  %698 = vst [vmem:[#allocation3 + $0x110] sm:$0xff] %v10867_v12 }
  0xba   : > { %575 = vst [vmem:[#allocation3 + $0x330] sm:$0xff] %v10869_v13  ;;  %579 = vst [vmem:[#allocation3 + $0x78] sm:$0xff] %v10869_v13 }
  0xbb   : > { %583 = vst [vmem:[#allocation3 + $0x140] sm:$0xff] %v10869_v13  ;;  %587 = vst [vmem:[#allocation3 + $0x280] sm:$0xff] %v10869_v13 }
  0xbc   : > { %591 = vst [vmem:[#allocation3 + $0x348] sm:$0xff] %v10869_v13  ;;  %595 = vst [vmem:[#allocation3 + $0x268] sm:$0xff] %v10869_v13 }
  0xbd   : > { %599 = vst [vmem:[#allocation3 + $0x120] sm:$0xff] %v10869_v13  ;;  %603 = vst [vmem:[#allocation3 + $0x368] sm:$0xff] %v10869_v13 }
  0xbe   : > { %607 = vst [vmem:[#allocation3 + $0xf0] sm:$0xff] %v10869_v13  ;;  %611 = vst [vmem:[#allocation3 + $0x1c0] sm:$0xff] %v10869_v13 }
  0xbf   : > { %615 = vst [vmem:[#allocation3 + $0x3b8] sm:$0xff] %v10869_v13  ;;  %619 = vst [vmem:[#allocation3 + $0x218] sm:$0xff] %v10869_v13 }
  0xc0   : > { %623 = vst [vmem:[#allocation3 + $0x68] sm:$0xff] %v10869_v13  ;;  %627 = vst [vmem:[#allocation3 + $0x1e8] sm:$0xff] %v10869_v13 }
  0xc1   : > { %631 = vst [vmem:[#allocation3 + $0x130] sm:$0xff] %v10869_v13  ;;  %635 = vst [vmem:[#allocation3 + $0x220] sm:$0xff] %v10869_v13 }
  0xc2   : > { %639 = vst [vmem:[#allocation3 + $0x378] sm:$0xff] %v10869_v13  ;;  %643 = vst [vmem:[#allocation3 + $0xe0] sm:$0xff] %v10869_v13 }
  0xc3   : > { %647 = vst [vmem:[#allocation3 + $0x1d8] sm:$0xff] %v10869_v13  ;;  %651 = vst [vmem:[#allocation3 + $0x3a0] sm:$0xff] %v10869_v13 }
  0xc4   : > { %655 = vst [vmem:[#allocation3 + $0x380] sm:$0xff] %v10869_v13  ;;  %659 = vst [vmem:[#allocation3 + $0x200] sm:$0xff] %v10869_v13 }
  0xc5   : > { %663 = vst [vmem:[#allocation3 + $0x350] sm:$0xff] %v10869_v13  ;;  %667 = vst [vmem:[#allocation3 + $0xc0] sm:$0xff] %v10869_v13 }
  0xc6   : > { %671 = vst [vmem:[#allocation3 + $0x240] sm:$0xff] %v10869_v13  ;;  %675 = vst [vmem:[#allocation3 + $0x28] sm:$0xff] %v10869_v13 }
  0xc7   : > { %679 = vst [vmem:[#allocation3 + $0x70] sm:$0xff] %v10869_v13  ;;  %683 = vst [vmem:[#allocation3 + $0x230] sm:$0xff] %v10869_v13 }
  0xc8   : > { %687 = vst [vmem:[#allocation3 + $0x1a0] sm:$0xff] %v10869_v13  ;;  %691 = vst [vmem:[#allocation3 + $0x1b0] sm:$0xff] %v10869_v13 }
  0xc9   : > { %695 = vst [vmem:[#allocation3 + $0xa0] sm:$0xff] %v10869_v13  ;;  %699 = vst [vmem:[#allocation3 + $0x2c0] sm:$0xff] %v10869_v13 }
  0xca   : > { %576 = vst [vmem:[#allocation3 + $0x228] sm:$0xff] %v10871_v14  ;;  %580 = vst [vmem:[#allocation3 + $0x10] sm:$0xff] %v10871_v14 }
  0xcb   : > { %584 = vst [vmem:[#allocation3 + $0x308] sm:$0xff] %v10871_v14  ;;  %588 = vst [vmem:[#allocation3 + $0x3f8] sm:$0xff] %v10871_v14 }
  0xcc   : > { %592 = vst [vmem:[#allocation3 + $0x310] sm:$0xff] %v10871_v14  ;;  %596 = vst [vmem:[#allocation3 + $0xd8] sm:$0xff] %v10871_v14 }
  0xcd   : > { %600 = vst [vmem:[#allocation3 + $0x60] sm:$0xff] %v10871_v14  ;;  %604 = vst [vmem:[#allocation3 + $0x320] sm:$0xff] %v10871_v14 }
  0xce   : > { %608 = vst [vmem:[#allocation3 + $0x2b8] sm:$0xff] %v10871_v14  ;;  %612 = vst [vmem:[#allocation3 + $0x290] sm:$0xff] %v10871_v14 }
  0xcf   : > { %616 = vst [vmem:[#allocation3 + $0x270] sm:$0xff] %v10871_v14  ;;  %620 = vst [vmem:[#allocation3 + $0x2e8] sm:$0xff] %v10871_v14 }
  0xd0   : > { %624 = vst [vmem:[#allocation3 + $0x30] sm:$0xff] %v10871_v14  ;;  %628 = vst [vmem:[#allocation3 + $0x210] sm:$0xff] %v10871_v14 }
  0xd1   : > { %632 = vst [vmem:[#allocation3 + $0x2e0] sm:$0xff] %v10871_v14  ;;  %636 = vst [vmem:[#allocation3 + $0x3e8] sm:$0xff] %v10871_v14 }
  0xd2   : > { %640 = vst [vmem:[#allocation3 + $0x260] sm:$0xff] %v10871_v14  ;;  %644 = vst [vmem:[#allocation3 + $0x88] sm:$0xff] %v10871_v14 }
  0xd3   : > { %648 = vst [vmem:[#allocation3 + $0x250] sm:$0xff] %v10871_v14  ;;  %652 = vst [vmem:[#allocation3 + $0x328] sm:$0xff] %v10871_v14 }
  0xd4   : > { %656 = vst [vmem:[#allocation3 + $0x138] sm:$0xff] %v10871_v14  ;;  %660 = vst [vmem:[#allocation3 + $0x150] sm:$0xff] %v10871_v14 }
  0xd5   : > { %664 = vst [vmem:[#allocation3 + $0x20] sm:$0xff] %v10871_v14  ;;  %668 = vst [vmem:[#allocation3 + $0x48] sm:$0xff] %v10871_v14 }
  0xd6   : > { %672 = vst [vmem:[#allocation3 + $0x1d0] sm:$0xff] %v10871_v14  ;;  %676 = vst [vmem:[#allocation3 + $0x3c0] sm:$0xff] %v10871_v14 }
  0xd7   : > { %680 = vst [vmem:[#allocation3 + $0x178] sm:$0xff] %v10871_v14  ;;  %684 = vst [vmem:[#allocation3 + $0x340] sm:$0xff] %v10871_v14 }
  0xd8   : > { %688 = vst [vmem:[#allocation3 + $0x3a8] sm:$0xff] %v10871_v14  ;;  %692 = vst [vmem:[#allocation3] sm:$0xff] %v10871_v14 }
  0xd9   : > { %696 = vst [vmem:[#allocation3 + $0x258] sm:$0xff] %v10871_v14  ;;  %700 = vst [vmem:[#allocation3 + $0x298] sm:$0xff] %v10871_v14 }
  0xda   : > { %577 = vst [vmem:[#allocation3 + $0xf8] sm:$0xff] %v10873_v15  ;;  %581 = vst [vmem:[#allocation3 + $0x98] sm:$0xff] %v10873_v15 }
  0xdb   : > { %585 = vst [vmem:[#allocation3 + $0x3e0] sm:$0xff] %v10873_v15  ;;  %589 = vst [vmem:[#allocation3 + $0x50] sm:$0xff] %v10873_v15 }
  0xdc   : > { %593 = vst [vmem:[#allocation3 + $0x238] sm:$0xff] %v10873_v15  ;;  %597 = vst [vmem:[#allocation3 + $0x1f0] sm:$0xff] %v10873_v15 }
  0xdd   : > { %601 = vst [vmem:[#allocation3 + $0x158] sm:$0xff] %v10873_v15  ;;  %605 = vst [vmem:[#allocation3 + $0x3c8] sm:$0xff] %v10873_v15 }
  0xde   : > { %609 = vst [vmem:[#allocation3 + $0x18] sm:$0xff] %v10873_v15  ;;  %613 = vst [vmem:[#allocation3 + $0x168] sm:$0xff] %v10873_v15 }
  0xdf   : > { %617 = vst [vmem:[#allocation3 + $0x170] sm:$0xff] %v10873_v15  ;;  %621 = vst [vmem:[#allocation3 + $0x288] sm:$0xff] %v10873_v15 }
  0xe0   : > { %625 = vst [vmem:[#allocation3 + $0x58] sm:$0xff] %v10873_v15  ;;  %629 = vst [vmem:[#allocation3 + $0x160] sm:$0xff] %v10873_v15 }
  0xe1   : > { %633 = vst [vmem:[#allocation3 + $0x3d8] sm:$0xff] %v10873_v15  ;;  %637 = vst [vmem:[#allocation3 + $0x198] sm:$0xff] %v10873_v15 }
  0xe2   : > { %641 = vst [vmem:[#allocation3 + $0x3f0] sm:$0xff] %v10873_v15  ;;  %645 = vst [vmem:[#allocation3 + $0xd0] sm:$0xff] %v10873_v15 }
  0xe3   : > { %649 = vst [vmem:[#allocation3 + $0x300] sm:$0xff] %v10873_v15  ;;  %653 = vst [vmem:[#allocation3 + $0x128] sm:$0xff] %v10873_v15 }
  0xe4   : > { %657 = vst [vmem:[#allocation3 + $0x1f8] sm:$0xff] %v10873_v15  ;;  %661 = vst [vmem:[#allocation3 + $0x1c8] sm:$0xff] %v10873_v15 }
  0xe5   : > { %665 = vst [vmem:[#allocation3 + $0xa8] sm:$0xff] %v10873_v15  ;;  %669 = vst [vmem:[#allocation3 + $0x360] sm:$0xff] %v10873_v15 }
  0xe6   : > { %673 = vst [vmem:[#allocation3 + $0x248] sm:$0xff] %v10873_v15  ;;  %677 = vst [vmem:[#allocation3 + $0x3b0] sm:$0xff] %v10873_v15 }
  0xe7   : > { %681 = vst [vmem:[#allocation3 + $0x2c8] sm:$0xff] %v10873_v15  ;;  %685 = vst [vmem:[#allocation3 + $0x180] sm:$0xff] %v10873_v15 }
  0xe8   : > { %689 = vst [vmem:[#allocation3 + $0xe8] sm:$0xff] %v10873_v15  ;;  %693 = vst [vmem:[#allocation3 + $0x1e0] sm:$0xff] %v10873_v15 }
  0xe9   : > { %697 = vst [vmem:[#allocation3 + $0x1a8] sm:$0xff] %v10873_v15  ;;  %701 = vst [vmem:[#allocation3 + $0xc8] sm:$0xff] %v10873_v15 }
  0xea PF: > { %v9377_v16 = vld [vmem:[%s10845_s9 + $0xe4] ss:$16 sps:$4 sm:$0xff]   ;;  %v9381_v18 = vld [vmem:[%s10845_s9 + $0xe0] ss:$16 sps:$4 sm:$0xff]   ;;  %v11150_v2 = vld [vmem:[%s10838_s17 + $0xc] ss:$16 sps:$4 sm:$0xff]  }
  0xeb   : > { %v9379_v17 = vld [vmem:[%s10845_s9 + $0x2e4] ss:$16 sps:$4 sm:$0xff]   ;;  %1982 = vmatprep.subr.bf16.mxu0 %v9377_v16  ;;  %v9382_v19 = vld [vmem:[%s10845_s9 + $0x2e0] ss:$16 sps:$4 sm:$0xff]   ;;  %2207 = vmatprep.mubr.bf16.mxu1 %v11150_v2  ;;  %p9278_p7 = scmp.ne.s32.totalorder %s10639_s21, 1 }
  0xec   : > { %2175 = vmatprep.subr.bf16.mxu1 %v9379_v17  ;;  %v9383_v20 = vld [vmem:[%s10845_s9 + $0xc4] ss:$16 sps:$4 sm:$0xff]   ;;  %1983 = vmatpush1.bf16.msra.mxu0 %v9381_v18  ;;  %v9387_v22 = vld [vmem:[%s10845_s9 + $0xc0] ss:$16 sps:$4 sm:$0xff]   ;;  %v9481_v18 = vld [vmem:[%s10845_s9 + $0xec] ss:$16 sps:$4 sm:$0xff]  }
  0xed   : > { %2176 = vmatpush1.bf16.msra.mxu1 %v9382_v19  ;;  %v9385_v21 = vld [vmem:[%s10845_s9 + $0x2c4] ss:$16 sps:$4 sm:$0xff]   ;;  %1984 = vmatprep.subr.bf16.mxu0 %v9383_v20  ;;  %v9388_v23 = vld [vmem:[%s10845_s9 + $0x2c0] ss:$16 sps:$4 sm:$0xff]   ;;  %v9484_v19 = vld [vmem:[%s10845_s9 + $0x2ec] ss:$16 sps:$4 sm:$0xff]  }
  0xee   : > { %2177 = vmatprep.subr.bf16.mxu1 %v9385_v21  ;;  %v9389_v24 = vld [vmem:[%s10845_s9 + $0xa4] ss:$16 sps:$4 sm:$0xff]   ;;  %v9393_v26 = vld [vmem:[%s10845_s9 + $0xa0] ss:$16 sps:$4 sm:$0xff]   ;;  %v11174_v21 = vld [vmem:[%s10838_s17 + $0x8] ss:$16 sps:$4 sm:$0xff]  }
  0xef   : > { %v9391_v25 = vld [vmem:[%s10845_s9 + $0x2a4] ss:$16 sps:$4 sm:$0xff]   ;;  %v9394_v27 = vld [vmem:[%s10845_s9 + $0x2a0] ss:$16 sps:$4 sm:$0xff]  }
  0xf0   : > { %1985 = vmatpush1.bf16.msra.mxu0 %v9387_v22  ;;  %v9395_v28 = vld [vmem:[%s10845_s9 + $0x84] ss:$16 sps:$4 sm:$0xff]   ;;  %v9399_v30 = vld [vmem:[%s10845_s9 + $0x80] ss:$16 sps:$4 sm:$0xff]   ;;  %v9479_v22 = vld [vmem:[%s10845_s9 + $0xe8] ss:$16 sps:$4 sm:$0xff]  }
  0xf1   : > { %2178 = vmatpush1.bf16.msra.mxu1 %v9388_v23  ;;  %1986 = vmatprep.subr.bf16.mxu0 %v9389_v24  ;;  %v9397_v29 = vld [vmem:[%s10845_s9 + $0x284] ss:$16 sps:$4 sm:$0xff]   ;;  %v9400_v31 = vld [vmem:[%s10845_s9 + $0x280] ss:$16 sps:$4 sm:$0xff]   ;;  %v9482_v23 = vld [vmem:[%s10845_s9 + $0x2e8] ss:$16 sps:$4 sm:$0xff]  }
  0xf2   : > { %2179 = vmatprep.subr.bf16.mxu1 %v9391_v25  ;;  %v9401_v32 = vld [vmem:[%s10845_s9 + $0x64] ss:$16 sps:$4 sm:$0xff]   ;;  %v9405_v34 = vld [vmem:[%s10845_s9 + $0x60] ss:$16 sps:$4 sm:$0xff]   ;;  %v11182_v25 = vld [vmem:[%s10838_s17 + $0x2c] ss:$16 sps:$4 sm:$0xff]  }
  0xf3   : > { %v9403_v33 = vld [vmem:[%s10845_s9 + $0x264] ss:$16 sps:$4 sm:$0xff]   ;;  %v9406_v35 = vld [vmem:[%s10845_s9 + $0x260] ss:$16 sps:$4 sm:$0xff]  }
  0xf4   : > { %1987 = vmatpush1.bf16.msra.mxu0 %v9393_v26  ;;  %v9407_v36 = vld [vmem:[%s10845_s9 + $0x44] ss:$16 sps:$4 sm:$0xff]   ;;  %v9411_v38 = vld [vmem:[%s10845_s9 + $0x40] ss:$16 sps:$4 sm:$0xff]   ;;  %v9493_v26 = vld [vmem:[%s10845_s9 + $0xcc] ss:$16 sps:$4 sm:$0xff]  }
  0xf5   : > { %2180 = vmatpush1.bf16.msra.mxu1 %v9394_v27  ;;  %1988 = vmatprep.subr.bf16.mxu0 %v9395_v28  ;;  %v9409_v37 = vld [vmem:[%s10845_s9 + $0x244] ss:$16 sps:$4 sm:$0xff]   ;;  %v9412_v39 = vld [vmem:[%s10845_s9 + $0x240] ss:$16 sps:$4 sm:$0xff]   ;;  %v9496_v27 = vld [vmem:[%s10845_s9 + $0x2cc] ss:$16 sps:$4 sm:$0xff]  }
  0xf6   : > { %2181 = vmatprep.subr.bf16.mxu1 %v9397_v29  ;;  %v9413_v40 = vld [vmem:[%s10845_s9 + $0x24] ss:$16 sps:$4 sm:$0xff]   ;;  %v9417_v42 = vld [vmem:[%s10845_s9 + $0x20] ss:$16 sps:$4 sm:$0xff]   ;;  %v9491_v28 = vld [vmem:[%s10845_s9 + $0xc8] ss:$16 sps:$4 sm:$0xff]  }
  0xf7   : > { %v9415_v41 = vld [vmem:[%s10845_s9 + $0x224] ss:$16 sps:$4 sm:$0xff]   ;;  %v9418_v43 = vld [vmem:[%s10845_s9 + $0x220] ss:$16 sps:$4 sm:$0xff]   ;;  %v9494_v29 = vld [vmem:[%s10845_s9 + $0x2c8] ss:$16 sps:$4 sm:$0xff]  }
  0xf8   : > { %1989 = vmatpush1.bf16.msra.mxu0 %v9399_v30  ;;  %v9419_v44 = vld [vmem:[%s10845_s9 + $0x4] ss:$16 sps:$4 sm:$0xff]   ;;  %v9423_v46 = vld [vmem:[%s10845_s9] ss:$16 sps:$4 sm:$0xff]   ;;  %v9505_v30 = vld [vmem:[%s10845_s9 + $0xac] ss:$16 sps:$4 sm:$0xff]  }
  0xf9   : > { %2182 = vmatpush1.bf16.msra.mxu1 %v9400_v31  ;;  %1990 = vmatprep.subr.bf16.mxu0 %v9401_v32  ;;  %v9421_v45 = vld [vmem:[%s10845_s9 + $0x204] ss:$16 sps:$4 sm:$0xff]   ;;  %v9424_v47 = vld [vmem:[%s10845_s9 + $0x200] ss:$16 sps:$4 sm:$0xff]   ;;  %v9508_v31 = vld [vmem:[%s10845_s9 + $0x2ac] ss:$16 sps:$4 sm:$0xff]  }
  0xfa   : > { %2183 = vmatprep.subr.bf16.mxu1 %v9403_v33  ;;  %v9425_v48 = vld [vmem:[%s10845_s9 + $0x1e4] ss:$16 sps:$4 sm:$0xff]   ;;  %v9429_v50 = vld [vmem:[%s10845_s9 + $0x1e0] ss:$16 sps:$4 sm:$0xff]   ;;  %v11198_v33 = vld [vmem:[%s10838_s17 + $0x28] ss:$16 sps:$4 sm:$0xff]  }
  0xfb   : > { %v9427_v49 = vld [vmem:[%s10845_s9 + $0x3e4] ss:$16 sps:$4 sm:$0xff]   ;;  %v9430_v51 = vld [vmem:[%s10845_s9 + $0x3e0] ss:$16 sps:$4 sm:$0xff]  }
  0xfc   : > { %1991 = vmatpush1.bf16.msra.mxu0 %v9405_v34  ;;  %v9431_v52 = vld [vmem:[%s10845_s9 + $0x1c4] ss:$16 sps:$4 sm:$0xff]   ;;  %v9435_v54 = vld [vmem:[%s10845_s9 + $0x1c0] ss:$16 sps:$4 sm:$0xff]  }
  0xfd   : > { %2184 = vmatpush1.bf16.msra.mxu1 %v9406_v35  ;;  %1992 = vmatprep.subr.bf16.mxu0 %v9407_v36  ;;  %v9433_v53 = vld [vmem:[%s10845_s9 + $0x3c4] ss:$16 sps:$4 sm:$0xff]   ;;  %v9436_v55 = vld [vmem:[%s10845_s9 + $0x3c0] ss:$16 sps:$4 sm:$0xff]   ;;  %v11204_v35 = vld [vmem:[%s10838_s17 + $0x4c] ss:$16 sps:$4 sm:$0xff]  }
  0xfe   : > { %2185 = vmatprep.subr.bf16.mxu1 %v9409_v37  ;;  %v9437_v56 = vld [vmem:[%s10845_s9 + $0x1a4] ss:$16 sps:$4 sm:$0xff]   ;;  %v9441_v58 = vld [vmem:[%s10845_s9 + $0x1a0] ss:$16 sps:$4 sm:$0xff]   ;;  %v9503_v36 = vld [vmem:[%s10845_s9 + $0xa8] ss:$16 sps:$4 sm:$0xff]  }
  0xff   : > { %v9439_v57 = vld [vmem:[%s10845_s9 + $0x3a4] ss:$16 sps:$4 sm:$0xff]   ;;  %v9442_v59 = vld [vmem:[%s10845_s9 + $0x3a0] ss:$16 sps:$4 sm:$0xff]   ;;  %v9506_v37 = vld [vmem:[%s10845_s9 + $0x2a8] ss:$16 sps:$4 sm:$0xff]  }
 0x100   : > { %1993 = vmatpush1.bf16.msra.mxu0 %v9411_v38  ;;  %v9443_v60 = vld [vmem:[%s10845_s9 + $0x184] ss:$16 sps:$4 sm:$0xff]   ;;  %v9447_v62 = vld [vmem:[%s10845_s9 + $0x180] ss:$16 sps:$4 sm:$0xff]   ;;  %v9517_v38 = vld [vmem:[%s10845_s9 + $0x8c] ss:$16 sps:$4 sm:$0xff]  }
 0x101   : > { %2186 = vmatpush1.bf16.msra.mxu1 %v9412_v39  ;;  %1994 = vmatprep.subr.bf16.mxu0 %v9413_v40  ;;  %v9445_v61 = vld [vmem:[%s10845_s9 + $0x384] ss:$16 sps:$4 sm:$0xff]   ;;  %v9448_v63 = vld [vmem:[%s10845_s9 + $0x380] ss:$16 sps:$4 sm:$0xff]   ;;  %v9520_v39 = vld [vmem:[%s10845_s9 + $0x28c] ss:$16 sps:$4 sm:$0xff]  }
 0x102   : > { %2187 = vmatprep.subr.bf16.mxu1 %v9415_v41  ;;  %v9473_v0 = vld [vmem:[%s10838_s17 + $0x4] ss:$16 sps:$4 sm:$0xff]   ;;  %v9453_v4 = vld [vmem:[%s10845_s9 + $0x160] ss:$16 sps:$4 sm:$0xff]   ;;  %v9515_v40 = vld [vmem:[%s10845_s9 + $0x88] ss:$16 sps:$4 sm:$0xff]  }
 0x103   : > { %v9449_v1 = vld [vmem:[%s10845_s9 + $0x164] ss:$16 sps:$4 sm:$0xff]   ;;  %2014 = vmatprep.mubr.bf16.mxu0 %v9473_v0  ;;  %v9454_v5 = vld [vmem:[%s10845_s9 + $0x360] ss:$16 sps:$4 sm:$0xff]   ;;  %v9563_v0 = vld [vmem:[%s10845_s9 + $0x8] ss:$16 sps:$4 sm:$0xff]  }
 0x104   : > { %1995 = vmatpush1.bf16.msra.mxu0 %v9417_v42  ;;  %v9451_v3 = vld [vmem:[%s10845_s9 + $0x364] ss:$16 sps:$4 sm:$0xff]   ;;  %v9459_v8 = vld [vmem:[%s10845_s9 + $0x140] ss:$16 sps:$4 sm:$0xff]   ;;  %v11219_v42 = vld [vmem:[%s10838_s17 + $0x48] ss:$16 sps:$4 sm:$0xff]  }
 0x105   : > { %2188 = vmatpush1.bf16.msra.mxu1 %v9418_v43  ;;  %1996 = vmatprep.subr.bf16.mxu0 %v9419_v44  ;;  %v9455_v6 = vld [vmem:[%s10845_s9 + $0x144] ss:$16 sps:$4 sm:$0xff]   ;;  %v9460_v9 = vld [vmem:[%s10845_s9 + $0x340] ss:$16 sps:$4 sm:$0xff]   ;;  %v9518_v43 = vld [vmem:[%s10845_s9 + $0x288] ss:$16 sps:$4 sm:$0xff]  }
 0x106   : > { %2189 = vmatprep.subr.bf16.mxu1 %v9421_v45  ;;  %v9457_v7 = vld [vmem:[%s10845_s9 + $0x344] ss:$16 sps:$4 sm:$0xff]   ;;  %v9465_v12 = vld [vmem:[%s10845_s9 + $0x120] ss:$16 sps:$4 sm:$0xff]   ;;  %v9529_v44 = vld [vmem:[%s10845_s9 + $0x6c] ss:$16 sps:$4 sm:$0xff]  }
 0x107   : > { %v9461_v10 = vld [vmem:[%s10845_s9 + $0x124] ss:$16 sps:$4 sm:$0xff]   ;;  %v9466_v13 = vld [vmem:[%s10845_s9 + $0x320] ss:$16 sps:$4 sm:$0xff]   ;;  %v9532_v45 = vld [vmem:[%s10845_s9 + $0x26c] ss:$16 sps:$4 sm:$0xff]  }
 0x108   : > { %1997 = vmatpush1.bf16.msra.mxu0 %v9423_v46  ;;  %v9463_v11 = vld [vmem:[%s10845_s9 + $0x324] ss:$16 sps:$4 sm:$0xff]   ;;  %v9471_v16 = vld [vmem:[%s10845_s9 + $0x100] ss:$16 sps:$4 sm:$0xff]  }
 0x109   : > { %2190 = vmatpush1.bf16.msra.mxu1 %v9424_v47  ;;  %1998 = vmatprep.subr.bf16.mxu0 %v9425_v48  ;;  %v9467_v14 = vld [vmem:[%s10845_s9 + $0x104] ss:$16 sps:$4 sm:$0xff]   ;;  %v9472_v17 = vld [vmem:[%s10845_s9 + $0x300] ss:$16 sps:$4 sm:$0xff]   ;;  %v11228_v47 = vld [vmem:[%s10838_s17 + $0x6c] ss:$16 sps:$4 sm:$0xff]  }
 0x10a   : > { %2191 = vmatprep.subr.bf16.mxu1 %v9427_v49  ;;  %v9469_v15 = vld [vmem:[%s10845_s9 + $0x304] ss:$16 sps:$4 sm:$0xff]   ;;  %v11171_v20 = vld [vmem:[%s10838_s17] ss:$16 sps:$4 sm:$0xff]   ;;  %v9527_v48 = vld [vmem:[%s10845_s9 + $0x68] ss:$16 sps:$4 sm:$0xff]  }
 0x10b   : > { %v11179_v24 = vld [vmem:[%s10838_s17 + $0x24] ss:$16 sps:$4 sm:$0xff]   ;;  %v11195_v32 = vld [vmem:[%s10838_s17 + $0x20] ss:$16 sps:$4 sm:$0xff]   ;;  %v9530_v49 = vld [vmem:[%s10845_s9 + $0x268] ss:$16 sps:$4 sm:$0xff]  }
 0x10c   : > { %1999 = vmatpush2.bf16.msra.mxu0 %v9429_v50  ;;  %v11201_v34 = vld [vmem:[%s10838_s17 + $0x44] ss:$16 sps:$4 sm:$0xff]   ;;  %v11216_v41 = vld [vmem:[%s10838_s17 + $0x40] ss:$16 sps:$4 sm:$0xff]   ;;  %v9541_v50 = vld [vmem:[%s10845_s9 + $0x4c] ss:$16 sps:$4 sm:$0xff]  }
 0x10d   : > { %2192 = vmatpush2.bf16.msra.mxu1 %v9430_v51  ;;  %2000 = vmatprep.subr.bf16.mxu0 %v9431_v52  ;;  %v11225_v46 = vld [vmem:[%s10838_s17 + $0x64] ss:$16 sps:$4 sm:$0xff]   ;;  %v9544_v51 = vld [vmem:[%s10845_s9 + $0x24c] ss:$16 sps:$4 sm:$0xff]   ;;  %v9539_v52 = vld [vmem:[%s10845_s9 + $0x48] ss:$16 sps:$4 sm:$0xff]  }
 0x10e   : > { %2193 = vmatprep.subr.bf16.mxu1 %v9433_v53  ;;  %v9542_v53 = vld [vmem:[%s10845_s9 + $0x248] ss:$16 sps:$4 sm:$0xff]  }
 0x110   : > { %2001 = vmatpush2.bf16.msra.mxu0 %v9435_v54  ;;  %v11241_v54 = vld [vmem:[%s10838_s17 + $0x60] ss:$16 sps:$4 sm:$0xff]  }
 0x111   : > { %2194 = vmatpush2.bf16.msra.mxu1 %v9436_v55  ;;  %2002 = vmatprep.subr.bf16.mxu0 %v9437_v56  ;;  %v9553_v55 = vld [vmem:[%s10845_s9 + $0x2c] ss:$16 sps:$4 sm:$0xff]  }
 0x112   : > { %2195 = vmatprep.subr.bf16.mxu1 %v9439_v57  ;;  %v9556_v56 = vld [vmem:[%s10845_s9 + $0x22c] ss:$16 sps:$4 sm:$0xff]   ;;  %v11246_v57 = vld [vmem:[%s10838_s17 + $0x68] ss:$16 sps:$4 sm:$0xff]  }
 0x114   : > { %2003 = vmatpush2.bf16.msra.mxu0 %v9441_v58  ;;  %v11249_v58 = vld [vmem:[%s10838_s17 + $0x84] ss:$16 sps:$4 sm:$0xff]  }
 0x115   : > { %2196 = vmatpush2.bf16.msra.mxu1 %v9442_v59  ;;  %2004 = vmatprep.subr.bf16.mxu0 %v9443_v60  ;;  %v11252_v59 = vld [vmem:[%s10838_s17 + $0x8c] ss:$16 sps:$4 sm:$0xff]   ;;  %v9551_v60 = vld [vmem:[%s10845_s9 + $0x28] ss:$16 sps:$4 sm:$0xff]  }
 0x116   : > { %2197 = vmatprep.subr.bf16.mxu1 %v9445_v61  ;;  %v9554_v61 = vld [vmem:[%s10845_s9 + $0x228] ss:$16 sps:$4 sm:$0xff]  }
 0x118   : > { %2005 = vmatpush2.bf16.msra.mxu0 %v9447_v62  ;;  %v9565_v62 = vld [vmem:[%s10845_s9 + $0xc] ss:$16 sps:$4 sm:$0xff]  }
 0x119   : > { %2198 = vmatpush2.bf16.msra.mxu1 %v9448_v63  ;;  %2006 = vmatprep.subr.bf16.mxu0 %v9449_v1  ;;  %v9568_v63 = vld [vmem:[%s10845_s9 + $0x20c] ss:$16 sps:$4 sm:$0xff]   ;;  %v11264_v1 = vld [vmem:[%s10838_s17 + $0x80] ss:$16 sps:$4 sm:$0xff]  }
 0x11a   : > { %2199 = vmatprep.subr.bf16.mxu1 %v9451_v3  ;;  %v11267_v3 = vld [vmem:[%s10838_s17 + $0x88] ss:$16 sps:$4 sm:$0xff]  }
 0x11c   : > { %2007 = vmatpush2.bf16.msra.mxu0 %v9453_v4  ;;  %v9566_v4 = vld [vmem:[%s10845_s9 + $0x208] ss:$16 sps:$4 sm:$0xff]  }
 0x11d   : > { %2200 = vmatpush2.bf16.msra.mxu1 %v9454_v5  ;;  %2008 = vmatprep.subr.bf16.mxu0 %v9455_v6  ;;  %v9577_v5 = vld [vmem:[%s10845_s9 + $0x1ec] ss:$16 sps:$4 sm:$0xff]  }
 0x11e   : > { %2201 = vmatprep.subr.bf16.mxu1 %v9457_v7  ;;  %v9580_v6 = vld [vmem:[%s10845_s9 + $0x3ec] ss:$16 sps:$4 sm:$0xff]   ;;  %v11273_v7 = vld [vmem:[%s10838_s17 + $0xa4] ss:$16 sps:$4 sm:$0xff]  }
 0x120   : > { %2009 = vmatpush2.bf16.msra.mxu0 %v9459_v8  ;;  %v11276_v8 = vld [vmem:[%s10838_s17 + $0xac] ss:$16 sps:$4 sm:$0xff]  }
 0x121   : > { %2202 = vmatpush2.bf16.msra.mxu1 %v9460_v9  ;;  %2010 = vmatprep.subr.bf16.mxu0 %v9461_v10  ;;  %v9575_v9 = vld [vmem:[%s10845_s9 + $0x1e8] ss:$16 sps:$4 sm:$0xff]  }
 0x122   : > { %2203 = vmatprep.subr.bf16.mxu1 %v9463_v11  ;;  %v9578_v10 = vld [vmem:[%s10845_s9 + $0x3e8] ss:$16 sps:$4 sm:$0xff]   ;;  %v9589_v11 = vld [vmem:[%s10845_s9 + $0x1cc] ss:$16 sps:$4 sm:$0xff]  }
 0x124   : > { %2011 = vmatpush2.bf16.msra.mxu0 %v9465_v12  ;;  %v9592_v12 = vld [vmem:[%s10845_s9 + $0x3cc] ss:$16 sps:$4 sm:$0xff]  }
 0x125   : > { %2204 = vmatpush2.bf16.msra.mxu1 %v9466_v13  ;;  %2012 = vmatprep.subr.bf16.mxu0 %v9467_v14  ;;  %v9587_v13 = vld [vmem:[%s10845_s9 + $0x1c8] ss:$16 sps:$4 sm:$0xff]  }
 0x126   : > { %2205 = vmatprep.subr.bf16.mxu1 %v9469_v15  ;;  %v9590_v14 = vld [vmem:[%s10845_s9 + $0x3c8] ss:$16 sps:$4 sm:$0xff]   ;;  %v11289_v15 = vld [vmem:[%s10838_s17 + $0xa0] ss:$16 sps:$4 sm:$0xff]  }
 0x128   : > { %2013 = vmatpush2.bf16.msra.mxu0 %v9471_v16  ;;  %v9601_v16 = vld [vmem:[%s10845_s9 + $0x1ac] ss:$16 sps:$4 sm:$0xff]  }
 0x129   : > { %2206 = vmatpush2.bf16.msra.mxu1 %v9472_v17  ;;  %2368 = vmatprep.subr.bf16.mxu0 %v9481_v18  ;;  %v9604_v17 = vld [vmem:[%s10845_s9 + $0x3ac] ss:$16 sps:$4 sm:$0xff]   ;;  %v11294_v18 = vld [vmem:[%s10838_s17 + $0xa8] ss:$16 sps:$4 sm:$0xff]  }
 0x12a   : > { %2561 = vmatprep.subr.bf16.mxu1 %v9484_v19  ;;  %v11297_v19 = vld [vmem:[%s10838_s17 + $0xc4] ss:$16 sps:$4 sm:$0xff]  }
 0x12b   : > { %2015 = vmatmul.mubr.bf16.vlgmr.msra.gmra.mxu0 %v11171_v20 }
 0x12c   : > { %2208 = vmatmul.mubr.bf16.vlgmr.msra.gmra.mxu1 %v11174_v21  ;;  %2369 = vmatpush1.bf16.msra.mxu0 %v9479_v22  ;;  %v11300_v22 = vld [vmem:[%s10838_s17 + $0xcc] ss:$16 sps:$4 sm:$0xff]  }
 0x12d   : > { %2562 = vmatpush1.bf16.msra.mxu1 %v9482_v23  ;;  %2024 = vmatprep.mubr.bf16.mxu0 %v11179_v24  ;;  %v9599_v23 = vld [vmem:[%s10845_s9 + $0x1a8] ss:$16 sps:$4 sm:$0xff]  }
 0x12e   : > { %2217 = vmatprep.mubr.bf16.mxu1 %v11182_v25  ;;  %2370 = vmatprep.subr.bf16.mxu0 %v9493_v26  ;;  %v9602_v26 = vld [vmem:[%s10845_s9 + $0x3a8] ss:$16 sps:$4 sm:$0xff]  }
 0x12f   : > { %2563 = vmatprep.subr.bf16.mxu1 %v9496_v27  ;;  %v9613_v27 = vld [vmem:[%s10845_s9 + $0x18c] ss:$16 sps:$4 sm:$0xff]  }
 0x130   : > { %2371 = vmatpush1.bf16.msra.mxu0 %v9491_v28  ;;  %v9616_v28 = vld [vmem:[%s10845_s9 + $0x38c] ss:$16 sps:$4 sm:$0xff]  }
 0x131   : > { %2564 = vmatpush1.bf16.msra.mxu1 %v9494_v29  ;;  %2372 = vmatprep.subr.bf16.mxu0 %v9505_v30  ;;  %v9611_v29 = vld [vmem:[%s10845_s9 + $0x188] ss:$16 sps:$4 sm:$0xff]   ;;  %v11312_v30 = vld [vmem:[%s10838_s17 + $0xc0] ss:$16 sps:$4 sm:$0xff]  }
 0x132   : > { %2565 = vmatprep.subr.bf16.mxu1 %v9508_v31  ;;  %v11315_v31 = vld [vmem:[%s10838_s17 + $0xc8] ss:$16 sps:$4 sm:$0xff]  }
 0x133   : > { %2025 = vmatmul.mubr.bf16.gmra.mxu0 %v11195_v32 }
 0x134   : > { %2218 = vmatmul.mubr.bf16.gmra.mxu1 %v11198_v33  ;;  %2034 = vmatprep.mubr.bf16.mxu0 %v11201_v34 }
 0x135   : > { %2227 = vmatprep.mubr.bf16.mxu1 %v11204_v35  ;;  %2373 = vmatpush1.bf16.msra.mxu0 %v9503_v36  ;;  %v9614_v36 = vld [vmem:[%s10845_s9 + $0x388] ss:$16 sps:$4 sm:$0xff]  }
 0x136   : > { %2566 = vmatpush1.bf16.msra.mxu1 %v9506_v37  ;;  %2374 = vmatprep.subr.bf16.mxu0 %v9517_v38  ;;  %v11319_v37 = vld [vmem:[%s10838_s17 + $0xe4] ss:$16 sps:$4 sm:$0xff]   ;;  %v9625_v38 = vld [vmem:[%s10845_s9 + $0x16c] ss:$16 sps:$4 sm:$0xff]  }
 0x137   : > { %2567 = vmatprep.subr.bf16.mxu1 %v9520_v39  ;;  %v11323_v39 = vld [vmem:[%s10838_s17 + $0xec] ss:$16 sps:$4 sm:$0xff]  }
 0x139   : > { %2375 = vmatpush1.bf16.msra.mxu0 %v9515_v40  ;;  %v9628_v40 = vld [vmem:[%s10845_s9 + $0x36c] ss:$16 sps:$4 sm:$0xff]  }
 0x13a   : > { %2568 = vmatpush1.bf16.msra.mxu1 %v9518_v43  ;;  %2376 = vmatprep.subr.bf16.mxu0 %v9529_v44  ;;  %v9623_v43 = vld [vmem:[%s10845_s9 + $0x168] ss:$16 sps:$4 sm:$0xff]  }
 0x13b   : > { %2569 = vmatprep.subr.bf16.mxu1 %v9532_v45  ;;  %2035 = vmatmul.mubr.bf16.gmra.mxu0 %v11216_v41  ;;  %v9626_v44 = vld [vmem:[%s10845_s9 + $0x368] ss:$16 sps:$4 sm:$0xff]  }
 0x13c   : > { %2228 = vmatmul.mubr.bf16.gmra.mxu1 %v11219_v42  ;;  %2044 = vmatprep.mubr.bf16.mxu0 %v11225_v46  ;;  %v9635_v45 = vld [vmem:[%s10845_s9 + $0x148] ss:$16 sps:$4 sm:$0xff]  }
 0x13d   : > { %2237 = vmatprep.mubr.bf16.mxu1 %v11228_v47  ;;  %2377 = vmatpush1.bf16.msra.mxu0 %v9527_v48  ;;  %v9637_v48 = vld [vmem:[%s10845_s9 + $0x14c] ss:$16 sps:$4 sm:$0xff]  }
 0x13e   : > { %2570 = vmatpush1.bf16.msra.mxu1 %v9530_v49  ;;  %2378 = vmatprep.subr.bf16.mxu0 %v9541_v50  ;;  %v9638_v49 = vld [vmem:[%s10845_s9 + $0x348] ss:$16 sps:$4 sm:$0xff]   ;;  %v9640_v50 = vld [vmem:[%s10845_s9 + $0x34c] ss:$16 sps:$4 sm:$0xff]  }
 0x13f   : > { %2571 = vmatprep.subr.bf16.mxu1 %v9544_v51  ;;  %v11337_v51 = vld [vmem:[%s10838_s17 + $0xe0] ss:$16 sps:$4 sm:$0xff]  }
 0x141   : > { %2379 = vmatpush1.bf16.msra.mxu0 %v9539_v52  ;;  %v11340_v52 = vld [vmem:[%s10838_s17 + $0xe8] ss:$16 sps:$4 sm:$0xff]  }
 0x142   : > { %2572 = vmatpush1.bf16.msra.mxu1 %v9542_v53  ;;  %2380 = vmatprep.subr.bf16.mxu0 %v9553_v55  ;;  %v11343_v53 = vld [vmem:[%s10838_s17 + $0x104] ss:$16 sps:$4 sm:$0xff]   ;;  %v11346_v55 = vld [vmem:[%s10838_s17 + $0x10c] ss:$16 sps:$4 sm:$0xff]  }
 0x143   : > { %2573 = vmatprep.subr.bf16.mxu1 %v9556_v56  ;;  %2045 = vmatmul.mubr.bf16.gmra.mxu0 %v11241_v54  ;;  %v9647_v56 = vld [vmem:[%s10845_s9 + $0x128] ss:$16 sps:$4 sm:$0xff]  }
 0x144   : > { %2238 = vmatmul.mubr.bf16.gmra.mxu1 %v11246_v57  ;;  %2054 = vmatprep.mubr.bf16.mxu0 %v11249_v58 }
 0x145   : > { %2247 = vmatprep.mubr.bf16.mxu1 %v11252_v59  ;;  %2381 = vmatpush1.bf16.msra.mxu0 %v9551_v60  ;;  %v9649_v60 = vld [vmem:[%s10845_s9 + $0x12c] ss:$16 sps:$4 sm:$0xff]  }
 0x146   : > { %2574 = vmatpush1.bf16.msra.mxu1 %v9554_v61  ;;  %2382 = vmatprep.subr.bf16.mxu0 %v9565_v62  ;;  %v9650_v61 = vld [vmem:[%s10845_s9 + $0x328] ss:$16 sps:$4 sm:$0xff]   ;;  %v9652_v62 = vld [vmem:[%s10845_s9 + $0x32c] ss:$16 sps:$4 sm:$0xff]  }
 0x147   : > { %2575 = vmatprep.subr.bf16.mxu1 %v9568_v63  ;;  %v11357_v63 = vld [vmem:[%s10838_s17 + $0x100] ss:$16 sps:$4 sm:$0xff]  }
 0x149   : > { %2383 = vmatpush1.bf16.msra.mxu0 %v9563_v0  ;;  %v11360_v0 = vld [vmem:[%s10838_s17 + $0x108] ss:$16 sps:$4 sm:$0xff]  }
 0x14a   : > { %2576 = vmatpush1.bf16.msra.mxu1 %v9566_v4  ;;  %2384 = vmatprep.subr.bf16.mxu0 %v9577_v5  ;;  %v11363_v4 = vld [vmem:[%s10838_s17 + $0x124] ss:$16 sps:$4 sm:$0xff]   ;;  %v9659_v5 = vld [vmem:[%s10845_s9 + $0x108] ss:$16 sps:$4 sm:$0xff]  }
 0x14b   : > { %2577 = vmatprep.subr.bf16.mxu1 %v9580_v6  ;;  %2055 = vmatmul.mubr.bf16.gmra.mxu0 %v11264_v1  ;;  %v9661_v6 = vld [vmem:[%s10845_s9 + $0x10c] ss:$16 sps:$4 sm:$0xff]  }
 0x14c   : > { %2248 = vmatmul.mubr.bf16.gmra.mxu1 %v11267_v3  ;;  %2064 = vmatprep.mubr.bf16.mxu0 %v11273_v7 }
 0x14d   : > { %2257 = vmatprep.mubr.bf16.mxu1 %v11276_v8  ;;  %2385 = vmatpush2.bf16.msra.mxu0 %v9575_v9  ;;  %v9662_v9 = vld [vmem:[%s10845_s9 + $0x308] ss:$16 sps:$4 sm:$0xff]  }
 0x14e   : > { %2578 = vmatpush2.bf16.msra.mxu1 %v9578_v10  ;;  %2386 = vmatprep.subr.bf16.mxu0 %v9589_v11  ;;  %v9664_v10 = vld [vmem:[%s10845_s9 + $0x30c] ss:$16 sps:$4 sm:$0xff]  }
 0x14f   : > { %2579 = vmatprep.subr.bf16.mxu1 %v9592_v12  ;;  %v11370_v11 = vld [vmem:[%s10838_s17 + $0x12c] ss:$16 sps:$4 sm:$0xff]   ;;  %v9667_v12 = vld [vmem:[%s10851_s14 + $0xe4] ss:$16 sps:$4 sm:$0xff]  }
 0x151   : > { %2387 = vmatpush2.bf16.msra.mxu0 %v9587_v13  ;;  %v9670_v13 = vld [vmem:[%s10851_s14 + $0x2e4] ss:$16 sps:$4 sm:$0xff]  }
 0x152   : > { %2580 = vmatpush2.bf16.msra.mxu1 %v9590_v14  ;;  %2388 = vmatprep.subr.bf16.mxu0 %v9601_v16  ;;  %v11379_v14 = vld [vmem:[%s10838_s17 + $0x120] ss:$16 sps:$4 sm:$0xff]   ;;  %v11382_v16 = vld [vmem:[%s10838_s17 + $0x128] ss:$16 sps:$4 sm:$0xff]  }
 0x153   : > { %2581 = vmatprep.subr.bf16.mxu1 %v9604_v17  ;;  %2065 = vmatmul.mubr.bf16.gmra.mxu0 %v11289_v15  ;;  %v11385_v17 = vld [vmem:[%s10838_s17 + $0x144] ss:$16 sps:$4 sm:$0xff]  }
 0x154   : > { %2258 = vmatmul.mubr.bf16.gmra.mxu1 %v11294_v18  ;;  %2074 = vmatprep.mubr.bf16.mxu0 %v11297_v19 }
 0x155   : > { %2267 = vmatprep.mubr.bf16.mxu1 %v11300_v22  ;;  %2389 = vmatpush2.bf16.msra.mxu0 %v9599_v23  ;;  %v11388_v23 = vld [vmem:[%s10838_s17 + $0x14c] ss:$16 sps:$4 sm:$0xff]  }
 0x156   : > { %2582 = vmatpush2.bf16.msra.mxu1 %v9602_v26  ;;  %2390 = vmatprep.subr.bf16.mxu0 %v9613_v27  ;;  %v11395_v26 = vld [vmem:[%s10838_s17 + $0x140] ss:$16 sps:$4 sm:$0xff]   ;;  %v11398_v27 = vld [vmem:[%s10838_s17 + $0x148] ss:$16 sps:$4 sm:$0xff]  }
 0x157   : > { %2583 = vmatprep.subr.bf16.mxu1 %v9616_v28  ;;  %v11401_v28 = vld [vmem:[%s10838_s17 + $0x164] ss:$16 sps:$4 sm:$0xff]  }
 0x159   : > { %2391 = vmatpush2.bf16.msra.mxu0 %v9611_v29  ;;  %v11404_v29 = vld [vmem:[%s10838_s17 + $0x16c] ss:$16 sps:$4 sm:$0xff]  }
 0x15a   : > { %2584 = vmatpush2.bf16.msra.mxu1 %v9614_v36  ;;  %2392 = vmatprep.subr.bf16.mxu0 %v9625_v38  ;;  %v11411_v36 = vld [vmem:[%s10838_s17 + $0x160] ss:$16 sps:$4 sm:$0xff]   ;;  %v11414_v38 = vld [vmem:[%s10838_s17 + $0x168] ss:$16 sps:$4 sm:$0xff]  }
 0x15b   : > { %2585 = vmatprep.subr.bf16.mxu1 %v9628_v40  ;;  %2075 = vmatmul.mubr.bf16.gmra.mxu0 %v11312_v30  ;;  %v11417_v40 = vld [vmem:[%s10838_s17 + $0x184] ss:$16 sps:$4 sm:$0xff]  }
 0x15c   : > { %2268 = vmatmul.mubr.bf16.gmra.mxu1 %v11315_v31  ;;  %2084 = vmatprep.mubr.bf16.mxu0 %v11319_v37 }
 0x15d   : > { %2277 = vmatprep.mubr.bf16.mxu1 %v11323_v39  ;;  %2393 = vmatpush2.bf16.msra.mxu0 %v9623_v43  ;;  %v11420_v43 = vld [vmem:[%s10838_s17 + $0x18c] ss:$16 sps:$4 sm:$0xff]  }
 0x15e   : > { %2586 = vmatpush2.bf16.msra.mxu1 %v9626_v44  ;;  %2394 = vmatprep.subr.bf16.mxu0 %v9637_v48  ;;  %v11427_v44 = vld [vmem:[%s10838_s17 + $0x180] ss:$16 sps:$4 sm:$0xff]   ;;  %v11433_v48 = vld [vmem:[%s10838_s17 + $0x1a4] ss:$16 sps:$4 sm:$0xff]  }
 0x15f   : > { %2587 = vmatprep.subr.bf16.mxu1 %v9640_v50  ;;  %v11443_v50 = vld [vmem:[%s10838_s17 + $0x1a0] ss:$16 sps:$4 sm:$0xff]  }
 0x161   : > { %2395 = vmatpush2.bf16.msra.mxu0 %v9635_v45  ;;  %v11430_v45 = vld [vmem:[%s10838_s17 + $0x188] ss:$16 sps:$4 sm:$0xff]  }
 0x162   : > { %2588 = vmatpush2.bf16.msra.mxu1 %v9638_v49  ;;  %2396 = vmatprep.subr.bf16.mxu0 %v9649_v60  ;;  %v11436_v49 = vld [vmem:[%s10838_s17 + $0x1ac] ss:$16 sps:$4 sm:$0xff]   ;;  %v11449_v60 = vld [vmem:[%s10838_s17 + $0x1c4] ss:$16 sps:$4 sm:$0xff]  }
 0x163   : > { %2085 = vmatmul.mubr.bf16.gmra.mxu0 %v11337_v51  ;;  %2589 = vmatprep.subr.bf16.mxu1 %v9652_v62  ;;  %14649 = vst [vmem:[#allocation17_spill] sm:$0xff] %v11449_v60  ;;  %v11459_v62 = vld [vmem:[%s10838_s17 + $0x1c0] ss:$16 sps:$4 sm:$0xff]  }
 0x164   : > { %2278 = vmatmul.mubr.bf16.gmra.mxu1 %v11340_v52  ;;  %2094 = vmatprep.mubr.bf16.mxu0 %v11343_v53  ;;  %14651 = vst [vmem:[#allocation19_spill] sm:$0xff] %v11459_v62 }
 0x165   : > { %2287 = vmatprep.mubr.bf16.mxu1 %v11346_v55  ;;  %2397 = vmatpush2.bf16.msra.mxu0 %v9647_v56  ;;  %v11446_v56 = vld [vmem:[%s10838_s17 + $0x1a8] ss:$16 sps:$4 sm:$0xff]  }
 0x166   : > { %2590 = vmatpush2.bf16.msra.mxu1 %v9650_v61  ;;  %2398 = vmatprep.subr.bf16.mxu0 %v9661_v6  ;;  %v11452_v61 = vld [vmem:[%s10838_s17 + $0x1cc] ss:$16 sps:$4 sm:$0xff]   ;;  %v11465_v6 = vld [vmem:[%s10838_s17 + $0x1e4] ss:$16 sps:$4 sm:$0xff]  }
 0x167   : > { %2591 = vmatprep.subr.bf16.mxu1 %v9664_v10  ;;  %14650 = vst [vmem:[#allocation18_spill] sm:$0xff] %v11452_v61  ;;  %14653 = vst [vmem:[#allocation21_spill] sm:$0xff] %v11465_v6  ;;  %v11475_v10 = vld [vmem:[%s10838_s17 + $0x1e0] ss:$16 sps:$4 sm:$0xff]  }
 0x169   : > { %2399 = vmatpush2.bf16.msra.mxu0 %v9659_v5  ;;  %v11462_v5 = vld [vmem:[%s10838_s17 + $0x1c8] ss:$16 sps:$4 sm:$0xff]  }
 0x16a   : > { %2592 = vmatpush2.bf16.msra.mxu1 %v9662_v9  ;;  %3906 = vmatprep.subr.bf16.mxu0 %v9667_v12  ;;  %14652 = vst [vmem:[#allocation20_spill] sm:$0xff] %v11462_v5  ;;  %v11468_v9 = vld [vmem:[%s10838_s17 + $0x1ec] ss:$16 sps:$4 sm:$0xff]   ;;  %v11478_v12 = vld [vmem:[%s10838_s17 + $0x1e8] ss:$16 sps:$4 sm:$0xff]  }
 0x16b   : > { %2095 = vmatmul.mubr.bf16.gmra.mxu0 %v11357_v63  ;;  %4099 = vmatprep.subr.bf16.mxu1 %v9670_v13  ;;  %14654 = vst [vmem:[#allocation22_spill] sm:$0xff] %v11468_v9  ;;  %14655 = vst [vmem:[#allocation23_spill] sm:$0xff] %v11478_v12  ;;  %v11483_v13 = vld [vmem:[%s10838_s17 + $0x4] ss:$16 sps:$4 sm:$0xff]  }
 0x16c   : > { %2288 = vmatmul.mubr.bf16.gmra.mxu1 %v11360_v0  ;;  %2104 = vmatprep.mubr.bf16.mxu0 %v11363_v4  ;;  %14656 = vst [vmem:[#allocation24_spill] sm:$0xff] %v11483_v13 }
 0x16d   : > { %2297 = vmatprep.mubr.bf16.mxu1 %v11370_v11 }
 0x173   : > { %2105 = vmatmul.mubr.bf16.gmra.mxu0 %v11379_v14 }
 0x174   : > { %2298 = vmatmul.mubr.bf16.gmra.mxu1 %v11382_v16  ;;  %2114 = vmatprep.mubr.bf16.mxu0 %v11385_v17 }
 0x175   : > { %2307 = vmatprep.mubr.bf16.mxu1 %v11388_v23 }
 0x17b   : > { %2115 = vmatmul.mubr.bf16.gmra.mxu0 %v11395_v26 }
 0x17c   : > { %2308 = vmatmul.mubr.bf16.gmra.mxu1 %v11398_v27  ;;  %2124 = vmatprep.mubr.bf16.mxu0 %v11401_v28 }
 0x17d   : > { %2317 = vmatprep.mubr.bf16.mxu1 %v11404_v29 }
 0x183   : > { %2125 = vmatmul.mubr.bf16.gmra.mxu0 %v11411_v36 }
 0x184   : > { %2318 = vmatmul.mubr.bf16.gmra.mxu1 %v11414_v38  ;;  %2134 = vmatprep.mubr.bf16.mxu0 %v11417_v40 }
 0x185   : > { %2327 = vmatprep.mubr.bf16.mxu1 %v11420_v43 }
 0x18b   : > { %2135 = vmatmul.mubr.bf16.gmra.mxu0 %v11427_v44 }
 0x18c   : > { %2328 = vmatmul.mubr.bf16.gmra.mxu1 %v11430_v45  ;;  %2144 = vmatprep.mubr.bf16.mxu0 %v11433_v48 }
 0x18d   : > { %2337 = vmatprep.mubr.bf16.mxu1 %v11436_v49 }
 0x193   : > { %2145 = vmatmul.mubr.bf16.gmra.mxu0 %v11443_v50 }
 0x194   : > { %2338 = vmatmul.mubr.bf16.gmra.mxu1 %v11446_v56  ;;  %2154 = vmatprep.mubr.bf16.mxu0 %v11449_v60  ;;  %v9674_v60 = vld [vmem:[%s10851_s14 + $0x2c0] ss:$16 sps:$4 sm:$0xff]  }
 0x195   : > { %2347 = vmatprep.mubr.bf16.mxu1 %v11452_v61  ;;  %v9671_v61 = vld [vmem:[%s10851_s14 + $0xc0] ss:$16 sps:$4 sm:$0xff]  }
 0x19b   : > { %2155 = vmatmul.mubr.bf16.gmra.mxu0 %v11459_v62  ;;  %v9673_v62 = vld [vmem:[%s10851_s14 + $0xc4] ss:$16 sps:$4 sm:$0xff]  }
 0x19c   : > { %2348 = vmatmul.mubr.bf16.gmra.mxu1 %v11462_v5  ;;  %2164 = vmatprep.mubr.bf16.mxu0 %v11465_v6  ;;  %v9665_v5 = vld [vmem:[%s10851_s14 + $0xe0] ss:$16 sps:$4 sm:$0xff]  }
 0x19d   : > { %2357 = vmatprep.mubr.bf16.mxu1 %v11468_v9  ;;  %v9668_v6 = vld [vmem:[%s10851_s14 + $0x2e0] ss:$16 sps:$4 sm:$0xff]   ;;  %v9676_v9 = vld [vmem:[%s10851_s14 + $0x2c4] ss:$16 sps:$4 sm:$0xff]  }
 0x1a3   : > { %2165 = vmatmul.mubr.bf16.gmra.mxu0 %v11475_v10 }
 0x1a4   : > { %2358 = vmatmul.mubr.bf16.gmra.mxu1 %v11478_v12  ;;  %2400 = vmatprep.mubr.bf16.mxu0 %v11483_v13  ;;  %v9679_v12 = vld [vmem:[%s10851_s14 + $0xa4] ss:$16 sps:$4 sm:$0xff]   ;;  %v9677_v13 = vld [vmem:[%s10851_s14 + $0xa0] ss:$16 sps:$4 sm:$0xff]  }
 0x1a5   : > { %2593 = vmatprep.mubr.bf16.mxu1 %v11150_v2  ;;  %v9682_v2 = vld [vmem:[%s10851_s14 + $0x2a4] ss:$16 sps:$4 sm:$0xff]  }
 0x1ab   : > { %2401 = vmatmul.mubr.bf16.vlgmr.msra.gmra.mxu0 %v11171_v20  ;;  %v9680_v20 = vld [vmem:[%s10851_s14 + $0x2a0] ss:$16 sps:$4 sm:$0xff]  }
 0x1ac   : > { %2594 = vmatmul.mubr.bf16.vlgmr.msra.gmra.mxu1 %v11174_v21  ;;  %3907 = vmatpush1.bf16.msra.mxu0 %v9665_v5  ;;  %v9685_v21 = vld [vmem:[%s10851_s14 + $0x84] ss:$16 sps:$4 sm:$0xff]  }
 0x1ad   : > { %4100 = vmatpush1.bf16.msra.mxu1 %v9668_v6  ;;  %2410 = vmatprep.mubr.bf16.mxu0 %v11179_v24  ;;  %v9688_v5 = vld [vmem:[%s10851_s14 + $0x284] ss:$16 sps:$4 sm:$0xff]   ;;  %v9683_v24 = vld [vmem:[%s10851_s14 + $0x80] ss:$16 sps:$4 sm:$0xff]  }
 0x1ae   : > { %2603 = vmatprep.mubr.bf16.mxu1 %v11182_v25  ;;  %3908 = vmatprep.subr.bf16.mxu0 %v9673_v62  ;;  %v9686_v25 = vld [vmem:[%s10851_s14 + $0x280] ss:$16 sps:$4 sm:$0xff]  }
 0x1af   : > { %4101 = vmatprep.subr.bf16.mxu1 %v9676_v9  ;;  %v9695_v62 = vld [vmem:[%s10851_s14 + $0x40] ss:$16 sps:$4 sm:$0xff]   ;;  %v9703_v9 = vld [vmem:[%s10851_s14 + $0x24] ss:$16 sps:$4 sm:$0xff]  }
 0x1b0   : > { %3909 = vmatpush1.bf16.msra.mxu0 %v9671_v61  ;;  %v9694_v61 = vld [vmem:[%s10851_s14 + $0x264] ss:$16 sps:$4 sm:$0xff]   ;;  %v9698_v6 = vld [vmem:[%s10851_s14 + $0x240] ss:$16 sps:$4 sm:$0xff]  }
 0x1b1   : > { %4102 = vmatpush1.bf16.msra.mxu1 %v9674_v60  ;;  %3910 = vmatprep.subr.bf16.mxu0 %v9679_v12  ;;  %v9691_v60 = vld [vmem:[%s10851_s14 + $0x64] ss:$16 sps:$4 sm:$0xff]  }
 0x1b2   : > { %4103 = vmatprep.subr.bf16.mxu1 %v9682_v2  ;;  %v9706_v12 = vld [vmem:[%s10851_s14 + $0x224] ss:$16 sps:$4 sm:$0xff]   ;;  %v9710_v2 = vld [vmem:[%s10851_s14 + $0x200] ss:$16 sps:$4 sm:$0xff]  }
 0x1b3   : > { %2411 = vmatmul.mubr.bf16.gmra.mxu0 %v11195_v32  ;;  %v9689_v32 = vld [vmem:[%s10851_s14 + $0x60] ss:$16 sps:$4 sm:$0xff]  }
 0x1b4   : > { %2604 = vmatmul.mubr.bf16.gmra.mxu1 %v11198_v33  ;;  %2420 = vmatprep.mubr.bf16.mxu0 %v11201_v34  ;;  %v9692_v33 = vld [vmem:[%s10851_s14 + $0x260] ss:$16 sps:$4 sm:$0xff]   ;;  %v9697_v34 = vld [vmem:[%s10851_s14 + $0x44] ss:$16 sps:$4 sm:$0xff]  }
 0x1b5   : > { %2613 = vmatprep.mubr.bf16.mxu1 %v11204_v35  ;;  %3911 = vmatpush1.bf16.msra.mxu0 %v9677_v13  ;;  %v9700_v35 = vld [vmem:[%s10851_s14 + $0x244] ss:$16 sps:$4 sm:$0xff]   ;;  %v9707_v13 = vld [vmem:[%s10851_s14] ss:$16 sps:$4 sm:$0xff]  }
 0x1b6   : > { %4104 = vmatpush1.bf16.msra.mxu1 %v9680_v20  ;;  %3912 = vmatprep.subr.bf16.mxu0 %v9685_v21  ;;  %v9715_v20 = vld [vmem:[%s10851_s14 + $0x1e4] ss:$16 sps:$4 sm:$0xff]  }
 0x1b7   : > { %4105 = vmatprep.subr.bf16.mxu1 %v9688_v5  ;;  %v9718_v21 = vld [vmem:[%s10851_s14 + $0x3e4] ss:$16 sps:$4 sm:$0xff]   ;;  %v9719_v5 = vld [vmem:[%s10851_s14 + $0x1c0] ss:$16 sps:$4 sm:$0xff]  }
 0x1b9   : > { %3913 = vmatpush1.bf16.msra.mxu0 %v9683_v24  ;;  %v9722_v24 = vld [vmem:[%s10851_s14 + $0x3c0] ss:$16 sps:$4 sm:$0xff]  }
 0x1ba   : > { %4106 = vmatpush1.bf16.msra.mxu1 %v9686_v25  ;;  %3914 = vmatprep.subr.bf16.mxu0 %v9691_v60  ;;  %v9727_v25 = vld [vmem:[%s10851_s14 + $0x1a4] ss:$16 sps:$4 sm:$0xff]  }
 0x1bb   : > { %4107 = vmatprep.subr.bf16.mxu1 %v9694_v61  ;;  %2421 = vmatmul.mubr.bf16.gmra.mxu0 %v11216_v41  ;;  %v9701_v41 = vld [vmem:[%s10851_s14 + $0x20] ss:$16 sps:$4 sm:$0xff]   ;;  %v9730_v60 = vld [vmem:[%s10851_s14 + $0x3a4] ss:$16 sps:$4 sm:$0xff]  }
 0x1bc   : > { %2614 = vmatmul.mubr.bf16.gmra.mxu1 %v11219_v42  ;;  %2430 = vmatprep.mubr.bf16.mxu0 %v11225_v46  ;;  %v9704_v42 = vld [vmem:[%s10851_s14 + $0x220] ss:$16 sps:$4 sm:$0xff]   ;;  %v9709_v46 = vld [vmem:[%s10851_s14 + $0x4] ss:$16 sps:$4 sm:$0xff]  }
 0x1bd   : > { %2623 = vmatprep.mubr.bf16.mxu1 %v11228_v47  ;;  %3915 = vmatpush1.bf16.msra.mxu0 %v9689_v32  ;;  %v9712_v47 = vld [vmem:[%s10851_s14 + $0x204] ss:$16 sps:$4 sm:$0xff]   ;;  %v9731_v61 = vld [vmem:[%s10851_s14 + $0x180] ss:$16 sps:$4 sm:$0xff]  }
 0x1be   : > { %4108 = vmatpush1.bf16.msra.mxu1 %v9692_v33  ;;  %3916 = vmatprep.subr.bf16.mxu0 %v9697_v34  ;;  %v9734_v32 = vld [vmem:[%s10851_s14 + $0x380] ss:$16 sps:$4 sm:$0xff]   ;;  %v9739_v33 = vld [vmem:[%s10851_s14 + $0x164] ss:$16 sps:$4 sm:$0xff]  }
 0x1bf   : > { %4109 = vmatprep.subr.bf16.mxu1 %v9700_v35  ;;  %v9742_v34 = vld [vmem:[%s10851_s14 + $0x364] ss:$16 sps:$4 sm:$0xff]   ;;  %v9743_v35 = vld [vmem:[%s10851_s14 + $0x140] ss:$16 sps:$4 sm:$0xff]  }
 0x1c1   : > { %3917 = vmatpush1.bf16.msra.mxu0 %v9695_v62  ;;  %v9746_v62 = vld [vmem:[%s10851_s14 + $0x340] ss:$16 sps:$4 sm:$0xff]  }
 0x1c2   : > { %4110 = vmatpush1.bf16.msra.mxu1 %v9698_v6  ;;  %3918 = vmatprep.subr.bf16.mxu0 %v9703_v9  ;;  %v9751_v6 = vld [vmem:[%s10851_s14 + $0x124] ss:$16 sps:$4 sm:$0xff]  }
 0x1c3   : > { %4111 = vmatprep.subr.bf16.mxu1 %v9706_v12  ;;  %2431 = vmatmul.mubr.bf16.gmra.mxu0 %v11241_v54  ;;  %v9713_v54 = vld [vmem:[%s10851_s14 + $0x1e0] ss:$16 sps:$4 sm:$0xff]   ;;  %v9754_v9 = vld [vmem:[%s10851_s14 + $0x324] ss:$16 sps:$4 sm:$0xff]  }
 0x1c4   : > { %2624 = vmatmul.mubr.bf16.gmra.mxu1 %v11246_v57  ;;  %2440 = vmatprep.mubr.bf16.mxu0 %v11249_v58  ;;  %v9716_v57 = vld [vmem:[%s10851_s14 + $0x3e0] ss:$16 sps:$4 sm:$0xff]   ;;  %v9721_v58 = vld [vmem:[%s10851_s14 + $0x1c4] ss:$16 sps:$4 sm:$0xff]  }
 0x1c5   : > { %2633 = vmatprep.mubr.bf16.mxu1 %v11252_v59  ;;  %3919 = vmatpush1.bf16.msra.mxu0 %v9701_v41  ;;  %v9724_v59 = vld [vmem:[%s10851_s14 + $0x3c4] ss:$16 sps:$4 sm:$0xff]   ;;  %v9755_v12 = vld [vmem:[%s10851_s14 + $0x100] ss:$16 sps:$4 sm:$0xff]  }
 0x1c6   : > { %4112 = vmatpush1.bf16.msra.mxu1 %v9704_v42  ;;  %3920 = vmatprep.subr.bf16.mxu0 %v9709_v46  ;;  %v9758_v41 = vld [vmem:[%s10851_s14 + $0x300] ss:$16 sps:$4 sm:$0xff]   ;;  %v9763_v42 = vld [vmem:[%s10851_s14 + $0xec] ss:$16 sps:$4 sm:$0xff]  }
 0x1c7   : > { %4113 = vmatprep.subr.bf16.mxu1 %v9712_v47  ;;  %v9766_v46 = vld [vmem:[%s10851_s14 + $0x2ec] ss:$16 sps:$4 sm:$0xff]  }
 0x1c9   : > { %3921 = vmatpush1.bf16.msra.mxu0 %v9707_v13 }
 0x1ca   : > { %4114 = vmatpush1.bf16.msra.mxu1 %v9710_v2  ;;  %3922 = vmatprep.subr.bf16.mxu0 %v9715_v20 }
 0x1cb   : > { %4115 = vmatprep.subr.bf16.mxu1 %v9718_v21  ;;  %2441 = vmatmul.mubr.bf16.gmra.mxu0 %v11264_v1  ;;  %v9725_v1 = vld [vmem:[%s10851_s14 + $0x1a0] ss:$16 sps:$4 sm:$0xff]  }
 0x1cc   : > { %2634 = vmatmul.mubr.bf16.gmra.mxu1 %v11267_v3  ;;  %2450 = vmatprep.mubr.bf16.mxu0 %v11273_v7  ;;  %v9728_v3 = vld [vmem:[%s10851_s14 + $0x3a0] ss:$16 sps:$4 sm:$0xff]   ;;  %v9733_v7 = vld [vmem:[%s10851_s14 + $0x184] ss:$16 sps:$4 sm:$0xff]  }
 0x1cd   : > { %2643 = vmatprep.mubr.bf16.mxu1 %v11276_v8  ;;  %3923 = vmatpush2.bf16.msra.mxu0 %v9713_v54  ;;  %v9736_v8 = vld [vmem:[%s10851_s14 + $0x384] ss:$16 sps:$4 sm:$0xff]  }
 0x1ce   : > { %4116 = vmatpush2.bf16.msra.mxu1 %v9716_v57  ;;  %3924 = vmatprep.subr.bf16.mxu0 %v9721_v58  ;;  %v770_v57 = vld [vmem:[#allocation2 + $0x50] sm:$0xff] }
 0x1cf   : > { %4117 = vmatprep.subr.bf16.mxu1 %v9724_v59 }
 0x1d1   : > { %3925 = vmatpush2.bf16.msra.mxu0 %v9719_v5 }
 0x1d2   : > { %4118 = vmatpush2.bf16.msra.mxu1 %v9722_v24  ;;  %3926 = vmatprep.subr.bf16.mxu0 %v9727_v25 }
 0x1d3   : > { %4119 = vmatprep.subr.bf16.mxu1 %v9730_v60  ;;  %2451 = vmatmul.mubr.bf16.gmra.mxu0 %v11289_v15  ;;  %v9737_v15 = vld [vmem:[%s10851_s14 + $0x160] ss:$16 sps:$4 sm:$0xff]  }
 0x1d4   : > { %2644 = vmatmul.mubr.bf16.gmra.mxu1 %v11294_v18  ;;  %2460 = vmatprep.mubr.bf16.mxu0 %v11297_v19  ;;  %v9740_v18 = vld [vmem:[%s10851_s14 + $0x360] ss:$16 sps:$4 sm:$0xff]   ;;  %v9745_v19 = vld [vmem:[%s10851_s14 + $0x144] ss:$16 sps:$4 sm:$0xff]  }
 0x1d5   : > { %2653 = vmatprep.mubr.bf16.mxu1 %v11300_v22  ;;  %3927 = vmatpush2.bf16.msra.mxu0 %v9725_v1  ;;  %v9748_v22 = vld [vmem:[%s10851_s14 + $0x344] ss:$16 sps:$4 sm:$0xff]  }
 0x1d6   : > { %4120 = vmatpush2.bf16.msra.mxu1 %v9728_v3  ;;  %3928 = vmatprep.subr.bf16.mxu0 %v9733_v7  ;;  %v774_v1 = vld [vmem:[#allocation2 + $0x380] sm:$0xff] }
 0x1d7   : > { %4121 = vmatprep.subr.bf16.mxu1 %v9736_v8 }
 0x1d9   : > { %3929 = vmatpush2.bf16.msra.mxu0 %v9731_v61  ;;  %v775_v61 = vld [vmem:[#allocation2 + $0x110] sm:$0xff] }
 0x1da   : > { %4122 = vmatpush2.bf16.msra.mxu1 %v9734_v32  ;;  %3930 = vmatprep.subr.bf16.mxu0 %v9739_v33 }
 0x1db   : > { %4123 = vmatprep.subr.bf16.mxu1 %v9742_v34  ;;  %2461 = vmatmul.mubr.bf16.gmra.mxu0 %v11312_v30  ;;  %v9749_v30 = vld [vmem:[%s10851_s14 + $0x120] ss:$16 sps:$4 sm:$0xff]  }
 0x1dc   : > { %2654 = vmatmul.mubr.bf16.gmra.mxu1 %v11315_v31  ;;  %2470 = vmatprep.mubr.bf16.mxu0 %v11319_v37  ;;  %v9752_v31 = vld [vmem:[%s10851_s14 + $0x320] ss:$16 sps:$4 sm:$0xff]   ;;  %v9757_v37 = vld [vmem:[%s10851_s14 + $0x104] ss:$16 sps:$4 sm:$0xff]  }
 0x1dd   : > { %2663 = vmatprep.mubr.bf16.mxu1 %v11323_v39  ;;  %3931 = vmatpush2.bf16.msra.mxu0 %v9737_v15  ;;  %v9760_v39 = vld [vmem:[%s10851_s14 + $0x304] ss:$16 sps:$4 sm:$0xff]  }
 0x1de   : > { %4124 = vmatpush2.bf16.msra.mxu1 %v9740_v18  ;;  %3932 = vmatprep.subr.bf16.mxu0 %v9745_v19  ;;  %v778_v18 = vld [vmem:[#allocation2 + $0x320] sm:$0xff] }
 0x1df   : > { %4125 = vmatprep.subr.bf16.mxu1 %v9748_v22 }
 0x1e1   : > { %3933 = vmatpush2.bf16.msra.mxu0 %v9743_v35  ;;  %v779_v35 = vld [vmem:[#allocation2 + $0x150] sm:$0xff] }
 0x1e2   : > { %4126 = vmatpush2.bf16.msra.mxu1 %v9746_v62  ;;  %3934 = vmatprep.subr.bf16.mxu0 %v9751_v6 }
 0x1e3   : > { %4127 = vmatprep.subr.bf16.mxu1 %v9754_v9  ;;  %2471 = vmatmul.mubr.bf16.gmra.mxu0 %v11337_v51  ;;  %v766_v51 = vld [vmem:[#allocation2 + $0x2b0] sm:$0xff] }
 0x1e4   : > { %2664 = vmatmul.mubr.bf16.gmra.mxu1 %v11340_v52  ;;  %2480 = vmatprep.mubr.bf16.mxu0 %v11343_v53 }
 0x1e5   : > { %2673 = vmatprep.mubr.bf16.mxu1 %v11346_v55  ;;  %3935 = vmatpush2.bf16.msra.mxu0 %v9749_v30  ;;  %v767_v55 = vld [vmem:[#allocation2 + $0x3b0] sm:$0xff] }
 0x1e6   : > { %4128 = vmatpush2.bf16.msra.mxu1 %v9752_v31  ;;  %3936 = vmatprep.subr.bf16.mxu0 %v9757_v37 }
 0x1e7   : > { %4129 = vmatprep.subr.bf16.mxu1 %v9760_v39 }
 0x1e9   : > { %3937 = vmatpush2.bf16.msra.mxu0 %v9755_v12  ;;  %v783_v12 = vld [vmem:[#allocation2 + $0x388] sm:$0xff] }
 0x1ea   : > { %4130 = vmatpush2.bf16.msra.mxu1 %v9758_v41  ;;  %4292 = vmatprep.subr.bf16.mxu0 %v9763_v42 }
 0x1eb   : > { %4485 = vmatprep.subr.bf16.mxu1 %v9766_v46  ;;  %v2016_v47 = vpop.f32.mrf.mxu0  ;;  %2481 = vmatmul.mubr.bf16.gmra.mxu0 %v11357_v63  ;;  %v771_v63 = vld [vmem:[#allocation2 + $0x368] sm:$0xff] }
 0x1ec   : > { %v2209_v13 = vpop.f32.mrf.mxu1  ;;  %2674 = vmatmul.mubr.bf16.gmra.mxu1 %v11360_v0  ;;  %2490 = vmatprep.mubr.bf16.mxu0 %v11363_v4 }
 0x1ed   : > { %v2210_v52 = vadd.f32 %v2209_v13, %v2016_v47  ;;  %2683 = vmatprep.mubr.bf16.mxu1 %v11370_v11  ;;  %v2018_v53 = vpop.f32.mrf.mxu0 }
 0x1ee   : > { %v2211_v2 = vpop.f32.mrf.mxu1 }
 0x1ef   : > { %v2754_v20 = vadd.f32 %v2210_v52, %v766_v51  ;;  %v2212_v21 = vadd.f32 %v2211_v2, %v2018_v53  ;;  %v2020_v54 = vpop.f32.mrf.mxu0  ;;  %v786_v51 = vld [vmem:[#allocation2 + $0x80] sm:$0xff]  ;;  %v787_v53 = vld [vmem:[#allocation2 + $0x1a8] sm:$0xff] }
 0x1f0   : > { %v2213_v58 = vpop.f32.mrf.mxu1 }
 0x1f1   : > { %2882 = vst [vmem:[#allocation2 + $0x2b0] sm:$0xff] %v2754_v20  ;;  %v2755_v59 = vadd.f32 %v2212_v21, %v767_v55  ;;  %v2214_v5 = vadd.f32 %v2213_v58, %v2020_v54  ;;  %v2022_v24 = vpop.f32.mrf.mxu0 }
 0x1f2   : > { %v2215_v25 = vpop.f32.mrf.mxu1 }
 0x1f3   : > { %2883 = vst [vmem:[#allocation2 + $0x3b0] sm:$0xff] %v2755_v59  ;;  %v2758_v0 = vadd.f32 %v2214_v5, %v770_v57  ;;  %v2216_v60 = vadd.f32 %v2215_v25, %v2022_v24  ;;  %v2026_v4 = vpop.f32.mrf.mxu0  ;;  %2491 = vmatmul.mubr.bf16.gmra.mxu0 %v11379_v14  ;;  %v791_v59 = vld [vmem:[#allocation2 + $0x2f8] sm:$0xff] }
 0x1f4   : > { %v2219_v11 = vpop.f32.mrf.mxu1  ;;  %2684 = vmatmul.mubr.bf16.gmra.mxu1 %v11382_v16  ;;  %2500 = vmatprep.mubr.bf16.mxu0 %v11385_v17 }
 0x1f5   : > { %2886 = vst [vmem:[#allocation2 + $0x50] sm:$0xff] %v2758_v0  ;;  %v2759_v3 = vadd.f32 %v2216_v60, %v771_v63  ;;  %v2220_v7 = vadd.f32 %v2219_v11, %v2026_v4  ;;  %2693 = vmatprep.mubr.bf16.mxu1 %v11388_v23  ;;  %v2028_v8 = vpop.f32.mrf.mxu0  ;;  %v782_v23 = vld [vmem:[#allocation2 + $0x2e0] sm:$0xff]  ;;  %v794_v0 = vld [vmem:[#allocation2 + $0x138] sm:$0xff] }
 0x1f6   : > { %v2221_v32 = vpop.f32.mrf.mxu1 }
 0x1f7   : > { %2887 = vst [vmem:[#allocation2 + $0x368] sm:$0xff] %v2759_v3  ;;  %v2762_v33 = vadd.f32 %v2220_v7, %v774_v1  ;;  %v2222_v34 = vadd.f32 %v2221_v32, %v2028_v8  ;;  %v2030_v15 = vpop.f32.mrf.mxu0  ;;  %v795_v1 = vld [vmem:[#allocation2 + $0xc0] sm:$0xff] }
 0x1f8   : > { %v2223_v19 = vpop.f32.mrf.mxu1 }
 0x1f9   : > { %2890 = vst [vmem:[#allocation2 + $0x380] sm:$0xff] %v2762_v33  ;;  %v2763_v14 = vadd.f32 %v2222_v34, %v775_v61  ;;  %v2224_v22 = vadd.f32 %v2223_v19, %v2030_v15  ;;  %v2032_v16 = vpop.f32.mrf.mxu0  ;;  %v799_v34 = vld [vmem:[#allocation2 + $0x3c0] sm:$0xff] }
 0x1fa   : > { %v2225_v62 = vpop.f32.mrf.mxu1 }
 0x1fb   : > { %2891 = vst [vmem:[#allocation2 + $0x110] sm:$0xff] %v2763_v14  ;;  %v2766_v6 = vadd.f32 %v2224_v22, %v778_v18  ;;  %v2226_v17 = vadd.f32 %v2225_v62, %v2032_v16  ;;  %v2036_v9 = vpop.f32.mrf.mxu0  ;;  %2501 = vmatmul.mubr.bf16.gmra.mxu0 %v11395_v26  ;;  %v802_v22 = vld [vmem:[#allocation2 + $0x218] sm:$0xff] }
 0x1fc   : > { %v2229_v30 = vpop.f32.mrf.mxu1  ;;  %2694 = vmatmul.mubr.bf16.gmra.mxu1 %v11398_v27  ;;  %2510 = vmatprep.mubr.bf16.mxu0 %v11401_v28  ;;  %v803_v62 = vld [vmem:[#allocation2 + $0x3f8] sm:$0xff] }
 0x1fd   : > { %2894 = vst [vmem:[#allocation2 + $0x320] sm:$0xff] %v2766_v6  ;;  %v2767_v31 = vadd.f32 %v2226_v17, %v779_v35  ;;  %v2230_v37 = vadd.f32 %v2229_v30, %v2036_v9  ;;  %2703 = vmatprep.mubr.bf16.mxu1 %v11404_v29  ;;  %v2038_v39 = vpop.f32.mrf.mxu0  ;;  %v790_v29 = vld [vmem:[#allocation2 + $0x3e8] sm:$0xff] }
 0x1fe   : > { %v2231_v41 = vpop.f32.mrf.mxu1 }
 0x1ff   : > { %2895 = vst [vmem:[#allocation2 + $0x150] sm:$0xff] %v2767_v31  ;;  %v2770_v42 = vadd.f32 %v2230_v37, %v782_v23  ;;  %v2232_v46 = vadd.f32 %v2231_v41, %v2038_v39  ;;  %v2040_v47 = vpop.f32.mrf.mxu0  ;;  %v14657_v37 = vld [vmem:[#allocation17_spill] sm:$0xff]  ;;  %v14658_v39 = vld [vmem:[#allocation18_spill] sm:$0xff] }
 0x200   : > { %v2233_v13 = vpop.f32.mrf.mxu1  ;;  %v807_v41 = vld [vmem:[#allocation2 + $0x3f0] sm:$0xff] }
 0x201   : > { %2898 = vst [vmem:[#allocation2 + $0x2e0] sm:$0xff] %v2770_v42  ;;  %v2771_v26 = vadd.f32 %v2232_v46, %v783_v12  ;;  %v2234_v52 = vadd.f32 %v2233_v13, %v2040_v47  ;;  %v2042_v27 = vpop.f32.mrf.mxu0  ;;  %v810_v13 = vld [vmem:[#allocation2 + $0xb0] sm:$0xff] }
 0x202   : > { %v2235_v55 = vpop.f32.mrf.mxu1 }
 0x203   : > { %2899 = vst [vmem:[#allocation2 + $0x388] sm:$0xff] %v2771_v26  ;;  %v2774_v2 = vadd.f32 %v2234_v52, %v786_v51  ;;  %v2236_v28 = vadd.f32 %v2235_v55, %v2042_v27  ;;  %v2046_v20 = vpop.f32.mrf.mxu0  ;;  %2511 = vmatmul.mubr.bf16.gmra.mxu0 %v11411_v36  ;;  %v811_v27 = vld [vmem:[#allocation2 + $0x1e0] sm:$0xff] }
 0x204   : > { %v2239_v21 = vpop.f32.mrf.mxu1  ;;  %2704 = vmatmul.mubr.bf16.gmra.mxu1 %v11414_v38  ;;  %2520 = vmatprep.mubr.bf16.mxu0 %v11417_v40 }
 0x205   : > { %2902 = vst [vmem:[#allocation2 + $0x80] sm:$0xff] %v2774_v2  ;;  %v2775_v54 = vadd.f32 %v2236_v28, %v787_v53  ;;  %v2240_v57 = vadd.f32 %v2239_v21, %v2046_v20  ;;  %2713 = vmatprep.mubr.bf16.mxu1 %v11420_v43  ;;  %v2048_v58 = vpop.f32.mrf.mxu0  ;;  %v798_v43 = vld [vmem:[#allocation2 + $0x100] sm:$0xff]  ;;  %v814_v20 = vld [vmem:[#allocation2 + $0x230] sm:$0xff] }
 0x206   : > { %v2241_v5 = vpop.f32.mrf.mxu1  ;;  %v14659_v21 = vld [vmem:[#allocation19_spill] sm:$0xff] }
 0x207   : > { %2903 = vst [vmem:[#allocation2 + $0x1a8] sm:$0xff] %v2775_v54  ;;  %v2778_v24 = vadd.f32 %v2240_v57, %v790_v29  ;;  %v2242_v63 = vadd.f32 %v2241_v5, %v2048_v58  ;;  %v2050_v25 = vpop.f32.mrf.mxu0  ;;  %v14660_v54 = vld [vmem:[#allocation20_spill] sm:$0xff]  ;;  %v14662_v5 = vld [vmem:[#allocation22_spill] sm:$0xff] }
 0x208   : > { %v2243_v60 = vpop.f32.mrf.mxu1 }
 0x209   : > { %2906 = vst [vmem:[#allocation2 + $0x3e8] sm:$0xff] %v2778_v24  ;;  %v2779_v36 = vadd.f32 %v2242_v63, %v791_v59  ;;  %v2244_v4 = vadd.f32 %v2243_v60, %v2050_v25  ;;  %v2052_v38 = vpop.f32.mrf.mxu0  ;;  %v14661_v59 = vld [vmem:[#allocation21_spill] sm:$0xff] }
 0x20a   : > { %v2245_v11 = vpop.f32.mrf.mxu1  ;;  %v815_v63 = vld [vmem:[#allocation2 + $0x240] sm:$0xff] }
 0x20b   : > { %2907 = vst [vmem:[#allocation2 + $0x2f8] sm:$0xff] %v2779_v36  ;;  %v2782_v3 = vadd.f32 %v2244_v4, %v794_v0  ;;  %v2246_v40 = vadd.f32 %v2245_v11, %v2052_v38  ;;  %v2056_v7 = vpop.f32.mrf.mxu0  ;;  %2521 = vmatmul.mubr.bf16.gmra.mxu0 %v11427_v44  ;;  %v818_v4 = vld [vmem:[#allocation2 + $0x208] sm:$0xff] }
 0x20c   : > { %v2249_v8 = vpop.f32.mrf.mxu1  ;;  %2714 = vmatmul.mubr.bf16.gmra.mxu1 %v11430_v45  ;;  %2530 = vmatprep.mubr.bf16.mxu0 %v11433_v48 }
 0x20d   : > { %2910 = vst [vmem:[#allocation2 + $0x138] sm:$0xff] %v2782_v3  ;;  %v2783_v61 = vadd.f32 %v2246_v40, %v795_v1  ;;  %v2250_v32 = vadd.f32 %v2249_v8, %v2056_v7  ;;  %2723 = vmatprep.mubr.bf16.mxu1 %v11436_v49  ;;  %v2058_v33 = vpop.f32.mrf.mxu0  ;;  %v806_v49 = vld [vmem:[#allocation2 + $0x2a0] sm:$0xff]  ;;  %v819_v40 = vld [vmem:[#allocation2 + $0xd0] sm:$0xff] }
 0x20e   : > { %v2251_v15 = vpop.f32.mrf.mxu1 }
 0x20f   : > { %2911 = vst [vmem:[#allocation2 + $0xc0] sm:$0xff] %v2783_v61  ;;  %v2786_v18 = vadd.f32 %v2250_v32, %v798_v43  ;;  %v2252_v19 = vadd.f32 %v2251_v15, %v2058_v33  ;;  %v2060_v14 = vpop.f32.mrf.mxu0  ;;  %v822_v32 = vld [vmem:[#allocation2 + $0x358] sm:$0xff] }
 0x210   : > { %v2253_v16 = vpop.f32.mrf.mxu1 }
 0x211   : > { %2914 = vst [vmem:[#allocation2 + $0x100] sm:$0xff] %v2786_v18  ;;  %v2787_v44 = vadd.f32 %v2252_v19, %v799_v34  ;;  %v2254_v35 = vadd.f32 %v2253_v16, %v2060_v14  ;;  %v2062_v45 = vpop.f32.mrf.mxu0  ;;  %v14663_v34 = vld [vmem:[#allocation23_spill] sm:$0xff]  ;;  %v14664_v19 = vld [vmem:[#allocation24_spill] sm:$0xff]  ;;  %v823_v16 = vld [vmem:[#allocation2 + $0x268] sm:$0xff] }
 0x212   : > { %v2255_v6 = vpop.f32.mrf.mxu1  ;;  %v9858_v14 = vld [vmem:[%s10838_s17 + $0xc] ss:$16 sps:$4 sm:$0xff]  }
 0x213   : > { %2915 = vst [vmem:[#allocation2 + $0x3c0] sm:$0xff] %v2787_v44  ;;  %v2790_v17 = vadd.f32 %v2254_v35, %v802_v22  ;;  %v2256_v48 = vadd.f32 %v2255_v6, %v2062_v45  ;;  %v2066_v9 = vpop.f32.mrf.mxu0  ;;  %2531 = vmatmul.mubr.bf16.gmra.mxu0 %v11443_v50 }
 0x214   : > { %v2259_v23 = vpop.f32.mrf.mxu1  ;;  %2724 = vmatmul.mubr.bf16.gmra.mxu1 %v11446_v56  ;;  %2540 = vmatprep.mubr.bf16.mxu0 %v14657_v37 }
 0x215   : > { %2918 = vst [vmem:[#allocation2 + $0x218] sm:$0xff] %v2790_v17  ;;  %v2791_v30 = vadd.f32 %v2256_v48, %v803_v62  ;;  %v2260_v31 = vadd.f32 %v2259_v23, %v2066_v9  ;;  %2733 = vmatprep.mubr.bf16.mxu1 %v14658_v39  ;;  %v2068_v12 = vpop.f32.mrf.mxu0  ;;  %v826_v62 = vld [vmem:[#allocation2 + $0x1d8] sm:$0xff] }
 0x216   : > { %v2261_v42 = vpop.f32.mrf.mxu1  ;;  %v9761_v9 = vld [vmem:[%s10851_s14 + $0xe8] ss:$16 sps:$4 sm:$0xff]  }
 0x217   : > { %2919 = vst [vmem:[#allocation2 + $0x3f8] sm:$0xff] %v2791_v30  ;;  %v2794_v46 = vadd.f32 %v2260_v31, %v806_v49  ;;  %v2262_v47 = vadd.f32 %v2261_v42, %v2068_v12  ;;  %v2070_v51 = vpop.f32.mrf.mxu0  ;;  %v9764_v49 = vld [vmem:[%s10851_s14 + $0x2e8] ss:$16 sps:$4 sm:$0xff]   ;;  %v827_v30 = vld [vmem:[#allocation2 + $0x30] sm:$0xff]  ;;  %v9769_v12 = vld [vmem:[%s10851_s14 + $0xcc] ss:$16 sps:$4 sm:$0xff]  }
 0x218   : > { %v2263_v26 = vpop.f32.mrf.mxu1 }
 0x219   : > { %2922 = vst [vmem:[#allocation2 + $0x2a0] sm:$0xff] %v2794_v46  ;;  %v2795_v50 = vadd.f32 %v2262_v47, %v807_v41  ;;  %v2264_v52 = vadd.f32 %v2263_v26, %v2070_v51  ;;  %v2072_v56 = vpop.f32.mrf.mxu0  ;;  %v9772_v41 = vld [vmem:[%s10851_s14 + $0x2cc] ss:$16 sps:$4 sm:$0xff]   ;;  %v830_v46 = vld [vmem:[#allocation2 + $0x130] sm:$0xff] }
 0x21a   : > { %v2265_v53 = vpop.f32.mrf.mxu1  ;;  %v9859_v51 = vld [vmem:[%s10838_s17] ss:$16 sps:$4 sm:$0xff]  }
 0x21b   : > { %2923 = vst [vmem:[#allocation2 + $0x3f0] sm:$0xff] %v2795_v50  ;;  %v2798_v55 = vadd.f32 %v2264_v52, %v810_v13  ;;  %v2266_v2 = vadd.f32 %v2265_v53, %v2072_v56  ;;  %v2076_v28 = vpop.f32.mrf.mxu0  ;;  %2541 = vmatmul.mubr.bf16.gmra.mxu0 %v14659_v21  ;;  %v9860_v13 = vld [vmem:[%s10838_s17 + $0x8] ss:$16 sps:$4 sm:$0xff]   ;;  %v831_v53 = vld [vmem:[#allocation2 + $0x200] sm:$0xff] }
 0x21c   : > { %v2269_v29 = vpop.f32.mrf.mxu1  ;;  %2734 = vmatmul.mubr.bf16.gmra.mxu1 %v14660_v54  ;;  %2550 = vmatprep.mubr.bf16.mxu0 %v14661_v59  ;;  %v9767_v52 = vld [vmem:[%s10851_s14 + $0xc8] ss:$16 sps:$4 sm:$0xff]  }
 0x21d   : > { %2926 = vst [vmem:[#allocation2 + $0xb0] sm:$0xff] %v2798_v55  ;;  %v2799_v57 = vadd.f32 %v2266_v2, %v811_v27  ;;  %v2270_v58 = vadd.f32 %v2269_v29, %v2076_v28  ;;  %2743 = vmatprep.mubr.bf16.mxu1 %v14662_v5  ;;  %v2078_v24 = vpop.f32.mrf.mxu0  ;;  %v9770_v56 = vld [vmem:[%s10851_s14 + $0x2c8] ss:$16 sps:$4 sm:$0xff]   ;;  %v9861_v2 = vld [vmem:[%s10838_s17 + $0x24] ss:$16 sps:$4 sm:$0xff]  }
 0x21e   : > { %v2271_v25 = vpop.f32.mrf.mxu1  ;;  %v9862_v28 = vld [vmem:[%s10838_s17 + $0x2c] ss:$16 sps:$4 sm:$0xff]  }
 0x21f   : > { %2927 = vst [vmem:[#allocation2 + $0x1e0] sm:$0xff] %v2799_v57  ;;  %v2802_v0 = vadd.f32 %v2270_v58, %v814_v20  ;;  %v2272_v60 = vadd.f32 %v2271_v25, %v2078_v24  ;;  %v2080_v36 = vpop.f32.mrf.mxu0  ;;  %v9775_v20 = vld [vmem:[%s10851_s14 + $0xac] ss:$16 sps:$4 sm:$0xff]   ;;  %v834_v58 = vld [vmem:[#allocation2 + $0x70] sm:$0xff]  ;;  %v835_v25 = vld [vmem:[#allocation2 + $0x300] sm:$0xff] }
 0x220   : > { %v2273_v38 = vpop.f32.mrf.mxu1  ;;  %v9778_v29 = vld [vmem:[%s10851_s14 + $0x2ac] ss:$16 sps:$4 sm:$0xff]  }
 0x221   : > { %2930 = vst [vmem:[#allocation2 + $0x230] sm:$0xff] %v2802_v0  ;;  %v2803_v1 = vadd.f32 %v2272_v60, %v815_v63  ;;  %v2274_v11 = vadd.f32 %v2273_v38, %v2080_v36  ;;  %v2082_v3 = vpop.f32.mrf.mxu0  ;;  %v9773_v60 = vld [vmem:[%s10851_s14 + $0xa8] ss:$16 sps:$4 sm:$0xff]  }
 0x222   : > { %v2275_v7 = vpop.f32.mrf.mxu1  ;;  %v9776_v36 = vld [vmem:[%s10851_s14 + $0x2a8] ss:$16 sps:$4 sm:$0xff]  }
 0x223   : > { %2931 = vst [vmem:[#allocation2 + $0x240] sm:$0xff] %v2803_v1  ;;  %v2806_v43 = vadd.f32 %v2274_v11, %v818_v4  ;;  %v2276_v8 = vadd.f32 %v2275_v7, %v2082_v3  ;;  %v2086_v61 = vpop.f32.mrf.mxu0  ;;  %2551 = vmatmul.mubr.bf16.gmra.mxu0 %v11475_v10  ;;  %v9781_v1 = vld [vmem:[%s10851_s14 + $0x8c] ss:$16 sps:$4 sm:$0xff]  }
 0x224   : > { %v2279_v33 = vpop.f32.mrf.mxu1  ;;  %2744 = vmatmul.mubr.bf16.gmra.mxu1 %v14663_v34  ;;  %3938 = vmatprep.mubr.bf16.mxu0 %v14664_v19  ;;  %v9784_v11 = vld [vmem:[%s10851_s14 + $0x28c] ss:$16 sps:$4 sm:$0xff]  }
 0x225   : > { %2934 = vst [vmem:[#allocation2 + $0x208] sm:$0xff] %v2806_v43  ;;  %v2807_v15 = vadd.f32 %v2276_v8, %v819_v40  ;;  %v2280_v18 = vadd.f32 %v2279_v33, %v2086_v61  ;;  %4131 = vmatprep.mubr.bf16.mxu1 %v9858_v14  ;;  %v2088_v22 = vpop.f32.mrf.mxu0  ;;  %v838_v40 = vld [vmem:[#allocation2 + $0x328] sm:$0xff]  ;;  %v9863_v43 = vld [vmem:[%s10838_s17 + $0x20] ss:$16 sps:$4 sm:$0xff]   ;;  %v9865_v33 = vld [vmem:[%s10838_s17 + $0x44] ss:$16 sps:$4 sm:$0xff]  }
 0x226   : > { %v2281_v44 = vpop.f32.mrf.mxu1  ;;  %v9864_v8 = vld [vmem:[%s10838_s17 + $0x28] ss:$16 sps:$4 sm:$0xff]   ;;  %v9866_v34 = vld [vmem:[%s10838_s17 + $0x4c] ss:$16 sps:$4 sm:$0xff]  }
 0x227   : > { %2935 = vst [vmem:[#allocation2 + $0xd0] sm:$0xff] %v2807_v15  ;;  %v2810_v35 = vadd.f32 %v2280_v18, %v822_v32  ;;  %v2282_v45 = vadd.f32 %v2281_v44, %v2088_v22  ;;  %v2090_v10 = vpop.f32.mrf.mxu0  ;;  %v839_v18 = vld [vmem:[#allocation2 + $0x260] sm:$0xff]  ;;  %v9779_v14 = vld [vmem:[%s10851_s14 + $0x88] ss:$16 sps:$4 sm:$0xff]  }
 0x228   : > { %v2283_v6 = vpop.f32.mrf.mxu1  ;;  %v9782_v22 = vld [vmem:[%s10851_s14 + $0x288] ss:$16 sps:$4 sm:$0xff]  }
 0x229   : > { %2938 = vst [vmem:[#allocation2 + $0x358] sm:$0xff] %v2810_v35  ;;  %v2811_v17 = vadd.f32 %v2282_v45, %v823_v16  ;;  %v2284_v48 = vadd.f32 %v2283_v6, %v2090_v10  ;;  %v2092_v23 = vpop.f32.mrf.mxu0  ;;  %v9787_v35 = vld [vmem:[%s10851_s14 + $0x6c] ss:$16 sps:$4 sm:$0xff]  }
 0x22a   : > { %v2285_v31 = vpop.f32.mrf.mxu1  ;;  %v9790_v45 = vld [vmem:[%s10851_s14 + $0x26c] ss:$16 sps:$4 sm:$0xff]  }
 0x22b   : > { %2939 = vst [vmem:[#allocation2 + $0x268] sm:$0xff] %v2811_v17  ;;  %v2814_v37 = vadd.f32 %v2284_v48, %v826_v62  ;;  %v2286_v39 = vadd.f32 %v2285_v31, %v2092_v23  ;;  %v2096_v42 = vpop.f32.mrf.mxu0  ;;  %3939 = vmatmul.mubr.bf16.vlgmr.msra.gmra.mxu0 %v9859_v51  ;;  %v842_v62 = vld [vmem:[#allocation2 + $0x248] sm:$0xff]  ;;  %v9867_v51 = vld [vmem:[%s10838_s17 + $0x40] ss:$16 sps:$4 sm:$0xff]  }
 0x22c   : > { %v2289_v47 = vpop.f32.mrf.mxu1  ;;  %4132 = vmatmul.mubr.bf16.vlgmr.msra.gmra.mxu1 %v9860_v13  ;;  %4293 = vmatpush1.bf16.msra.mxu0 %v9761_v9  ;;  %v9788_v31 = vld [vmem:[%s10851_s14 + $0x268] ss:$16 sps:$4 sm:$0xff]  }
 0x22d   : > { %2942 = vst [vmem:[#allocation2 + $0x1d8] sm:$0xff] %v2814_v37  ;;  %v2815_v26 = vadd.f32 %v2286_v39, %v827_v30  ;;  %v2290_v50 = vadd.f32 %v2289_v47, %v2096_v42  ;;  %4486 = vmatpush1.bf16.msra.mxu1 %v9764_v49  ;;  %v2098_v27 = vpop.f32.mrf.mxu0  ;;  %3948 = vmatprep.mubr.bf16.mxu0 %v9861_v2  ;;  %v843_v49 = vld [vmem:[#allocation2 + $0x40] sm:$0xff]  ;;  %v9785_v30 = vld [vmem:[%s10851_s14 + $0x68] ss:$16 sps:$4 sm:$0xff]  }
 0x22e   : > { %v2291_v55 = vpop.f32.mrf.mxu1  ;;  %4141 = vmatprep.mubr.bf16.mxu1 %v9862_v28  ;;  %4294 = vmatprep.subr.bf16.mxu0 %v9769_v12  ;;  %v9793_v12 = vld [vmem:[%s10851_s14 + $0x4c] ss:$16 sps:$4 sm:$0xff]   ;;  %v9868_v13 = vld [vmem:[%s10838_s17 + $0x48] ss:$16 sps:$4 sm:$0xff]  }
 0x22f   : > { %2943 = vst [vmem:[#allocation2 + $0x30] sm:$0xff] %v2815_v26  ;;  %v2818_v21 = vadd.f32 %v2290_v50, %v830_v46  ;;  %v2292_v54 = vadd.f32 %v2291_v55, %v2098_v27  ;;  %4487 = vmatprep.subr.bf16.mxu1 %v9772_v41  ;;  %v2100_v57 = vpop.f32.mrf.mxu0  ;;  %v9796_v41 = vld [vmem:[%s10851_s14 + $0x24c] ss:$16 sps:$4 sm:$0xff]   ;;  %v9791_v2 = vld [vmem:[%s10851_s14 + $0x48] ss:$16 sps:$4 sm:$0xff]  }
 0x230   : > { %v2293_v59 = vpop.f32.mrf.mxu1  ;;  %4295 = vmatpush1.bf16.msra.mxu0 %v9767_v52  ;;  %v846_v46 = vld [vmem:[#allocation2 + $0x288] sm:$0xff]  ;;  %v9869_v52 = vld [vmem:[%s10838_s17 + $0x64] ss:$16 sps:$4 sm:$0xff]  }
 0x231   : > { %2946 = vst [vmem:[#allocation2 + $0x130] sm:$0xff] %v2818_v21  ;;  %v2819_v5 = vadd.f32 %v2292_v54, %v831_v53  ;;  %v2294_v24 = vadd.f32 %v2293_v59, %v2100_v57  ;;  %4488 = vmatpush1.bf16.msra.mxu1 %v9770_v56  ;;  %v2102_v63 = vpop.f32.mrf.mxu0  ;;  %4296 = vmatprep.subr.bf16.mxu0 %v9775_v20  ;;  %v9870_v56 = vld [vmem:[%s10838_s17 + $0x6c] ss:$16 sps:$4 sm:$0xff]   ;;  %v9794_v28 = vld [vmem:[%s10851_s14 + $0x248] ss:$16 sps:$4 sm:$0xff]  }
 0x232   : > { %v2295_v0 = vpop.f32.mrf.mxu1  ;;  %4489 = vmatprep.subr.bf16.mxu1 %v9778_v29  ;;  %v847_v53 = vld [vmem:[#allocation2 + $0x3a8] sm:$0xff] }
 0x233   : > { %2947 = vst [vmem:[#allocation2 + $0x200] sm:$0xff] %v2819_v5  ;;  %v2822_v4 = vadd.f32 %v2294_v24, %v834_v58  ;;  %v2296_v38 = vadd.f32 %v2295_v0, %v2102_v63  ;;  %v2106_v3 = vpop.f32.mrf.mxu0  ;;  %3949 = vmatmul.mubr.bf16.gmra.mxu0 %v9863_v43  ;;  %v9799_v21 = vld [vmem:[%s10851_s14 + $0x2c] ss:$16 sps:$4 sm:$0xff]   ;;  %v9871_v43 = vld [vmem:[%s10838_s17 + $0x60] ss:$16 sps:$4 sm:$0xff]  }
 0x234   : > { %v2299_v7 = vpop.f32.mrf.mxu1  ;;  %4142 = vmatmul.mubr.bf16.gmra.mxu1 %v9864_v8  ;;  %3958 = vmatprep.mubr.bf16.mxu0 %v9865_v33  ;;  %v9802_v54 = vld [vmem:[%s10851_s14 + $0x22c] ss:$16 sps:$4 sm:$0xff]   ;;  %v9872_v8 = vld [vmem:[%s10838_s17 + $0x68] ss:$16 sps:$4 sm:$0xff]   ;;  %v9873_v33 = vld [vmem:[%s10838_s17 + $0x84] ss:$16 sps:$4 sm:$0xff]  }
 0x235   : > { %2950 = vst [vmem:[#allocation2 + $0x70] sm:$0xff] %v2822_v4  ;;  %v2823_v61 = vadd.f32 %v2296_v38, %v835_v25  ;;  %v2300_v32 = vadd.f32 %v2299_v7, %v2106_v3  ;;  %4151 = vmatprep.mubr.bf16.mxu1 %v9866_v34  ;;  %v2108_v15 = vpop.f32.mrf.mxu0  ;;  %4297 = vmatpush1.bf16.msra.mxu0 %v9773_v60  ;;  %v850_v58 = vld [vmem:[#allocation2 + $0x2c8] sm:$0xff]  ;;  %v851_v25 = vld [vmem:[#allocation2 + $0x210] sm:$0xff] }
 0x236   : > { %v2301_v19 = vpop.f32.mrf.mxu1  ;;  %4490 = vmatpush1.bf16.msra.mxu1 %v9776_v36  ;;  %4298 = vmatprep.subr.bf16.mxu0 %v9781_v1  ;;  %v9797_v60 = vld [vmem:[%s10851_s14 + $0x28] ss:$16 sps:$4 sm:$0xff]   ;;  %v9805_v1 = vld [vmem:[%s10851_s14 + $0xc] ss:$16 sps:$4 sm:$0xff]  }
 0x237   : > { %2951 = vst [vmem:[#allocation2 + $0x300] sm:$0xff] %v2823_v61  ;;  %v2826_v16 = vadd.f32 %v2300_v32, %v838_v40  ;;  %v2302_v44 = vadd.f32 %v2301_v19, %v2108_v15  ;;  %4491 = vmatprep.subr.bf16.mxu1 %v9784_v11  ;;  %v2110_v10 = vpop.f32.mrf.mxu0  ;;  %v9800_v36 = vld [vmem:[%s10851_s14 + $0x228] ss:$16 sps:$4 sm:$0xff]   ;;  %v9808_v11 = vld [vmem:[%s10851_s14 + $0x20c] ss:$16 sps:$4 sm:$0xff]   ;;  %v854_v40 = vld [vmem:[#allocation2 + $0x1b0] sm:$0xff] }
 0x238   : > { %v2303_v6 = vpop.f32.mrf.mxu1  ;;  %v9874_v34 = vld [vmem:[%s10838_s17 + $0x8c] ss:$16 sps:$4 sm:$0xff]  }
 0x239   : > { %2954 = vst [vmem:[#allocation2 + $0x328] sm:$0xff] %v2826_v16  ;;  %v2827_v17 = vadd.f32 %v2302_v44, %v839_v18  ;;  %v2304_v48 = vadd.f32 %v2303_v6, %v2110_v10  ;;  %v2112_v9 = vpop.f32.mrf.mxu0  ;;  %4299 = vmatpush1.bf16.msra.mxu0 %v9779_v14  ;;  %v855_v18 = vld [vmem:[#allocation2 + $0x1c8] sm:$0xff] }
 0x23a   : > { %v2305_v23 = vpop.f32.mrf.mxu1  ;;  %4492 = vmatpush1.bf16.msra.mxu1 %v9782_v22  ;;  %4300 = vmatprep.subr.bf16.mxu0 %v9787_v35  ;;  %v9803_v14 = vld [vmem:[%s10851_s14 + $0x8] ss:$16 sps:$4 sm:$0xff]   ;;  %v9811_v35 = vld [vmem:[%s10851_s14 + $0x1ec] ss:$16 sps:$4 sm:$0xff]  }
 0x23b   : > { %2955 = vst [vmem:[#allocation2 + $0x260] sm:$0xff] %v2827_v17  ;;  %v2830_v37 = vadd.f32 %v2304_v48, %v842_v62  ;;  %v2306_v39 = vadd.f32 %v2305_v23, %v2112_v9  ;;  %4493 = vmatprep.subr.bf16.mxu1 %v9790_v45  ;;  %v2116_v42 = vpop.f32.mrf.mxu0  ;;  %3959 = vmatmul.mubr.bf16.gmra.mxu0 %v9867_v51  ;;  %v9806_v22 = vld [vmem:[%s10851_s14 + $0x208] ss:$16 sps:$4 sm:$0xff]   ;;  %v9814_v45 = vld [vmem:[%s10851_s14 + $0x3ec] ss:$16 sps:$4 sm:$0xff]  }
 0x23c   : > { %v2309_v47 = vpop.f32.mrf.mxu1  ;;  %4152 = vmatmul.mubr.bf16.gmra.mxu1 %v9868_v13  ;;  %3968 = vmatprep.mubr.bf16.mxu0 %v9869_v52  ;;  %v858_v62 = vld [vmem:[#allocation2 + $0x58] sm:$0xff]  ;;  %v11668_v51 = vld [vmem:[%s10838_s17 + $0x80] ss:$16 sps:$4 sm:$0xff]   ;;  %v11676_v52 = vld [vmem:[%s10838_s17 + $0xa4] ss:$16 sps:$4 sm:$0xff]  }
 0x23d   : > { %2958 = vst [vmem:[#allocation2 + $0x248] sm:$0xff] %v2830_v37  ;;  %v2831_v26 = vadd.f32 %v2306_v39, %v843_v49  ;;  %v2310_v50 = vadd.f32 %v2309_v47, %v2116_v42  ;;  %4161 = vmatprep.mubr.bf16.mxu1 %v9870_v56  ;;  %v2118_v27 = vpop.f32.mrf.mxu0  ;;  %4301 = vmatpush1.bf16.msra.mxu0 %v9785_v30  ;;  %v859_v49 = vld [vmem:[#allocation2 + $0x120] sm:$0xff]  ;;  %v9809_v30 = vld [vmem:[%s10851_s14 + $0x1e8] ss:$16 sps:$4 sm:$0xff]   ;;  %v11680_v56 = vld [vmem:[%s10838_s17 + $0xac] ss:$16 sps:$4 sm:$0xff]  }
 0x23e   : > { %v2311_v55 = vpop.f32.mrf.mxu1  ;;  %4494 = vmatpush1.bf16.msra.mxu1 %v9788_v31  ;;  %4302 = vmatprep.subr.bf16.mxu0 %v9793_v12  ;;  %v9812_v31 = vld [vmem:[%s10851_s14 + $0x3e8] ss:$16 sps:$4 sm:$0xff]   ;;  %v9817_v12 = vld [vmem:[%s10851_s14 + $0x1cc] ss:$16 sps:$4 sm:$0xff]  }
 0x23f   : > { %2959 = vst [vmem:[#allocation2 + $0x40] sm:$0xff] %v2831_v26  ;;  %v2834_v20 = vadd.f32 %v2310_v50, %v846_v46  ;;  %v2312_v29 = vadd.f32 %v2311_v55, %v2118_v27  ;;  %4495 = vmatprep.subr.bf16.mxu1 %v9796_v41  ;;  %v2120_v57 = vpop.f32.mrf.mxu0  ;;  %v9820_v41 = vld [vmem:[%s10851_s14 + $0x3cc] ss:$16 sps:$4 sm:$0xff]   ;;  %v11672_v13 = vld [vmem:[%s10838_s17 + $0x88] ss:$16 sps:$4 sm:$0xff]  }
 0x240   : > { %v2313_v59 = vpop.f32.mrf.mxu1  ;;  %v862_v46 = vld [vmem:[#allocation2 + $0x1f8] sm:$0xff] }
 0x241   : > { %2962 = vst [vmem:[#allocation2 + $0x288] sm:$0xff] %v2834_v20  ;;  %v2835_v5 = vadd.f32 %v2312_v29, %v847_v53  ;;  %v2314_v24 = vadd.f32 %v2313_v59, %v2120_v57  ;;  %v2122_v63 = vpop.f32.mrf.mxu0  ;;  %4303 = vmatpush1.bf16.msra.mxu0 %v9791_v2  ;;  %v863_v53 = vld [vmem:[#allocation2 + $0x238] sm:$0xff] }
 0x242   : > { %v2315_v0 = vpop.f32.mrf.mxu1  ;;  %4496 = vmatpush1.bf16.msra.mxu1 %v9794_v28  ;;  %4304 = vmatprep.subr.bf16.mxu0 %v9799_v21  ;;  %v9815_v2 = vld [vmem:[%s10851_s14 + $0x1c8] ss:$16 sps:$4 sm:$0xff]   ;;  %v9823_v21 = vld [vmem:[%s10851_s14 + $0x1ac] ss:$16 sps:$4 sm:$0xff]  }
 0x243   : > { %2963 = vst [vmem:[#allocation2 + $0x3a8] sm:$0xff] %v2835_v5  ;;  %v2838_v4 = vadd.f32 %v2314_v24, %v850_v58  ;;  %v2316_v38 = vadd.f32 %v2315_v0, %v2122_v63  ;;  %4497 = vmatprep.subr.bf16.mxu1 %v9802_v54  ;;  %v2126_v3 = vpop.f32.mrf.mxu0  ;;  %3969 = vmatmul.mubr.bf16.gmra.mxu0 %v9871_v43  ;;  %v9818_v28 = vld [vmem:[%s10851_s14 + $0x3c8] ss:$16 sps:$4 sm:$0xff]   ;;  %v9826_v54 = vld [vmem:[%s10851_s14 + $0x3ac] ss:$16 sps:$4 sm:$0xff]   ;;  %v866_v58 = vld [vmem:[#allocation2 + $0x1a0] sm:$0xff] }
 0x244   : > { %v2319_v7 = vpop.f32.mrf.mxu1  ;;  %4162 = vmatmul.mubr.bf16.gmra.mxu1 %v9872_v8  ;;  %3978 = vmatprep.mubr.bf16.mxu0 %v9873_v33  ;;  %v11692_v43 = vld [vmem:[%s10838_s17 + $0xa0] ss:$16 sps:$4 sm:$0xff]   ;;  %v11696_v8 = vld [vmem:[%s10838_s17 + $0xa8] ss:$16 sps:$4 sm:$0xff]   ;;  %v11700_v33 = vld [vmem:[%s10838_s17 + $0xc4] ss:$16 sps:$4 sm:$0xff]  }
 0x245   : > { %2966 = vst [vmem:[#allocation2 + $0x2c8] sm:$0xff] %v2838_v4  ;;  %v2839_v61 = vadd.f32 %v2316_v38, %v851_v25  ;;  %v2320_v32 = vadd.f32 %v2319_v7, %v2126_v3  ;;  %4171 = vmatprep.mubr.bf16.mxu1 %v9874_v34  ;;  %v2128_v15 = vpop.f32.mrf.mxu0  ;;  %4305 = vmatpush1.bf16.msra.mxu0 %v9797_v60  ;;  %v867_v25 = vld [vmem:[#allocation2 + $0xa8] sm:$0xff] }
 0x246   : > { %v2321_v19 = vpop.f32.mrf.mxu1  ;;  %4498 = vmatpush1.bf16.msra.mxu1 %v9800_v36  ;;  %4306 = vmatprep.subr.bf16.mxu0 %v9805_v1  ;;  %v9821_v60 = vld [vmem:[%s10851_s14 + $0x1a8] ss:$16 sps:$4 sm:$0xff]   ;;  %v9829_v1 = vld [vmem:[%s10851_s14 + $0x18c] ss:$16 sps:$4 sm:$0xff]  }
 0x247   : > { %2967 = vst [vmem:[#allocation2 + $0x210] sm:$0xff] %v2839_v61  ;;  %v2842_v16 = vadd.f32 %v2320_v32, %v854_v40  ;;  %v2322_v44 = vadd.f32 %v2321_v19, %v2128_v15  ;;  %4499 = vmatprep.subr.bf16.mxu1 %v9808_v11  ;;  %v2130_v10 = vpop.f32.mrf.mxu0  ;;  %v9824_v36 = vld [vmem:[%s10851_s14 + $0x3a8] ss:$16 sps:$4 sm:$0xff]   ;;  %v9832_v11 = vld [vmem:[%s10851_s14 + $0x38c] ss:$16 sps:$4 sm:$0xff]   ;;  %v870_v40 = vld [vmem:[#allocation2 + $0xf0] sm:$0xff] }
 0x248   : > { %v2323_v6 = vpop.f32.mrf.mxu1  ;;  %v11704_v34 = vld [vmem:[%s10838_s17 + $0xcc] ss:$16 sps:$4 sm:$0xff]  }
 0x249   : > { %2970 = vst [vmem:[#allocation2 + $0x1b0] sm:$0xff] %v2842_v16  ;;  %v2843_v17 = vadd.f32 %v2322_v44, %v855_v18  ;;  %v2324_v48 = vadd.f32 %v2323_v6, %v2130_v10  ;;  %v2132_v9 = vpop.f32.mrf.mxu0  ;;  %4307 = vmatpush1.bf16.msra.mxu0 %v9803_v14  ;;  %v871_v18 = vld [vmem:[#allocation2 + $0x180] sm:$0xff]  ;;  %v9827_v14 = vld [vmem:[%s10851_s14 + $0x188] ss:$16 sps:$4 sm:$0xff]  }
 0x24a   : > { %v2325_v23 = vpop.f32.mrf.mxu1  ;;  %4500 = vmatpush1.bf16.msra.mxu1 %v9806_v22  ;;  %4308 = vmatprep.subr.bf16.mxu0 %v9811_v35  ;;  %v9830_v22 = vld [vmem:[%s10851_s14 + $0x388] ss:$16 sps:$4 sm:$0xff]   ;;  %v9835_v35 = vld [vmem:[%s10851_s14 + $0x16c] ss:$16 sps:$4 sm:$0xff]  }
 0x24b   : > { %2971 = vst [vmem:[#allocation2 + $0x1c8] sm:$0xff] %v2843_v17  ;;  %v2846_v37 = vadd.f32 %v2324_v48, %v858_v62  ;;  %v2326_v39 = vadd.f32 %v2325_v23, %v2132_v9  ;;  %4501 = vmatprep.subr.bf16.mxu1 %v9814_v45  ;;  %v2136_v42 = vpop.f32.mrf.mxu0  ;;  %3979 = vmatmul.mubr.bf16.gmra.mxu0 %v11668_v51  ;;  %v9838_v45 = vld [vmem:[%s10851_s14 + $0x36c] ss:$16 sps:$4 sm:$0xff]   ;;  %v874_v62 = vld [vmem:[#allocation2 + $0x250] sm:$0xff] }
 0x24c   : > { %v2329_v47 = vpop.f32.mrf.mxu1  ;;  %4172 = vmatmul.mubr.bf16.gmra.mxu1 %v11672_v13  ;;  %3988 = vmatprep.mubr.bf16.mxu0 %v11676_v52 }
 0x24d   : > { %2974 = vst [vmem:[#allocation2 + $0x58] sm:$0xff] %v2846_v37  ;;  %v2847_v26 = vadd.f32 %v2326_v39, %v859_v49  ;;  %v2330_v50 = vadd.f32 %v2329_v47, %v2136_v42  ;;  %4181 = vmatprep.mubr.bf16.mxu1 %v11680_v56  ;;  %v2138_v27 = vpop.f32.mrf.mxu0  ;;  %4309 = vmatpush2.bf16.msra.mxu0 %v9809_v30  ;;  %v875_v49 = vld [vmem:[#allocation2 + $0x378] sm:$0xff] }
 0x24e   : > { %v2331_v55 = vpop.f32.mrf.mxu1  ;;  %4502 = vmatpush2.bf16.msra.mxu1 %v9812_v31  ;;  %4310 = vmatprep.subr.bf16.mxu0 %v9817_v12  ;;  %v9833_v30 = vld [vmem:[%s10851_s14 + $0x168] ss:$16 sps:$4 sm:$0xff]   ;;  %v9841_v12 = vld [vmem:[%s10851_s14 + $0x14c] ss:$16 sps:$4 sm:$0xff]  }
 0x24f   : > { %2975 = vst [vmem:[#allocation2 + $0x120] sm:$0xff] %v2847_v26  ;;  %v2850_v20 = vadd.f32 %v2330_v50, %v862_v46  ;;  %v2332_v29 = vadd.f32 %v2331_v55, %v2138_v27  ;;  %4503 = vmatprep.subr.bf16.mxu1 %v9820_v41  ;;  %v2140_v57 = vpop.f32.mrf.mxu0  ;;  %v9836_v31 = vld [vmem:[%s10851_s14 + $0x368] ss:$16 sps:$4 sm:$0xff]   ;;  %v9844_v41 = vld [vmem:[%s10851_s14 + $0x34c] ss:$16 sps:$4 sm:$0xff]  }
 0x250   : > { %v2333_v59 = vpop.f32.mrf.mxu1  ;;  %v878_v46 = vld [vmem:[#allocation2 + $0x78] sm:$0xff]  ;;  %v11716_v26 = vld [vmem:[%s10838_s17 + $0xc0] ss:$16 sps:$4 sm:$0xff]   ;;  %v11724_v55 = vld [vmem:[%s10838_s17 + $0xe4] ss:$16 sps:$4 sm:$0xff]  }
 0x251   : > { %2978 = vst [vmem:[#allocation2 + $0x1f8] sm:$0xff] %v2850_v20  ;;  %v2851_v5 = vadd.f32 %v2332_v29, %v863_v53  ;;  %v2334_v24 = vadd.f32 %v2333_v59, %v2140_v57  ;;  %v2142_v63 = vpop.f32.mrf.mxu0  ;;  %4311 = vmatpush2.bf16.msra.mxu0 %v9815_v2  ;;  %v11720_v50 = vld [vmem:[%s10838_s17 + $0xc8] ss:$16 sps:$4 sm:$0xff]   ;;  %v11728_v2 = vld [vmem:[%s10838_s17 + $0xec] ss:$16 sps:$4 sm:$0xff]  }
 0x252   : > { %v2335_v0 = vpop.f32.mrf.mxu1  ;;  %4504 = vmatpush2.bf16.msra.mxu1 %v9818_v28  ;;  %4312 = vmatprep.subr.bf16.mxu0 %v9823_v21  ;;  %v879_v20 = vld [vmem:[#allocation2 + $0x308] sm:$0xff] }
 0x253   : > { %2979 = vst [vmem:[#allocation2 + $0x238] sm:$0xff] %v2851_v5  ;;  %v2854_v4 = vadd.f32 %v2334_v24, %v866_v58  ;;  %v2336_v38 = vadd.f32 %v2335_v0, %v2142_v63  ;;  %4505 = vmatprep.subr.bf16.mxu1 %v9826_v54  ;;  %v2146_v3 = vpop.f32.mrf.mxu0  ;;  %3989 = vmatmul.mubr.bf16.gmra.mxu0 %v11692_v43  ;;  %v9839_v21 = vld [vmem:[%s10851_s14 + $0x148] ss:$16 sps:$4 sm:$0xff]   ;;  %v9847_v59 = vld [vmem:[%s10851_s14 + $0x12c] ss:$16 sps:$4 sm:$0xff]  }
 0x254   : > { %v2339_v7 = vpop.f32.mrf.mxu1  ;;  %4182 = vmatmul.mubr.bf16.gmra.mxu1 %v11696_v8  ;;  %3998 = vmatprep.mubr.bf16.mxu0 %v11700_v33  ;;  %v9842_v54 = vld [vmem:[%s10851_s14 + $0x348] ss:$16 sps:$4 sm:$0xff]   ;;  %v9850_v5 = vld [vmem:[%s10851_s14 + $0x32c] ss:$16 sps:$4 sm:$0xff]  }
 0x255   : > { %2982 = vst [vmem:[#allocation2 + $0x1a0] sm:$0xff] %v2854_v4  ;;  %v2855_v61 = vadd.f32 %v2336_v38, %v867_v25  ;;  %v2340_v32 = vadd.f32 %v2339_v7, %v2146_v3  ;;  %4191 = vmatprep.mubr.bf16.mxu1 %v11704_v34  ;;  %v2148_v15 = vpop.f32.mrf.mxu0  ;;  %4313 = vmatpush2.bf16.msra.mxu0 %v9821_v60  ;;  %v882_v63 = vld [vmem:[#allocation2 + $0x278] sm:$0xff]  ;;  %v883_v4 = vld [vmem:[#allocation2 + $0x360] sm:$0xff] }
 0x256   : > { %v2341_v19 = vpop.f32.mrf.mxu1  ;;  %4506 = vmatpush2.bf16.msra.mxu1 %v9824_v36  ;;  %4314 = vmatprep.subr.bf16.mxu0 %v9829_v1  ;;  %v9845_v1 = vld [vmem:[%s10851_s14 + $0x128] ss:$16 sps:$4 sm:$0xff]   ;;  %v9853_v7 = vld [vmem:[%s10851_s14 + $0x10c] ss:$16 sps:$4 sm:$0xff]  }
 0x257   : > { %2983 = vst [vmem:[#allocation2 + $0xa8] sm:$0xff] %v2855_v61  ;;  %v2858_v16 = vadd.f32 %v2340_v32, %v870_v40  ;;  %v2342_v44 = vadd.f32 %v2341_v19, %v2148_v15  ;;  %4507 = vmatprep.subr.bf16.mxu1 %v9832_v11  ;;  %v2150_v10 = vpop.f32.mrf.mxu0  ;;  %v9848_v11 = vld [vmem:[%s10851_s14 + $0x328] ss:$16 sps:$4 sm:$0xff]   ;;  %v9856_v61 = vld [vmem:[%s10851_s14 + $0x30c] ss:$16 sps:$4 sm:$0xff]  }
 0x258   : > { %v2343_v6 = vpop.f32.mrf.mxu1  ;;  %v886_v15 = vld [vmem:[#allocation2 + $0x148] sm:$0xff]  ;;  %v11740_v19 = vld [vmem:[%s10838_s17 + $0xe0] ss:$16 sps:$4 sm:$0xff]  }
 0x259   : > { %2986 = vst [vmem:[#allocation2 + $0xf0] sm:$0xff] %v2858_v16  ;;  %v2859_v17 = vadd.f32 %v2342_v44, %v871_v18  ;;  %v2344_v48 = vadd.f32 %v2343_v6, %v2150_v10  ;;  %v2152_v9 = vpop.f32.mrf.mxu0  ;;  %4315 = vmatpush2.bf16.msra.mxu0 %v9827_v14  ;;  %v11744_v14 = vld [vmem:[%s10838_s17 + $0xe8] ss:$16 sps:$4 sm:$0xff]   ;;  %v11748_v44 = vld [vmem:[%s10838_s17 + $0x104] ss:$16 sps:$4 sm:$0xff]  }
 0x25a   : > { %v2345_v23 = vpop.f32.mrf.mxu1  ;;  %4508 = vmatpush2.bf16.msra.mxu1 %v9830_v22  ;;  %4316 = vmatprep.subr.bf16.mxu0 %v9835_v35  ;;  %v11752_v35 = vld [vmem:[%s10838_s17 + $0x10c] ss:$16 sps:$4 sm:$0xff]   ;;  %v9851_v6 = vld [vmem:[%s10851_s14 + $0x108] ss:$16 sps:$4 sm:$0xff]  }
 0x25b   : > { %2987 = vst [vmem:[#allocation2 + $0x180] sm:$0xff] %v2859_v17  ;;  %v2862_v37 = vadd.f32 %v2344_v48, %v874_v62  ;;  %v2346_v39 = vadd.f32 %v2345_v23, %v2152_v9  ;;  %4509 = vmatprep.subr.bf16.mxu1 %v9838_v45  ;;  %v2156_v42 = vpop.f32.mrf.mxu0  ;;  %3999 = vmatmul.mubr.bf16.gmra.mxu0 %v11716_v26  ;;  %v887_v10 = vld [vmem:[#allocation2 + $0xf8] sm:$0xff] }
 0x25c   : > { %v2349_v47 = vpop.f32.mrf.mxu1  ;;  %4192 = vmatmul.mubr.bf16.gmra.mxu1 %v11720_v50  ;;  %4008 = vmatprep.mubr.bf16.mxu0 %v11724_v55  ;;  %v9854_v17 = vld [vmem:[%s10851_s14 + $0x308] ss:$16 sps:$4 sm:$0xff]  }
 0x25d   : > { %2990 = vst [vmem:[#allocation2 + $0x250] sm:$0xff] %v2862_v37  ;;  %v2863_v27 = vadd.f32 %v2346_v39, %v875_v49  ;;  %v2350_v53 = vadd.f32 %v2349_v47, %v2156_v42  ;;  %4201 = vmatprep.mubr.bf16.mxu1 %v11728_v2  ;;  %v2158_v28 = vpop.f32.mrf.mxu0  ;;  %4317 = vmatpush2.bf16.msra.mxu0 %v9833_v30  ;;  %v890_v23 = vld [vmem:[#allocation2 + $0x298] sm:$0xff] }
 0x25e   : > { %v2351_v29 = vpop.f32.mrf.mxu1  ;;  %4510 = vmatpush2.bf16.msra.mxu1 %v9836_v31  ;;  %4318 = vmatprep.subr.bf16.mxu0 %v9841_v12  ;;  %v891_v12 = vld [vmem:[#allocation2 + $0x270] sm:$0xff] }
 0x25f   : > { %2991 = vst [vmem:[#allocation2 + $0x378] sm:$0xff] %v2863_v27  ;;  %v2866_v57 = vadd.f32 %v2350_v53, %v878_v46  ;;  %v2352_v58 = vadd.f32 %v2351_v29, %v2158_v28  ;;  %4511 = vmatprep.subr.bf16.mxu1 %v9844_v41  ;;  %v2160_v24 = vpop.f32.mrf.mxu0  ;;  %v768_v27 = vld [vmem:[#allocation2 + $0xd8] sm:$0xff]  ;;  %v11758_v28 = vld [vmem:[%s10838_s17 + $0x100] ss:$16 sps:$4 sm:$0xff]  }
 0x260   : > { %v2353_v25 = vpop.f32.mrf.mxu1 }
 0x261   : > { %2994 = vst [vmem:[#allocation2 + $0x78] sm:$0xff] %v2866_v57  ;;  %v2867_v0 = vadd.f32 %v2352_v58, %v879_v20  ;;  %v2354_v60 = vadd.f32 %v2353_v25, %v2160_v24  ;;  %v2162_v36 = vpop.f32.mrf.mxu0  ;;  %4319 = vmatpush2.bf16.msra.mxu0 %v9839_v21  ;;  %v11762_v20 = vld [vmem:[%s10838_s17 + $0x108] ss:$16 sps:$4 sm:$0xff]   ;;  %v11770_v57 = vld [vmem:[%s10838_s17 + $0x12c] ss:$16 sps:$4 sm:$0xff]  }
 0x262   : > { %v2355_v38 = vpop.f32.mrf.mxu1  ;;  %4512 = vmatpush2.bf16.msra.mxu1 %v9842_v54  ;;  %4320 = vmatprep.subr.bf16.mxu0 %v9847_v59  ;;  %v11766_v54 = vld [vmem:[%s10838_s17 + $0x124] ss:$16 sps:$4 sm:$0xff]   ;;  %v769_v59 = vld [vmem:[#allocation2 + $0x18] sm:$0xff] }
 0x263   : > { %2995 = vst [vmem:[#allocation2 + $0x308] sm:$0xff] %v2867_v0  ;;  %v2870_v3 = vadd.f32 %v2354_v60, %v882_v63  ;;  %v2356_v40 = vadd.f32 %v2355_v38, %v2162_v36  ;;  %4513 = vmatprep.subr.bf16.mxu1 %v9850_v5  ;;  %v2166_v32 = vpop.f32.mrf.mxu0  ;;  %4009 = vmatmul.mubr.bf16.gmra.mxu0 %v11740_v19  ;;  %v772_v0 = vld [vmem:[#allocation2 + $0x330] sm:$0xff] }
 0x264   : > { %v2359_v18 = vpop.f32.mrf.mxu1  ;;  %4202 = vmatmul.mubr.bf16.gmra.mxu1 %v11744_v14  ;;  %4018 = vmatprep.mubr.bf16.mxu0 %v11748_v44 }
 0x265   : > { %2998 = vst [vmem:[#allocation2 + $0x278] sm:$0xff] %v2870_v3  ;;  %v2871_v22 = vadd.f32 %v2356_v40, %v883_v4  ;;  %v2360_v16 = vadd.f32 %v2359_v18, %v2166_v32  ;;  %4211 = vmatprep.mubr.bf16.mxu1 %v11752_v35  ;;  %v2168_v45 = vpop.f32.mrf.mxu0  ;;  %4321 = vmatpush2.bf16.msra.mxu0 %v9845_v1  ;;  %v773_v1 = vld [vmem:[#allocation2 + $0x48] sm:$0xff] }
 0x266   : > { %v2361_v62 = vpop.f32.mrf.mxu1  ;;  %4514 = vmatpush2.bf16.msra.mxu1 %v9848_v11  ;;  %4322 = vmatprep.subr.bf16.mxu0 %v9853_v7  ;;  %v11778_v18 = vld [vmem:[%s10838_s17 + $0x128] ss:$16 sps:$4 sm:$0xff]  }
 0x267   : > { %2999 = vst [vmem:[#allocation2 + $0x360] sm:$0xff] %v2871_v22  ;;  %v2874_v48 = vadd.f32 %v2360_v16, %v886_v15  ;;  %v2362_v9 = vadd.f32 %v2361_v62, %v2168_v45  ;;  %4515 = vmatprep.subr.bf16.mxu1 %v9856_v61  ;;  %v2170_v49 = vpop.f32.mrf.mxu0  ;;  %v776_v61 = vld [vmem:[#allocation2 + $0x118] sm:$0xff]  ;;  %v11774_v15 = vld [vmem:[%s10838_s17 + $0x120] ss:$16 sps:$4 sm:$0xff]   ;;  %v11782_v45 = vld [vmem:[%s10838_s17 + $0x144] ss:$16 sps:$4 sm:$0xff]  }
 0x268   : > { %v2363_v30 = vpop.f32.mrf.mxu1 }
 0x269   : > { %3002 = vst [vmem:[#allocation2 + $0x148] sm:$0xff] %v2874_v48  ;;  %v2875_v31 = vadd.f32 %v2362_v9, %v887_v10  ;;  %v2364_v37 = vadd.f32 %v2363_v30, %v2170_v49  ;;  %v2172_v39 = vpop.f32.mrf.mxu0  ;;  %4323 = vmatpush2.bf16.msra.mxu0 %v9851_v6  ;;  %v11786_v10 = vld [vmem:[%s10838_s17 + $0x14c] ss:$16 sps:$4 sm:$0xff]  }
 0x26a   : > { %v2365_v41 = vpop.f32.mrf.mxu1  ;;  %4516 = vmatpush2.bf16.msra.mxu1 %v9854_v17  ;;  %v777_v6 = vld [vmem:[#allocation2 + $0x98] sm:$0xff] }
 0x26b   : > { %3003 = vst [vmem:[#allocation2 + $0xf8] sm:$0xff] %v2875_v31  ;;  %v2878_v42 = vadd.f32 %v2364_v37, %v890_v23  ;;  %v2366_v46 = vadd.f32 %v2365_v41, %v2172_v39  ;;  %v2402_v47 = vpop.f32.mrf.mxu0  ;;  %4019 = vmatmul.mubr.bf16.gmra.mxu0 %v11758_v28  ;;  %v780_v23 = vld [vmem:[#allocation2 + $0x108] sm:$0xff] }
 0x26c   : > { %v2595_v53 = vpop.f32.mrf.mxu1  ;;  %4212 = vmatmul.mubr.bf16.gmra.mxu1 %v11762_v20  ;;  %4028 = vmatprep.mubr.bf16.mxu0 %v11766_v54 }
 0x26d   : > { %3006 = vst [vmem:[#allocation2 + $0x298] sm:$0xff] %v2878_v42  ;;  %v2879_v29 = vadd.f32 %v2366_v46, %v891_v12  ;;  %v2596_v21 = vadd.f32 %v2595_v53, %v2402_v47  ;;  %4221 = vmatprep.mubr.bf16.mxu1 %v11770_v57  ;;  %v2404_v58 = vpop.f32.mrf.mxu0  ;;  %v781_v12 = vld [vmem:[#allocation2 + $0x60] sm:$0xff] }
 0x26e   : > { %v2597_v5 = vpop.f32.mrf.mxu1 }
 0x26f   : > { %3007 = vst [vmem:[#allocation2 + $0x270] sm:$0xff] %v2879_v29  ;;  %v2756_v24 = vadd.f32 %v2596_v21, %v768_v27  ;;  %v2598_v63 = vadd.f32 %v2597_v5, %v2404_v58  ;;  %v2406_v25 = vpop.f32.mrf.mxu0  ;;  %v784_v27 = vld [vmem:[#allocation2 + $0x338] sm:$0xff]  ;;  %v11790_v29 = vld [vmem:[%s10838_s17 + $0x140] ss:$16 sps:$4 sm:$0xff]   ;;  %v11798_v5 = vld [vmem:[%s10838_s17 + $0x164] ss:$16 sps:$4 sm:$0xff]  }
 0x270   : > { %v2599_v60 = vpop.f32.mrf.mxu1  ;;  %v11794_v21 = vld [vmem:[%s10838_s17 + $0x148] ss:$16 sps:$4 sm:$0xff]  }
 0x271   : > { %2884 = vst [vmem:[#allocation2 + $0xd8] sm:$0xff] %v2756_v24  ;;  %v2757_v36 = vadd.f32 %v2598_v63, %v769_v59  ;;  %v2600_v4 = vadd.f32 %v2599_v60, %v2406_v25  ;;  %v2408_v38 = vpop.f32.mrf.mxu0  ;;  %v11802_v24 = vld [vmem:[%s10838_s17 + $0x16c] ss:$16 sps:$4 sm:$0xff]   ;;  %v785_v25 = vld [vmem:[#allocation2 + $0x340] sm:$0xff] }
 0x272   : > { %v2601_v11 = vpop.f32.mrf.mxu1 }
 0x273   : > { %2885 = vst [vmem:[#allocation2 + $0x18] sm:$0xff] %v2757_v36  ;;  %v2760_v3 = vadd.f32 %v2600_v4, %v772_v0  ;;  %v2602_v40 = vadd.f32 %v2601_v11, %v2408_v38  ;;  %v2412_v7 = vpop.f32.mrf.mxu0  ;;  %4029 = vmatmul.mubr.bf16.gmra.mxu0 %v11774_v15  ;;  %v788_v38 = vld [vmem:[#allocation2 + $0x1b8] sm:$0xff] }
 0x274   : > { %v2605_v32 = vpop.f32.mrf.mxu1  ;;  %4222 = vmatmul.mubr.bf16.gmra.mxu1 %v11778_v18  ;;  %4038 = vmatprep.mubr.bf16.mxu0 %v11782_v45 }
 0x275   : > { %2888 = vst [vmem:[#allocation2 + $0x330] sm:$0xff] %v2760_v3  ;;  %v2761_v22 = vadd.f32 %v2602_v40, %v773_v1  ;;  %v2606_v16 = vadd.f32 %v2605_v32, %v2412_v7  ;;  %4231 = vmatprep.mubr.bf16.mxu1 %v11786_v10  ;;  %v2414_v62 = vpop.f32.mrf.mxu0  ;;  %v789_v7 = vld [vmem:[#allocation2 + $0x168] sm:$0xff] }
 0x276   : > { %v2607_v17 = vpop.f32.mrf.mxu1 }
 0x277   : > { %2889 = vst [vmem:[#allocation2 + $0x48] sm:$0xff] %v2761_v22  ;;  %v2764_v48 = vadd.f32 %v2606_v16, %v776_v61  ;;  %v2608_v9 = vadd.f32 %v2607_v17, %v2414_v62  ;;  %v2416_v49 = vpop.f32.mrf.mxu0  ;;  %v792_v62 = vld [vmem:[#allocation2 + $0x290] sm:$0xff] }
 0x278   : > { %v2609_v30 = vpop.f32.mrf.mxu1  ;;  %v11806_v17 = vld [vmem:[%s10838_s17 + $0x160] ss:$16 sps:$4 sm:$0xff]  }
 0x279   : > { %2892 = vst [vmem:[#allocation2 + $0x118] sm:$0xff] %v2764_v48  ;;  %v2765_v31 = vadd.f32 %v2608_v9, %v777_v6  ;;  %v2610_v37 = vadd.f32 %v2609_v30, %v2416_v49  ;;  %v2418_v39 = vpop.f32.mrf.mxu0  ;;  %v11810_v48 = vld [vmem:[%s10838_s17 + $0x168] ss:$16 sps:$4 sm:$0xff]   ;;  %v11818_v30 = vld [vmem:[%s10838_s17 + $0x18c] ss:$16 sps:$4 sm:$0xff]  }
 0x27a   : > { %v2611_v41 = vpop.f32.mrf.mxu1 }
 0x27b   : > { %2893 = vst [vmem:[#allocation2 + $0x98] sm:$0xff] %v2765_v31  ;;  %v2768_v42 = vadd.f32 %v2610_v37, %v780_v23  ;;  %v2612_v46 = vadd.f32 %v2611_v41, %v2418_v39  ;;  %v2422_v47 = vpop.f32.mrf.mxu0  ;;  %4039 = vmatmul.mubr.bf16.gmra.mxu0 %v11790_v29  ;;  %v11814_v23 = vld [vmem:[%s10838_s17 + $0x184] ss:$16 sps:$4 sm:$0xff]   ;;  %v793_v37 = vld [vmem:[#allocation2 + $0x28] sm:$0xff] }
 0x27c   : > { %v2615_v53 = vpop.f32.mrf.mxu1  ;;  %4232 = vmatmul.mubr.bf16.gmra.mxu1 %v11794_v21  ;;  %4048 = vmatprep.mubr.bf16.mxu0 %v11798_v5 }
 0x27d   : > { %2896 = vst [vmem:[#allocation2 + $0x108] sm:$0xff] %v2768_v42  ;;  %v2769_v58 = vadd.f32 %v2612_v46, %v781_v12  ;;  %v2616_v59 = vadd.f32 %v2615_v53, %v2422_v47  ;;  %4241 = vmatprep.mubr.bf16.mxu1 %v11802_v24  ;;  %v2424_v63 = vpop.f32.mrf.mxu0  ;;  %v796_v46 = vld [vmem:[#allocation2 + $0x1c0] sm:$0xff] }
 0x27e   : > { %v2617_v0 = vpop.f32.mrf.mxu1 }
 0x27f   : > { %2897 = vst [vmem:[#allocation2 + $0x60] sm:$0xff] %v2769_v58  ;;  %v2772_v60 = vadd.f32 %v2616_v59, %v784_v27  ;;  %v2618_v36 = vadd.f32 %v2617_v0, %v2424_v63  ;;  %v2426_v4 = vpop.f32.mrf.mxu0  ;;  %v797_v59 = vld [vmem:[#allocation2 + $0x280] sm:$0xff] }
 0x280   : > { %v2619_v1 = vpop.f32.mrf.mxu1 }
 0x281   : > { %2900 = vst [vmem:[#allocation2 + $0x338] sm:$0xff] %v2772_v60  ;;  %v2773_v11 = vadd.f32 %v2618_v36, %v785_v25  ;;  %v2620_v3 = vadd.f32 %v2619_v1, %v2426_v4  ;;  %v2428_v40 = vpop.f32.mrf.mxu0  ;;  %v800_v36 = vld [vmem:[#allocation2 + $0x158] sm:$0xff] }
 0x282   : > { %v2621_v61 = vpop.f32.mrf.mxu1  ;;  %v11826_v1 = vld [vmem:[%s10838_s17 + $0x188] ss:$16 sps:$4 sm:$0xff]  }
 0x283   : > { %2901 = vst [vmem:[#allocation2 + $0x340] sm:$0xff] %v2773_v11  ;;  %v2776_v32 = vadd.f32 %v2620_v3, %v788_v38  ;;  %v2622_v22 = vadd.f32 %v2621_v61, %v2428_v40  ;;  %v2432_v16 = vpop.f32.mrf.mxu0  ;;  %4049 = vmatmul.mubr.bf16.gmra.mxu0 %v11806_v17  ;;  %v11822_v38 = vld [vmem:[%s10838_s17 + $0x180] ss:$16 sps:$4 sm:$0xff]   ;;  %v11830_v40 = vld [vmem:[%s10838_s17 + $0x1a4] ss:$16 sps:$4 sm:$0xff]  }
 0x284   : > { %v2625_v6 = vpop.f32.mrf.mxu1  ;;  %4242 = vmatmul.mubr.bf16.gmra.mxu1 %v11810_v48  ;;  %4058 = vmatprep.mubr.bf16.mxu0 %v11814_v23 }
 0x285   : > { %2904 = vst [vmem:[#allocation2 + $0x1b8] sm:$0xff] %v2776_v32  ;;  %v2777_v9 = vadd.f32 %v2622_v22, %v789_v7  ;;  %v2626_v49 = vadd.f32 %v2625_v6, %v2432_v16  ;;  %4251 = vmatprep.mubr.bf16.mxu1 %v11818_v30  ;;  %v2434_v31 = vpop.f32.mrf.mxu0  ;;  %v11834_v7 = vld [vmem:[%s10838_s17 + $0x1ac] ss:$16 sps:$4 sm:$0xff]   ;;  %v801_v32 = vld [vmem:[#allocation2 + $0x3e0] sm:$0xff] }
 0x286   : > { %v2627_v39 = vpop.f32.mrf.mxu1 }
 0x287   : > { %2905 = vst [vmem:[#allocation2 + $0x168] sm:$0xff] %v2777_v9  ;;  %v2780_v12 = vadd.f32 %v2626_v49, %v792_v62  ;;  %v2628_v41 = vadd.f32 %v2627_v39, %v2434_v31  ;;  %v2436_v42 = vpop.f32.mrf.mxu0  ;;  %v804_v9 = vld [vmem:[#allocation2 + $0x8] sm:$0xff] }
 0x288   : > { %v2629_v47 = vpop.f32.mrf.mxu1 }
 0x289   : > { %2908 = vst [vmem:[#allocation2 + $0x290] sm:$0xff] %v2780_v12  ;;  %v2781_v27 = vadd.f32 %v2628_v41, %v793_v37  ;;  %v2630_v53 = vadd.f32 %v2629_v47, %v2436_v42  ;;  %v2438_v58 = vpop.f32.mrf.mxu0  ;;  %v805_v12 = vld [vmem:[#allocation2 + $0x128] sm:$0xff] }
 0x28a   : > { %v2631_v63 = vpop.f32.mrf.mxu1 }
 0x28b   : > { %2909 = vst [vmem:[#allocation2 + $0x28] sm:$0xff] %v2781_v27  ;;  %v2784_v25 = vadd.f32 %v2630_v53, %v796_v46  ;;  %v2632_v0 = vadd.f32 %v2631_v63, %v2438_v58  ;;  %v2442_v60 = vpop.f32.mrf.mxu0  ;;  %4059 = vmatmul.mubr.bf16.gmra.mxu0 %v11822_v38  ;;  %v808_v27 = vld [vmem:[#allocation2 + $0xa0] sm:$0xff] }
 0x28c   : > { %v2635_v4 = vpop.f32.mrf.mxu1  ;;  %4252 = vmatmul.mubr.bf16.gmra.mxu1 %v11826_v1  ;;  %4068 = vmatprep.mubr.bf16.mxu0 %v11830_v40  ;;  %v11838_v58 = vld [vmem:[%s10838_s17 + $0x1a0] ss:$16 sps:$4 sm:$0xff]  }
 0x28d   : > { %2912 = vst [vmem:[#allocation2 + $0x1c0] sm:$0xff] %v2784_v25  ;;  %v2785_v11 = vadd.f32 %v2632_v0, %v797_v59  ;;  %v2636_v3 = vadd.f32 %v2635_v4, %v2442_v60  ;;  %4261 = vmatprep.mubr.bf16.mxu1 %v11834_v7  ;;  %v2444_v61 = vpop.f32.mrf.mxu0  ;;  %v11842_v59 = vld [vmem:[%s10838_s17 + $0x1a8] ss:$16 sps:$4 sm:$0xff]   ;;  %v11846_v0 = vld [vmem:[%s10838_s17 + $0x1c4] ss:$16 sps:$4 sm:$0xff]  }
 0x28e   : > { %v2637_v22 = vpop.f32.mrf.mxu1  ;;  %v11850_v60 = vld [vmem:[%s10838_s17 + $0x1cc] ss:$16 sps:$4 sm:$0xff]   ;;  %v809_v4 = vld [vmem:[#allocation2 + $0x2c0] sm:$0xff] }
 0x28f   : > { %2913 = vst [vmem:[#allocation2 + $0x280] sm:$0xff] %v2785_v11  ;;  %v2788_v16 = vadd.f32 %v2636_v3, %v800_v36  ;;  %v2638_v62 = vadd.f32 %v2637_v22, %v2444_v61  ;;  %v2446_v6 = vpop.f32.mrf.mxu0  ;;  %v812_v22 = vld [vmem:[#allocation2 + $0x1f0] sm:$0xff] }
 0x290   : > { %v2639_v49 = vpop.f32.mrf.mxu1 }
 0x291   : > { %2916 = vst [vmem:[#allocation2 + $0x158] sm:$0xff] %v2788_v16  ;;  %v2789_v31 = vadd.f32 %v2638_v62, %v801_v32  ;;  %v2640_v37 = vadd.f32 %v2639_v49, %v2446_v6  ;;  %v2448_v39 = vpop.f32.mrf.mxu0  ;;  %v813_v49 = vld [vmem:[#allocation2 + $0x10] sm:$0xff] }
 0x292   : > { %v2641_v41 = vpop.f32.mrf.mxu1 }
 0x293   : > { %2917 = vst [vmem:[#allocation2 + $0x3e0] sm:$0xff] %v2789_v31  ;;  %v2792_v42 = vadd.f32 %v2640_v37, %v804_v9  ;;  %v2642_v46 = vadd.f32 %v2641_v41, %v2448_v39  ;;  %v2452_v47 = vpop.f32.mrf.mxu0  ;;  %4069 = vmatmul.mubr.bf16.gmra.mxu0 %v11838_v58  ;;  %v816_v41 = vld [vmem:[#allocation2 + $0x90] sm:$0xff] }
 0x294   : > { %v2645_v53 = vpop.f32.mrf.mxu1  ;;  %4262 = vmatmul.mubr.bf16.gmra.mxu1 %v11842_v59  ;;  %4078 = vmatprep.mubr.bf16.mxu0 %v11846_v0 }
 0x295   : > { %2920 = vst [vmem:[#allocation2 + $0x8] sm:$0xff] %v2792_v42  ;;  %v2793_v63 = vadd.f32 %v2642_v46, %v805_v12  ;;  %v2646_v25 = vadd.f32 %v2645_v53, %v2452_v47  ;;  %4271 = vmatprep.mubr.bf16.mxu1 %v11850_v60  ;;  %v2454_v36 = vpop.f32.mrf.mxu0  ;;  %v11854_v46 = vld [vmem:[%s10838_s17 + $0x1c0] ss:$16 sps:$4 sm:$0xff]   ;;  %v11858_v47 = vld [vmem:[%s10838_s17 + $0x1c8] ss:$16 sps:$4 sm:$0xff]  }
 0x296   : > { %v2647_v11 = vpop.f32.mrf.mxu1 }
 0x297   : > { %2921 = vst [vmem:[#allocation2 + $0x128] sm:$0xff] %v2793_v63  ;;  %v2796_v3 = vadd.f32 %v2646_v25, %v808_v27  ;;  %v2648_v61 = vadd.f32 %v2647_v11, %v2454_v36  ;;  %v2456_v32 = vpop.f32.mrf.mxu0  ;;  %v11862_v63 = vld [vmem:[%s10838_s17 + $0x1e4] ss:$16 sps:$4 sm:$0xff]   ;;  %v11866_v25 = vld [vmem:[%s10838_s17 + $0x1ec] ss:$16 sps:$4 sm:$0xff]  }
 0x298   : > { %v2649_v16 = vpop.f32.mrf.mxu1  ;;  %14665 = vst [vmem:[#allocation17_spill] sm:$0xff] %v11866_v25 }
 0x299   : > { %2924 = vst [vmem:[#allocation2 + $0xa0] sm:$0xff] %v2796_v3  ;;  %v2797_v62 = vadd.f32 %v2648_v61, %v809_v4  ;;  %v2650_v6 = vadd.f32 %v2649_v16, %v2456_v32  ;;  %v2458_v9 = vpop.f32.mrf.mxu0  ;;  %v817_v4 = vld [vmem:[#allocation2 + $0x3a0] sm:$0xff] }
 0x29a   : > { %v2651_v31 = vpop.f32.mrf.mxu1 }
 0x29b   : > { %2925 = vst [vmem:[#allocation2 + $0x2c0] sm:$0xff] %v2797_v62  ;;  %v2800_v37 = vadd.f32 %v2650_v6, %v812_v22  ;;  %v2652_v39 = vadd.f32 %v2651_v31, %v2458_v9  ;;  %v2462_v12 = vpop.f32.mrf.mxu0  ;;  %4079 = vmatmul.mubr.bf16.gmra.mxu0 %v11854_v46  ;;  %v820_v22 = vld [vmem:[#allocation2 + $0x88] sm:$0xff] }
 0x29c   : > { %v2655_v42 = vpop.f32.mrf.mxu1  ;;  %4272 = vmatmul.mubr.bf16.gmra.mxu1 %v11858_v47  ;;  %4088 = vmatprep.mubr.bf16.mxu0 %v11862_v63 }
 0x29d   : > { %2928 = vst [vmem:[#allocation2 + $0x1f0] sm:$0xff] %v2800_v37  ;;  %v2801_v27 = vadd.f32 %v2652_v39, %v813_v49  ;;  %v2656_v53 = vadd.f32 %v2655_v42, %v2462_v12  ;;  %4281 = vmatprep.mubr.bf16.mxu1 %v11866_v25  ;;  %v2464_v36 = vpop.f32.mrf.mxu0  ;;  %v821_v49 = vld [vmem:[#allocation2 + $0x2f0] sm:$0xff] }
 0x29e   : > { %v2657_v11 = vpop.f32.mrf.mxu1  ;;  %v824_v42 = vld [vmem:[#allocation2 + $0x350] sm:$0xff] }
 0x29f   : > { %2929 = vst [vmem:[#allocation2 + $0x10] sm:$0xff] %v2801_v27  ;;  %v2804_v3 = vadd.f32 %v2656_v53, %v816_v41  ;;  %v2658_v61 = vadd.f32 %v2657_v11, %v2464_v36  ;;  %v2466_v32 = vpop.f32.mrf.mxu0  ;;  %v11870_v27 = vld [vmem:[%s10838_s17 + $0x1e0] ss:$16 sps:$4 sm:$0xff]   ;;  %v11874_v53 = vld [vmem:[%s10838_s17 + $0x1e8] ss:$16 sps:$4 sm:$0xff]  }
 0x2a0   : > { %v2659_v16 = vpop.f32.mrf.mxu1  ;;  %14666 = vst [vmem:[#allocation18_spill] sm:$0xff] %v11870_v27  ;;  %14667 = vst [vmem:[#allocation19_spill] sm:$0xff] %v11874_v53  ;;  %v9921_v11 = vld [vmem:[%s10838_s17 + $0x4] ss:$16 sps:$4 sm:$0xff]  }
 0x2a1   : > { %2932 = vst [vmem:[#allocation2 + $0x90] sm:$0xff] %v2804_v3  ;;  %v2805_v62 = vadd.f32 %v2658_v61, %v817_v4  ;;  %v2660_v6 = vadd.f32 %v2659_v16, %v2466_v32  ;;  %v2468_v9 = vpop.f32.mrf.mxu0  ;;  %v9922_v3 = vld [vmem:[%s10838_s17 + $0xc] ss:$16 sps:$4 sm:$0xff]  }
 0x2a2   : > { %v2661_v31 = vpop.f32.mrf.mxu1  ;;  %v825_v32 = vld [vmem:[#allocation2 + $0x188] sm:$0xff] }
 0x2a3   : > { %2933 = vst [vmem:[#allocation2 + $0x3a0] sm:$0xff] %v2805_v62  ;;  %v2808_v37 = vadd.f32 %v2660_v6, %v820_v22  ;;  %v2662_v39 = vadd.f32 %v2661_v31, %v2468_v9  ;;  %v2472_v12 = vpop.f32.mrf.mxu0  ;;  %4089 = vmatmul.mubr.bf16.gmra.mxu0 %v11870_v27  ;;  %v828_v9 = vld [vmem:[#allocation2 + $0x140] sm:$0xff] }
 0x2a4   : > { %v2665_v41 = vpop.f32.mrf.mxu1  ;;  %4282 = vmatmul.mubr.bf16.gmra.mxu1 %v11874_v53  ;;  %4324 = vmatprep.mubr.bf16.mxu0 %v9921_v11 }
 0x2a5   : > { %2936 = vst [vmem:[#allocation2 + $0x88] sm:$0xff] %v2808_v37  ;;  %v2809_v36 = vadd.f32 %v2662_v39, %v821_v49  ;;  %v2666_v4 = vadd.f32 %v2665_v41, %v2472_v12  ;;  %4517 = vmatprep.mubr.bf16.mxu1 %v9922_v3  ;;  %v2474_v61 = vpop.f32.mrf.mxu0  ;;  %v829_v39 = vld [vmem:[#allocation2 + $0x2a8] sm:$0xff] }
 0x2a6   : > { %v2667_v22 = vpop.f32.mrf.mxu1 }
 0x2a7   : > { %2937 = vst [vmem:[#allocation2 + $0x2f0] sm:$0xff] %v2809_v36  ;;  %v2812_v16 = vadd.f32 %v2666_v4, %v824_v42  ;;  %v2668_v62 = vadd.f32 %v2667_v22, %v2474_v61  ;;  %v2476_v6 = vpop.f32.mrf.mxu0  ;;  %v832_v36 = vld [vmem:[#allocation2 + $0x318] sm:$0xff]  ;;  %v9923_v4 = vld [vmem:[%s10838_s17] ss:$16 sps:$4 sm:$0xff]  }
 0x2a8   : > { %v2669_v31 = vpop.f32.mrf.mxu1  ;;  %v9924_v61 = vld [vmem:[%s10838_s17 + $0x8] ss:$16 sps:$4 sm:$0xff]  }
 0x2a9   : > { %2940 = vst [vmem:[#allocation2 + $0x350] sm:$0xff] %v2812_v16  ;;  %v2813_v53 = vadd.f32 %v2668_v62, %v825_v32  ;;  %v2670_v37 = vadd.f32 %v2669_v31, %v2476_v6  ;;  %v2478_v49 = vpop.f32.mrf.mxu0  ;;  %v9925_v32 = vld [vmem:[%s10838_s17 + $0x24] ss:$16 sps:$4 sm:$0xff]   ;;  %v9926_v62 = vld [vmem:[%s10838_s17 + $0x2c] ss:$16 sps:$4 sm:$0xff]  }
 0x2aa   : > { %v2671_v12 = vpop.f32.mrf.mxu1  ;;  %v833_v31 = vld [vmem:[#allocation2 + $0x220] sm:$0xff] }
 0x2ab   : > { %2941 = vst [vmem:[#allocation2 + $0x188] sm:$0xff] %v2813_v53  ;;  %v2816_v41 = vadd.f32 %v2670_v37, %v828_v9  ;;  %v2672_v11 = vadd.f32 %v2671_v12, %v2478_v49  ;;  %v2482_v3 = vpop.f32.mrf.mxu0  ;;  %4325 = vmatmul.mubr.bf16.vlgmr.msra.gmra.mxu0 %v9923_v4  ;;  %v836_v49 = vld [vmem:[#allocation2 + $0xe0] sm:$0xff] }
 0x2ac   : > { %v2675_v42 = vpop.f32.mrf.mxu1  ;;  %4518 = vmatmul.mubr.bf16.vlgmr.msra.gmra.mxu1 %v9924_v61  ;;  %4334 = vmatprep.mubr.bf16.mxu0 %v9925_v32 }
 0x2ad   : > { %2944 = vst [vmem:[#allocation2 + $0x140] sm:$0xff] %v2816_v41  ;;  %v2817_v22 = vadd.f32 %v2672_v11, %v829_v39  ;;  %v2676_v16 = vadd.f32 %v2675_v42, %v2482_v3  ;;  %4527 = vmatprep.mubr.bf16.mxu1 %v9926_v62  ;;  %v2484_v6 = vpop.f32.mrf.mxu0  ;;  %v837_v11 = vld [vmem:[#allocation2 + $0x178] sm:$0xff] }
 0x2ae   : > { %v2677_v27 = vpop.f32.mrf.mxu1 }
 0x2af   : > { %2945 = vst [vmem:[#allocation2 + $0x2a8] sm:$0xff] %v2817_v22  ;;  %v2820_v53 = vadd.f32 %v2676_v16, %v832_v36  ;;  %v2678_v9 = vadd.f32 %v2677_v27, %v2484_v6  ;;  %v2486_v37 = vpop.f32.mrf.mxu0  ;;  %v840_v22 = vld [vmem:[#allocation2 + $0x3b8] sm:$0xff]  ;;  %v9927_v27 = vld [vmem:[%s10838_s17 + $0x20] ss:$16 sps:$4 sm:$0xff]  }
 0x2b0   : > { %v2679_v12 = vpop.f32.mrf.mxu1  ;;  %v9928_v16 = vld [vmem:[%s10838_s17 + $0x28] ss:$16 sps:$4 sm:$0xff]  }
 0x2b1   : > { %2948 = vst [vmem:[#allocation2 + $0x318] sm:$0xff] %v2820_v53  ;;  %v2821_v4 = vadd.f32 %v2678_v9, %v833_v31  ;;  %v2680_v41 = vadd.f32 %v2679_v12, %v2486_v37  ;;  %v2488_v39 = vpop.f32.mrf.mxu0  ;;  %v9929_v31 = vld [vmem:[%s10838_s17 + $0x44] ss:$16 sps:$4 sm:$0xff]   ;;  %v9930_v53 = vld [vmem:[%s10838_s17 + $0x4c] ss:$16 sps:$4 sm:$0xff]  }
 0x2b2   : > { %v2681_v3 = vpop.f32.mrf.mxu1  ;;  %v841_v37 = vld [vmem:[#allocation2 + $0x2b8] sm:$0xff] }
 0x2b3   : > { %2949 = vst [vmem:[#allocation2 + $0x220] sm:$0xff] %v2821_v4  ;;  %v2824_v42 = vadd.f32 %v2680_v41, %v836_v49  ;;  %v2682_v61 = vadd.f32 %v2681_v3, %v2488_v39  ;;  %v2492_v32 = vpop.f32.mrf.mxu0  ;;  %4335 = vmatmul.mubr.bf16.gmra.mxu0 %v9927_v27  ;;  %v844_v39 = vld [vmem:[#allocation2 + $0x20] sm:$0xff] }
 0x2b4   : > { %v2685_v36 = vpop.f32.mrf.mxu1  ;;  %4528 = vmatmul.mubr.bf16.gmra.mxu1 %v9928_v16  ;;  %4344 = vmatprep.mubr.bf16.mxu0 %v9929_v31 }
 0x2b5   : > { %2952 = vst [vmem:[#allocation2 + $0xe0] sm:$0xff] %v2824_v42  ;;  %v2825_v62 = vadd.f32 %v2682_v61, %v837_v11  ;;  %v2686_v6 = vadd.f32 %v2685_v36, %v2492_v32  ;;  %4537 = vmatprep.mubr.bf16.mxu1 %v9930_v53  ;;  %v2494_v9 = vpop.f32.mrf.mxu0  ;;  %v845_v61 = vld [vmem:[#allocation2 + $0xe8] sm:$0xff] }
 0x2b6   : > { %v2687_v12 = vpop.f32.mrf.mxu1  ;;  %v9932_v53 = vld [vmem:[%s10838_s17 + $0x48] ss:$16 sps:$4 sm:$0xff]  }
 0x2b7   : > { %2953 = vst [vmem:[#allocation2 + $0x178] sm:$0xff] %v2825_v62  ;;  %v2828_v49 = vadd.f32 %v2686_v6, %v840_v22  ;;  %v2688_v4 = vadd.f32 %v2687_v12, %v2494_v9  ;;  %v2496_v41 = vpop.f32.mrf.mxu0  ;;  %v848_v62 = vld [vmem:[#allocation2 + $0x3c8] sm:$0xff]  ;;  %v9931_v6 = vld [vmem:[%s10838_s17 + $0x40] ss:$16 sps:$4 sm:$0xff]  }
 0x2b8   : > { %v2689_v3 = vpop.f32.mrf.mxu1 }
 0x2b9   : > { %2956 = vst [vmem:[#allocation2 + $0x3b8] sm:$0xff] %v2828_v49  ;;  %v2829_v27 = vadd.f32 %v2688_v4, %v841_v37  ;;  %v2690_v42 = vadd.f32 %v2689_v3, %v2496_v41  ;;  %v2498_v11 = vpop.f32.mrf.mxu0  ;;  %v9933_v37 = vld [vmem:[%s10838_s17 + $0x64] ss:$16 sps:$4 sm:$0xff]   ;;  %v9934_v49 = vld [vmem:[%s10838_s17 + $0x6c] ss:$16 sps:$4 sm:$0xff]  }
 0x2ba   : > { %v2691_v32 = vpop.f32.mrf.mxu1  ;;  %v849_v41 = vld [vmem:[#allocation2 + $0x160] sm:$0xff] }
 0x2bb   : > { %2957 = vst [vmem:[#allocation2 + $0x2b8] sm:$0xff] %v2829_v27  ;;  %v2832_v36 = vadd.f32 %v2690_v42, %v844_v39  ;;  %v2692_v16 = vadd.f32 %v2691_v32, %v2498_v11  ;;  %v2502_v31 = vpop.f32.mrf.mxu0  ;;  %4345 = vmatmul.mubr.bf16.gmra.mxu0 %v9931_v6  ;;  %v852_v11 = vld [vmem:[#allocation2 + $0x3d8] sm:$0xff] }
 0x2bc   : > { %v2695_v22 = vpop.f32.mrf.mxu1  ;;  %4538 = vmatmul.mubr.bf16.gmra.mxu1 %v9932_v53  ;;  %4354 = vmatprep.mubr.bf16.mxu0 %v9933_v37 }
 0x2bd   : > { %2960 = vst [vmem:[#allocation2 + $0x20] sm:$0xff] %v2832_v36  ;;  %v2833_v9 = vadd.f32 %v2692_v16, %v845_v61  ;;  %v2696_v12 = vadd.f32 %v2695_v22, %v2502_v31  ;;  %4547 = vmatprep.mubr.bf16.mxu1 %v9934_v49  ;;  %v2504_v4 = vpop.f32.mrf.mxu0  ;;  %v853_v16 = vld [vmem:[#allocation2 + $0x1e8] sm:$0xff] }
 0x2be   : > { %v2697_v3 = vpop.f32.mrf.mxu1  ;;  %v9936_v49 = vld [vmem:[%s10838_s17 + $0x68] ss:$16 sps:$4 sm:$0xff]  }
 0x2bf   : > { %2961 = vst [vmem:[#allocation2 + $0xe8] sm:$0xff] %v2833_v9  ;;  %v2836_v39 = vadd.f32 %v2696_v12, %v848_v62  ;;  %v2698_v27 = vadd.f32 %v2697_v3, %v2504_v4  ;;  %v2506_v42 = vpop.f32.mrf.mxu0  ;;  %v856_v9 = vld [vmem:[#allocation2 + $0x2d0] sm:$0xff] }
 0x2c0   : > { %v2699_v32 = vpop.f32.mrf.mxu1  ;;  %v9935_v12 = vld [vmem:[%s10838_s17 + $0x60] ss:$16 sps:$4 sm:$0xff]  }
 0x2c1   : > { %2964 = vst [vmem:[#allocation2 + $0x3c8] sm:$0xff] %v2836_v39  ;;  %v2837_v6 = vadd.f32 %v2698_v27, %v849_v41  ;;  %v2700_v36 = vadd.f32 %v2699_v32, %v2506_v42  ;;  %v2508_v61 = vpop.f32.mrf.mxu0  ;;  %v9937_v41 = vld [vmem:[%s10838_s17 + $0x84] ss:$16 sps:$4 sm:$0xff]   ;;  %v9938_v39 = vld [vmem:[%s10838_s17 + $0x8c] ss:$16 sps:$4 sm:$0xff]  }
 0x2c2   : > { %v2701_v31 = vpop.f32.mrf.mxu1  ;;  %v857_v42 = vld [vmem:[#allocation2 + $0x1d0] sm:$0xff] }
 0x2c3   : > { %2965 = vst [vmem:[#allocation2 + $0x160] sm:$0xff] %v2837_v6  ;;  %v2840_v22 = vadd.f32 %v2700_v36, %v852_v11  ;;  %v2702_v53 = vadd.f32 %v2701_v31, %v2508_v61  ;;  %v2512_v37 = vpop.f32.mrf.mxu0  ;;  %4355 = vmatmul.mubr.bf16.gmra.mxu0 %v9935_v12  ;;  %v860_v61 = vld [vmem:[#allocation2 + $0x198] sm:$0xff] }
 0x2c4   : > { %v2705_v62 = vpop.f32.mrf.mxu1  ;;  %4548 = vmatmul.mubr.bf16.gmra.mxu1 %v9936_v49  ;;  %4364 = vmatprep.mubr.bf16.mxu0 %v9937_v41  ;;  %v864_v41 = vld [vmem:[#allocation2 + $0x398] sm:$0xff] }
 0x2c5   : > { %2968 = vst [vmem:[#allocation2 + $0x3d8] sm:$0xff] %v2840_v22  ;;  %v2841_v4 = vadd.f32 %v2702_v53, %v853_v16  ;;  %v2706_v3 = vadd.f32 %v2705_v62, %v2512_v37  ;;  %4557 = vmatprep.mubr.bf16.mxu1 %v9938_v39  ;;  %v2514_v27 = vpop.f32.mrf.mxu0  ;;  %v861_v22 = vld [vmem:[#allocation2 + $0x2e8] sm:$0xff] }
 0x2c6   : > { %v2707_v32 = vpop.f32.mrf.mxu1 }
 0x2c7   : > { %2969 = vst [vmem:[#allocation2 + $0x1e8] sm:$0xff] %v2841_v4  ;;  %v2844_v11 = vadd.f32 %v2706_v3, %v856_v9  ;;  %v2708_v6 = vadd.f32 %v2707_v32, %v2514_v27  ;;  %v2516_v36 = vpop.f32.mrf.mxu0  ;;  %v865_v27 = vld [vmem:[#allocation2 + $0x390] sm:$0xff] }
 0x2c8   : > { %v2709_v31 = vpop.f32.mrf.mxu1 }
 0x2c9   : > { %2972 = vst [vmem:[#allocation2 + $0x2d0] sm:$0xff] %v2844_v11  ;;  %v2845_v12 = vadd.f32 %v2708_v6, %v857_v42  ;;  %v2710_v25 = vadd.f32 %v2709_v31, %v2516_v36  ;;  %v2518_v49 = vpop.f32.mrf.mxu0  ;;  %v868_v6 = vld [vmem:[#allocation2 + $0x258] sm:$0xff] }
 0x2ca   : > { %v2711_v16 = vpop.f32.mrf.mxu1  ;;  %v869_v31 = vld [vmem:[#allocation2 + $0x2d8] sm:$0xff] }
 0x2cb   : > { %2973 = vst [vmem:[#allocation2 + $0x1d0] sm:$0xff] %v2845_v12  ;;  %v2848_v53 = vadd.f32 %v2710_v25, %v860_v61  ;;  %v2712_v37 = vadd.f32 %v2711_v16, %v2518_v49  ;;  %v2522_v62 = vpop.f32.mrf.mxu0  ;;  %4365 = vmatmul.mubr.bf16.gmra.mxu0 %v11668_v51 }
 0x2cc   : > { %v2715_v39 = vpop.f32.mrf.mxu1  ;;  %4558 = vmatmul.mubr.bf16.gmra.mxu1 %v11672_v13  ;;  %4374 = vmatprep.mubr.bf16.mxu0 %v11676_v52 }
 0x2cd   : > { %2976 = vst [vmem:[#allocation2 + $0x198] sm:$0xff] %v2848_v53  ;;  %v2849_v9 = vadd.f32 %v2712_v37, %v861_v22  ;;  %v2716_v4 = vadd.f32 %v2715_v39, %v2522_v62  ;;  %4567 = vmatprep.mubr.bf16.mxu1 %v11680_v56  ;;  %v2524_v3 = vpop.f32.mrf.mxu0  ;;  %v872_v56 = vld [vmem:[#allocation2 + $0x170] sm:$0xff] }
 0x2ce   : > { %v2717_v42 = vpop.f32.mrf.mxu1 }
 0x2cf   : > { %2977 = vst [vmem:[#allocation2 + $0x2e8] sm:$0xff] %v2849_v9  ;;  %v2852_v25 = vadd.f32 %v2716_v4, %v864_v41  ;;  %v2718_v32 = vadd.f32 %v2717_v42, %v2524_v3  ;;  %v2526_v11 = vpop.f32.mrf.mxu0  ;;  %v873_v41 = vld [vmem:[#allocation2 + $0x3d0] sm:$0xff] }
 0x2d0   : > { %v2719_v36 = vpop.f32.mrf.mxu1 }
 0x2d1   : > { %2980 = vst [vmem:[#allocation2 + $0x398] sm:$0xff] %v2852_v25  ;;  %v2853_v51 = vadd.f32 %v2718_v32, %v865_v27  ;;  %v2720_v61 = vadd.f32 %v2719_v36, %v2526_v11  ;;  %v2528_v13 = vpop.f32.mrf.mxu0  ;;  %v876_v27 = vld [vmem:[#allocation2 + $0xb8] sm:$0xff] }
 0x2d2   : > { %v2721_v12 = vpop.f32.mrf.mxu1  ;;  %v877_v32 = vld [vmem:[#allocation2 + $0x38] sm:$0xff] }
 0x2d3   : > { %2981 = vst [vmem:[#allocation2 + $0x390] sm:$0xff] %v2853_v51  ;;  %v2856_v49 = vadd.f32 %v2720_v61, %v868_v6  ;;  %v2722_v52 = vadd.f32 %v2721_v12, %v2528_v13  ;;  %v2532_v22 = vpop.f32.mrf.mxu0  ;;  %4375 = vmatmul.mubr.bf16.gmra.mxu0 %v11692_v43  ;;  %v881_v12 = vld [vmem:[#allocation2 + $0xc8] sm:$0xff] }
 0x2d4   : > { %v2725_v16 = vpop.f32.mrf.mxu1  ;;  %4568 = vmatmul.mubr.bf16.gmra.mxu1 %v11696_v8  ;;  %4384 = vmatprep.mubr.bf16.mxu0 %v11700_v33 }
 0x2d5   : > { %2984 = vst [vmem:[#allocation2 + $0x258] sm:$0xff] %v2856_v49  ;;  %v2857_v53 = vadd.f32 %v2722_v52, %v869_v31  ;;  %v2726_v37 = vadd.f32 %v2725_v16, %v2532_v22  ;;  %4577 = vmatprep.mubr.bf16.mxu1 %v11704_v34  ;;  %v2534_v62 = vpop.f32.mrf.mxu0  ;;  %v880_v34 = vld [vmem:[#allocation2 + $0x370] sm:$0xff]  ;;  %v884_v16 = vld [vmem:[#allocation2 + $0x228] sm:$0xff] }
 0x2d6   : > { %v2727_v39 = vpop.f32.mrf.mxu1 }
 0x2d7   : > { %2985 = vst [vmem:[#allocation2 + $0x2d8] sm:$0xff] %v2857_v53  ;;  %v2860_v9 = vadd.f32 %v2726_v37, %v872_v56  ;;  %v2728_v4 = vadd.f32 %v2727_v39, %v2534_v62  ;;  %v2536_v3 = vpop.f32.mrf.mxu0  ;;  %v885_v62 = vld [vmem:[#allocation2 + $0x348] sm:$0xff] }
 0x2d8   : > { %v2729_v42 = vpop.f32.mrf.mxu1 }
 0x2d9   : > { %2988 = vst [vmem:[#allocation2 + $0x170] sm:$0xff] %v2860_v9  ;;  %v2861_v43 = vadd.f32 %v2728_v4, %v873_v41  ;;  %v2730_v25 = vadd.f32 %v2729_v42, %v2536_v3  ;;  %v2538_v8 = vpop.f32.mrf.mxu0 }
 0x2da   : > { %v2731_v11 = vpop.f32.mrf.mxu1 }
 0x2db   : > { %2989 = vst [vmem:[#allocation2 + $0x3d0] sm:$0xff] %v2861_v43  ;;  %v2864_v6 = vadd.f32 %v2730_v25, %v876_v27  ;;  %v2732_v33 = vadd.f32 %v2731_v11, %v2538_v8  ;;  %v2542_v36 = vpop.f32.mrf.mxu0  ;;  %4385 = vmatmul.mubr.bf16.gmra.mxu0 %v11716_v26  ;;  %v889_v43 = vld [vmem:[#allocation2] sm:$0xff] }
 0x2dc   : > { %v2735_v51 = vpop.f32.mrf.mxu1  ;;  %4578 = vmatmul.mubr.bf16.gmra.mxu1 %v11720_v50  ;;  %4394 = vmatprep.mubr.bf16.mxu0 %v11724_v55 }
 0x2dd   : > { %2992 = vst [vmem:[#allocation2 + $0xb8] sm:$0xff] %v2864_v6  ;;  %v2865_v61 = vadd.f32 %v2732_v33, %v877_v32  ;;  %v2736_v13 = vadd.f32 %v2735_v51, %v2542_v36  ;;  %4587 = vmatprep.mubr.bf16.mxu1 %v11728_v2  ;;  %v2544_v31 = vpop.f32.mrf.mxu0  ;;  %v888_v2 = vld [vmem:[#allocation2 + $0x68] sm:$0xff]  ;;  %v892_v6 = vld [vmem:[#allocation2 + $0x310] sm:$0xff] }
 0x2de   : > { %v2737_v49 = vpop.f32.mrf.mxu1 }
 0x2df   : > { %2993 = vst [vmem:[#allocation2 + $0x38] sm:$0xff] %v2865_v61  ;;  %v2868_v52 = vadd.f32 %v2736_v13, %v880_v34  ;;  %v2738_v22 = vadd.f32 %v2737_v49, %v2544_v31  ;;  %v2546_v56 = vpop.f32.mrf.mxu0  ;;  %v893_v34 = vld [vmem:[#allocation2 + $0x190] sm:$0xff] }
 0x2e0   : > { %v2739_v53 = vpop.f32.mrf.mxu1 }
 0x2e1   : > { %2996 = vst [vmem:[#allocation2 + $0x370] sm:$0xff] %v2868_v52  ;;  %v2869_v26 = vadd.f32 %v2738_v22, %v881_v12  ;;  %v2740_v37 = vadd.f32 %v2739_v53, %v2546_v56  ;;  %v2548_v50 = vpop.f32.mrf.mxu0  ;;  %v3011_v22 = vld [vmem:[#allocation3 + $0x330] sm:$0xff] }
 0x2e2   : > { %v2741_v41 = vpop.f32.mrf.mxu1 }
 0x2e3   : > { %2997 = vst [vmem:[#allocation2 + $0xc8] sm:$0xff] %v2869_v26  ;;  %v2872_v39 = vadd.f32 %v2740_v37, %v884_v16  ;;  %v2742_v55 = vadd.f32 %v2741_v41, %v2548_v50  ;;  %v2552_v9 = vpop.f32.mrf.mxu0  ;;  %4395 = vmatmul.mubr.bf16.gmra.mxu0 %v11740_v19  ;;  %v3014_v37 = vld [vmem:[#allocation3 + $0x8] sm:$0xff]  ;;  %v3015_v41 = vld [vmem:[#allocation3 + $0x78] sm:$0xff] }
 0x2e4   : > { %v2745_v4 = vpop.f32.mrf.mxu1  ;;  %4588 = vmatmul.mubr.bf16.gmra.mxu1 %v11744_v14  ;;  %4404 = vmatprep.mubr.bf16.mxu0 %v11748_v44 }
 0x2e5   : > { %3000 = vst [vmem:[#allocation2 + $0x228] sm:$0xff] %v2872_v39  ;;  %v2873_v3 = vadd.f32 %v2742_v55, %v885_v62  ;;  %v2746_v27 = vadd.f32 %v2745_v4, %v2552_v9  ;;  %4597 = vmatprep.mubr.bf16.mxu1 %v11752_v35  ;;  %v2554_v42 = vpop.f32.mrf.mxu0  ;;  %v3010_v35 = vld [vmem:[#allocation3 + $0x2f8] sm:$0xff] }
 0x2e6   : > { %v2747_v25 = vpop.f32.mrf.mxu1 }
 0x2e7   : > { %3001 = vst [vmem:[#allocation2 + $0x348] sm:$0xff] %v2873_v3  ;;  %v2876_v8 = vadd.f32 %v2746_v27, %v888_v2  ;;  %v2748_v32 = vadd.f32 %v2747_v25, %v2554_v42  ;;  %v2556_v11 = vpop.f32.mrf.mxu0  ;;  %v3019_v42 = vld [vmem:[#allocation3 + $0x140] sm:$0xff] }
 0x2e8   : > { %v2749_v33 = vpop.f32.mrf.mxu1 }
 0x2e9   : > { %3004 = vst [vmem:[#allocation2 + $0x68] sm:$0xff] %v2876_v8  ;;  %v2877_v19 = vadd.f32 %v2748_v32, %v889_v43  ;;  %v2750_v36 = vadd.f32 %v2749_v33, %v2556_v11  ;;  %v2558_v14 = vpop.f32.mrf.mxu0  ;;  %v3022_v11 = vld [vmem:[#allocation3 + $0x338] sm:$0xff] }
 0x2ea   : > { %v2751_v51 = vpop.f32.mrf.mxu1 }
 0x2eb   : > { %3005 = vst [vmem:[#allocation2] sm:$0xff] %v2877_v19  ;;  %v2880_v61 = vadd.f32 %v2750_v36, %v892_v6  ;;  %v2752_v44 = vadd.f32 %v2751_v51, %v2558_v14  ;;  %v3940_v13 = vpop.f32.mrf.mxu0  ;;  %4405 = vmatmul.mubr.bf16.gmra.mxu0 %v11758_v28  ;;  %v3023_v19 = vld [vmem:[#allocation3 + $0x280] sm:$0xff] }
 0x2ec   : > { %v4133_v31 = vpop.f32.mrf.mxu1  ;;  %4598 = vmatmul.mubr.bf16.gmra.mxu1 %v11762_v20  ;;  %4414 = vmatprep.mubr.bf16.mxu0 %v11766_v54 }
 0x2ed   : > { %3008 = vst [vmem:[#allocation2 + $0x310] sm:$0xff] %v2880_v61  ;;  %v2881_v12 = vadd.f32 %v2752_v44, %v893_v34  ;;  %v4134_v49 = vadd.f32 %v4133_v31, %v3940_v13  ;;  %4607 = vmatprep.mubr.bf16.mxu1 %v11770_v57  ;;  %v3942_v52 = vpop.f32.mrf.mxu0  ;;  %v3018_v57 = vld [vmem:[#allocation3 + $0x208] sm:$0xff] }
 0x2ee   : > { %v4135_v56 = vpop.f32.mrf.mxu1 }
 0x2ef   : > { %3009 = vst [vmem:[#allocation2 + $0x190] sm:$0xff] %v2881_v12  ;;  %v4678_v16 = vadd.f32 %v4134_v49, %v3010_v35  ;;  %v4136_v53 = vadd.f32 %v4135_v56, %v3942_v52  ;;  %v3944_v26 = vpop.f32.mrf.mxu0  ;;  %v3027_v35 = vld [vmem:[#allocation3 + $0x348] sm:$0xff] }
 0x2f0   : > { %v4137_v50 = vpop.f32.mrf.mxu1 }
 0x2f1   : > { %4806 = vst [vmem:[#allocation3 + $0x2f8] sm:$0xff] %v4678_v16  ;;  %v4679_v28 = vadd.f32 %v4136_v53, %v3011_v22  ;;  %v4138_v62 = vadd.f32 %v4137_v50, %v3944_v26  ;;  %v3946_v20 = vpop.f32.mrf.mxu0  ;;  %v3030_v22 = vld [vmem:[#allocation3 + $0x148] sm:$0xff] }
 0x2f2   : > { %v4139_v39 = vpop.f32.mrf.mxu1  ;;  %v3031_v53 = vld [vmem:[#allocation3 + $0x268] sm:$0xff] }
 0x2f3   : > { %4807 = vst [vmem:[#allocation3 + $0x330] sm:$0xff] %v4679_v28  ;;  %v4682_v55 = vadd.f32 %v4138_v62, %v3014_v37  ;;  %v4140_v54 = vadd.f32 %v4139_v39, %v3946_v20  ;;  %v3950_v9 = vpop.f32.mrf.mxu0  ;;  %4415 = vmatmul.mubr.bf16.gmra.mxu0 %v11774_v15  ;;  %v3035_v39 = vld [vmem:[#allocation3 + $0x120] sm:$0xff] }
 0x2f4   : > { %v4143_v2 = vpop.f32.mrf.mxu1  ;;  %4608 = vmatmul.mubr.bf16.gmra.mxu1 %v11778_v18  ;;  %4424 = vmatprep.mubr.bf16.mxu0 %v11782_v45 }
 0x2f5   : > { %4810 = vst [vmem:[#allocation3 + $0x8] sm:$0xff] %v4682_v55  ;;  %v4683_v4 = vadd.f32 %v4140_v54, %v3015_v41  ;;  %v4144_v3 = vadd.f32 %v4143_v2, %v3950_v9  ;;  %4617 = vmatprep.mubr.bf16.mxu1 %v11786_v10  ;;  %v3952_v27 = vpop.f32.mrf.mxu0  ;;  %v3026_v10 = vld [vmem:[#allocation3 + $0x388] sm:$0xff]  ;;  %v3038_v2 = vld [vmem:[#allocation3 + $0xb0] sm:$0xff] }
 0x2f6   : > { %v4145_v43 = vpop.f32.mrf.mxu1 }
 0x2f7   : > { %4811 = vst [vmem:[#allocation3 + $0x78] sm:$0xff] %v4683_v4  ;;  %v4686_v25 = vadd.f32 %v4144_v3, %v3018_v57  ;;  %v4146_v8 = vadd.f32 %v4145_v43, %v3952_v27  ;;  %v3954_v32 = vpop.f32.mrf.mxu0  ;;  %v3039_v27 = vld [vmem:[#allocation3 + $0x368] sm:$0xff] }
 0x2f8   : > { %v4147_v6 = vpop.f32.mrf.mxu1 }
 0x2f9   : > { %4814 = vst [vmem:[#allocation3 + $0x208] sm:$0xff] %v4686_v25  ;;  %v4687_v15 = vadd.f32 %v4146_v8, %v3019_v42  ;;  %v4148_v33 = vadd.f32 %v4147_v6, %v3954_v32  ;;  %v3956_v18 = vpop.f32.mrf.mxu0 }
 0x2fa   : > { %v4149_v36 = vpop.f32.mrf.mxu1 }
 0x2fb   : > { %4815 = vst [vmem:[#allocation3 + $0x140] sm:$0xff] %v4687_v15  ;;  %v4690_v14 = vadd.f32 %v4148_v33, %v3022_v11  ;;  %v4150_v45 = vadd.f32 %v4149_v36, %v3956_v18  ;;  %v3960_v34 = vpop.f32.mrf.mxu0  ;;  %4425 = vmatmul.mubr.bf16.gmra.mxu0 %v11790_v29  ;;  %v3043_v15 = vld [vmem:[#allocation3 + $0xf0] sm:$0xff] }
 0x2fc   : > { %v4153_v51 = vpop.f32.mrf.mxu1  ;;  %4618 = vmatmul.mubr.bf16.gmra.mxu1 %v11794_v21  ;;  %4434 = vmatprep.mubr.bf16.mxu0 %v11798_v5 }
 0x2fd   : > { %4818 = vst [vmem:[#allocation3 + $0x338] sm:$0xff] %v4690_v14  ;;  %v4691_v61 = vadd.f32 %v4150_v45, %v3023_v19  ;;  %v4154_v44 = vadd.f32 %v4153_v51, %v3960_v34  ;;  %4627 = vmatprep.mubr.bf16.mxu1 %v11802_v24  ;;  %v3962_v13 = vpop.f32.mrf.mxu0  ;;  %v3034_v24 = vld [vmem:[#allocation3 + $0x358] sm:$0xff]  ;;  %v3046_v14 = vld [vmem:[#allocation3 + $0x188] sm:$0xff] }
 0x2fe   : > { %v4155_v31 = vpop.f32.mrf.mxu1 }
 0x2ff   : > { %4819 = vst [vmem:[#allocation3 + $0x280] sm:$0xff] %v4691_v61  ;;  %v4694_v12 = vadd.f32 %v4154_v44, %v3026_v10  ;;  %v4156_v49 = vadd.f32 %v4155_v31, %v3962_v13  ;;  %v3964_v52 = vpop.f32.mrf.mxu0  ;;  %v3047_v10 = vld [vmem:[#allocation3 + $0x1c0] sm:$0xff] }
 0x300   : > { %v4157_v56 = vpop.f32.mrf.mxu1 }
 0x301   : > { %4822 = vst [vmem:[#allocation3 + $0x388] sm:$0xff] %v4694_v12  ;;  %v4695_v29 = vadd.f32 %v4156_v49, %v3027_v35  ;;  %v4158_v16 = vadd.f32 %v4157_v56, %v3964_v52  ;;  %v3966_v21 = vpop.f32.mrf.mxu0  ;;  %v3051_v49 = vld [vmem:[#allocation3 + $0x3b8] sm:$0xff] }
 0x302   : > { %v4159_v26 = vpop.f32.mrf.mxu1 }
 0x303   : > { %4823 = vst [vmem:[#allocation3 + $0x348] sm:$0xff] %v4695_v29  ;;  %v4698_v37 = vadd.f32 %v4158_v16, %v3030_v22  ;;  %v4160_v5 = vadd.f32 %v4159_v26, %v3966_v21  ;;  %v3970_v50 = vpop.f32.mrf.mxu0  ;;  %4435 = vmatmul.mubr.bf16.gmra.mxu0 %v11806_v17  ;;  %v3054_v16 = vld [vmem:[#allocation3 + $0x1b8] sm:$0xff] }
 0x304   : > { %v4163_v28 = vpop.f32.mrf.mxu1  ;;  %4628 = vmatmul.mubr.bf16.gmra.mxu1 %v11810_v48  ;;  %4444 = vmatprep.mubr.bf16.mxu0 %v11814_v23  ;;  %v3055_v26 = vld [vmem:[#allocation3 + $0x218] sm:$0xff] }
 0x305   : > { %4826 = vst [vmem:[#allocation3 + $0x148] sm:$0xff] %v4698_v37  ;;  %v4699_v62 = vadd.f32 %v4160_v5, %v3031_v53  ;;  %v4164_v20 = vadd.f32 %v4163_v28, %v3970_v50  ;;  %4637 = vmatprep.mubr.bf16.mxu1 %v11818_v30  ;;  %v3972_v41 = vpop.f32.mrf.mxu0  ;;  %v3042_v30 = vld [vmem:[#allocation3 + $0x2f0] sm:$0xff] }
 0x306   : > { %v4165_v55 = vpop.f32.mrf.mxu1 }
 0x307   : > { %4827 = vst [vmem:[#allocation3 + $0x268] sm:$0xff] %v4699_v62  ;;  %v4702_v54 = vadd.f32 %v4164_v20, %v3034_v24  ;;  %v4166_v9 = vadd.f32 %v4165_v55, %v3972_v41  ;;  %v3974_v57 = vpop.f32.mrf.mxu0  ;;  %v14668_v20 = vld [vmem:[#allocation17_spill] sm:$0xff] }
 0x308   : > { %v4167_v4 = vpop.f32.mrf.mxu1 }
 0x309   : > { %4830 = vst [vmem:[#allocation3 + $0x358] sm:$0xff] %v4702_v54  ;;  %v4703_v17 = vadd.f32 %v4166_v9, %v3035_v39  ;;  %v4168_v3 = vadd.f32 %v4167_v4, %v3974_v57  ;;  %v3976_v48 = vpop.f32.mrf.mxu0  ;;  %v3059_v39 = vld [vmem:[#allocation3 + $0x68] sm:$0xff] }
 0x30a   : > { %v4169_v42 = vpop.f32.mrf.mxu1 }
 0x30b   : > { %4831 = vst [vmem:[#allocation3 + $0x120] sm:$0xff] %v4703_v17  ;;  %v4706_v43 = vadd.f32 %v4168_v3, %v3038_v2  ;;  %v4170_v23 = vadd.f32 %v4169_v42, %v3976_v48  ;;  %v3980_v25 = vpop.f32.mrf.mxu0  ;;  %4445 = vmatmul.mubr.bf16.gmra.mxu0 %v11822_v38  ;;  %v3062_v2 = vld [vmem:[#allocation3 + $0x318] sm:$0xff]  ;;  %v3063_v3 = vld [vmem:[#allocation3 + $0x1e8] sm:$0xff] }
 0x30c   : > { %v4173_v8 = vpop.f32.mrf.mxu1  ;;  %4638 = vmatmul.mubr.bf16.gmra.mxu1 %v11826_v1  ;;  %4454 = vmatprep.mubr.bf16.mxu0 %v11830_v40 }
 0x30d   : > { %4834 = vst [vmem:[#allocation3 + $0xb0] sm:$0xff] %v4706_v43  ;;  %v4707_v32 = vadd.f32 %v4170_v23, %v3039_v27  ;;  %v4174_v11 = vadd.f32 %v4173_v8, %v3980_v25  ;;  %4647 = vmatprep.mubr.bf16.mxu1 %v11834_v7  ;;  %v3982_v6 = vpop.f32.mrf.mxu0  ;;  %v3050_v7 = vld [vmem:[#allocation3 + $0x190] sm:$0xff]  ;;  %v3066_v43 = vld [vmem:[#allocation3 + $0x2d8] sm:$0xff] }
 0x30e   : > { %v4175_v33 = vpop.f32.mrf.mxu1  ;;  %v14669_v25 = vld [vmem:[#allocation18_spill] sm:$0xff] }
 0x30f   : > { %4835 = vst [vmem:[#allocation3 + $0x368] sm:$0xff] %v4707_v32  ;;  %v4710_v18 = vadd.f32 %v4174_v11, %v3042_v30  ;;  %v4176_v19 = vadd.f32 %v4175_v33, %v3982_v6  ;;  %v3984_v36 = vpop.f32.mrf.mxu0  ;;  %v14670_v30 = vld [vmem:[#allocation19_spill] sm:$0xff] }
 0x310   : > { %v4177_v45 = vpop.f32.mrf.mxu1  ;;  %v3067_v6 = vld [vmem:[#allocation3 + $0x130] sm:$0xff] }
 0x311   : > { %4838 = vst [vmem:[#allocation3 + $0x2f0] sm:$0xff] %v4710_v18  ;;  %v4711_v38 = vadd.f32 %v4176_v19, %v3043_v15  ;;  %v4178_v34 = vadd.f32 %v4177_v45, %v3984_v36  ;;  %v3986_v1 = vpop.f32.mrf.mxu0  ;;  %v3070_v36 = vld [vmem:[#allocation3 + $0x3d0] sm:$0xff] }
 0x312   : > { %v4179_v51 = vpop.f32.mrf.mxu1 }
 0x313   : > { %4839 = vst [vmem:[#allocation3 + $0xf0] sm:$0xff] %v4711_v38  ;;  %v4714_v61 = vadd.f32 %v4178_v34, %v3046_v14  ;;  %v4180_v40 = vadd.f32 %v4179_v51, %v3986_v1  ;;  %v3990_v44 = vpop.f32.mrf.mxu0  ;;  %4455 = vmatmul.mubr.bf16.gmra.mxu0 %v11838_v58  ;;  %v3071_v1 = vld [vmem:[#allocation3 + $0x220] sm:$0xff] }
 0x314   : > { %v4183_v13 = vpop.f32.mrf.mxu1  ;;  %4648 = vmatmul.mubr.bf16.gmra.mxu1 %v11842_v59  ;;  %4464 = vmatprep.mubr.bf16.mxu0 %v11846_v0 }
 0x315   : > { %4842 = vst [vmem:[#allocation3 + $0x188] sm:$0xff] %v4714_v61  ;;  %v4715_v35 = vadd.f32 %v4180_v40, %v3047_v10  ;;  %v4184_v31 = vadd.f32 %v4183_v13, %v3990_v44  ;;  %4657 = vmatprep.mubr.bf16.mxu1 %v11850_v60  ;;  %v3992_v12 = vpop.f32.mrf.mxu0  ;;  %v3058_v60 = vld [vmem:[#allocation3 + $0x80] sm:$0xff] }
 0x316   : > { %v4185_v52 = vpop.f32.mrf.mxu1  ;;  %v3074_v44 = vld [vmem:[#allocation3 + $0x2a0] sm:$0xff] }
 0x317   : > { %4843 = vst [vmem:[#allocation3 + $0x1c0] sm:$0xff] %v4715_v35  ;;  %v4718_v22 = vadd.f32 %v4184_v31, %v3050_v7  ;;  %v4186_v56 = vadd.f32 %v4185_v52, %v3992_v12  ;;  %v3994_v29 = vpop.f32.mrf.mxu0  ;;  %v3075_v12 = vld [vmem:[#allocation3 + $0x378] sm:$0xff] }
 0x318   : > { %v4187_v21 = vpop.f32.mrf.mxu1 }
 0x319   : > { %4846 = vst [vmem:[#allocation3 + $0x190] sm:$0xff] %v4718_v22  ;;  %v4719_v58 = vadd.f32 %v4186_v56, %v3051_v49  ;;  %v4188_v53 = vadd.f32 %v4187_v21, %v3994_v29  ;;  %v3996_v59 = vpop.f32.mrf.mxu0  ;;  %v3078_v29 = vld [vmem:[#allocation3 + $0x2b0] sm:$0xff] }
 0x31a   : > { %v4189_v37 = vpop.f32.mrf.mxu1 }
 0x31b   : > { %4847 = vst [vmem:[#allocation3 + $0x3b8] sm:$0xff] %v4719_v58  ;;  %v4722_v5 = vadd.f32 %v4188_v53, %v3054_v16  ;;  %v4190_v0 = vadd.f32 %v4189_v37, %v3996_v59  ;;  %v4000_v50 = vpop.f32.mrf.mxu0  ;;  %4465 = vmatmul.mubr.bf16.gmra.mxu0 %v11854_v46  ;;  %v3079_v59 = vld [vmem:[#allocation3 + $0xe0] sm:$0xff] }
 0x31c   : > { %v4193_v24 = vpop.f32.mrf.mxu1  ;;  %4658 = vmatmul.mubr.bf16.gmra.mxu1 %v11858_v47  ;;  %4474 = vmatprep.mubr.bf16.mxu0 %v11862_v63 }
 0x31d   : > { %4850 = vst [vmem:[#allocation3 + $0x1b8] sm:$0xff] %v4722_v5  ;;  %v4723_v28 = vadd.f32 %v4190_v0, %v3055_v26  ;;  %v4194_v62 = vadd.f32 %v4193_v24, %v4000_v50  ;;  %4667 = vmatprep.mubr.bf16.mxu1 %v14668_v20  ;;  %v4002_v41 = vpop.f32.mrf.mxu0  ;;  %v3082_v50 = vld [vmem:[#allocation3 + $0x2d0] sm:$0xff]  ;;  %v3083_v20 = vld [vmem:[#allocation3 + $0x1d8] sm:$0xff] }
 0x31e   : > { %v4195_v55 = vpop.f32.mrf.mxu1 }
 0x31f   : > { %4851 = vst [vmem:[#allocation3 + $0x218] sm:$0xff] %v4723_v28  ;;  %v4726_v54 = vadd.f32 %v4194_v62, %v3058_v60  ;;  %v4196_v9 = vadd.f32 %v4195_v55, %v4002_v41  ;;  %v4004_v57 = vpop.f32.mrf.mxu0 }
 0x320   : > { %v4197_v4 = vpop.f32.mrf.mxu1 }
 0x321   : > { %4854 = vst [vmem:[#allocation3 + $0x80] sm:$0xff] %v4726_v54  ;;  %v4727_v46 = vadd.f32 %v4196_v9, %v3059_v39  ;;  %v4198_v17 = vadd.f32 %v4197_v4, %v4004_v57  ;;  %v4006_v47 = vpop.f32.mrf.mxu0  ;;  %v3086_v9 = vld [vmem:[#allocation3 + $0x90] sm:$0xff] }
 0x322   : > { %v4199_v48 = vpop.f32.mrf.mxu1 }
 0x323   : > { %4855 = vst [vmem:[#allocation3 + $0x68] sm:$0xff] %v4727_v46  ;;  %v4730_v27 = vadd.f32 %v4198_v17, %v3062_v2  ;;  %v4200_v63 = vadd.f32 %v4199_v48, %v4006_v47  ;;  %v4010_v42 = vpop.f32.mrf.mxu0  ;;  %4475 = vmatmul.mubr.bf16.gmra.mxu0 %v14669_v25  ;;  %v3087_v17 = vld [vmem:[#allocation3 + $0x3a0] sm:$0xff] }
 0x324   : > { %v4203_v23 = vpop.f32.mrf.mxu1  ;;  %4668 = vmatmul.mubr.bf16.gmra.mxu1 %v14670_v30  ;;  %v3091_v30 = vld [vmem:[#allocation3 + $0x380] sm:$0xff] }
 0x325   : > { %4858 = vst [vmem:[#allocation3 + $0x318] sm:$0xff] %v4730_v27  ;;  %v4731_v8 = vadd.f32 %v4200_v63, %v3063_v3  ;;  %v4204_v32 = vadd.f32 %v4203_v23, %v4010_v42  ;;  %v4012_v11 = vpop.f32.mrf.mxu0  ;;  %v3090_v63 = vld [vmem:[#allocation3 + $0x108] sm:$0xff] }
 0x326   : > { %v4205_v15 = vpop.f32.mrf.mxu1 }
 0x327   : > { %4859 = vst [vmem:[#allocation3 + $0x1e8] sm:$0xff] %v4731_v8  ;;  %v4734_v33 = vadd.f32 %v4204_v32, %v3066_v43  ;;  %v4206_v18 = vadd.f32 %v4205_v15, %v4012_v11  ;;  %v4014_v19 = vpop.f32.mrf.mxu0  ;;  %v3094_v15 = vld [vmem:[#allocation3 + $0x278] sm:$0xff] }
 0x328   : > { %v4207_v14 = vpop.f32.mrf.mxu1 }
 0x329   : > { %4862 = vst [vmem:[#allocation3 + $0x2d8] sm:$0xff] %v4734_v33  ;;  %v4735_v45 = vadd.f32 %v4206_v18, %v3067_v6  ;;  %v4208_v38 = vadd.f32 %v4207_v14, %v4014_v19  ;;  %v4016_v34 = vpop.f32.mrf.mxu0  ;;  %v3095_v14 = vld [vmem:[#allocation3 + $0x200] sm:$0xff] }
 0x32a   : > { %v4209_v10 = vpop.f32.mrf.mxu1 }
 0x32b   : > { %4863 = vst [vmem:[#allocation3 + $0x130] sm:$0xff] %v4735_v45  ;;  %v4738_v51 = vadd.f32 %v4208_v38, %v3070_v36  ;;  %v4210_v61 = vadd.f32 %v4209_v10, %v4016_v34  ;;  %v4020_v40 = vpop.f32.mrf.mxu0  ;;  %v3098_v10 = vld [vmem:[#allocation3 + $0x38] sm:$0xff] }
 0x32c   : > { %v4213_v7 = vpop.f32.mrf.mxu1 }
 0x32d   : > { %4866 = vst [vmem:[#allocation3 + $0x3d0] sm:$0xff] %v4738_v51  ;;  %v4739_v13 = vadd.f32 %v4210_v61, %v3071_v1  ;;  %v4214_v35 = vadd.f32 %v4213_v7, %v4020_v40  ;;  %v4022_v31 = vpop.f32.mrf.mxu0  ;;  %v3099_v7 = vld [vmem:[#allocation3 + $0x350] sm:$0xff] }
 0x32e   : > { %v4215_v49 = vpop.f32.mrf.mxu1 }
 0x32f   : > { %4867 = vst [vmem:[#allocation3 + $0x220] sm:$0xff] %v4739_v13  ;;  %v4742_v52 = vadd.f32 %v4214_v35, %v3074_v44  ;;  %v4216_v22 = vadd.f32 %v4215_v49, %v4022_v31  ;;  %v4024_v56 = vpop.f32.mrf.mxu0  ;;  %v3102_v49 = vld [vmem:[#allocation3 + $0x398] sm:$0xff] }
 0x330   : > { %v4217_v16 = vpop.f32.mrf.mxu1 }
 0x331   : > { %4870 = vst [vmem:[#allocation3 + $0x2a0] sm:$0xff] %v4742_v52  ;;  %v4743_v21 = vadd.f32 %v4216_v22, %v3075_v12  ;;  %v4218_v58 = vadd.f32 %v4217_v16, %v4024_v56  ;;  %v4026_v53 = vpop.f32.mrf.mxu0  ;;  %v3103_v16 = vld [vmem:[#allocation3 + $0xc0] sm:$0xff] }
 0x332   : > { %v4219_v26 = vpop.f32.mrf.mxu1 }
 0x333   : > { %4871 = vst [vmem:[#allocation3 + $0x378] sm:$0xff] %v4743_v21  ;;  %v4746_v37 = vadd.f32 %v4218_v58, %v3078_v29  ;;  %v4220_v5 = vadd.f32 %v4219_v26, %v4026_v53  ;;  %v4030_v0 = vpop.f32.mrf.mxu0  ;;  %v3106_v26 = vld [vmem:[#allocation3 + $0x118] sm:$0xff] }
 0x334   : > { %v4223_v60 = vpop.f32.mrf.mxu1 }
 0x335   : > { %4874 = vst [vmem:[#allocation3 + $0x2b0] sm:$0xff] %v4746_v37  ;;  %v4747_v24 = vadd.f32 %v4220_v5, %v3079_v59  ;;  %v4224_v28 = vadd.f32 %v4223_v60, %v4030_v0  ;;  %v4032_v62 = vpop.f32.mrf.mxu0  ;;  %v3107_v60 = vld [vmem:[#allocation3 + $0x240] sm:$0xff] }
 0x336   : > { %v4225_v41 = vpop.f32.mrf.mxu1 }
 0x337   : > { %4875 = vst [vmem:[#allocation3 + $0xe0] sm:$0xff] %v4747_v24  ;;  %v4750_v39 = vadd.f32 %v4224_v28, %v3082_v50  ;;  %v4226_v55 = vadd.f32 %v4225_v41, %v4032_v62  ;;  %v4034_v54 = vpop.f32.mrf.mxu0  ;;  %v3110_v41 = vld [vmem:[#allocation3 + $0x370] sm:$0xff] }
 0x338   : > { %v4227_v57 = vpop.f32.mrf.mxu1 }
 0x339   : > { %4878 = vst [vmem:[#allocation3 + $0x2d0] sm:$0xff] %v4750_v39  ;;  %v4751_v2 = vadd.f32 %v4226_v55, %v3083_v20  ;;  %v4228_v4 = vadd.f32 %v4227_v57, %v4034_v54  ;;  %v4036_v46 = vpop.f32.mrf.mxu0  ;;  %v3111_v57 = vld [vmem:[#allocation3 + $0x28] sm:$0xff] }
 0x33a   : > { %v4229_v47 = vpop.f32.mrf.mxu1 }
 0x33b   : > { %4879 = vst [vmem:[#allocation3 + $0x1d8] sm:$0xff] %v4751_v2  ;;  %v4754_v3 = vadd.f32 %v4228_v4, %v3086_v9  ;;  %v4230_v48 = vadd.f32 %v4229_v47, %v4036_v46  ;;  %v4040_v27 = vpop.f32.mrf.mxu0  ;;  %v3114_v47 = vld [vmem:[#allocation3 + $0x390] sm:$0xff] }
 0x33c   : > { %v4233_v42 = vpop.f32.mrf.mxu1 }
 0x33d   : > { %4882 = vst [vmem:[#allocation3 + $0x90] sm:$0xff] %v4754_v3  ;;  %v4755_v43 = vadd.f32 %v4230_v48, %v3087_v17  ;;  %v4234_v23 = vadd.f32 %v4233_v42, %v4040_v27  ;;  %v4042_v25 = vpop.f32.mrf.mxu0  ;;  %v3115_v42 = vld [vmem:[#allocation3 + $0x70] sm:$0xff] }
 0x33e   : > { %v4235_v8 = vpop.f32.mrf.mxu1 }
 0x33f   : > { %4883 = vst [vmem:[#allocation3 + $0x3a0] sm:$0xff] %v4755_v43  ;;  %v4758_v32 = vadd.f32 %v4234_v23, %v3090_v63  ;;  %v4236_v11 = vadd.f32 %v4235_v8, %v4042_v25  ;;  %v4044_v6 = vpop.f32.mrf.mxu0  ;;  %v3118_v8 = vld [vmem:[#allocation3 + $0x40] sm:$0xff] }
 0x340   : > { %v4237_v33 = vpop.f32.mrf.mxu1 }
 0x341   : > { %4886 = vst [vmem:[#allocation3 + $0x108] sm:$0xff] %v4758_v32  ;;  %v4759_v18 = vadd.f32 %v4236_v11, %v3091_v30  ;;  %v4238_v19 = vadd.f32 %v4237_v33, %v4044_v6  ;;  %v4046_v36 = vpop.f32.mrf.mxu0  ;;  %v3119_v33 = vld [vmem:[#allocation3 + $0x230] sm:$0xff] }
 0x342   : > { %v4239_v45 = vpop.f32.mrf.mxu1 }
 0x343   : > { %4887 = vst [vmem:[#allocation3 + $0x380] sm:$0xff] %v4759_v18  ;;  %v4762_v38 = vadd.f32 %v4238_v19, %v3094_v15  ;;  %v4240_v34 = vadd.f32 %v4239_v45, %v4046_v36  ;;  %v4050_v1 = vpop.f32.mrf.mxu0  ;;  %v3122_v45 = vld [vmem:[#allocation3 + $0x2a8] sm:$0xff] }
 0x344   : > { %v4243_v51 = vpop.f32.mrf.mxu1 }
 0x345   : > { %4890 = vst [vmem:[#allocation3 + $0x278] sm:$0xff] %v4762_v38  ;;  %v4763_v61 = vadd.f32 %v4240_v34, %v3095_v14  ;;  %v4244_v40 = vadd.f32 %v4243_v51, %v4050_v1  ;;  %v4052_v44 = vpop.f32.mrf.mxu0  ;;  %v3123_v51 = vld [vmem:[#allocation3 + $0x1a0] sm:$0xff] }
 0x346   : > { %v4245_v13 = vpop.f32.mrf.mxu1 }
 0x347   : > { %4891 = vst [vmem:[#allocation3 + $0x200] sm:$0xff] %v4763_v61  ;;  %v4766_v35 = vadd.f32 %v4244_v40, %v3098_v10  ;;  %v4246_v31 = vadd.f32 %v4245_v13, %v4052_v44  ;;  %v4054_v12 = vpop.f32.mrf.mxu0  ;;  %v3126_v13 = vld [vmem:[#allocation3 + $0xb8] sm:$0xff] }
 0x348   : > { %v4247_v52 = vpop.f32.mrf.mxu1 }
 0x349   : > { %4894 = vst [vmem:[#allocation3 + $0x38] sm:$0xff] %v4766_v35  ;;  %v4767_v22 = vadd.f32 %v4246_v31, %v3099_v7  ;;  %v4248_v56 = vadd.f32 %v4247_v52, %v4054_v12  ;;  %v4056_v29 = vpop.f32.mrf.mxu0  ;;  %v3127_v52 = vld [vmem:[#allocation3 + $0x1b0] sm:$0xff] }
 0x34a   : > { %v4249_v21 = vpop.f32.mrf.mxu1 }
 0x34b   : > { %4895 = vst [vmem:[#allocation3 + $0x350] sm:$0xff] %v4767_v22  ;;  %v4770_v58 = vadd.f32 %v4248_v56, %v3102_v49  ;;  %v4250_v53 = vadd.f32 %v4249_v21, %v4056_v29  ;;  %v4060_v59 = vpop.f32.mrf.mxu0  ;;  %v3130_v21 = vld [vmem:[#allocation3 + $0x100] sm:$0xff] }
 0x34c   : > { %v4253_v37 = vpop.f32.mrf.mxu1 }
 0x34d   : > { %4898 = vst [vmem:[#allocation3 + $0x398] sm:$0xff] %v4770_v58  ;;  %v4771_v5 = vadd.f32 %v4250_v53, %v3103_v16  ;;  %v4254_v0 = vadd.f32 %v4253_v37, %v4060_v59  ;;  %v4062_v50 = vpop.f32.mrf.mxu0  ;;  %v3131_v37 = vld [vmem:[#allocation3 + $0xa0] sm:$0xff] }
 0x34e   : > { %v4255_v24 = vpop.f32.mrf.mxu1 }
 0x34f   : > { %4899 = vst [vmem:[#allocation3 + $0xc0] sm:$0xff] %v4771_v5  ;;  %v4774_v28 = vadd.f32 %v4254_v0, %v3106_v26  ;;  %v4256_v62 = vadd.f32 %v4255_v24, %v4062_v50  ;;  %v4064_v20 = vpop.f32.mrf.mxu0  ;;  %v3134_v24 = vld [vmem:[#allocation3 + $0x110] sm:$0xff] }
 0x350   : > { %v4257_v39 = vpop.f32.mrf.mxu1 }
 0x351   : > { %4902 = vst [vmem:[#allocation3 + $0x118] sm:$0xff] %v4774_v28  ;;  %v4775_v55 = vadd.f32 %v4256_v62, %v3107_v60  ;;  %v4258_v54 = vadd.f32 %v4257_v39, %v4064_v20  ;;  %v4066_v9 = vpop.f32.mrf.mxu0  ;;  %v3135_v39 = vld [vmem:[#allocation3 + $0x2c0] sm:$0xff] }
 0x352   : > { %v4259_v2 = vpop.f32.mrf.mxu1 }
 0x353   : > { %4903 = vst [vmem:[#allocation3 + $0x240] sm:$0xff] %v4775_v55  ;;  %v4778_v4 = vadd.f32 %v4258_v54, %v3110_v41  ;;  %v4260_v46 = vadd.f32 %v4259_v2, %v4066_v9  ;;  %v4070_v17 = vpop.f32.mrf.mxu0  ;;  %v3012_v2 = vld [vmem:[#allocation3 + $0x228] sm:$0xff] }
 0x354   : > { %v4263_v3 = vpop.f32.mrf.mxu1 }
 0x355   : > { %4906 = vst [vmem:[#allocation3 + $0x370] sm:$0xff] %v4778_v4  ;;  %v4779_v48 = vadd.f32 %v4260_v46, %v3111_v57  ;;  %v4264_v27 = vadd.f32 %v4263_v3, %v4070_v17  ;;  %v4072_v63 = vpop.f32.mrf.mxu0  ;;  %v3013_v3 = vld [vmem:[#allocation3 + $0xf8] sm:$0xff] }
 0x356   : > { %v4265_v43 = vpop.f32.mrf.mxu1 }
 0x357   : > { %4907 = vst [vmem:[#allocation3 + $0x28] sm:$0xff] %v4779_v48  ;;  %v4782_v23 = vadd.f32 %v4264_v27, %v3114_v47  ;;  %v4266_v25 = vadd.f32 %v4265_v43, %v4072_v63  ;;  %v4074_v30 = vpop.f32.mrf.mxu0  ;;  %v3016_v43 = vld [vmem:[#allocation3 + $0x10] sm:$0xff] }
 0x358   : > { %v4267_v32 = vpop.f32.mrf.mxu1 }
 0x359   : > { %4910 = vst [vmem:[#allocation3 + $0x390] sm:$0xff] %v4782_v23  ;;  %v4783_v11 = vadd.f32 %v4266_v25, %v3115_v42  ;;  %v4268_v6 = vadd.f32 %v4267_v32, %v4074_v30  ;;  %v4076_v15 = vpop.f32.mrf.mxu0  ;;  %v3017_v32 = vld [vmem:[#allocation3 + $0x98] sm:$0xff] }
 0x35a   : > { %v4269_v18 = vpop.f32.mrf.mxu1 }
 0x35b   : > { %4911 = vst [vmem:[#allocation3 + $0x70] sm:$0xff] %v4783_v11  ;;  %v4786_v19 = vadd.f32 %v4268_v6, %v3118_v8  ;;  %v4270_v36 = vadd.f32 %v4269_v18, %v4076_v15  ;;  %v4080_v14 = vpop.f32.mrf.mxu0  ;;  %v3020_v18 = vld [vmem:[#allocation3 + $0x308] sm:$0xff] }
 0x35c   : > { %v4273_v38 = vpop.f32.mrf.mxu1 }
 0x35d   : > { %4914 = vst [vmem:[#allocation3 + $0x40] sm:$0xff] %v4786_v19  ;;  %v4787_v34 = vadd.f32 %v4270_v36, %v3119_v33  ;;  %v4274_v1 = vadd.f32 %v4273_v38, %v4080_v14  ;;  %v4082_v10 = vpop.f32.mrf.mxu0  ;;  %v3021_v38 = vld [vmem:[#allocation3 + $0x3e0] sm:$0xff] }
 0x35e   : > { %v4275_v61 = vpop.f32.mrf.mxu1 }
 0x35f   : > { %4915 = vst [vmem:[#allocation3 + $0x230] sm:$0xff] %v4787_v34  ;;  %v4790_v40 = vadd.f32 %v4274_v1, %v3122_v45  ;;  %v4276_v44 = vadd.f32 %v4275_v61, %v4082_v10  ;;  %v4084_v7 = vpop.f32.mrf.mxu0  ;;  %v3024_v61 = vld [vmem:[#allocation3 + $0x3f8] sm:$0xff] }
 0x360   : > { %v4277_v35 = vpop.f32.mrf.mxu1 }
 0x361   : > { %4918 = vst [vmem:[#allocation3 + $0x2a8] sm:$0xff] %v4790_v40  ;;  %v4791_v31 = vadd.f32 %v4276_v44, %v3123_v51  ;;  %v4278_v12 = vadd.f32 %v4277_v35, %v4084_v7  ;;  %v4086_v49 = vpop.f32.mrf.mxu0  ;;  %v3025_v35 = vld [vmem:[#allocation3 + $0x50] sm:$0xff] }
 0x362   : > { %v4279_v22 = vpop.f32.mrf.mxu1 }
 0x363   : > { %4919 = vst [vmem:[#allocation3 + $0x1a0] sm:$0xff] %v4791_v31  ;;  %v4794_v56 = vadd.f32 %v4278_v12, %v3126_v13  ;;  %v4280_v29 = vadd.f32 %v4279_v22, %v4086_v49  ;;  %v4090_v16 = vpop.f32.mrf.mxu0  ;;  %v3028_v22 = vld [vmem:[#allocation3 + $0x310] sm:$0xff] }
 0x364   : > { %v4283_v58 = vpop.f32.mrf.mxu1 }
 0x365   : > { %4922 = vst [vmem:[#allocation3 + $0xb8] sm:$0xff] %v4794_v56  ;;  %v4795_v53 = vadd.f32 %v4280_v29, %v3127_v52  ;;  %v4284_v59 = vadd.f32 %v4283_v58, %v4090_v16  ;;  %v4092_v26 = vpop.f32.mrf.mxu0  ;;  %v3029_v58 = vld [vmem:[#allocation3 + $0x238] sm:$0xff] }
 0x366   : > { %v4285_v5 = vpop.f32.mrf.mxu1 }
 0x367   : > { %4923 = vst [vmem:[#allocation3 + $0x1b0] sm:$0xff] %v4795_v53  ;;  %v4798_v0 = vadd.f32 %v4284_v59, %v3130_v21  ;;  %v4286_v50 = vadd.f32 %v4285_v5, %v4092_v26  ;;  %v4094_v60 = vpop.f32.mrf.mxu0  ;;  %v3032_v5 = vld [vmem:[#allocation3 + $0xd8] sm:$0xff] }
 0x368   : > { %v4287_v28 = vpop.f32.mrf.mxu1 }
 0x369   : > { %4926 = vst [vmem:[#allocation3 + $0x100] sm:$0xff] %v4798_v0  ;;  %v4799_v62 = vadd.f32 %v4286_v50, %v3131_v37  ;;  %v4288_v20 = vadd.f32 %v4287_v28, %v4094_v60  ;;  %v4096_v41 = vpop.f32.mrf.mxu0  ;;  %v3033_v28 = vld [vmem:[#allocation3 + $0x1f0] sm:$0xff] }
 0x36a   : > { %v4289_v55 = vpop.f32.mrf.mxu1 }
 0x36b   : > { %4927 = vst [vmem:[#allocation3 + $0xa0] sm:$0xff] %v4799_v62  ;;  %v4802_v54 = vadd.f32 %v4288_v20, %v3134_v24  ;;  %v4290_v9 = vadd.f32 %v4289_v55, %v4096_v41  ;;  %v4326_v57 = vpop.f32.mrf.mxu0  ;;  %v3036_v55 = vld [vmem:[#allocation3 + $0x60] sm:$0xff] }
 0x36c   : > { %v4519_v4 = vpop.f32.mrf.mxu1 }
 0x36d   : > { %4930 = vst [vmem:[#allocation3 + $0x110] sm:$0xff] %v4802_v54  ;;  %v4803_v46 = vadd.f32 %v4290_v9, %v3135_v39  ;;  %v4520_v17 = vadd.f32 %v4519_v4, %v4326_v57  ;;  %v4328_v47 = vpop.f32.mrf.mxu0  ;;  %v3037_v4 = vld [vmem:[#allocation3 + $0x158] sm:$0xff] }
 0x36e   : > { %v4521_v48 = vpop.f32.mrf.mxu1 }
 0x36f   : > { %4931 = vst [vmem:[#allocation3 + $0x2c0] sm:$0xff] %v4803_v46  ;;  %v4680_v27 = vadd.f32 %v4520_v17, %v3012_v2  ;;  %v4522_v63 = vadd.f32 %v4521_v48, %v4328_v47  ;;  %v4330_v42 = vpop.f32.mrf.mxu0  ;;  %v3040_v48 = vld [vmem:[#allocation3 + $0x320] sm:$0xff] }
 0x370   : > { %v4523_v23 = vpop.f32.mrf.mxu1 }
 0x371   : > { %4808 = vst [vmem:[#allocation3 + $0x228] sm:$0xff] %v4680_v27  ;;  %v4681_v25 = vadd.f32 %v4522_v63, %v3013_v3  ;;  %v4524_v30 = vadd.f32 %v4523_v23, %v4330_v42  ;;  %v4332_v8 = vpop.f32.mrf.mxu0  ;;  %v3041_v23 = vld [vmem:[#allocation3 + $0x3c8] sm:$0xff] }
 0x372   : > { %v4525_v11 = vpop.f32.mrf.mxu1 }
 0x373   : > { %4809 = vst [vmem:[#allocation3 + $0xf8] sm:$0xff] %v4681_v25  ;;  %v4684_v6 = vadd.f32 %v4524_v30, %v3016_v43  ;;  %v4526_v15 = vadd.f32 %v4525_v11, %v4332_v8  ;;  %v4336_v33 = vpop.f32.mrf.mxu0  ;;  %v3044_v11 = vld [vmem:[#allocation3 + $0x2b8] sm:$0xff] }
 0x374   : > { %v4529_v19 = vpop.f32.mrf.mxu1 }
 0x375   : > { %4812 = vst [vmem:[#allocation3 + $0x10] sm:$0xff] %v4684_v6  ;;  %v4685_v36 = vadd.f32 %v4526_v15, %v3017_v32  ;;  %v4530_v14 = vadd.f32 %v4529_v19, %v4336_v33  ;;  %v4338_v45 = vpop.f32.mrf.mxu0  ;;  %v3045_v19 = vld [vmem:[#allocation3 + $0x18] sm:$0xff] }
 0x376   : > { %v4531_v34 = vpop.f32.mrf.mxu1 }
 0x377   : > { %4813 = vst [vmem:[#allocation3 + $0x98] sm:$0xff] %v4685_v36  ;;  %v4688_v1 = vadd.f32 %v4530_v14, %v3020_v18  ;;  %v4532_v10 = vadd.f32 %v4531_v34, %v4338_v45  ;;  %v4340_v51 = vpop.f32.mrf.mxu0  ;;  %v3048_v34 = vld [vmem:[#allocation3 + $0x290] sm:$0xff] }
 0x378   : > { %v4533_v40 = vpop.f32.mrf.mxu1 }
 0x379   : > { %4816 = vst [vmem:[#allocation3 + $0x308] sm:$0xff] %v4688_v1  ;;  %v4689_v44 = vadd.f32 %v4532_v10, %v3021_v38  ;;  %v4534_v7 = vadd.f32 %v4533_v40, %v4340_v51  ;;  %v4342_v13 = vpop.f32.mrf.mxu0  ;;  %v3049_v40 = vld [vmem:[#allocation3 + $0x168] sm:$0xff] }
 0x37a   : > { %v4535_v31 = vpop.f32.mrf.mxu1 }
 0x37b   : > { %4817 = vst [vmem:[#allocation3 + $0x3e0] sm:$0xff] %v4689_v44  ;;  %v4692_v12 = vadd.f32 %v4534_v7, %v3024_v61  ;;  %v4536_v49 = vadd.f32 %v4535_v31, %v4342_v13  ;;  %v4346_v52 = vpop.f32.mrf.mxu0  ;;  %v3052_v31 = vld [vmem:[#allocation3 + $0x270] sm:$0xff] }
 0x37c   : > { %v4539_v56 = vpop.f32.mrf.mxu1 }
 0x37d   : > { %4820 = vst [vmem:[#allocation3 + $0x3f8] sm:$0xff] %v4692_v12  ;;  %v4693_v29 = vadd.f32 %v4536_v49, %v3025_v35  ;;  %v4540_v16 = vadd.f32 %v4539_v56, %v4346_v52  ;;  %v4348_v21 = vpop.f32.mrf.mxu0  ;;  %v3053_v56 = vld [vmem:[#allocation3 + $0x170] sm:$0xff] }
 0x37e   : > { %v4541_v53 = vpop.f32.mrf.mxu1 }
 0x37f   : > { %4821 = vst [vmem:[#allocation3 + $0x50] sm:$0xff] %v4693_v29  ;;  %v4696_v59 = vadd.f32 %v4540_v16, %v3028_v22  ;;  %v4542_v26 = vadd.f32 %v4541_v53, %v4348_v21  ;;  %v4350_v37 = vpop.f32.mrf.mxu0  ;;  %v3056_v53 = vld [vmem:[#allocation3 + $0x2e8] sm:$0xff] }
 0x380   : > { %v4543_v0 = vpop.f32.mrf.mxu1 }
 0x381   : > { %4824 = vst [vmem:[#allocation3 + $0x310] sm:$0xff] %v4696_v59  ;;  %v4697_v50 = vadd.f32 %v4542_v26, %v3029_v58  ;;  %v4544_v60 = vadd.f32 %v4543_v0, %v4350_v37  ;;  %v4352_v24 = vpop.f32.mrf.mxu0  ;;  %v3057_v0 = vld [vmem:[#allocation3 + $0x288] sm:$0xff] }
 0x382   : > { %v4545_v62 = vpop.f32.mrf.mxu1 }
 0x383   : > { %4825 = vst [vmem:[#allocation3 + $0x238] sm:$0xff] %v4697_v50  ;;  %v4700_v20 = vadd.f32 %v4544_v60, %v3032_v5  ;;  %v4546_v41 = vadd.f32 %v4545_v62, %v4352_v24  ;;  %v4356_v39 = vpop.f32.mrf.mxu0  ;;  %v3060_v62 = vld [vmem:[#allocation3 + $0x30] sm:$0xff] }
 0x384   : > { %v4549_v54 = vpop.f32.mrf.mxu1 }
 0x385   : > { %4828 = vst [vmem:[#allocation3 + $0xd8] sm:$0xff] %v4700_v20  ;;  %v4701_v9 = vadd.f32 %v4546_v41, %v3033_v28  ;;  %v4550_v57 = vadd.f32 %v4549_v54, %v4356_v39  ;;  %v4358_v2 = vpop.f32.mrf.mxu0  ;;  %v3061_v54 = vld [vmem:[#allocation3 + $0x58] sm:$0xff] }
 0x386   : > { %v4551_v46 = vpop.f32.mrf.mxu1 }
 0x387   : > { %4829 = vst [vmem:[#allocation3 + $0x1f0] sm:$0xff] %v4701_v9  ;;  %v4704_v17 = vadd.f32 %v4550_v57, %v3036_v55  ;;  %v4552_v47 = vadd.f32 %v4551_v46, %v4358_v2  ;;  %v4360_v3 = vpop.f32.mrf.mxu0  ;;  %v3064_v46 = vld [vmem:[#allocation3 + $0x210] sm:$0xff] }
 0x388   : > { %v4553_v27 = vpop.f32.mrf.mxu1 }
 0x389   : > { %4832 = vst [vmem:[#allocation3 + $0x60] sm:$0xff] %v4704_v17  ;;  %v4705_v63 = vadd.f32 %v4552_v47, %v3037_v4  ;;  %v4554_v42 = vadd.f32 %v4553_v27, %v4360_v3  ;;  %v4362_v43 = vpop.f32.mrf.mxu0  ;;  %v3065_v27 = vld [vmem:[#allocation3 + $0x160] sm:$0xff] }
 0x38a   : > { %v4555_v25 = vpop.f32.mrf.mxu1 }
 0x38b   : > { %4833 = vst [vmem:[#allocation3 + $0x158] sm:$0xff] %v4705_v63  ;;  %v4708_v30 = vadd.f32 %v4554_v42, %v3040_v48  ;;  %v4556_v8 = vadd.f32 %v4555_v25, %v4362_v43  ;;  %v4366_v32 = vpop.f32.mrf.mxu0  ;;  %v3068_v25 = vld [vmem:[#allocation3 + $0x2e0] sm:$0xff] }
 0x38c   : > { %v4559_v6 = vpop.f32.mrf.mxu1 }
 0x38d   : > { %4836 = vst [vmem:[#allocation3 + $0x320] sm:$0xff] %v4708_v30  ;;  %v4709_v15 = vadd.f32 %v4556_v8, %v3041_v23  ;;  %v4560_v33 = vadd.f32 %v4559_v6, %v4366_v32  ;;  %v4368_v18 = vpop.f32.mrf.mxu0  ;;  %v3069_v6 = vld [vmem:[#allocation3 + $0x3d8] sm:$0xff] }
 0x38e   : > { %v4561_v36 = vpop.f32.mrf.mxu1 }
 0x38f   : > { %4837 = vst [vmem:[#allocation3 + $0x3c8] sm:$0xff] %v4709_v15  ;;  %v4712_v14 = vadd.f32 %v4560_v33, %v3044_v11  ;;  %v4562_v45 = vadd.f32 %v4561_v36, %v4368_v18  ;;  %v4370_v38 = vpop.f32.mrf.mxu0  ;;  %v3072_v36 = vld [vmem:[#allocation3 + $0x3e8] sm:$0xff] }
 0x390   : > { %v4563_v1 = vpop.f32.mrf.mxu1 }
 0x391   : > { %4840 = vst [vmem:[#allocation3 + $0x2b8] sm:$0xff] %v4712_v14  ;;  %v4713_v10 = vadd.f32 %v4562_v45, %v3045_v19  ;;  %v4564_v51 = vadd.f32 %v4563_v1, %v4370_v38  ;;  %v4372_v61 = vpop.f32.mrf.mxu0  ;;  %v3073_v1 = vld [vmem:[#allocation3 + $0x198] sm:$0xff] }
 0x392   : > { %v4565_v44 = vpop.f32.mrf.mxu1 }
 0x393   : > { %4841 = vst [vmem:[#allocation3 + $0x18] sm:$0xff] %v4713_v10  ;;  %v4716_v7 = vadd.f32 %v4564_v51, %v3048_v34  ;;  %v4566_v13 = vadd.f32 %v4565_v44, %v4372_v61  ;;  %v4376_v35 = vpop.f32.mrf.mxu0  ;;  %v3076_v44 = vld [vmem:[#allocation3 + $0x260] sm:$0xff] }
 0x394   : > { %v4569_v12 = vpop.f32.mrf.mxu1 }
 0x395   : > { %4844 = vst [vmem:[#allocation3 + $0x290] sm:$0xff] %v4716_v7  ;;  %v4717_v49 = vadd.f32 %v4566_v13, %v3049_v40  ;;  %v4570_v52 = vadd.f32 %v4569_v12, %v4376_v35  ;;  %v4378_v22 = vpop.f32.mrf.mxu0  ;;  %v3077_v12 = vld [vmem:[#allocation3 + $0x3f0] sm:$0xff] }
 0x396   : > { %v4571_v29 = vpop.f32.mrf.mxu1 }
 0x397   : > { %4845 = vst [vmem:[#allocation3 + $0x168] sm:$0xff] %v4717_v49  ;;  %v4720_v16 = vadd.f32 %v4570_v52, %v3052_v31  ;;  %v4572_v21 = vadd.f32 %v4571_v29, %v4378_v22  ;;  %v4380_v58 = vpop.f32.mrf.mxu0  ;;  %v3080_v29 = vld [vmem:[#allocation3 + $0x88] sm:$0xff] }
 0x398   : > { %v4573_v59 = vpop.f32.mrf.mxu1 }
 0x399   : > { %4848 = vst [vmem:[#allocation3 + $0x270] sm:$0xff] %v4720_v16  ;;  %v4721_v26 = vadd.f32 %v4572_v21, %v3053_v56  ;;  %v4574_v37 = vadd.f32 %v4573_v59, %v4380_v58  ;;  %v4382_v5 = vpop.f32.mrf.mxu0  ;;  %v3081_v59 = vld [vmem:[#allocation3 + $0xd0] sm:$0xff] }
 0x39a   : > { %v4575_v50 = vpop.f32.mrf.mxu1 }
 0x39b   : > { %4849 = vst [vmem:[#allocation3 + $0x170] sm:$0xff] %v4721_v26  ;;  %v4724_v60 = vadd.f32 %v4574_v37, %v3056_v53  ;;  %v4576_v24 = vadd.f32 %v4575_v50, %v4382_v5  ;;  %v4386_v28 = vpop.f32.mrf.mxu0  ;;  %v3084_v50 = vld [vmem:[#allocation3 + $0x250] sm:$0xff] }
 0x39c   : > { %v4579_v20 = vpop.f32.mrf.mxu1 }
 0x39d   : > { %4852 = vst [vmem:[#allocation3 + $0x2e8] sm:$0xff] %v4724_v60  ;;  %v4725_v41 = vadd.f32 %v4576_v24, %v3057_v0  ;;  %v4580_v39 = vadd.f32 %v4579_v20, %v4386_v28  ;;  %v4388_v55 = vpop.f32.mrf.mxu0  ;;  %v3085_v20 = vld [vmem:[#allocation3 + $0x300] sm:$0xff] }
 0x39e   : > { %v4581_v9 = vpop.f32.mrf.mxu1 }
 0x39f   : > { %4853 = vst [vmem:[#allocation3 + $0x288] sm:$0xff] %v4725_v41  ;;  %v4728_v57 = vadd.f32 %v4580_v39, %v3060_v62  ;;  %v4582_v2 = vadd.f32 %v4581_v9, %v4388_v55  ;;  %v4390_v4 = vpop.f32.mrf.mxu0  ;;  %v3088_v9 = vld [vmem:[#allocation3 + $0x328] sm:$0xff] }
 0x3a0   : > { %v4583_v17 = vpop.f32.mrf.mxu1 }
 0x3a1   : > { %4856 = vst [vmem:[#allocation3 + $0x30] sm:$0xff] %v4728_v57  ;;  %v4729_v47 = vadd.f32 %v4582_v2, %v3061_v54  ;;  %v4584_v3 = vadd.f32 %v4583_v17, %v4390_v4  ;;  %v4392_v48 = vpop.f32.mrf.mxu0  ;;  %v3089_v17 = vld [vmem:[#allocation3 + $0x128] sm:$0xff] }
 0x3a2   : > { %v4585_v63 = vpop.f32.mrf.mxu1 }
 0x3a3   : > { %4857 = vst [vmem:[#allocation3 + $0x58] sm:$0xff] %v4729_v47  ;;  %v4732_v42 = vadd.f32 %v4584_v3, %v3064_v46  ;;  %v4586_v43 = vadd.f32 %v4585_v63, %v4392_v48  ;;  %v4396_v23 = vpop.f32.mrf.mxu0  ;;  %v3092_v63 = vld [vmem:[#allocation3 + $0x138] sm:$0xff] }
 0x3a4   : > { %v4589_v30 = vpop.f32.mrf.mxu1 }
 0x3a5   : > { %4860 = vst [vmem:[#allocation3 + $0x210] sm:$0xff] %v4732_v42  ;;  %v4733_v8 = vadd.f32 %v4586_v43, %v3065_v27  ;;  %v4590_v32 = vadd.f32 %v4589_v30, %v4396_v23  ;;  %v4398_v11 = vpop.f32.mrf.mxu0  ;;  %v3093_v30 = vld [vmem:[#allocation3 + $0x1f8] sm:$0xff] }
 0x3a6   : > { %v4591_v15 = vpop.f32.mrf.mxu1 }
 0x3a7   : > { %4861 = vst [vmem:[#allocation3 + $0x160] sm:$0xff] %v4733_v8  ;;  %v4736_v33 = vadd.f32 %v4590_v32, %v3068_v25  ;;  %v4592_v18 = vadd.f32 %v4591_v15, %v4398_v11  ;;  %v4400_v19 = vpop.f32.mrf.mxu0  ;;  %v3096_v15 = vld [vmem:[#allocation3 + $0x150] sm:$0xff] }
 0x3a8   : > { %v4593_v14 = vpop.f32.mrf.mxu1 }
 0x3a9   : > { %4864 = vst [vmem:[#allocation3 + $0x2e0] sm:$0xff] %v4736_v33  ;;  %v4737_v45 = vadd.f32 %v4592_v18, %v3069_v6  ;;  %v4594_v38 = vadd.f32 %v4593_v14, %v4400_v19  ;;  %v4402_v34 = vpop.f32.mrf.mxu0  ;;  %v3097_v14 = vld [vmem:[#allocation3 + $0x1c8] sm:$0xff] }
 0x3aa   : > { %v4595_v10 = vpop.f32.mrf.mxu1 }
 0x3ab   : > { %4865 = vst [vmem:[#allocation3 + $0x3d8] sm:$0xff] %v4737_v45  ;;  %v4740_v51 = vadd.f32 %v4594_v38, %v3072_v36  ;;  %v4596_v61 = vadd.f32 %v4595_v10, %v4402_v34  ;;  %v4406_v40 = vpop.f32.mrf.mxu0  ;;  %v3100_v10 = vld [vmem:[#allocation3 + $0x20] sm:$0xff] }
 0x3ac   : > { %v4599_v7 = vpop.f32.mrf.mxu1 }
 0x3ad   : > { %4868 = vst [vmem:[#allocation3 + $0x3e8] sm:$0xff] %v4740_v51  ;;  %v4741_v13 = vadd.f32 %v4596_v61, %v3073_v1  ;;  %v4600_v35 = vadd.f32 %v4599_v7, %v4406_v40  ;;  %v4408_v31 = vpop.f32.mrf.mxu0  ;;  %v3101_v7 = vld [vmem:[#allocation3 + $0xa8] sm:$0xff] }
 0x3ae   : > { %v4601_v49 = vpop.f32.mrf.mxu1 }
 0x3af   : > { %4869 = vst [vmem:[#allocation3 + $0x198] sm:$0xff] %v4741_v13  ;;  %v4744_v52 = vadd.f32 %v4600_v35, %v3076_v44  ;;  %v4602_v22 = vadd.f32 %v4601_v49, %v4408_v31  ;;  %v4410_v56 = vpop.f32.mrf.mxu0  ;;  %v3104_v49 = vld [vmem:[#allocation3 + $0x48] sm:$0xff] }
 0x3b0   : > { %v4603_v16 = vpop.f32.mrf.mxu1 }
 0x3b1   : > { %4872 = vst [vmem:[#allocation3 + $0x260] sm:$0xff] %v4744_v52  ;;  %v4745_v21 = vadd.f32 %v4602_v22, %v3077_v12  ;;  %v4604_v58 = vadd.f32 %v4603_v16, %v4410_v56  ;;  %v4412_v53 = vpop.f32.mrf.mxu0  ;;  %v3105_v16 = vld [vmem:[#allocation3 + $0x360] sm:$0xff] }
 0x3b2   : > { %v4605_v26 = vpop.f32.mrf.mxu1 }
 0x3b3   : > { %4873 = vst [vmem:[#allocation3 + $0x3f0] sm:$0xff] %v4745_v21  ;;  %v4748_v37 = vadd.f32 %v4604_v58, %v3080_v29  ;;  %v4606_v5 = vadd.f32 %v4605_v26, %v4412_v53  ;;  %v4416_v0 = vpop.f32.mrf.mxu0  ;;  %v3108_v26 = vld [vmem:[#allocation3 + $0x1d0] sm:$0xff] }
 0x3b4   : > { %v4609_v60 = vpop.f32.mrf.mxu1 }
 0x3b5   : > { %4876 = vst [vmem:[#allocation3 + $0x88] sm:$0xff] %v4748_v37  ;;  %v4749_v24 = vadd.f32 %v4606_v5, %v3081_v59  ;;  %v4610_v28 = vadd.f32 %v4609_v60, %v4416_v0  ;;  %v4418_v62 = vpop.f32.mrf.mxu0  ;;  %v3109_v60 = vld [vmem:[#allocation3 + $0x248] sm:$0xff] }
 0x3b6   : > { %v4611_v41 = vpop.f32.mrf.mxu1 }
 0x3b7   : > { %4877 = vst [vmem:[#allocation3 + $0xd0] sm:$0xff] %v4749_v24  ;;  %v4752_v39 = vadd.f32 %v4610_v28, %v3084_v50  ;;  %v4612_v55 = vadd.f32 %v4611_v41, %v4418_v62  ;;  %v4420_v54 = vpop.f32.mrf.mxu0  ;;  %v3112_v41 = vld [vmem:[#allocation3 + $0x3c0] sm:$0xff] }
 0x3b8   : > { %v4613_v57 = vpop.f32.mrf.mxu1 }
 0x3b9   : > { %4880 = vst [vmem:[#allocation3 + $0x250] sm:$0xff] %v4752_v39  ;;  %v4753_v2 = vadd.f32 %v4612_v55, %v3085_v20  ;;  %v4614_v4 = vadd.f32 %v4613_v57, %v4420_v54  ;;  %v4422_v46 = vpop.f32.mrf.mxu0  ;;  %v3113_v57 = vld [vmem:[#allocation3 + $0x3b0] sm:$0xff] }
 0x3ba   : > { %v4615_v47 = vpop.f32.mrf.mxu1 }
 0x3bb   : > { %4881 = vst [vmem:[#allocation3 + $0x300] sm:$0xff] %v4753_v2  ;;  %v4756_v3 = vadd.f32 %v4614_v4, %v3088_v9  ;;  %v4616_v48 = vadd.f32 %v4615_v47, %v4422_v46  ;;  %v4426_v27 = vpop.f32.mrf.mxu0  ;;  %v3116_v47 = vld [vmem:[#allocation3 + $0x178] sm:$0xff] }
 0x3bc   : > { %v4619_v42 = vpop.f32.mrf.mxu1 }
 0x3bd   : > { %4884 = vst [vmem:[#allocation3 + $0x328] sm:$0xff] %v4756_v3  ;;  %v4757_v43 = vadd.f32 %v4616_v48, %v3089_v17  ;;  %v4620_v23 = vadd.f32 %v4619_v42, %v4426_v27  ;;  %v4428_v25 = vpop.f32.mrf.mxu0  ;;  %v3117_v42 = vld [vmem:[#allocation3 + $0x2c8] sm:$0xff] }
 0x3be   : > { %v4621_v8 = vpop.f32.mrf.mxu1 }
 0x3bf   : > { %4885 = vst [vmem:[#allocation3 + $0x128] sm:$0xff] %v4757_v43  ;;  %v4760_v32 = vadd.f32 %v4620_v23, %v3092_v63  ;;  %v4622_v11 = vadd.f32 %v4621_v8, %v4428_v25  ;;  %v4430_v6 = vpop.f32.mrf.mxu0  ;;  %v3120_v8 = vld [vmem:[#allocation3 + $0x340] sm:$0xff] }
 0x3c0   : > { %v4623_v33 = vpop.f32.mrf.mxu1 }
 0x3c1   : > { %4888 = vst [vmem:[#allocation3 + $0x138] sm:$0xff] %v4760_v32  ;;  %v4761_v18 = vadd.f32 %v4622_v11, %v3093_v30  ;;  %v4624_v19 = vadd.f32 %v4623_v33, %v4430_v6  ;;  %v4432_v36 = vpop.f32.mrf.mxu0  ;;  %v3121_v33 = vld [vmem:[#allocation3 + $0x180] sm:$0xff] }
 0x3c2   : > { %v4625_v45 = vpop.f32.mrf.mxu1 }
 0x3c3   : > { %4889 = vst [vmem:[#allocation3 + $0x1f8] sm:$0xff] %v4761_v18  ;;  %v4764_v38 = vadd.f32 %v4624_v19, %v3096_v15  ;;  %v4626_v34 = vadd.f32 %v4625_v45, %v4432_v36  ;;  %v4436_v1 = vpop.f32.mrf.mxu0  ;;  %v3124_v45 = vld [vmem:[#allocation3 + $0x3a8] sm:$0xff] }
 0x3c4   : > { %v4629_v51 = vpop.f32.mrf.mxu1 }
 0x3c5   : > { %4892 = vst [vmem:[#allocation3 + $0x150] sm:$0xff] %v4764_v38  ;;  %v4765_v61 = vadd.f32 %v4626_v34, %v3097_v14  ;;  %v4630_v40 = vadd.f32 %v4629_v51, %v4436_v1  ;;  %v4438_v44 = vpop.f32.mrf.mxu0  ;;  %v3125_v51 = vld [vmem:[#allocation3 + $0xe8] sm:$0xff] }
 0x3c6   : > { %v4631_v13 = vpop.f32.mrf.mxu1 }
 0x3c7   : > { %4893 = vst [vmem:[#allocation3 + $0x1c8] sm:$0xff] %v4765_v61  ;;  %v4768_v35 = vadd.f32 %v4630_v40, %v3100_v10  ;;  %v4632_v31 = vadd.f32 %v4631_v13, %v4438_v44  ;;  %v4440_v12 = vpop.f32.mrf.mxu0  ;;  %v3128_v13 = vld [vmem:[#allocation3] sm:$0xff] }
 0x3c8   : > { %v4633_v52 = vpop.f32.mrf.mxu1 }
 0x3c9   : > { %4896 = vst [vmem:[#allocation3 + $0x20] sm:$0xff] %v4768_v35  ;;  %v4769_v22 = vadd.f32 %v4632_v31, %v3101_v7  ;;  %v4634_v56 = vadd.f32 %v4633_v52, %v4440_v12  ;;  %v4442_v29 = vpop.f32.mrf.mxu0  ;;  %v3129_v52 = vld [vmem:[#allocation3 + $0x1e0] sm:$0xff] }
 0x3ca   : > { %v4635_v21 = vpop.f32.mrf.mxu1 }
 0x3cb   : > { %4897 = vst [vmem:[#allocation3 + $0xa8] sm:$0xff] %v4769_v22  ;;  %v4772_v58 = vadd.f32 %v4634_v56, %v3104_v49  ;;  %v4636_v53 = vadd.f32 %v4635_v21, %v4442_v29  ;;  %v4446_v59 = vpop.f32.mrf.mxu0  ;;  %v3132_v21 = vld [vmem:[#allocation3 + $0x258] sm:$0xff] }
 0x3cc   : > { %v4639_v37 = vpop.f32.mrf.mxu1 }
 0x3cd   : > { %4900 = vst [vmem:[#allocation3 + $0x48] sm:$0xff] %v4772_v58  ;;  %v4773_v5 = vadd.f32 %v4636_v53, %v3105_v16  ;;  %v4640_v0 = vadd.f32 %v4639_v37, %v4446_v59  ;;  %v4448_v50 = vpop.f32.mrf.mxu0  ;;  %v3133_v37 = vld [vmem:[#allocation3 + $0x1a8] sm:$0xff] }
 0x3ce   : > { %v4641_v24 = vpop.f32.mrf.mxu1 }
 0x3cf   : > { %4901 = vst [vmem:[#allocation3 + $0x360] sm:$0xff] %v4773_v5  ;;  %v4776_v28 = vadd.f32 %v4640_v0, %v3108_v26  ;;  %v4642_v62 = vadd.f32 %v4641_v24, %v4448_v50  ;;  %v4450_v20 = vpop.f32.mrf.mxu0  ;;  %v3136_v24 = vld [vmem:[#allocation3 + $0x298] sm:$0xff] }
 0x3d0   : > { %v4643_v39 = vpop.f32.mrf.mxu1 }
 0x3d1   : > { %4904 = vst [vmem:[#allocation3 + $0x1d0] sm:$0xff] %v4776_v28  ;;  %v4777_v55 = vadd.f32 %v4642_v62, %v3109_v60  ;;  %v4644_v54 = vadd.f32 %v4643_v39, %v4450_v20  ;;  %v4452_v9 = vpop.f32.mrf.mxu0  ;;  %v3137_v39 = vld [vmem:[#allocation3 + $0xc8] sm:$0xff] }
 0x3d2   : > { %v4645_v2 = vpop.f32.mrf.mxu1 }
 0x3d3   : > { %4905 = vst [vmem:[#allocation3 + $0x248] sm:$0xff] %v4777_v55  ;;  %v4780_v4 = vadd.f32 %v4644_v54, %v3112_v41  ;;  %v4646_v46 = vadd.f32 %v4645_v2, %v4452_v9  ;;  %v4456_v17 = vpop.f32.mrf.mxu0 }
 0x3d4   : > { %v4649_v3 = vpop.f32.mrf.mxu1 }
 0x3d5   : > { %4908 = vst [vmem:[#allocation3 + $0x3c0] sm:$0xff] %v4780_v4  ;;  %v4781_v48 = vadd.f32 %v4646_v46, %v3113_v57  ;;  %v4650_v27 = vadd.f32 %v4649_v3, %v4456_v17  ;;  %v4458_v63 = vpop.f32.mrf.mxu0 }
 0x3d6   : > { %v4651_v43 = vpop.f32.mrf.mxu1 }
 0x3d7   : > { %4909 = vst [vmem:[#allocation3 + $0x3b0] sm:$0xff] %v4781_v48  ;;  %v4784_v23 = vadd.f32 %v4650_v27, %v3116_v47  ;;  %v4652_v25 = vadd.f32 %v4651_v43, %v4458_v63  ;;  %v4460_v30 = vpop.f32.mrf.mxu0 }
 0x3d8   : > { %v4653_v32 = vpop.f32.mrf.mxu1 }
 0x3d9   : > { %4912 = vst [vmem:[#allocation3 + $0x178] sm:$0xff] %v4784_v23  ;;  %v4785_v11 = vadd.f32 %v4652_v25, %v3117_v42  ;;  %v4654_v6 = vadd.f32 %v4653_v32, %v4460_v30  ;;  %v4462_v15 = vpop.f32.mrf.mxu0 }
 0x3da   : > { %v4655_v18 = vpop.f32.mrf.mxu1 }
 0x3db   : > { %4913 = vst [vmem:[#allocation3 + $0x2c8] sm:$0xff] %v4785_v11  ;;  %v4788_v19 = vadd.f32 %v4654_v6, %v3120_v8  ;;  %v4656_v36 = vadd.f32 %v4655_v18, %v4462_v15  ;;  %v4466_v14 = vpop.f32.mrf.mxu0 }
 0x3dc   : > { %v4659_v38 = vpop.f32.mrf.mxu1 }
 0x3dd   : > { %4916 = vst [vmem:[#allocation3 + $0x340] sm:$0xff] %v4788_v19  ;;  %v4789_v34 = vadd.f32 %v4656_v36, %v3121_v33  ;;  %v4660_v1 = vadd.f32 %v4659_v38, %v4466_v14  ;;  %v4468_v10 = vpop.f32.mrf.mxu0 }
 0x3de   : > { %v4661_v61 = vpop.f32.mrf.mxu1 }
 0x3df   : > { %4917 = vst [vmem:[#allocation3 + $0x180] sm:$0xff] %v4789_v34  ;;  %v4792_v40 = vadd.f32 %v4660_v1, %v3124_v45  ;;  %v4662_v44 = vadd.f32 %v4661_v61, %v4468_v10  ;;  %v4470_v7 = vpop.f32.mrf.mxu0 }
 0x3e0   : > { %v4663_v35 = vpop.f32.mrf.mxu1 }
 0x3e1   : > { %4920 = vst [vmem:[#allocation3 + $0x3a8] sm:$0xff] %v4792_v40  ;;  %v4793_v31 = vadd.f32 %v4662_v44, %v3125_v51  ;;  %v4664_v12 = vadd.f32 %v4663_v35, %v4470_v7  ;;  %v4472_v49 = vpop.f32.mrf.mxu0 }
 0x3e2   : > { %v4665_v22 = vpop.f32.mrf.mxu1 }
 0x3e3   : > { %4921 = vst [vmem:[#allocation3 + $0xe8] sm:$0xff] %v4793_v31  ;;  %v4796_v56 = vadd.f32 %v4664_v12, %v3128_v13  ;;  %v4666_v29 = vadd.f32 %v4665_v22, %v4472_v49  ;;  %v4476_v16 = vpop.f32.mrf.mxu0 }
 0x3e4   : > { %v4669_v58 = vpop.f32.mrf.mxu1 }
 0x3e5   : > { %4924 = vst [vmem:[#allocation3] sm:$0xff] %v4796_v56  ;;  %v4797_v53 = vadd.f32 %v4666_v29, %v3129_v52  ;;  %v4670_v59 = vadd.f32 %v4669_v58, %v4476_v16  ;;  %v4478_v26 = vpop.f32.mrf.mxu0 }
 0x3e6   : > { %v4671_v5 = vpop.f32.mrf.mxu1 }
 0x3e7   : > { %4925 = vst [vmem:[#allocation3 + $0x1e0] sm:$0xff] %v4797_v53  ;;  %v4800_v0 = vadd.f32 %v4670_v59, %v3132_v21  ;;  %v4672_v50 = vadd.f32 %v4671_v5, %v4478_v26  ;;  %v4480_v60 = vpop.f32.mrf.mxu0 }
 0x3e8   : > { %v4673_v28 = vpop.f32.mrf.mxu1 }
 0x3e9   : > { %4928 = vst [vmem:[#allocation3 + $0x258] sm:$0xff] %v4800_v0  ;;  %v4801_v62 = vadd.f32 %v4672_v50, %v3133_v37  ;;  %v4674_v20 = vadd.f32 %v4673_v28, %v4480_v60  ;;  %v4482_v41 = vpop.f32.mrf.mxu0 }
 0x3ea   : > { %v4675_v55 = vpop.f32.mrf.mxu1 }
 0x3eb   : > { %4929 = vst [vmem:[#allocation3 + $0x1a8] sm:$0xff] %v4801_v62  ;;  %v4804_v54 = vadd.f32 %v4674_v20, %v3136_v24  ;;  %v4676_v9 = vadd.f32 %v4675_v55, %v4482_v41  ;;  %4937 = sbr.rel (%p9278_p7) target bundleno = 1897 (0x769), region = 64 }
 0x3ed   : > { %4932 = vst [vmem:[#allocation3 + $0x298] sm:$0xff] %v4804_v54  ;;  %v4805_v57 = vadd.f32 %v4676_v9, %v3137_v39 }
 0x3ef   : > { %4933 = vst [vmem:[#allocation3 + $0xc8] sm:$0xff] %v4805_v57 }
 0x3f0   : > { %v5066_v2 = vld [vmem:[#allocation3 + $0x2f8] sm:$0xff]  ;;  %v5067_v46 = vld [vmem:[#allocation3 + $0x330] sm:$0xff]  ;;  %v5068_v17 = vld [vmem:[#allocation3 + $0x228] sm:$0xff]  ;;  %v10656_v51 = vmov -1.0  }
 0x3f1   : > { %v5322_v4 = vmul.f32 0.70710677, %v5066_v2  ;;  %v5323_v47 = vmul.f32 0.70710677, %v5067_v46  ;;  %v5324_v3 = vmul.f32 0.70710677, %v5068_v17 }
 0x3f2   : > { %v5069_v63 = vld [vmem:[#allocation3 + $0xf8] sm:$0xff]  ;;  %v5070_v18 = vld [vmem:[#allocation3 + $0x8] sm:$0xff]  ;;  %v11942_v19 = vmul.f32 0.5, %v5066_v2  ;;  %v11946_v38 = vmul.f32 0.5, %v5067_v46  ;;  %v11948_v1 = vmul.f32 0.5, %v5068_v17  ;;  %v11958_v49 = vld [vmem:[#allocation3 + $0x10] sm:$0xff] }
 0x3f3   : > { %v5706_v48 = vand.u32 2147483647, %v5322_v4  ;;  %v5707_v27 = vand.u32 2147483647, %v5323_v47  ;;  %v5708_v25 = vand.u32 2147483647, %v5324_v3 }
 0x3f4   : > { %v5325_v32 = vmul.f32 0.70710677, %v5069_v63  ;;  %vm5450_vm0 = vcmp.ge.f32.partialorder %v5322_v4, 0.0  ;;  %vm5451_vm1 = vcmp.ge.f32.partialorder %v5323_v47, 0.0  ;;  %v11944_v45 = vld [vmem:[#allocation3 + $0x78] sm:$0xff]  ;;  %vm5452_vm2 = vcmp.ge.f32.partialorder %v5324_v3, 0.0 }
 0x3f5   : > { %v5834_v42 = vmul.f32 0.3275911, %v5706_v48  ;;  %v7370_v43 = vsub.f32 0.0, %v5706_v48  ;;  %v5835_v23 = vmul.f32 0.3275911, %v5707_v27  ;;  %v7371_v8 = vsub.f32 0.0, %v5707_v27 }
 0x3f6   : > { %v5836_v6 = vmul.f32 0.3275911, %v5708_v25  ;;  %v7372_v15 = vsub.f32 0.0, %v5708_v25  ;;  %v5709_v33 = vand.u32 2147483647, %v5325_v32  ;;  %v11952_v61 = vsel %vm5450_vm0, 1.0, %v10656_v51 }
 0x3f7   : > { %v5962_v30 = vadd.f32 1.0, %v5834_v42  ;;  %v5963_v11 = vadd.f32 1.0, %v5835_v23  ;;  %v7498_v36 = vmul.f32 %v7370_v43, %v5706_v48  ;;  %v7499_v34 = vmul.f32 %v7371_v8, %v5707_v27  ;;  %v11960_v52 = vld [vmem:[#allocation3 + $0x98] sm:$0xff]  ;;  %v11985_v47 = vld [vmem:[#allocation3 + $0x208] sm:$0xff] }
 0x3f8   : > { %v5964_v14 = vadd.f32 1.0, %v5836_v6  ;;  %v5837_v10 = vmul.f32 0.3275911, %v5709_v33  ;;  %v11955_v40 = vsel %vm5451_vm1, 1.0, %v10656_v51  ;;  %v5326_v44 = vmul.f32 0.70710677, %v5070_v18 }
 0x3f9   : > { %9939 = vrcp.f32 %v5962_v30  ;;  %v7500_v7 = vmul.f32 %v7372_v15, %v5708_v25  ;;  %v5327_v35 = vmul.f32 0.70710677, %v11944_v45  ;;  %v7626_v31 = vmul.f32 1.442695, %v7498_v36 }
 0x3fa   : > { %9941 = vrcp.f32 %v5963_v11  ;;  %v5965_v13 = vadd.f32 1.0, %v5837_v10  ;;  %v5710_v12 = vand.u32 2147483647, %v5326_v44  ;;  %v7628_v22 = vmul.f32 1.442695, %v7499_v34 }
 0x3fb   : > { %9943 = vrcp.f32 %v5964_v14  ;;  %v11963_v56 = vsel %vm5452_vm2, 1.0, %v10656_v51  ;;  %v11965_v29 = vmul.f32 0.5, %v5069_v63  ;;  %vm5453_vm3 = vcmp.ge.f32.partialorder %v5325_v32, 0.0 }
 0x3fc   : > { %9945 = vrcp.f32 %v5965_v13  ;;  %v7373_v16 = vsub.f32 0.0, %v5709_v33  ;;  %v5838_v21 = vmul.f32 0.3275911, %v5710_v12  ;;  %v5711_v58 = vand.u32 2147483647, %v5327_v35 }
 0x3fd   : > { %v7630_v53 = vmul.f32 1.442695, %v7500_v7  ;;  %v11968_v59 = vmul.f32 0.70710677, %v11958_v49  ;;  %v11971_v26 = vmul.f32 0.70710677, %v11960_v52  ;;  %9947 = vpow2.f32 %v7626_v31 }
 0x3fe   : > { %v5966_v37 = vadd.f32 1.0, %v5838_v21  ;;  %v7374_v5 = vsub.f32 0.0, %v5710_v12  ;;  %v5839_v0 = vmul.f32 0.3275911, %v5711_v58  ;;  %9949 = vpow2.f32 %v7628_v22 }
 0x3ff   : > { %v11973_v50 = vmul.f32 0.5, %v5070_v18  ;;  %v5712_v60 = vand.u32 2147483647, %v11968_v59  ;;  %v5713_v24 = vand.u32 2147483647, %v11971_v26  ;;  %v11978_v28 = vsel %vm5453_vm3, 1.0, %v10656_v51 }
 0x400   : > { %9951 = vrcp.f32 %v5966_v37  ;;  %v5967_v62 = vadd.f32 1.0, %v5839_v0  ;;  %v7375_v20 = vsub.f32 0.0, %v5711_v58  ;;  %v7501_v41 = vmul.f32 %v7373_v16, %v5709_v33  ;;  %v12003_v18 = vld [vmem:[#allocation3 + $0x140] sm:$0xff] }
 0x401   : > { %9953 = vpow2.f32 %v7630_v53  ;;  %v5840_v39 = vmul.f32 0.3275911, %v5712_v60  ;;  %v7376_v55 = vsub.f32 0.0, %v5712_v60  ;;  %vm5454_vm4 = vcmp.ge.f32.partialorder %v5326_v44, 0.0 }
 0x402   : > { %v7502_v9 = vmul.f32 %v7374_v5, %v5710_v12  ;;  %vm5455_vm5 = vcmp.ge.f32.partialorder %v5327_v35, 0.0  ;;  %v5841_v57 = vmul.f32 0.3275911, %v5713_v24  ;;  %9955 = vrcp.f32 %v5967_v62 }
 0x403   : > { %v5968_v46 = vadd.f32 1.0, %v5840_v39  ;;  %v7377_v17 = vsub.f32 0.0, %v5713_v24  ;;  %v7503_v48 = vmul.f32 %v7375_v20, %v5711_v58  ;;  %v7504_v27 = vmul.f32 %v7376_v55, %v5712_v60 }
 0x404   : > { %v5969_v63 = vadd.f32 1.0, %v5841_v57  ;;  %v7632_v43 = vmul.f32 1.442695, %v7501_v41  ;;  %v11990_v23 = vsel %vm5454_vm4, 1.0, %v10656_v51  ;;  %v7634_v8 = vmul.f32 1.442695, %v7502_v9 }
 0x405   : > { %9957 = vrcp.f32 %v5968_v46  ;;  %v11995_v32 = vmul.f32 0.70710677, %v11985_v47  ;;  %v12001_v15 = vsel %vm5455_vm5, 1.0, %v10656_v51  ;;  %v7505_v33 = vmul.f32 %v7377_v17, %v5713_v24 }
 0x406   : > { %v11980_v54 = vpop.eup %9939  ;;  %9959 = vrcp.f32 %v5969_v63  ;;  %v7636_v34 = vmul.f32 1.442695, %v7503_v48  ;;  %v7638_v10 = vmul.f32 1.442695, %v7504_v27  ;;  %v12014_v62 = vmul.f32 0.70710677, %v12003_v18 }
 0x407   : > { %v11982_v2 = vpop.eup %9941  ;;  %v6218_v4 = vmul.f32 1.0614054, %v11980_v54  ;;  %v5714_v44 = vand.u32 2147483647, %v11995_v32  ;;  %9961 = vpow2.f32 %v7632_v43  ;;  %v7640_v37 = vmul.f32 1.442695, %v7505_v33 }
 0x408   : > { %v6219_v3 = vmul.f32 1.0614054, %v11982_v2  ;;  %v11992_v25 = vpop.eup %9943  ;;  %9963 = vpow2.f32 %v7634_v8  ;;  %v12026_v43 = vand.u32 2147483647, %v12014_v62  ;;  %vm5456_vm6 = vcmp.ge.f32.partialorder %v11968_v59, 0.0 }
 0x409   : > { %v6346_v42 = vadd.f32 -1.4531521, %v6218_v4  ;;  %v6220_v6 = vmul.f32 1.0614054, %v11992_v25  ;;  %v12005_v36 = vpop.eup %9945  ;;  %v5842_v35 = vmul.f32 0.3275911, %v5714_v44  ;;  %9965 = vpow2.f32 %v7636_v34 }
 0x40a   : > { %v6347_v30 = vadd.f32 -1.4531521, %v6219_v3  ;;  %v6221_v31 = vmul.f32 1.0614054, %v12005_v36  ;;  %v7378_v22 = vsub.f32 0.0, %v5714_v44  ;;  %v9948_v16 = vpop.eup %9947  ;;  %9967 = vpow2.f32 %v7638_v10 }
 0x40b   : > { %v6474_v11 = vmul.f32 %v11980_v54, %v6346_v42  ;;  %v6348_v13 = vadd.f32 -1.4531521, %v6220_v6  ;;  %v9950_v5 = vpop.eup %9949  ;;  %v5970_v60 = vadd.f32 1.0, %v5842_v35  ;;  %9969 = vpow2.f32 %v7640_v37 }
 0x40c   : > { %v6475_v14 = vmul.f32 %v11982_v2, %v6347_v30  ;;  %v6349_v53 = vadd.f32 -1.4531521, %v6221_v31  ;;  %v7506_v24 = vmul.f32 %v7378_v22, %v5714_v44  ;;  %v12034_v10 = vmul.f32 0.3275911, %v12026_v43 }
 0x40d   : > { %v6602_v7 = vadd.f32 1.4214138, %v6474_v11  ;;  %v6476_v58 = vmul.f32 %v11992_v25, %v6348_v13  ;;  %v12016_v20 = vpop.eup %9951  ;;  %9971 = vrcp.f32 %v5970_v60  ;;  %vm5457_vm7 = vcmp.ge.f32.partialorder %v11971_v26, 0.0 }
 0x40e   : > { %v6603_v12 = vadd.f32 1.4214138, %v6475_v14  ;;  %v6477_v55 = vmul.f32 %v12005_v36, %v6349_v53  ;;  %v9954_v9 = vpop.eup %9953  ;;  %v6222_v4 = vmul.f32 1.0614054, %v12016_v20  ;;  %v7642_v46 = vmul.f32 1.442695, %v7506_v24 }
 0x40f   : > { %v6730_v21 = vmul.f32 %v11980_v54, %v6602_v7  ;;  %v6604_v39 = vadd.f32 1.4214138, %v6476_v58  ;;  %v12022_v27 = vpop.eup %9955  ;;  %vm5458_vm8 = vcmp.ge.f32.partialorder %v11995_v32, 0.0  ;;  %vm5459_vm9 = vcmp.ge.f32.partialorder %v12014_v62, 0.0  ;;  %v12125_v62 = vld [vmem:[#allocation3 + $0x3f8] sm:$0xff] }
 0x410   : > { %v6731_v0 = vmul.f32 %v11982_v2, %v6603_v12  ;;  %v6605_v48 = vadd.f32 1.4214138, %v6477_v55  ;;  %v6350_v42 = vadd.f32 -1.4531521, %v6222_v4  ;;  %v6223_v6 = vmul.f32 1.0614054, %v12022_v27 }
 0x411   : > { %v6858_v41 = vadd.f32 -0.28449672, %v6730_v21  ;;  %v6732_v3 = vmul.f32 %v11992_v25, %v6604_v39  ;;  %9973 = vpow2.f32 %v7642_v46 }
 0x412   : > { %v6859_v57 = vadd.f32 -0.28449672, %v6731_v0  ;;  %v6733_v11 = vmul.f32 %v12005_v36, %v6605_v48  ;;  %v12030_v33 = vpop.eup %9957  ;;  %v6478_v34 = vmul.f32 %v12016_v20, %v6350_v42  ;;  %v6351_v12 = vadd.f32 -1.4531521, %v6223_v6 }
 0x413   : > { %v6986_v17 = vmul.f32 %v11980_v54, %v6858_v41  ;;  %v6860_v8 = vadd.f32 -0.28449672, %v6732_v3  ;;  %v12036_v44 = vpop.eup %9959  ;;  %v6224_v21 = vmul.f32 1.0614054, %v12030_v33 }
 0x414   : > { %v6987_v63 = vmul.f32 %v11982_v2, %v6859_v57  ;;  %v6861_v31 = vadd.f32 -0.28449672, %v6733_v11  ;;  %v6606_v22 = vadd.f32 1.4214138, %v6478_v34  ;;  %v6225_v58 = vmul.f32 1.0614054, %v12036_v44  ;;  %v9962_v24 = vpop.eup %9961 }
 0x415   : > { %v7114_v30 = vadd.f32 0.2548296, %v6986_v17  ;;  %v6988_v13 = vmul.f32 %v11992_v25, %v6860_v8  ;;  %v6479_v60 = vmul.f32 %v12022_v27, %v6351_v12  ;;  %v6352_v39 = vadd.f32 -1.4531521, %v6224_v21  ;;  %v9964_v57 = vpop.eup %9963  ;;  %v4938_v21 = vld [vmem:[#allocation2 + $0x2b0] sm:$0xff] }
 0x416   : > { %v7115_v14 = vadd.f32 0.2548296, %v6987_v63  ;;  %v6989_v0 = vmul.f32 %v12005_v36, %v6861_v31  ;;  %v6353_v55 = vadd.f32 -1.4531521, %v6225_v58  ;;  %v9966_v11 = vpop.eup %9965 }
 0x417   : > { %v7242_v7 = vmul.f32 %v11980_v54, %v7114_v30  ;;  %v7116_v37 = vadd.f32 0.2548296, %v6988_v13  ;;  %v6734_v54 = vmul.f32 %v12016_v20, %v6606_v22  ;;  %v6607_v17 = vadd.f32 1.4214138, %v6479_v60 }
 0x418   : > { %v7243_v35 = vmul.f32 %v11982_v2, %v7115_v14  ;;  %v7117_v46 = vadd.f32 0.2548296, %v6989_v0  ;;  %v6481_v63 = vmul.f32 %v12036_v44, %v6353_v55 }
 0x419   : > { %v7882_v53 = vmul.f32 %v9948_v16, %v7242_v7  ;;  %v7244_v2 = vmul.f32 %v11992_v25, %v7116_v37  ;;  %v6862_v48 = vadd.f32 -0.28449672, %v6734_v54  ;;  %v6480_v16 = vmul.f32 %v12030_v33, %v6352_v39  ;;  %v9968_v7 = vpop.eup %9967  ;;  %v4939_v37 = vld [vmem:[#allocation2 + $0x3b0] sm:$0xff] }
 0x41a   : > { %v7883_v41 = vmul.f32 %v9950_v5, %v7243_v35  ;;  %v7245_v5 = vmul.f32 %v12005_v36, %v7117_v46  ;;  %v6735_v8 = vmul.f32 %v12022_v27, %v6607_v17  ;;  %v6609_v34 = vadd.f32 1.4214138, %v6481_v63  ;;  %v9970_v22 = vpop.eup %9969 }
 0x41b   : > { %v8010_v4 = vsub.f32 1.0, %v7882_v53  ;;  %v7884_v30 = vmul.f32 %v9954_v9, %v7244_v2  ;;  %v6990_v25 = vmul.f32 %v12016_v20, %v6862_v48  ;;  %v6608_v14 = vadd.f32 1.4214138, %v6480_v16  ;;  %v12058_v58 = vpop.eup %9971  ;;  %v4940_v48 = vld [vmem:[#allocation2 + $0xd8] sm:$0xff] }
 0x41c   : > { %v8011_v3 = vsub.f32 1.0, %v7883_v41  ;;  %v7885_v12 = vmul.f32 %v9962_v24, %v7245_v5  ;;  %v6863_v35 = vadd.f32 -0.28449672, %v6735_v8  ;;  %v6226_v5 = vmul.f32 1.0614054, %v12058_v58 }
 0x41d   : > { %v8138_v42 = vmul.f32 %v8010_v4, %v11952_v61  ;;  %v8012_v31 = vsub.f32 1.0, %v7884_v30  ;;  %v7118_v9 = vadd.f32 0.2548296, %v6990_v25  ;;  %v6736_v36 = vmul.f32 %v12030_v33, %v6608_v14 }
 0x41e   : > { %v8139_v6 = vmul.f32 %v8011_v3, %v11955_v40  ;;  %v6737_v40 = vmul.f32 %v12036_v44, %v6609_v34  ;;  %v8013_v60 = vsub.f32 1.0, %v7885_v12  ;;  %v6991_v24 = vmul.f32 %v12022_v27, %v6863_v35  ;;  %v12065_v4 = vpop.eup %9973 }
 0x41f   : > { %v8266_v13 = vadd.f32 1.0, %v8138_v42  ;;  %v8140_v0 = vmul.f32 %v8012_v31, %v11963_v56  ;;  %v7246_v54 = vmul.f32 %v12016_v20, %v7118_v9  ;;  %v6864_v39 = vadd.f32 -0.28449672, %v6736_v36  ;;  %v4941_v20 = vld [vmem:[#allocation2 + $0x18] sm:$0xff]  ;;  %v12075_v31 = vld [vmem:[#allocation3 + $0x308] sm:$0xff] }
 0x420   : > { %v8267_v61 = vadd.f32 1.0, %v8139_v6  ;;  %v6865_v55 = vadd.f32 -0.28449672, %v6737_v40  ;;  %v8141_v17 = vmul.f32 %v8013_v60, %v11978_v28  ;;  %v7119_v3 = vadd.f32 0.2548296, %v6991_v24 }
 0x421   : > { %v8394_v53 = vmul.f32 %v8266_v13, %v11942_v19  ;;  %v8268_v46 = vadd.f32 1.0, %v8140_v0  ;;  %v7886_v16 = vmul.f32 %v9964_v57, %v7246_v54  ;;  %v6992_v56 = vmul.f32 %v12030_v33, %v6864_v39  ;;  %v12094_v0 = vld [vmem:[#allocation3 + $0x3e0] sm:$0xff]  ;;  %v4943_v54 = vld [vmem:[#allocation2 + $0x368] sm:$0xff] }
 0x422   : > { %v8395_v41 = vmul.f32 %v8267_v61, %v11946_v38  ;;  %v6993_v63 = vmul.f32 %v12036_v44, %v6865_v55  ;;  %v8269_v42 = vadd.f32 1.0, %v8141_v17  ;;  %v7247_v30 = vmul.f32 %v12022_v27, %v7119_v3 }
 0x423   : > { %v8522_v2 = vmul.f32 %v8394_v53, %v4938_v21  ;;  %v8396_v38 = vmul.f32 %v8268_v46, %v11948_v1  ;;  %v8014_v8 = vsub.f32 1.0, %v7886_v16  ;;  %v7120_v28 = vadd.f32 0.2548296, %v6992_v56  ;;  %v4945_v16 = vld [vmem:[#allocation2 + $0x48] sm:$0xff] }
 0x424   : > { %v8523_v19 = vmul.f32 %v8395_v41, %v4939_v37  ;;  %v7121_v6 = vadd.f32 0.2548296, %v6993_v63  ;;  %v5971_v25 = vadd.f32 1.0, %v12034_v10  ;;  %v8397_v14 = vmul.f32 %v8269_v42, %v11965_v29 }
 0x425   : > { %8650 = vst [vmem:[#allocation12] sm:$0xff] %v8522_v2  ;;  %v8524_v57 = vmul.f32 %v8396_v38, %v4940_v48  ;;  %v7887_v34 = vmul.f32 %v9966_v11, %v7247_v30  ;;  %v6354_v13 = vadd.f32 -1.4531521, %v6226_v5  ;;  %v8142_v1 = vmul.f32 %v8014_v8, %v11990_v23  ;;  %v4942_v23 = vld [vmem:[#allocation2 + $0x50] sm:$0xff]  ;;  %v5078_v30 = vld [vmem:[#allocation3 + $0x338] sm:$0xff] }
 0x426   : > { %8651 = vst [vmem:[#allocation12 + $0x8] sm:$0xff] %v8523_v19  ;;  %v7248_v12 = vmul.f32 %v12030_v33, %v7120_v28  ;;  %v7249_v27 = vmul.f32 %v12036_v44, %v7121_v6  ;;  %9975 = vrcp.f32 %v5971_v25  ;;  %v8525_v35 = vmul.f32 %v8397_v14, %v4941_v20  ;;  %v4944_v48 = vld [vmem:[#allocation2 + $0x330] sm:$0xff]  ;;  %v5079_v28 = vld [vmem:[#allocation3 + $0x280] sm:$0xff] }
 0x427   : > { %8652 = vst [vmem:[#allocation12 + $0x10] sm:$0xff] %v8524_v57  ;;  %v5199_v21 = vmul.f32 0.5, %v11944_v45  ;;  %v8015_v61 = vsub.f32 1.0, %v7887_v34  ;;  %v6482_v10 = vmul.f32 %v12058_v58, %v6354_v13  ;;  %v8270_v9 = vadd.f32 1.0, %v8142_v1 }
 0x428   : > { %v7888_v29 = vmul.f32 %v9968_v7, %v7248_v12  ;;  %v7889_v11 = vmul.f32 %v9970_v22, %v7249_v27  ;;  %v12083_v36 = vmul.f32 0.70710677, %v12075_v31  ;;  %8653 = vst [vmem:[#allocation12 + $0x18] sm:$0xff] %v8525_v35  ;;  %v5584_v44 = vsel %vm5456_vm6, 1.0, %v10656_v51 }
 0x429   : > { %v8143_v33 = vmul.f32 %v8015_v61, %v12001_v15  ;;  %v5585_v45 = vsel %vm5457_vm7, 1.0, %v10656_v51  ;;  %v6610_v40 = vadd.f32 1.4214138, %v6482_v10  ;;  %v8398_v53 = vmul.f32 %v8270_v9, %v11973_v50 }
 0x42a   : > { %v8016_v7 = vsub.f32 1.0, %v7888_v29  ;;  %v8017_v22 = vsub.f32 1.0, %v7889_v11  ;;  %v7379_v37 = vsub.f32 0.0, %v12026_v43  ;;  %v5200_v15 = vmul.f32 0.5, %v11958_v49 }
 0x42b   : > { %v8271_v60 = vadd.f32 1.0, %v8143_v33  ;;  %v5201_v24 = vmul.f32 0.5, %v11960_v52  ;;  %v6738_v59 = vmul.f32 %v12058_v58, %v6610_v40  ;;  %v8526_v41 = vmul.f32 %v8398_v53, %v4942_v23 }
 0x42c   : > { %v8144_v26 = vmul.f32 %v8016_v7, %v5584_v44  ;;  %v8145_v39 = vmul.f32 %v8017_v22, %v5585_v45  ;;  %v5716_v55 = vand.u32 2147483647, %v12083_v36  ;;  %v12101_v46 = vmul.f32 0.70710677, %v12094_v0 }
 0x42d   : > { %v8399_v50 = vmul.f32 %v8271_v60, %v5199_v21  ;;  %v6866_v2 = vadd.f32 -0.28449672, %v6738_v59  ;;  %8654 = vst [vmem:[#allocation12 + $0x20] sm:$0xff] %v8526_v41  ;;  %v7507_v49 = vmul.f32 %v7379_v37, %v12026_v43  ;;  %v12110_v13 = vmul.f32 0.70710677, %v5078_v30 }
 0x42e   : > { %v8272_v17 = vadd.f32 1.0, %v8144_v26  ;;  %v8273_v3 = vadd.f32 1.0, %v8145_v39  ;;  %v5844_v19 = vmul.f32 0.3275911, %v5716_v55  ;;  %v5717_v63 = vand.u32 2147483647, %v12101_v46 }
 0x42f   : > { %v8527_v52 = vmul.f32 %v8399_v50, %v4943_v54  ;;  %v6994_v56 = vmul.f32 %v12058_v58, %v6866_v2  ;;  %v7644_v25 = vmul.f32 1.442695, %v7507_v49  ;;  %v5202_v1 = vmul.f32 0.5, %v11985_v47 }
 0x430   : > { %v8400_v38 = vmul.f32 %v8272_v17, %v5200_v15  ;;  %v8401_v20 = vmul.f32 %v8273_v3, %v5201_v24  ;;  %v5972_v42 = vadd.f32 1.0, %v5844_v19  ;;  %v5845_v8 = vmul.f32 0.3275911, %v5717_v63  ;;  %v12148_v15 = vld [vmem:[#allocation3 + $0x50] sm:$0xff]  ;;  %v4946_v24 = vld [vmem:[#allocation2 + $0x380] sm:$0xff] }
 0x431   : > { %8655 = vst [vmem:[#allocation12 + $0x28] sm:$0xff] %v8527_v52  ;;  %v7122_v5 = vadd.f32 0.2548296, %v6994_v56  ;;  %v12115_v27 = vmul.f32 0.70710677, %v5079_v28  ;;  %v5586_v35 = vsel %vm5458_vm8, 1.0, %v10656_v51 }
 0x432   : > { %v8528_v6 = vmul.f32 %v8400_v38, %v4944_v48  ;;  %v8529_v43 = vmul.f32 %v8401_v20, %v4945_v16  ;;  %9977 = vrcp.f32 %v5972_v42  ;;  %v5973_v34 = vadd.f32 1.0, %v5845_v8 }
 0x433   : > { %v12107_v57 = vpop.eup %9975  ;;  %v7250_v14 = vmul.f32 %v12058_v58, %v7122_v5  ;;  %v12122_v58 = vmul.f32 0.5, %v12003_v18  ;;  %v7380_v10 = vsub.f32 0.0, %v5716_v55  ;;  %v5718_v47 = vand.u32 2147483647, %v12110_v13 }
 0x434   : > { %8656 = vst [vmem:[#allocation12 + $0x30] sm:$0xff] %v8528_v6  ;;  %8657 = vst [vmem:[#allocation12 + $0x38] sm:$0xff] %v8529_v43  ;;  %v6227_v12 = vmul.f32 1.0614054, %v12107_v57  ;;  %9979 = vrcp.f32 %v5973_v34  ;;  %v12128_v29 = vsel %vm5459_vm9, 1.0, %v10656_v51  ;;  %v12131_v32 = vmul.f32 0.5, %v12075_v31 }
 0x435   : > { %v7890_v21 = vmul.f32 %v12065_v4, %v7250_v14  ;;  %9981 = vpow2.f32 %v7644_v25  ;;  %v5719_v4 = vand.u32 2147483647, %v12115_v27  ;;  %vm5460_vm10 = vcmp.ge.f32.partialorder %v12083_v36, 0.0 }
 0x436   : > { %v6355_v61 = vadd.f32 -1.4531521, %v6227_v12  ;;  %vm5461_vm11 = vcmp.ge.f32.partialorder %v12101_v46, 0.0  ;;  %v5846_v11 = vmul.f32 0.3275911, %v5718_v47  ;;  %v7381_v33 = vsub.f32 0.0, %v5717_v63 }
 0x437   : > { %v8018_v9 = vsub.f32 1.0, %v7890_v21  ;;  %v5847_v44 = vmul.f32 0.3275911, %v5719_v4  ;;  %v12138_v45 = vmul.f32 0.70710677, %v12125_v62  ;;  %v7508_v53 = vmul.f32 %v7380_v10, %v5716_v55  ;;  %v12157_v55 = vld [vmem:[#allocation3 + $0x388] sm:$0xff] }
 0x438   : > { %v6483_v18 = vmul.f32 %v12107_v57, %v6355_v61  ;;  %v12141_v31 = vmul.f32 0.5, %v12094_v0  ;;  %v5974_v7 = vadd.f32 1.0, %v5846_v11  ;;  %v12144_v37 = vsel %vm5460_vm10, 1.0, %v10656_v51 }
 0x439   : > { %v8146_v23 = vmul.f32 %v8018_v9, %v5586_v35  ;;  %v12146_v36 = vmul.f32 0.5, %v5078_v30  ;;  %v5975_v60 = vadd.f32 1.0, %v5847_v44  ;;  %v12154_v41 = vsel %vm5461_vm11, 1.0, %v10656_v51  ;;  %v12179_v35 = vld [vmem:[#allocation3 + $0x348] sm:$0xff] }
 0x43a   : > { %v6611_v40 = vadd.f32 1.4214138, %v6483_v18  ;;  %9983 = vrcp.f32 %v5974_v7  ;;  %v7382_v0 = vsub.f32 0.0, %v5718_v47  ;;  %v7509_v26 = vmul.f32 %v7381_v33, %v5717_v63 }
 0x43b   : > { %v8274_v22 = vadd.f32 1.0, %v8146_v23  ;;  %9985 = vrcp.f32 %v5975_v60  ;;  %v5720_v39 = vand.u32 2147483647, %v12138_v45  ;;  %v7646_v2 = vmul.f32 1.442695, %v7508_v53 }
 0x43c   : > { %v6739_v59 = vmul.f32 %v12107_v57, %v6611_v40  ;;  %v12160_v17 = vmul.f32 0.70710677, %v12148_v15  ;;  %v12164_v46 = vmul.f32 0.5, %v5079_v28  ;;  %v7383_v19 = vsub.f32 0.0, %v5719_v4 }
 0x43d   : > { %v8402_v54 = vmul.f32 %v8274_v22, %v5202_v1  ;;  %v5848_v52 = vmul.f32 0.3275911, %v5720_v39  ;;  %v7510_v56 = vmul.f32 %v7382_v0, %v5718_v47  ;;  %v7648_v38 = vmul.f32 1.442695, %v7509_v26 }
 0x43e   : > { %v6867_v50 = vadd.f32 -0.28449672, %v6739_v59  ;;  %v5721_v63 = vand.u32 2147483647, %v12160_v17  ;;  %vm5462_vm12 = vcmp.ge.f32.partialorder %v12110_v13, 0.0  ;;  %9987 = vpow2.f32 %v7646_v2 }
 0x43f   : > { %v12162_v3 = vpop.eup %9977  ;;  %v8530_v49 = vmul.f32 %v8402_v54, %v4946_v24  ;;  %v5976_v20 = vadd.f32 1.0, %v5848_v52  ;;  %v12171_v42 = vmul.f32 0.70710677, %v12157_v55  ;;  %vm5463_vm13 = vcmp.ge.f32.partialorder %v12115_v27, 0.0 }
 0x440   : > { %v6995_v48 = vmul.f32 %v12107_v57, %v6867_v50  ;;  %v6228_v16 = vmul.f32 1.0614054, %v12162_v3  ;;  %v5849_v28 = vmul.f32 0.3275911, %v5721_v63  ;;  %v7511_v25 = vmul.f32 %v7383_v19, %v5719_v4 }
 0x441   : > { %8658 = vst [vmem:[#allocation12 + $0x40] sm:$0xff] %v8530_v49  ;;  %v12173_v30 = vpop.eup %9979  ;;  %9989 = vrcp.f32 %v5976_v20  ;;  %v7650_v1 = vmul.f32 1.442695, %v7510_v56  ;;  %v12184_v61 = vsel %vm5462_vm12, 1.0, %v10656_v51  ;;  %v7384_v10 = vsub.f32 0.0, %v5720_v39  ;;  %v4947_v49 = vld [vmem:[#allocation2 + $0x110] sm:$0xff] }
 0x442   : > { %v7123_v5 = vadd.f32 0.2548296, %v6995_v48  ;;  %v6356_v8 = vadd.f32 -1.4531521, %v6228_v16  ;;  %v9982_v6 = vpop.eup %9981  ;;  %v6229_v43 = vmul.f32 1.0614054, %v12173_v30  ;;  %9991 = vpow2.f32 %v7648_v38 }
 0x443   : > { %v5977_v12 = vadd.f32 1.0, %v5849_v28  ;;  %v5722_v4 = vand.u32 2147483647, %v12171_v42  ;;  %v12191_v18 = vsel %vm5463_vm13, 1.0, %v10656_v51  ;;  %v7652_v11 = vmul.f32 1.442695, %v7511_v25 }
 0x444   : > { %v7251_v14 = vmul.f32 %v12107_v57, %v7123_v5  ;;  %v6484_v34 = vmul.f32 %v12162_v3, %v6356_v8  ;;  %v6357_v21 = vadd.f32 -1.4531521, %v6229_v43  ;;  %v12194_v23 = vmul.f32 0.70710677, %v12179_v35 }
 0x445   : > { %9993 = vrcp.f32 %v5977_v12  ;;  %v5850_v44 = vmul.f32 0.3275911, %v5722_v4  ;;  %v7512_v7 = vmul.f32 %v7384_v10, %v5720_v39  ;;  %v7385_v22 = vsub.f32 0.0, %v5721_v63 }
 0x446   : > { %v7891_v47 = vmul.f32 %v9982_v6, %v7251_v14  ;;  %v6612_v9 = vadd.f32 1.4214138, %v6484_v34  ;;  %v6485_v57 = vmul.f32 %v12173_v30, %v6357_v21  ;;  %9995 = vpow2.f32 %v7650_v1 }
 0x447   : > { %v12197_v40 = vpop.eup %9983  ;;  %v5723_v60 = vand.u32 2147483647, %v12194_v23  ;;  %v5978_v54 = vadd.f32 1.0, %v5850_v44  ;;  %9997 = vpow2.f32 %v7652_v11  ;;  %v7386_v2 = vsub.f32 0.0, %v5722_v4 }
 0x448   : > { %v8019_v13 = vsub.f32 1.0, %v7891_v47  ;;  %v6740_v33 = vmul.f32 %v12162_v3, %v6612_v9  ;;  %v6613_v53 = vadd.f32 1.4214138, %v6485_v57  ;;  %v12200_v24 = vpop.eup %9985  ;;  %v6230_v0 = vmul.f32 1.0614054, %v12197_v40 }
 0x449   : > { %v6231_v50 = vmul.f32 1.0614054, %v12200_v24  ;;  %9999 = vrcp.f32 %v5978_v54  ;;  %v7654_v56 = vmul.f32 1.442695, %v7512_v7  ;;  %v5851_v8 = vmul.f32 0.3275911, %v5723_v60 }
 0x44a   : > { %v8147_v27 = vmul.f32 %v8019_v13, %v12128_v29  ;;  %v6868_v59 = vadd.f32 -0.28449672, %v6740_v33  ;;  %v6741_v26 = vmul.f32 %v12173_v30, %v6613_v53  ;;  %v6358_v52 = vadd.f32 -1.4531521, %v6230_v0  ;;  %v12220_v7 = vld [vmem:[#allocation3 + $0x310] sm:$0xff] }
 0x44b   : > { %v6359_v16 = vadd.f32 -1.4531521, %v6231_v50  ;;  %v7513_v29 = vmul.f32 %v7385_v22, %v5721_v63  ;;  %v9988_v28 = vpop.eup %9987  ;;  %v7514_v25 = vmul.f32 %v7386_v2, %v5722_v4  ;;  %v7387_v14 = vsub.f32 0.0, %v5723_v60 }
 0x44c   : > { %v8275_v19 = vadd.f32 1.0, %v8147_v27  ;;  %v6996_v39 = vmul.f32 %v12162_v3, %v6868_v59  ;;  %v6869_v48 = vadd.f32 -0.28449672, %v6741_v26  ;;  %v6486_v5 = vmul.f32 %v12197_v40, %v6358_v52 }
 0x44d   : > { %v6487_v43 = vmul.f32 %v12200_v24, %v6359_v16  ;;  %v5979_v63 = vadd.f32 1.0, %v5851_v8  ;;  %10001 = vpow2.f32 %v7654_v56  ;;  %v7656_v13 = vmul.f32 1.442695, %v7513_v29 }
 0x44e   : > { %v8403_v38 = vmul.f32 %v8275_v19, %v12122_v58  ;;  %v7124_v20 = vadd.f32 0.2548296, %v6996_v39  ;;  %v6997_v6 = vmul.f32 %v12173_v30, %v6869_v48  ;;  %v12211_v34 = vpop.eup %9989  ;;  %v6614_v21 = vadd.f32 1.4214138, %v6486_v5 }
 0x44f   : > { %v6615_v58 = vadd.f32 1.4214138, %v6487_v43  ;;  %v6232_v47 = vmul.f32 1.0614054, %v12211_v34  ;;  %v9992_v9 = vpop.eup %9991  ;;  %10003 = vrcp.f32 %v5979_v63  ;;  %v7658_v53 = vmul.f32 1.442695, %v7514_v25 }
 0x450   : > { %v8531_v1 = vmul.f32 %v8403_v38, %v4947_v49  ;;  %v7252_v12 = vmul.f32 %v12162_v3, %v7124_v20  ;;  %v7125_v10 = vadd.f32 0.2548296, %v6997_v6  ;;  %v6742_v11 = vmul.f32 %v12197_v40, %v6614_v21  ;;  %v4948_v20 = vld [vmem:[#allocation2 + $0x118] sm:$0xff] }
 0x451   : > { %v6743_v3 = vmul.f32 %v12200_v24, %v6615_v58  ;;  %v6360_v44 = vadd.f32 -1.4531521, %v6232_v47  ;;  %v12223_v59 = vmul.f32 0.5, %v12125_v62  ;;  %v7515_v49 = vmul.f32 %v7387_v14, %v5723_v60 }
 0x452   : > { %8659 = vst [vmem:[#allocation12 + $0x48] sm:$0xff] %v8531_v1  ;;  %v7892_v57 = vmul.f32 %v9988_v28, %v7252_v12  ;;  %v12216_v4 = vpop.eup %9993  ;;  %v7253_v33 = vmul.f32 %v12173_v30, %v7125_v10  ;;  %v6870_v27 = vadd.f32 -0.28449672, %v6742_v11  ;;  %10005 = vpow2.f32 %v7656_v13 }
 0x453   : > { %v6233_v0 = vmul.f32 1.0614054, %v12216_v4  ;;  %v9996_v54 = vpop.eup %9995  ;;  %v6871_v50 = vadd.f32 -0.28449672, %v6743_v3  ;;  %v6488_v2 = vmul.f32 %v12211_v34, %v6360_v44  ;;  %v12231_v62 = vmul.f32 0.70710677, %v12220_v7 }
 0x454   : > { %v8020_v22 = vsub.f32 1.0, %v7892_v57  ;;  %v7893_v26 = vmul.f32 %v9992_v9, %v7253_v33  ;;  %v6998_v19 = vmul.f32 %v12197_v40, %v6870_v27  ;;  %v9998_v56 = vpop.eup %9997  ;;  %vm5464_vm14 = vcmp.ge.f32.partialorder %v12138_v45, 0.0 }
 0x455   : > { %v6361_v39 = vadd.f32 -1.4531521, %v6233_v0  ;;  %v6999_v48 = vmul.f32 %v12200_v24, %v6871_v50  ;;  %v6616_v16 = vadd.f32 1.4214138, %v6488_v2  ;;  %10007 = vpow2.f32 %v7658_v53 }
 0x456   : > { %v8148_v30 = vmul.f32 %v8020_v22, %v12144_v37  ;;  %v8021_v52 = vsub.f32 1.0, %v7893_v26  ;;  %v7126_v38 = vadd.f32 0.2548296, %v6998_v19  ;;  %v12235_v37 = vpop.eup %9999  ;;  %v7660_v6 = vmul.f32 1.442695, %v7515_v49  ;;  %v12256_v49 = vld [vmem:[#allocation3 + $0x238] sm:$0xff] }
 0x457   : > { %v6489_v60 = vmul.f32 %v12216_v4, %v6361_v39  ;;  %v7127_v8 = vadd.f32 0.2548296, %v6999_v48  ;;  %v6744_v28 = vmul.f32 %v12211_v34, %v6616_v16  ;;  %v6234_v1 = vmul.f32 1.0614054, %v12235_v37 }
 0x458   : > { %v8276_v29 = vadd.f32 1.0, %v8148_v30  ;;  %v8149_v5 = vmul.f32 %v8021_v52, %v12154_v41  ;;  %v7254_v25 = vmul.f32 %v12197_v40, %v7126_v38  ;;  %v12244_v10 = vand.u32 2147483647, %v12231_v62  ;;  %v4949_v41 = vld [vmem:[#allocation2 + $0x98] sm:$0xff] }
 0x459   : > { %v6617_v14 = vadd.f32 1.4214138, %v6489_v60  ;;  %v7255_v21 = vmul.f32 %v12200_v24, %v7127_v8  ;;  %v6872_v63 = vadd.f32 -0.28449672, %v6744_v28  ;;  %v6362_v57 = vadd.f32 -1.4531521, %v6234_v1 }
 0x45a   : > { %v8404_v43 = vmul.f32 %v8276_v29, %v12131_v32  ;;  %v8277_v12 = vadd.f32 1.0, %v8149_v5  ;;  %v7894_v47 = vmul.f32 %v9996_v54, %v7254_v25  ;;  %v5852_v13 = vmul.f32 0.3275911, %v12244_v10  ;;  %v10002_v33 = vpop.eup %10001  ;;  %v12276_v1 = vld [vmem:[#allocation3 + $0x148] sm:$0xff] }
 0x45b   : > { %v6745_v9 = vmul.f32 %v12216_v4, %v6617_v14  ;;  %v7895_v11 = vmul.f32 %v9998_v56, %v7255_v21  ;;  %v7000_v40 = vmul.f32 %v12211_v34, %v6872_v63  ;;  %v6490_v44 = vmul.f32 %v12235_v37, %v6362_v57  ;;  %v4950_v56 = vld [vmem:[#allocation2 + $0x320] sm:$0xff] }
 0x45c   : > { %v8532_v58 = vmul.f32 %v8404_v43, %v4948_v20  ;;  %v8405_v32 = vmul.f32 %v8277_v12, %v12141_v31  ;;  %v8022_v24 = vsub.f32 1.0, %v7894_v47  ;;  %10009 = vpow2.f32 %v7660_v6  ;;  %v12251_v53 = vpop.eup %10003  ;;  %v4951_v20 = vld [vmem:[#allocation2 + $0x150] sm:$0xff] }
 0x45d   : > { %v6873_v3 = vadd.f32 -0.28449672, %v6745_v9  ;;  %v8023_v27 = vsub.f32 1.0, %v7895_v11  ;;  %v7128_v0 = vadd.f32 0.2548296, %v7000_v40  ;;  %v5980_v54 = vadd.f32 1.0, %v5852_v13 }
 0x45e   : > { %8660 = vst [vmem:[#allocation12 + $0x50] sm:$0xff] %v8532_v58  ;;  %v8533_v22 = vmul.f32 %v8405_v32, %v4949_v41  ;;  %v8150_v31 = vmul.f32 %v8022_v24, %v12184_v61  ;;  %v6618_v50 = vadd.f32 1.4214138, %v6490_v44  ;;  %v6235_v2 = vmul.f32 1.0614054, %v12251_v53  ;;  %v4952_v40 = vld [vmem:[#allocation2 + $0x108] sm:$0xff] }
 0x45f   : > { %v7001_v26 = vmul.f32 %v12216_v4, %v6873_v3  ;;  %v8151_v30 = vmul.f32 %v8023_v27, %v12191_v18  ;;  %v7256_v19 = vmul.f32 %v12211_v34, %v7128_v0  ;;  %vm5465_vm15 = vcmp.ge.f32.partialorder %v12160_v17, 0.0  ;;  %v10006_v16 = vpop.eup %10005  ;;  %v12288_v44 = vld [vmem:[#allocation3 + $0x268] sm:$0xff] }
 0x460   : > { %8661 = vst [vmem:[#allocation12 + $0x58] sm:$0xff] %v8533_v22  ;;  %10011 = vrcp.f32 %v5980_v54  ;;  %v8278_v39 = vadd.f32 1.0, %v8150_v31  ;;  %v6746_v48 = vmul.f32 %v12235_v37, %v6618_v50  ;;  %v6363_v61 = vadd.f32 -1.4531521, %v6235_v2  ;;  %v4953_v2 = vld [vmem:[#allocation2 + $0x60] sm:$0xff] }
 0x461   : > { %v7129_v52 = vadd.f32 0.2548296, %v7001_v26  ;;  %v8279_v29 = vadd.f32 1.0, %v8151_v30  ;;  %v5592_v38 = vsel %vm5464_vm14, 1.0, %v10656_v51  ;;  %v7896_v60 = vmul.f32 %v10002_v33, %v7256_v19 }
 0x462   : > { %v12266_v18 = vmul.f32 0.70710677, %v12256_v49  ;;  %v8406_v34 = vmul.f32 %v8278_v39, %v12146_v36  ;;  %v6874_v8 = vadd.f32 -0.28449672, %v6746_v48  ;;  %v6491_v28 = vmul.f32 %v12251_v53, %v6363_v61  ;;  %v10008_v6 = vpop.eup %10007 }
 0x463   : > { %v7257_v5 = vmul.f32 %v12216_v4, %v7129_v52  ;;  %v8407_v43 = vmul.f32 %v8279_v29, %v12164_v46  ;;  %v8024_v25 = vsub.f32 1.0, %v7896_v60  ;;  %v5593_v45 = vsel %vm5465_vm15, 1.0, %v10656_v51 }
 0x464   : > { %v7388_v14 = vsub.f32 0.0, %v12244_v10  ;;  %v8534_v12 = vmul.f32 %v8406_v34, %v4950_v56  ;;  %v7002_v21 = vmul.f32 %v12235_v37, %v6874_v8  ;;  %v6619_v4 = vadd.f32 1.4214138, %v6491_v28 }
 0x465   : > { %v7897_v36 = vmul.f32 %v10006_v16, %v7257_v5  ;;  %v8535_v63 = vmul.f32 %v8407_v43, %v4951_v20  ;;  %v8152_v58 = vmul.f32 %v8024_v25, %v5592_v38  ;;  %vm5466_vm0 = vcmp.ge.f32.partialorder %v12171_v42, 0.0  ;;  %v12306_v5 = vld [vmem:[#allocation3 + $0xd8] sm:$0xff] }
 0x466   : > { %v5725_v46 = vand.u32 2147483647, %v12266_v18  ;;  %8662 = vst [vmem:[#allocation12 + $0x60] sm:$0xff] %v8534_v12  ;;  %v7130_v47 = vadd.f32 0.2548296, %v7002_v21  ;;  %v6747_v17 = vmul.f32 %v12251_v53, %v6619_v4  ;;  %v7516_v32 = vmul.f32 %v7388_v14, %v12244_v10 }
 0x467   : > { %v8025_v41 = vsub.f32 1.0, %v7897_v36  ;;  %v12283_v9 = vmul.f32 0.70710677, %v12276_v1  ;;  %8663 = vst [vmem:[#allocation12 + $0x68] sm:$0xff] %v8535_v63  ;;  %v8280_v57 = vadd.f32 1.0, %v8152_v58  ;;  %v5209_v13 = vmul.f32 0.5, %v12148_v15 }
 0x468   : > { %v5853_v11 = vmul.f32 0.3275911, %v5725_v46  ;;  %v7258_v24 = vmul.f32 %v12235_v37, %v7130_v47  ;;  %v6875_v3 = vadd.f32 -0.28449672, %v6747_v17  ;;  %v5594_v0 = vsel %vm5466_vm0, 1.0, %v10656_v51  ;;  %v12317_v58 = vld [vmem:[#allocation3 + $0x1f0] sm:$0xff] }
 0x469   : > { %v8153_v33 = vmul.f32 %v8025_v41, %v5593_v45  ;;  %v10010_v22 = vpop.eup %10009  ;;  %v8408_v27 = vmul.f32 %v8280_v57, %v12223_v59  ;;  %v5726_v15 = vand.u32 2147483647, %v12283_v9  ;;  %v7662_v37 = vmul.f32 1.442695, %v7516_v32  ;;  %v12328_v32 = vld [vmem:[#allocation3 + $0x358] sm:$0xff] }
 0x46a   : > { %v5981_v54 = vadd.f32 1.0, %v5853_v11  ;;  %v7898_v10 = vmul.f32 %v10008_v6, %v7258_v24  ;;  %v7003_v26 = vmul.f32 %v12251_v53, %v6875_v3  ;;  %v12297_v30 = vmul.f32 0.70710677, %v12288_v44 }
 0x46b   : > { %v8281_v31 = vadd.f32 1.0, %v8153_v33  ;;  %v8536_v50 = vmul.f32 %v8408_v27, %v4952_v40  ;;  %v5854_v52 = vmul.f32 0.3275911, %v5726_v15  ;;  %v5210_v48 = vmul.f32 0.5, %v12157_v55  ;;  %v4954_v55 = vld [vmem:[#allocation2 + $0x2e0] sm:$0xff] }
 0x46c   : > { %10013 = vrcp.f32 %v5981_v54  ;;  %v8026_v39 = vsub.f32 1.0, %v7898_v10  ;;  %v7131_v42 = vadd.f32 0.2548296, %v7003_v26  ;;  %vm5467_vm1 = vcmp.ge.f32.partialorder %v12194_v23, 0.0 }
 0x46d   : > { %v12299_v19 = vpop.eup %10011  ;;  %v8409_v59 = vmul.f32 %v8281_v31, %v5209_v13  ;;  %8664 = vst [vmem:[#allocation12 + $0x70] sm:$0xff] %v8536_v50  ;;  %v5982_v38 = vadd.f32 1.0, %v5854_v52  ;;  %10015 = vpow2.f32 %v7662_v37  ;;  %v7389_v34 = vsub.f32 0.0, %v5725_v46 }
 0x46e   : > { %v6236_v61 = vmul.f32 1.0614054, %v12299_v19  ;;  %v8154_v56 = vmul.f32 %v8026_v39, %v5594_v0  ;;  %v7259_v29 = vmul.f32 %v12251_v53, %v7131_v42  ;;  %v5727_v20 = vand.u32 2147483647, %v12297_v30 }
 0x46f   : > { %v8537_v16 = vmul.f32 %v8409_v59, %v4953_v2  ;;  %10017 = vrcp.f32 %v5982_v38  ;;  %v5211_v6 = vmul.f32 0.5, %v12179_v35  ;;  %v5595_v43 = vsel %vm5467_vm1, 1.0, %v10656_v51 }
 0x470   : > { %v6364_v60 = vadd.f32 -1.4531521, %v6236_v61  ;;  %v8282_v8 = vadd.f32 1.0, %v8154_v56  ;;  %v7899_v28 = vmul.f32 %v10010_v22, %v7259_v29  ;;  %v5855_v25 = vmul.f32 0.3275911, %v5727_v20  ;;  %v12355_v61 = vld [vmem:[#allocation3 + $0x120] sm:$0xff] }
 0x471   : > { %8665 = vst [vmem:[#allocation12 + $0x78] sm:$0xff] %v8537_v16  ;;  %v7390_v12 = vsub.f32 0.0, %v5726_v15  ;;  %v12314_v36 = vmul.f32 0.70710677, %v12306_v5  ;;  %vm5468_vm2 = vcmp.ge.f32.partialorder %v12231_v62, 0.0  ;;  %v7517_v4 = vmul.f32 %v7389_v34, %v5725_v46  ;;  %v4955_v46 = vld [vmem:[#allocation2 + $0x388] sm:$0xff] }
 0x472   : > { %v6492_v53 = vmul.f32 %v12299_v19, %v6364_v60  ;;  %v8410_v45 = vmul.f32 %v8282_v8, %v5210_v48  ;;  %v8027_v14 = vsub.f32 1.0, %v7899_v28  ;;  %v5983_v63 = vadd.f32 1.0, %v5855_v25 }
 0x473   : > { %vm5469_vm3 = vcmp.ge.f32.partialorder %v12266_v18, 0.0  ;;  %v5728_v23 = vand.u32 2147483647, %v12314_v36  ;;  %v12322_v47 = vmul.f32 0.5, %v12220_v7  ;;  %v12326_v57 = vmul.f32 0.5, %v12256_v49 }
 0x474   : > { %v6620_v21 = vadd.f32 1.4214138, %v6492_v53  ;;  %v8538_v35 = vmul.f32 %v8410_v45, %v4954_v55  ;;  %v8155_v41 = vmul.f32 %v8027_v14, %v5595_v43  ;;  %10019 = vrcp.f32 %v5983_v63 }
 0x475   : > { %v7518_v40 = vmul.f32 %v7390_v12, %v5726_v15  ;;  %v5856_v13 = vmul.f32 0.3275911, %v5728_v23  ;;  %v12331_v18 = vmul.f32 0.70710677, %v12317_v58  ;;  %v5596_v7 = vsel %vm5468_vm2, 1.0, %v10656_v51 }
 0x476   : > { %v6748_v17 = vmul.f32 %v12299_v19, %v6620_v21  ;;  %8666 = vst [vmem:[#allocation12 + $0x80] sm:$0xff] %v8538_v35  ;;  %v8283_v11 = vadd.f32 1.0, %v8155_v41  ;;  %v12337_v24 = vsel %vm5469_vm3, 1.0, %v10656_v51  ;;  %v7664_v49 = vmul.f32 1.442695, %v7517_v4 }
 0x477   : > { %v7391_v27 = vsub.f32 0.0, %v5727_v20  ;;  %v5984_v0 = vadd.f32 1.0, %v5856_v13  ;;  %v12342_v54 = vmul.f32 0.70710677, %v12328_v32  ;;  %v12347_v62 = vmul.f32 0.5, %v12276_v1 }
 0x478   : > { %v6876_v33 = vadd.f32 -0.28449672, %v6748_v17  ;;  %v8411_v22 = vmul.f32 %v8283_v11, %v5211_v6  ;;  %v5729_v26 = vand.u32 2147483647, %v12331_v18  ;;  %vm5470_vm4 = vcmp.ge.f32.partialorder %v12283_v9, 0.0  ;;  %v12385_v17 = vld [vmem:[#allocation3 + $0x60] sm:$0xff] }
 0x479   : > { %v12339_v3 = vpop.eup %10013  ;;  %v7666_v50 = vmul.f32 1.442695, %v7518_v40  ;;  %10021 = vrcp.f32 %v5984_v0  ;;  %v12352_v42 = vmul.f32 0.5, %v12288_v44  ;;  %v7519_v52 = vmul.f32 %v7391_v27, %v5727_v20 }
 0x47a   : > { %v7004_v31 = vmul.f32 %v12299_v19, %v6876_v33  ;;  %v6237_v10 = vmul.f32 1.0614054, %v12339_v3  ;;  %v8539_v15 = vmul.f32 %v8411_v22, %v4955_v46  ;;  %10023 = vpow2.f32 %v7664_v49  ;;  %v10016_v39 = vpop.eup %10015  ;;  %v4956_v22 = vld [vmem:[#allocation2 + $0x338] sm:$0xff] }
 0x47b   : > { %v5857_v59 = vmul.f32 0.3275911, %v5729_v26  ;;  %v7392_v48 = vsub.f32 0.0, %v5728_v23  ;;  %v5730_v1 = vand.u32 2147483647, %v12342_v54  ;;  %v12364_v38 = vsel %vm5470_vm4, 1.0, %v10656_v51 }
 0x47c   : > { %v7132_v2 = vadd.f32 0.2548296, %v7004_v31  ;;  %v6365_v37 = vadd.f32 -1.4531521, %v6237_v10  ;;  %8667 = vst [vmem:[#allocation12 + $0x88] sm:$0xff] %v8539_v15  ;;  %v12357_v16 = vpop.eup %10017  ;;  %10025 = vpow2.f32 %v7666_v50  ;;  %vm5471_vm5 = vcmp.ge.f32.partialorder %v12297_v30, 0.0 }
 0x47d   : > { %v5985_v60 = vadd.f32 1.0, %v5857_v59  ;;  %v6238_v44 = vmul.f32 1.0614054, %v12357_v16  ;;  %v5858_v34 = vmul.f32 0.3275911, %v5730_v1  ;;  %v7520_v6 = vmul.f32 %v7392_v48, %v5728_v23 }
 0x47e   : > { %v7260_v56 = vmul.f32 %v12299_v19, %v7132_v2  ;;  %v6493_v29 = vmul.f32 %v12339_v3, %v6365_v37  ;;  %v12369_v28 = vmul.f32 0.70710677, %v12355_v61  ;;  %v7668_v55 = vmul.f32 1.442695, %v7519_v52 }
 0x47f   : > { %10027 = vrcp.f32 %v5985_v60  ;;  %v6366_v19 = vadd.f32 -1.4531521, %v6238_v44  ;;  %v5986_v43 = vadd.f32 1.0, %v5858_v34  ;;  %v7393_v25 = vsub.f32 0.0, %v5729_v26 }
 0x480   : > { %v7900_v20 = vmul.f32 %v10016_v39, %v7260_v56  ;;  %v6621_v8 = vadd.f32 1.4214138, %v6493_v29  ;;  %v5731_v45 = vand.u32 2147483647, %v12369_v28  ;;  %v12379_v21 = vsel %vm5471_vm5, 1.0, %v10656_v51 }
 0x481   : > { %v12373_v14 = vpop.eup %10019  ;;  %v6494_v12 = vmul.f32 %v12357_v16, %v6366_v19  ;;  %v12382_v4 = vmul.f32 0.5, %v12306_v5  ;;  %v7394_v63 = vsub.f32 0.0, %v5730_v1  ;;  %10029 = vrcp.f32 %v5986_v43 }
 0x482   : > { %v8028_v9 = vsub.f32 1.0, %v7900_v20  ;;  %v6749_v53 = vmul.f32 %v12339_v3, %v6621_v8  ;;  %v6239_v23 = vmul.f32 1.0614054, %v12373_v14  ;;  %10031 = vpow2.f32 %v7668_v55 }
 0x483   : > { %v6622_v46 = vadd.f32 1.4214138, %v6494_v12  ;;  %v7670_v11 = vmul.f32 1.442695, %v7520_v6  ;;  %v5859_v40 = vmul.f32 0.3275911, %v5731_v45  ;;  %v7521_v49 = vmul.f32 %v7393_v25, %v5729_v26 }
 0x484   : > { %v8156_v35 = vmul.f32 %v8028_v9, %v5596_v7  ;;  %v6877_v41 = vadd.f32 -0.28449672, %v6749_v53  ;;  %v6367_v33 = vadd.f32 -1.4531521, %v6239_v23  ;;  %v7522_v27 = vmul.f32 %v7394_v63, %v5730_v1 }
 0x485   : > { %v6750_v5 = vmul.f32 %v12357_v16, %v6622_v46  ;;  %v5987_v7 = vadd.f32 1.0, %v5859_v40  ;;  %v7395_v0 = vsub.f32 0.0, %v5731_v45  ;;  %v12394_v2 = vmul.f32 0.70710677, %v12385_v17 }
 0x486   : > { %v8284_v13 = vadd.f32 1.0, %v8156_v35  ;;  %v7005_v30 = vmul.f32 %v12339_v3, %v6877_v41  ;;  %v12389_v31 = vpop.eup %10021  ;;  %v6495_v50 = vmul.f32 %v12373_v14, %v6367_v33  ;;  %vm5472_vm6 = vcmp.ge.f32.partialorder %v12314_v36, 0.0 }
 0x487   : > { %v10024_v37 = vpop.eup %10023  ;;  %v6878_v59 = vadd.f32 -0.28449672, %v6750_v5  ;;  %v6240_v26 = vmul.f32 1.0614054, %v12389_v31  ;;  %10033 = vrcp.f32 %v5987_v7  ;;  %v7672_v1 = vmul.f32 1.442695, %v7521_v49 }
 0x488   : > { %v8412_v10 = vmul.f32 %v8284_v13, %v12322_v47  ;;  %v7133_v15 = vadd.f32 0.2548296, %v7005_v30  ;;  %v6623_v48 = vadd.f32 1.4214138, %v6495_v50  ;;  %10035 = vpow2.f32 %v7670_v11  ;;  %v4957_v5 = vld [vmem:[#allocation2 + $0x340] sm:$0xff] }
 0x489   : > { %v7006_v47 = vmul.f32 %v12357_v16, %v6878_v59  ;;  %v6368_v56 = vadd.f32 -1.4531521, %v6240_v26  ;;  %v7674_v29 = vmul.f32 1.442695, %v7522_v27  ;;  %v10026_v60 = vpop.eup %10025  ;;  %v7523_v20 = vmul.f32 %v7395_v0, %v5731_v45  ;;  %v12414_v45 = vld [vmem:[#allocation3 + $0x158] sm:$0xff] }
 0x48a   : > { %v8540_v39 = vmul.f32 %v8412_v10, %v4956_v22  ;;  %v7261_v52 = vmul.f32 %v12339_v3, %v7133_v15  ;;  %v6751_v34 = vmul.f32 %v12373_v14, %v6623_v48  ;;  %v5732_v8 = vand.u32 2147483647, %v12394_v2 }
 0x48b   : > { %v7134_v55 = vadd.f32 0.2548296, %v7006_v47  ;;  %v12407_v3 = vsel %vm5472_vm6, 1.0, %v10656_v51  ;;  %v6496_v6 = vmul.f32 %v12389_v31, %v6368_v56  ;;  %v12411_v43 = vmul.f32 0.5, %v12317_v58 }
 0x48c   : > { %8668 = vst [vmem:[#allocation12 + $0x90] sm:$0xff] %v8540_v39  ;;  %v7901_v44 = vmul.f32 %v10024_v37, %v7261_v52  ;;  %v12402_v19 = vpop.eup %10027  ;;  %v6879_v53 = vadd.f32 -0.28449672, %v6751_v34  ;;  %10037 = vpow2.f32 %v7672_v1  ;;  %v5860_v35 = vmul.f32 0.3275911, %v5732_v8 }
 0x48d   : > { %v6241_v25 = vmul.f32 1.0614054, %v12402_v19  ;;  %v7262_v12 = vmul.f32 %v12357_v16, %v7134_v55  ;;  %v6624_v63 = vadd.f32 1.4214138, %v6496_v6  ;;  %10039 = vpow2.f32 %v7674_v29 }
 0x48e   : > { %v8029_v9 = vsub.f32 1.0, %v7901_v44  ;;  %v7007_v41 = vmul.f32 %v12373_v14, %v6879_v53  ;;  %v7676_v46 = vmul.f32 1.442695, %v7523_v20  ;;  %v12419_v58 = vpop.eup %10029  ;;  %v5988_v13 = vadd.f32 1.0, %v5860_v35  ;;  %v4958_v44 = vld [vmem:[#allocation2 + $0x80] sm:$0xff] }
 0x48f   : > { %v6369_v23 = vadd.f32 -1.4531521, %v6241_v25  ;;  %v7902_v11 = vmul.f32 %v10026_v60, %v7262_v12  ;;  %v6752_v40 = vmul.f32 %v12389_v31, %v6624_v63  ;;  %v12423_v30 = vmul.f32 0.70710677, %v12414_v45  ;;  %v10032_v33 = vpop.eup %10031 }
 0x490   : > { %v8157_v36 = vmul.f32 %v8029_v9, %v12337_v24  ;;  %v7135_v49 = vadd.f32 0.2548296, %v7007_v41  ;;  %v6242_v24 = vmul.f32 1.0614054, %v12419_v58  ;;  %10041 = vrcp.f32 %v5988_v13 }
 0x491   : > { %v6497_v22 = vmul.f32 %v12402_v19, %v6369_v23  ;;  %v8030_v27 = vsub.f32 1.0, %v7902_v11  ;;  %v6880_v7 = vadd.f32 -0.28449672, %v6752_v40  ;;  %v7396_v0 = vsub.f32 0.0, %v5732_v8 }
 0x492   : > { %v8285_v16 = vadd.f32 1.0, %v8157_v36  ;;  %v7263_v15 = vmul.f32 %v12373_v14, %v7135_v49  ;;  %v6370_v37 = vadd.f32 -1.4531521, %v6242_v24  ;;  %vm5473_vm7 = vcmp.ge.f32.partialorder %v12331_v18, 0.0 }
 0x493   : > { %v6625_v50 = vadd.f32 1.4214138, %v6497_v22  ;;  %v8158_v59 = vmul.f32 %v8030_v27, %v12364_v38  ;;  %v7008_v26 = vmul.f32 %v12389_v31, %v6880_v7  ;;  %v12433_v39 = vand.u32 2147483647, %v12423_v30  ;;  %v12440_v38 = vld [vmem:[#allocation3 + $0xb0] sm:$0xff] }
 0x494   : > { %v8413_v10 = vmul.f32 %v8285_v16, %v12326_v57  ;;  %v12435_v52 = vpop.eup %10033  ;;  %v7903_v1 = vmul.f32 %v10032_v33, %v7263_v15  ;;  %v6498_v57 = vmul.f32 %v12419_v58, %v6370_v37  ;;  %10043 = vpow2.f32 %v7676_v46  ;;  %v4959_v16 = vld [vmem:[#allocation2 + $0x1a8] sm:$0xff] }
 0x495   : > { %v6753_v47 = vmul.f32 %v12402_v19, %v6625_v50  ;;  %v8286_v14 = vadd.f32 1.0, %v8158_v59  ;;  %v7136_v56 = vadd.f32 0.2548296, %v7008_v26  ;;  %v6243_v29 = vmul.f32 1.0614054, %v12435_v52  ;;  %v10036_v60 = vpop.eup %10035  ;;  %v12463_v50 = vld [vmem:[#allocation3 + $0x368] sm:$0xff] }
 0x496   : > { %v8541_v48 = vmul.f32 %v8413_v10, %v4957_v5  ;;  %v8031_v34 = vsub.f32 1.0, %v7903_v1  ;;  %v6626_v55 = vadd.f32 1.4214138, %v6498_v57  ;;  %v7524_v6 = vmul.f32 %v7396_v0, %v5732_v8 }
 0x497   : > { %v6881_v20 = vadd.f32 -0.28449672, %v6753_v47  ;;  %v8414_v9 = vmul.f32 %v8286_v14, %v12347_v62  ;;  %v7264_v53 = vmul.f32 %v12389_v31, %v7136_v56  ;;  %v6371_v25 = vadd.f32 -1.4531521, %v6243_v29 }
 0x498   : > { %8669 = vst [vmem:[#allocation12 + $0x98] sm:$0xff] %v8541_v48  ;;  %v5861_v12 = vmul.f32 0.3275911, %v12433_v39  ;;  %v8159_v63 = vmul.f32 %v8031_v34, %v12379_v21  ;;  %v6754_v36 = vmul.f32 %v12419_v58, %v6626_v55  ;;  %v12449_v41 = vmul.f32 0.70710677, %v12440_v38 }
 0x499   : > { %v7009_v35 = vmul.f32 %v12402_v19, %v6881_v20  ;;  %v10038_v23 = vpop.eup %10037  ;;  %v8542_v46 = vmul.f32 %v8414_v9, %v4958_v44  ;;  %v7904_v11 = vmul.f32 %v10036_v60, %v7264_v53  ;;  %v6499_v8 = vmul.f32 %v12435_v52, %v6371_v25 }
 0x49a   : > { %v5989_v62 = vadd.f32 1.0, %v5861_v12  ;;  %v10040_v40 = vpop.eup %10039  ;;  %v8287_v31 = vadd.f32 1.0, %v8159_v63  ;;  %v5601_v13 = vsel %vm5473_vm7, 1.0, %v10656_v51  ;;  %v6882_v33 = vadd.f32 -0.28449672, %v6754_v36 }
 0x49b   : > { %v7137_v21 = vadd.f32 0.2548296, %v7009_v35  ;;  %8670 = vst [vmem:[#allocation12 + $0xa0] sm:$0xff] %v8542_v46  ;;  %v8032_v49 = vsub.f32 1.0, %v7904_v11  ;;  %v6627_v22 = vadd.f32 1.4214138, %v6499_v8 }
 0x49c   : > { %v7678_v24 = vmul.f32 1.442695, %v7524_v6  ;;  %10045 = vrcp.f32 %v5989_v62  ;;  %v8415_v5 = vmul.f32 %v8287_v31, %v12352_v42  ;;  %v7010_v7 = vmul.f32 %v12419_v58, %v6882_v33 }
 0x49d   : > { %v7265_v27 = vmul.f32 %v12402_v19, %v7137_v21  ;;  %v5734_v0 = vand.u32 2147483647, %v12449_v41  ;;  %v8160_v10 = vmul.f32 %v8032_v49, %v12407_v3  ;;  %vm5474_vm8 = vcmp.ge.f32.partialorder %v12342_v54, 0.0  ;;  %v12465_v37 = vpop.eup %10041  ;;  %v4960_v3 = vld [vmem:[#allocation2 + $0x1b8] sm:$0xff] }
 0x49e   : > { %v6755_v18 = vmul.f32 %v12435_v52, %v6627_v22  ;;  %v7397_v15 = vsub.f32 0.0, %v12433_v39  ;;  %v8543_v59 = vmul.f32 %v8415_v5, %v4959_v16  ;;  %v7138_v26 = vadd.f32 0.2548296, %v7010_v7  ;;  %v4962_v22 = vld [vmem:[#allocation2 + $0x3e8] sm:$0xff] }
 0x49f   : > { %v7905_v42 = vmul.f32 %v10038_v23, %v7265_v27  ;;  %v5862_v19 = vmul.f32 0.3275911, %v5734_v0  ;;  %v8288_v48 = vadd.f32 1.0, %v8160_v10  ;;  %v6244_v47 = vmul.f32 1.0614054, %v12465_v37  ;;  %v4961_v23 = vld [vmem:[#allocation2 + $0x168] sm:$0xff] }
 0x4a0   : > { %v6883_v1 = vadd.f32 -0.28449672, %v6755_v18  ;;  %10047 = vpow2.f32 %v7678_v24  ;;  %8671 = vst [vmem:[#allocation12 + $0xa8] sm:$0xff] %v8543_v59  ;;  %v7266_v14 = vmul.f32 %v12419_v58, %v7138_v26  ;;  %v12470_v29 = vmul.f32 0.70710677, %v12463_v50 }
 0x4a1   : > { %v8033_v57 = vsub.f32 1.0, %v7905_v42  ;;  %v5990_v56 = vadd.f32 1.0, %v5862_v19  ;;  %v8416_v60 = vmul.f32 %v8288_v48, %v12382_v4  ;;  %v6372_v34 = vadd.f32 -1.4531521, %v6244_v47  ;;  %v10044_v55 = vpop.eup %10043 }
 0x4a2   : > { %v7011_v44 = vmul.f32 %v12435_v52, %v6883_v1  ;;  %v7525_v20 = vmul.f32 %v7397_v15, %v12433_v39  ;;  %v5602_v9 = vsel %vm5474_vm8, 1.0, %v10656_v51  ;;  %v7906_v53 = vmul.f32 %v10040_v40, %v7266_v14  ;;  %v12483_v39 = vld [vmem:[#allocation3 + $0x320] sm:$0xff] }
 0x4a3   : > { %v8161_v6 = vmul.f32 %v8033_v57, %v5601_v13  ;;  %10049 = vrcp.f32 %v5990_v56  ;;  %v8544_v58 = vmul.f32 %v8416_v60, %v4960_v3  ;;  %vm5475_vm9 = vcmp.ge.f32.partialorder %v12369_v28, 0.0  ;;  %v12499_v28 = vld [vmem:[#allocation3 + $0x3c8] sm:$0xff]  ;;  %v4963_v3 = vld [vmem:[#allocation2 + $0x2f8] sm:$0xff] }
 0x4a4   : > { %v7139_v25 = vadd.f32 0.2548296, %v7011_v44  ;;  %v6500_v12 = vmul.f32 %v12465_v37, %v6372_v34  ;;  %v8034_v63 = vsub.f32 1.0, %v7906_v53  ;;  %v7398_v35 = vsub.f32 0.0, %v5734_v0 }
 0x4a5   : > { %v8289_v4 = vadd.f32 1.0, %v8161_v6  ;;  %v12481_v36 = vand.u32 2147483647, %v12470_v29  ;;  %8672 = vst [vmem:[#allocation12 + $0xb0] sm:$0xff] %v8544_v58  ;;  %v7680_v11 = vmul.f32 1.442695, %v7525_v20 }
 0x4a6   : > { %v7267_v54 = vmul.f32 %v12435_v52, %v7139_v25  ;;  %v6628_v46 = vadd.f32 1.4214138, %v6500_v12  ;;  %v5218_v62 = vmul.f32 0.5, %v12328_v32  ;;  %v8162_v40 = vmul.f32 %v8034_v63, %v5602_v9 }
 0x4a7   : > { %v8417_v8 = vmul.f32 %v8289_v4, %v12411_v43  ;;  %v5863_v31 = vmul.f32 0.3275911, %v12481_v36  ;;  %v5603_v13 = vsel %vm5475_vm9, 1.0, %v10656_v51  ;;  %v12494_v16 = vmul.f32 0.70710677, %v12483_v39 }
 0x4a8   : > { %v7907_v21 = vmul.f32 %v10044_v55, %v7267_v54  ;;  %v6756_v33 = vmul.f32 %v12465_v37, %v6628_v46  ;;  %v8290_v43 = vadd.f32 1.0, %v8162_v40  ;;  %v7526_v24 = vmul.f32 %v7398_v35, %v5734_v0  ;;  %v12504_v0 = vld [vmem:[#allocation3 + $0x2f0] sm:$0xff] }
 0x4a9   : > { %v12496_v52 = vpop.eup %10045  ;;  %v8545_v49 = vmul.f32 %v8417_v8, %v4961_v23  ;;  %v5991_v32 = vadd.f32 1.0, %v5863_v31  ;;  %10051 = vpow2.f32 %v7680_v11  ;;  %v5219_v18 = vmul.f32 0.5, %v12355_v61 }
 0x4aa   : > { %v8035_v5 = vsub.f32 1.0, %v7907_v21  ;;  %v6884_v27 = vadd.f32 -0.28449672, %v6756_v33  ;;  %v6245_v7 = vmul.f32 1.0614054, %v12496_v52  ;;  %v8418_v10 = vmul.f32 %v8290_v43, %v5218_v62 }
 0x4ab   : > { %8673 = vst [vmem:[#allocation12 + $0xb8] sm:$0xff] %v8545_v49  ;;  %10053 = vrcp.f32 %v5991_v32  ;;  %v5736_v26 = vand.u32 2147483647, %v12494_v16  ;;  %vm5476_vm10 = vcmp.ge.f32.partialorder %v12394_v2, 0.0  ;;  %v7682_v1 = vmul.f32 1.442695, %v7526_v24 }
 0x4ac   : > { %v8163_v15 = vmul.f32 %v8035_v5, %v5603_v13  ;;  %v7012_v59 = vmul.f32 %v12465_v37, %v6884_v27  ;;  %v6373_v42 = vadd.f32 -1.4531521, %v6245_v7  ;;  %v8546_v48 = vmul.f32 %v8418_v10, %v4962_v22  ;;  %v4964_v10 = vld [vmem:[#allocation2 + $0x290] sm:$0xff] }
 0x4ad   : > { %v10048_v19 = vpop.eup %10047  ;;  %v12508_v47 = vmul.f32 0.70710677, %v12499_v28  ;;  %v5864_v56 = vmul.f32 0.3275911, %v5736_v26  ;;  %v5220_v60 = vmul.f32 0.5, %v12385_v17  ;;  %v7399_v44 = vsub.f32 0.0, %v12481_v36 }
 0x4ae   : > { %v8291_v57 = vadd.f32 1.0, %v8163_v15  ;;  %v7140_v61 = vadd.f32 0.2548296, %v7012_v59  ;;  %v6501_v14 = vmul.f32 %v12496_v52, %v6373_v42  ;;  %8674 = vst [vmem:[#allocation12 + $0xc0] sm:$0xff] %v8546_v48  ;;  %v12515_v20 = vmul.f32 0.70710677, %v12504_v0 }
 0x4af   : > { %v5737_v34 = vand.u32 2147483647, %v12508_v47  ;;  %v5992_v58 = vadd.f32 1.0, %v5864_v56  ;;  %v5604_v25 = vsel %vm5476_vm10, 1.0, %v10656_v51  ;;  %10055 = vpow2.f32 %v7682_v1  ;;  %v12556_v48 = vld [vmem:[#allocation3 + $0x2b8] sm:$0xff] }
 0x4b0   : > { %v12517_v55 = vpop.eup %10049  ;;  %v8419_v6 = vmul.f32 %v8291_v57, %v5219_v18  ;;  %v7268_v9 = vmul.f32 %v12465_v37, %v7140_v61  ;;  %v6629_v53 = vadd.f32 1.4214138, %v6501_v14  ;;  %v7527_v54 = vmul.f32 %v7399_v44, %v12481_v36  ;;  %v12536_v36 = vld [vmem:[#allocation3 + $0xf0] sm:$0xff] }
 0x4b1   : > { %v6246_v17 = vmul.f32 1.0614054, %v12517_v55  ;;  %v5865_v12 = vmul.f32 0.3275911, %v5737_v34  ;;  %10057 = vrcp.f32 %v5992_v58  ;;  %v7400_v46 = vsub.f32 0.0, %v5736_v26 }
 0x4b2   : > { %v8547_v4 = vmul.f32 %v8419_v6, %v4963_v3  ;;  %v7908_v63 = vmul.f32 %v10048_v19, %v7268_v9  ;;  %v6757_v35 = vmul.f32 %v12496_v52, %v6629_v53  ;;  %v12527_v8 = vmul.f32 0.5, %v12414_v45 }
 0x4b3   : > { %v6374_v23 = vadd.f32 -1.4531521, %v6246_v17  ;;  %v5993_v37 = vadd.f32 1.0, %v5865_v12  ;;  %v5738_v62 = vand.u32 2147483647, %v12515_v20  ;;  %vm5477_vm11 = vcmp.ge.f32.partialorder %v12423_v30, 0.0 }
 0x4b4   : > { %8675 = vst [vmem:[#allocation12 + $0xc8] sm:$0xff] %v8547_v4  ;;  %v8036_v11 = vsub.f32 1.0, %v7908_v63  ;;  %v6885_v2 = vadd.f32 -0.28449672, %v6757_v35  ;;  %v12532_v40 = vmul.f32 0.5, %v12440_v38  ;;  %vm5478_vm12 = vcmp.ge.f32.partialorder %v12449_v41, 0.0 }
 0x4b5   : > { %v6502_v31 = vmul.f32 %v12517_v55, %v6374_v23  ;;  %10059 = vrcp.f32 %v5993_v37  ;;  %v5866_v45 = vmul.f32 0.3275911, %v5738_v62  ;;  %v7684_v22 = vmul.f32 1.442695, %v7527_v54 }
 0x4b6   : > { %v8164_v13 = vmul.f32 %v8036_v11, %v5604_v25  ;;  %v7013_v21 = vmul.f32 %v12496_v52, %v6885_v2  ;;  %v10052_v33 = vpop.eup %10051  ;;  %v7528_v43 = vmul.f32 %v7400_v46, %v5736_v26  ;;  %v7401_v24 = vsub.f32 0.0, %v5737_v34 }
 0x4b7   : > { %v6630_v49 = vadd.f32 1.4214138, %v6502_v31  ;;  %v5994_v27 = vadd.f32 1.0, %v5866_v45  ;;  %v12542_v7 = vmul.f32 0.70710677, %v12536_v36  ;;  %v5605_v18 = vsel %vm5477_vm11, 1.0, %v10656_v51 }
 0x4b8   : > { %v12539_v32 = vpop.eup %10053  ;;  %v8292_v38 = vadd.f32 1.0, %v8164_v13  ;;  %v7141_v5 = vadd.f32 0.2548296, %v7013_v21  ;;  %v12550_v15 = vsel %vm5478_vm12, 1.0, %v10656_v51  ;;  %vm5479_vm13 = vcmp.ge.f32.partialorder %v12470_v29, 0.0 }
 0x4b9   : > { %v6758_v59 = vmul.f32 %v12517_v55, %v6630_v49  ;;  %v6247_v42 = vmul.f32 1.0614054, %v12539_v32  ;;  %10061 = vrcp.f32 %v5994_v27  ;;  %v7686_v3 = vmul.f32 1.442695, %v7528_v43 }
 0x4ba   : > { %v8420_v26 = vmul.f32 %v8292_v38, %v5220_v60  ;;  %v7269_v19 = vmul.f32 %v12496_v52, %v7141_v5  ;;  %10063 = vpow2.f32 %v7684_v22  ;;  %v7529_v61 = vmul.f32 %v7401_v24, %v5737_v34  ;;  %v12587_v22 = vld [vmem:[#allocation3 + $0x18] sm:$0xff] }
 0x4bb   : > { %v6886_v1 = vadd.f32 -0.28449672, %v6758_v59  ;;  %v6375_v30 = vadd.f32 -1.4531521, %v6247_v42  ;;  %v5739_v14 = vand.u32 2147483647, %v12542_v7  ;;  %10065 = vpow2.f32 %v7686_v3 }
 0x4bc   : > { %v8548_v57 = vmul.f32 %v8420_v26, %v4964_v10  ;;  %v7909_v41 = vmul.f32 %v10052_v33, %v7269_v19  ;;  %v12561_v60 = vmul.f32 0.5, %v12463_v50  ;;  %v7402_v44 = vsub.f32 0.0, %v5738_v62  ;;  %v10056_v6 = vpop.eup %10055 }
 0x4bd   : > { %v7014_v56 = vmul.f32 %v12517_v55, %v6886_v1  ;;  %v6503_v52 = vmul.f32 %v12539_v32, %v6375_v30  ;;  %v12567_v53 = vsel %vm5479_vm13, 1.0, %v10656_v51  ;;  %v5867_v58 = vmul.f32 0.3275911, %v5739_v14 }
 0x4be   : > { %8676 = vst [vmem:[#allocation12 + $0xd0] sm:$0xff] %v8548_v57  ;;  %v8037_v9 = vsub.f32 1.0, %v7909_v41  ;;  %v12570_v34 = vmul.f32 0.70710677, %v12556_v48  ;;  %v12572_v25 = vpop.eup %10057  ;;  %v12575_v12 = vmul.f32 0.5, %v12483_v39  ;;  %v7530_v46 = vmul.f32 %v7402_v44, %v5738_v62  ;;  %v4965_v39 = vld [vmem:[#allocation2 + $0x28] sm:$0xff] }
 0x4bf   : > { %v7142_v17 = vadd.f32 0.2548296, %v7014_v56  ;;  %v6631_v50 = vadd.f32 1.4214138, %v6503_v52  ;;  %v6248_v63 = vmul.f32 1.0614054, %v12572_v25 }
 0x4c0   : > { %v8165_v4 = vmul.f32 %v8037_v9, %v5605_v18  ;;  %v7688_v35 = vmul.f32 1.442695, %v7529_v61  ;;  %v5995_v23 = vadd.f32 1.0, %v5867_v58  ;;  %v5740_v37 = vand.u32 2147483647, %v12570_v34  ;;  %v4966_v61 = vld [vmem:[#allocation2 + $0x138] sm:$0xff] }
 0x4c1   : > { %v7270_v29 = vmul.f32 %v12517_v55, %v7142_v17  ;;  %v6759_v54 = vmul.f32 %v12539_v32, %v6631_v50  ;;  %v6376_v2 = vadd.f32 -1.4531521, %v6248_v63  ;;  %v7403_v31 = vsub.f32 0.0, %v5739_v14 }
 0x4c2   : > { %v8293_v11 = vadd.f32 1.0, %v8165_v4  ;;  %10067 = vrcp.f32 %v5995_v23  ;;  %v12581_v13 = vpop.eup %10059  ;;  %vm5480_vm14 = vcmp.ge.f32.partialorder %v12494_v16, 0.0  ;;  %v5868_v33 = vmul.f32 0.3275911, %v5740_v37 }
 0x4c3   : > { %v7910_v21 = vmul.f32 %v10056_v6, %v7270_v29  ;;  %v6887_v45 = vadd.f32 -0.28449672, %v6759_v54  ;;  %v6504_v55 = vmul.f32 %v12572_v25, %v6376_v2  ;;  %v6249_v62 = vmul.f32 1.0614054, %v12581_v13 }
 0x4c4   : > { %v8421_v49 = vmul.f32 %v8293_v11, %v12527_v8  ;;  %10069 = vpow2.f32 %v7688_v35  ;;  %v7690_v38 = vmul.f32 1.442695, %v7530_v46  ;;  %v5996_v5 = vadd.f32 1.0, %v5868_v33  ;;  %v12612_v35 = vld [vmem:[#allocation3 + $0x188] sm:$0xff] }
 0x4c5   : > { %v8038_v43 = vsub.f32 1.0, %v7910_v21  ;;  %v7015_v24 = vmul.f32 %v12539_v32, %v6887_v45  ;;  %v6632_v10 = vadd.f32 1.4214138, %v6504_v55  ;;  %v6377_v18 = vadd.f32 -1.4531521, %v6249_v62 }
 0x4c6   : > { %v8549_v27 = vmul.f32 %v8421_v49, %v4965_v39  ;;  %v7531_v59 = vmul.f32 %v7403_v31, %v5739_v14  ;;  %v12590_v42 = vpop.eup %10061  ;;  %10071 = vrcp.f32 %v5996_v5  ;;  %v12594_v19 = vmul.f32 0.70710677, %v12587_v22 }
 0x4c7   : > { %v8166_v8 = vmul.f32 %v8038_v43, %v12550_v15  ;;  %v7143_v26 = vadd.f32 0.2548296, %v7015_v24  ;;  %v10064_v1 = vpop.eup %10063  ;;  %v6760_v30 = vmul.f32 %v12572_v25, %v6632_v10  ;;  %v12598_v3 = vmul.f32 0.5, %v12499_v28  ;;  %v4967_v43 = vld [vmem:[#allocation2 + $0xc0] sm:$0xff] }
 0x4c8   : > { %8677 = vst [vmem:[#allocation12 + $0xd8] sm:$0xff] %v8549_v27  ;;  %v6505_v57 = vmul.f32 %v12581_v13, %v6377_v18  ;;  %v6250_v41 = vmul.f32 1.0614054, %v12590_v42  ;;  %v5608_v56 = vsel %vm5480_vm14, 1.0, %v10656_v51  ;;  %v7404_v52 = vsub.f32 0.0, %v5740_v37  ;;  %v10066_v4 = vpop.eup %10065 }
 0x4c9   : > { %v8294_v14 = vadd.f32 1.0, %v8166_v8  ;;  %v7271_v15 = vmul.f32 %v12539_v32, %v7143_v26  ;;  %v6888_v44 = vadd.f32 -0.28449672, %v6760_v30  ;;  %10073 = vpow2.f32 %v7690_v38 }
 0x4ca   : > { %v6633_v6 = vadd.f32 1.4214138, %v6505_v57  ;;  %v6378_v9 = vadd.f32 -1.4531521, %v6250_v41  ;;  %v7692_v17 = vmul.f32 1.442695, %v7531_v59  ;;  %v7532_v54 = vmul.f32 %v7404_v52, %v5740_v37 }
 0x4cb   : > { %v8422_v28 = vmul.f32 %v8294_v14, %v12532_v40  ;;  %v7911_v58 = vmul.f32 %v10064_v1, %v7271_v15  ;;  %v5741_v50 = vand.u32 2147483647, %v12594_v19  ;;  %v7016_v63 = vmul.f32 %v12572_v25, %v6888_v44  ;;  %v12637_v41 = vld [vmem:[#allocation3 + $0x1c0] sm:$0xff] }
 0x4cc   : > { %vm5481_vm15 = vcmp.ge.f32.partialorder %v12508_v47, 0.0  ;;  %v6761_v32 = vmul.f32 %v12581_v13, %v6633_v6  ;;  %v6506_v16 = vmul.f32 %v12590_v42, %v6378_v9  ;;  %10075 = vpow2.f32 %v7692_v17 }
 0x4cd   : > { %v8550_v23 = vmul.f32 %v8422_v28, %v4966_v61  ;;  %v8039_v29 = vsub.f32 1.0, %v7911_v58  ;;  %v5869_v46 = vmul.f32 0.3275911, %v5741_v50  ;;  %v7144_v40 = vadd.f32 0.2548296, %v7016_v63 }
 0x4ce   : > { %v6889_v11 = vadd.f32 -0.28449672, %v6761_v32  ;;  %v6634_v2 = vadd.f32 1.4214138, %v6506_v16  ;;  %v12618_v45 = vmul.f32 0.70710677, %v12612_v35 }
 0x4cf   : > { %v12614_v31 = vpop.eup %10067  ;;  %8678 = vst [vmem:[#allocation12 + $0xe0] sm:$0xff] %v8550_v23  ;;  %v8167_v39 = vmul.f32 %v8039_v29, %v12567_v53  ;;  %v5997_v21 = vadd.f32 1.0, %v5869_v46  ;;  %v7272_v33 = vmul.f32 %v12572_v25, %v7144_v40  ;;  %v5609_v53 = vsel %vm5481_vm15, 1.0, %v10656_v51  ;;  %v4968_v23 = vld [vmem:[#allocation2 + $0x1c0] sm:$0xff] }
 0x4d0   : > { %v7017_v49 = vmul.f32 %v12581_v13, %v6889_v11  ;;  %v6762_v37 = vmul.f32 %v12590_v42, %v6634_v2  ;;  %v6251_v55 = vmul.f32 1.0614054, %v12614_v31  ;;  %v7694_v38 = vmul.f32 1.442695, %v7532_v54  ;;  %v12652_v2 = vld [vmem:[#allocation3 + $0x290] sm:$0xff] }
 0x4d1   : > { %v10070_v62 = vpop.eup %10069  ;;  %v8295_v24 = vadd.f32 1.0, %v8167_v39  ;;  %10077 = vrcp.f32 %v5997_v21  ;;  %v7912_v5 = vmul.f32 %v10066_v4, %v7272_v33  ;;  %vm5482_vm0 = vcmp.ge.f32.partialorder %v12515_v20, 0.0 }
 0x4d2   : > { %v7145_v27 = vadd.f32 0.2548296, %v7017_v49  ;;  %v6890_v10 = vadd.f32 -0.28449672, %v6762_v37  ;;  %v6379_v18 = vadd.f32 -1.4531521, %v6251_v55  ;;  %10079 = vpow2.f32 %v7694_v38 }
 0x4d3   : > { %v8423_v25 = vmul.f32 %v8295_v24, %v12561_v60  ;;  %v7405_v59 = vsub.f32 0.0, %v5741_v50  ;;  %v12630_v8 = vand.u32 2147483647, %v12618_v45  ;;  %v12632_v26 = vpop.eup %10071  ;;  %v8040_v1 = vsub.f32 1.0, %v7912_v5  ;;  %v4969_v55 = vld [vmem:[#allocation2 + $0x280] sm:$0xff] }
 0x4d4   : > { %v7273_v47 = vmul.f32 %v12581_v13, %v7145_v27  ;;  %v7018_v30 = vmul.f32 %v12590_v42, %v6890_v10  ;;  %v6507_v57 = vmul.f32 %v12614_v31, %v6379_v18  ;;  %v6252_v60 = vmul.f32 1.0614054, %v12632_v26 }
 0x4d5   : > { %v8551_v61 = vmul.f32 %v8423_v25, %v4967_v43  ;;  %v5870_v14 = vmul.f32 0.3275911, %v12630_v8  ;;  %v8168_v15 = vmul.f32 %v8040_v1, %v5608_v56  ;;  %v7533_v13 = vmul.f32 %v7405_v59, %v5741_v50 }
 0x4d6   : > { %v7913_v52 = vmul.f32 %v10070_v62, %v7273_v47  ;;  %v7146_v44 = vadd.f32 0.2548296, %v7018_v30  ;;  %v6635_v6 = vadd.f32 1.4214138, %v6507_v57  ;;  %v10074_v9 = vpop.eup %10073  ;;  %v6380_v28 = vadd.f32 -1.4531521, %v6252_v60 }
 0x4d7   : > { %8679 = vst [vmem:[#allocation12 + $0xe8] sm:$0xff] %v8551_v61  ;;  %v5998_v58 = vadd.f32 1.0, %v5870_v14  ;;  %v12642_v17 = vmul.f32 0.70710677, %v12637_v41  ;;  %v8296_v4 = vadd.f32 1.0, %v8168_v15  ;;  %v5226_v56 = vmul.f32 0.5, %v12504_v0 }
 0x4d8   : > { %v8041_v63 = vsub.f32 1.0, %v7913_v52  ;;  %v7274_v32 = vmul.f32 %v12590_v42, %v7146_v44  ;;  %v6763_v16 = vmul.f32 %v12614_v31, %v6635_v6  ;;  %v5610_v29 = vsel %vm5482_vm0, 1.0, %v10656_v51  ;;  %v4970_v57 = vld [vmem:[#allocation2 + $0x100] sm:$0xff] }
 0x4d9   : > { %v6508_v54 = vmul.f32 %v12632_v26, %v6380_v28  ;;  %10081 = vrcp.f32 %v5998_v58  ;;  %v8424_v50 = vmul.f32 %v8296_v4, %v12575_v12  ;;  %v7696_v39 = vmul.f32 1.442695, %v7533_v13  ;;  %v10076_v33 = vpop.eup %10075  ;;  %v12676_v58 = vld [vmem:[#allocation3 + $0x168] sm:$0xff] }
 0x4da   : > { %v8169_v46 = vmul.f32 %v8041_v63, %v5609_v53  ;;  %v7914_v40 = vmul.f32 %v10074_v9, %v7274_v32  ;;  %v6891_v11 = vadd.f32 -0.28449672, %v6763_v16  ;;  %v5743_v21 = vand.u32 2147483647, %v12642_v17  ;;  %v12678_v16 = vld [vmem:[#allocation3 + $0x190] sm:$0xff] }
 0x4db   : > { %v6636_v42 = vadd.f32 1.4214138, %v6508_v54  ;;  %v8552_v0 = vmul.f32 %v8424_v50, %v4968_v23  ;;  %vm5483_vm1 = vcmp.ge.f32.partialorder %v12542_v7, 0.0  ;;  %v7406_v62 = vsub.f32 0.0, %v12630_v8 }
 0x4dc   : > { %v8297_v49 = vadd.f32 1.0, %v8169_v46  ;;  %v8042_v37 = vsub.f32 1.0, %v7914_v40  ;;  %v7019_v20 = vmul.f32 %v12614_v31, %v6891_v11  ;;  %v5871_v43 = vmul.f32 0.3275911, %v5743_v21 }
 0x4dd   : > { %v6764_v12 = vmul.f32 %v12632_v26, %v6636_v42  ;;  %8680 = vst [vmem:[#allocation12 + $0xf0] sm:$0xff] %v8552_v0  ;;  %v12663_v27 = vmul.f32 0.70710677, %v12652_v2  ;;  %10083 = vpow2.f32 %v7696_v39  ;;  %v7407_v30 = vsub.f32 0.0, %v5743_v21 }
 0x4de   : > { %v12659_v24 = vpop.eup %10077  ;;  %v8425_v53 = vmul.f32 %v8297_v49, %v12598_v3  ;;  %v8170_v38 = vmul.f32 %v8042_v37, %v5610_v29  ;;  %v7147_v5 = vadd.f32 0.2548296, %v7019_v20  ;;  %v5999_v25 = vadd.f32 1.0, %v5871_v43 }
 0x4df   : > { %v6892_v10 = vadd.f32 -0.28449672, %v6764_v12  ;;  %v6253_v18 = vmul.f32 1.0614054, %v12659_v24  ;;  %v7534_v3 = vmul.f32 %v7406_v62, %v12630_v8  ;;  %v10080_v14 = vpop.eup %10079  ;;  %v5227_v52 = vmul.f32 0.5, %v12536_v36 }
 0x4e0   : > { %v8553_v59 = vmul.f32 %v8425_v53, %v4969_v55  ;;  %v8298_v1 = vadd.f32 1.0, %v8170_v38  ;;  %v7275_v47 = vmul.f32 %v12614_v31, %v7147_v5  ;;  %10085 = vrcp.f32 %v5999_v25  ;;  %v12705_v38 = vld [vmem:[#allocation3 + $0x3b8] sm:$0xff] }
 0x4e1   : > { %v7020_v61 = vmul.f32 %v12632_v26, %v6892_v10  ;;  %v6381_v60 = vadd.f32 -1.4531521, %v6253_v18  ;;  %v5744_v6 = vand.u32 2147483647, %v12663_v27  ;;  %v5611_v31 = vsel %vm5483_vm1, 1.0, %v10656_v51 }
 0x4e2   : > { %8681 = vst [vmem:[#allocation12 + $0xf8] sm:$0xff] %v8553_v59  ;;  %v8426_v15 = vmul.f32 %v8298_v1, %v5226_v56  ;;  %v7915_v44 = vmul.f32 %v10076_v33, %v7275_v47  ;;  %v5228_v9 = vmul.f32 0.5, %v12556_v48  ;;  %v7535_v63 = vmul.f32 %v7407_v30, %v5743_v21  ;;  %v4971_v21 = vld [vmem:[#allocation2 + $0x3c0] sm:$0xff]  ;;  %v4972_v47 = vld [vmem:[#allocation2 + $0x158] sm:$0xff] }
 0x4e3   : > { %v7148_v28 = vadd.f32 0.2548296, %v7020_v61  ;;  %v6509_v13 = vmul.f32 %v12659_v24, %v6381_v60  ;;  %v5872_v32 = vmul.f32 0.3275911, %v5744_v6  ;;  %vm5484_vm2 = vcmp.ge.f32.partialorder %v12570_v34, 0.0 }
 0x4e4   : > { %v8554_v8 = vmul.f32 %v8426_v15, %v4970_v57  ;;  %v8043_v4 = vsub.f32 1.0, %v7915_v44  ;;  %v7698_v7 = vmul.f32 1.442695, %v7534_v3  ;;  %v12685_v29 = vmul.f32 0.5, %v12587_v22 }
 0x4e5   : > { %v7276_v36 = vmul.f32 %v12632_v26, %v7148_v28  ;;  %v6637_v23 = vadd.f32 1.4214138, %v6509_v13  ;;  %v6000_v54 = vadd.f32 1.0, %v5872_v32  ;;  %v12688_v50 = vmul.f32 0.70710677, %v12676_v58 }
 0x4e6   : > { %v12682_v56 = vpop.eup %10081  ;;  %8682 = vst [vmem:[#allocation12 + $0x100] sm:$0xff] %v8554_v8  ;;  %v8171_v48 = vmul.f32 %v8043_v4, %v5611_v31  ;;  %v12693_v26 = vmul.f32 0.70710677, %v12678_v16  ;;  %v5612_v42 = vsel %vm5484_vm2, 1.0, %v10656_v51  ;;  %v7700_v39 = vmul.f32 1.442695, %v7535_v63 }
 0x4e7   : > { %v7916_v46 = vmul.f32 %v10080_v14, %v7276_v36  ;;  %v6765_v40 = vmul.f32 %v12659_v24, %v6637_v23  ;;  %v6254_v34 = vmul.f32 1.0614054, %v12682_v56  ;;  %10087 = vrcp.f32 %v6000_v54 }
 0x4e8   : > { %v8299_v11 = vadd.f32 1.0, %v8171_v48  ;;  %10089 = vpow2.f32 %v7698_v7  ;;  %v12697_v37 = vmul.f32 0.5, %v12612_v35  ;;  %v7408_v20 = vsub.f32 0.0, %v5744_v6  ;;  %v12728_v7 = vld [vmem:[#allocation3 + $0x270] sm:$0xff] }
 0x4e9   : > { %v8044_v22 = vsub.f32 1.0, %v7916_v46  ;;  %v6893_v33 = vadd.f32 -0.28449672, %v6765_v40  ;;  %v6382_v0 = vadd.f32 -1.4531521, %v6254_v34  ;;  %vm5485_vm3 = vcmp.ge.f32.partialorder %v12594_v19, 0.0 }
 0x4ea   : > { %v8427_v49 = vmul.f32 %v8299_v11, %v5227_v52  ;;  %v5745_v55 = vand.u32 2147483647, %v12688_v50  ;;  %v12703_v53 = vand.u32 2147483647, %v12693_v26  ;;  %v10084_v5 = vpop.eup %10083  ;;  %vm5486_vm4 = vcmp.ge.f32.partialorder %v12618_v45, 0.0 }
 0x4eb   : > { %v8172_v12 = vmul.f32 %v8044_v22, %v5612_v42  ;;  %v7021_v62 = vmul.f32 %v12659_v24, %v6893_v33  ;;  %v6510_v43 = vmul.f32 %v12682_v56, %v6382_v0  ;;  %10091 = vpow2.f32 %v7700_v39 }
 0x4ec   : > { %v8555_v10 = vmul.f32 %v8427_v49, %v4971_v21  ;;  %v5873_v35 = vmul.f32 0.3275911, %v5745_v55  ;;  %v7536_v30 = vmul.f32 %v7408_v20, %v5744_v6  ;;  %v5874_v61 = vmul.f32 0.3275911, %v12703_v53  ;;  %v12748_v49 = vld [vmem:[#allocation3 + $0x170] sm:$0xff]  ;;  %v4973_v20 = vld [vmem:[#allocation2 + $0x3e0] sm:$0xff] }
 0x4ed   : > { %v8300_v18 = vadd.f32 1.0, %v8172_v12  ;;  %v7149_v25 = vadd.f32 0.2548296, %v7021_v62  ;;  %v6638_v59 = vadd.f32 1.4214138, %v6510_v43  ;;  %v12709_v1 = vpop.eup %10085  ;;  %vm5487_vm5 = vcmp.ge.f32.partialorder %v12642_v17, 0.0 }
 0x4ee   : > { %8683 = vst [vmem:[#allocation12 + $0x108] sm:$0xff] %v8555_v10  ;;  %v6001_v57 = vadd.f32 1.0, %v5873_v35  ;;  %v12713_v60 = vmul.f32 0.70710677, %v12705_v38  ;;  %v6255_v52 = vmul.f32 1.0614054, %v12709_v1 }
 0x4ef   : > { %v8428_v3 = vmul.f32 %v8300_v18, %v5228_v9  ;;  %v7277_v14 = vmul.f32 %v12659_v24, %v7149_v25  ;;  %v6766_v15 = vmul.f32 %v12682_v56, %v6638_v59  ;;  %v7409_v44 = vsub.f32 0.0, %v5745_v55 }
 0x4f0   : > { %10093 = vrcp.f32 %v6001_v57  ;;  %v6002_v31 = vadd.f32 1.0, %v5874_v61  ;;  %v6383_v8 = vadd.f32 -1.4531521, %v6255_v52  ;;  %v5613_v4 = vsel %vm5485_vm3, 1.0, %v10656_v51 }
 0x4f1   : > { %v8556_v28 = vmul.f32 %v8428_v3, %v4972_v47  ;;  %v7917_v6 = vmul.f32 %v10084_v5, %v7277_v14  ;;  %v6894_v13 = vadd.f32 -0.28449672, %v6766_v15  ;;  %v5614_v24 = vsel %vm5486_vm4, 1.0, %v10656_v51 }
 0x4f2   : > { %v7702_v9 = vmul.f32 1.442695, %v7536_v30  ;;  %v5747_v63 = vand.u32 2147483647, %v12713_v60  ;;  %v6511_v23 = vmul.f32 %v12709_v1, %v6383_v8  ;;  %10095 = vrcp.f32 %v6002_v31 }
 0x4f3   : > { %8684 = vst [vmem:[#allocation12 + $0x110] sm:$0xff] %v8556_v28  ;;  %v8045_v32 = vsub.f32 1.0, %v7917_v6  ;;  %v7022_v36 = vmul.f32 %v12682_v56, %v6894_v13  ;;  %v12731_v48 = vmul.f32 0.5, %v12637_v41  ;;  %v12736_v19 = vsel %vm5487_vm5, 1.0, %v10656_v51 }
 0x4f4   : > { %vm5488_vm6 = vcmp.ge.f32.partialorder %v12663_v27, 0.0  ;;  %v5875_v45 = vmul.f32 0.3275911, %v5747_v63  ;;  %v12739_v54 = vpop.eup %10087  ;;  %v6639_v34 = vadd.f32 1.4214138, %v6511_v23  ;;  %v7537_v11 = vmul.f32 %v7409_v44, %v5745_v55 }
 0x4f5   : > { %v8173_v46 = vmul.f32 %v8045_v32, %v5613_v4  ;;  %v7150_v40 = vadd.f32 0.2548296, %v7022_v36  ;;  %v10090_v42 = vpop.eup %10089  ;;  %v6256_v39 = vmul.f32 1.0614054, %v12739_v54  ;;  %v7410_v41 = vsub.f32 0.0, %v12703_v53  ;;  %v4974_v32 = vld [vmem:[#allocation2 + $0x218] sm:$0xff] }
 0x4f6   : > { %v6003_v21 = vadd.f32 1.0, %v5875_v45  ;;  %v12744_v22 = vmul.f32 0.70710677, %v12728_v7  ;;  %v6767_v0 = vmul.f32 %v12709_v1, %v6639_v34  ;;  %10097 = vpow2.f32 %v7702_v9 }
 0x4f7   : > { %v8301_v17 = vadd.f32 1.0, %v8173_v46  ;;  %v7278_v33 = vmul.f32 %v12682_v56, %v7150_v40  ;;  %v12751_v55 = vmul.f32 0.5, %v12652_v2  ;;  %v12756_v12 = vsel %vm5488_vm6, 1.0, %v10656_v51 }
 0x4f8   : > { %v6384_v62 = vadd.f32 -1.4531521, %v6256_v39  ;;  %10099 = vrcp.f32 %v6003_v21  ;;  %v6895_v56 = vadd.f32 -0.28449672, %v6767_v0  ;;  %v7704_v10 = vmul.f32 1.442695, %v7537_v11  ;;  %v10092_v35 = vpop.eup %10091 }
 0x4f9   : > { %v8429_v43 = vmul.f32 %v8301_v17, %v12685_v29  ;;  %v7918_v5 = vmul.f32 %v10090_v42, %v7278_v33  ;;  %v7538_v25 = vmul.f32 %v7410_v41, %v12703_v53  ;;  %v5748_v2 = vand.u32 2147483647, %v12744_v22 }
 0x4fa   : > { %v6512_v18 = vmul.f32 %v12739_v54, %v6384_v62  ;;  %v12763_v59 = vmul.f32 0.70710677, %v12748_v49  ;;  %v7023_v30 = vmul.f32 %v12709_v1, %v6895_v56  ;;  %v7411_v57 = vsub.f32 0.0, %v5747_v63 }
 0x4fb   : > { %v8557_v27 = vmul.f32 %v8429_v43, %v4973_v20  ;;  %v8046_v47 = vsub.f32 1.0, %v7918_v5  ;;  %v12767_v29 = vmul.f32 0.5, %v12676_v58  ;;  %v12770_v3 = vmul.f32 0.5, %v12678_v16 }
 0x4fc   : > { %v6640_v61 = vadd.f32 1.4214138, %v6512_v18  ;;  %v5876_v14 = vmul.f32 0.3275911, %v5748_v2  ;;  %v7151_v52 = vadd.f32 0.2548296, %v7023_v30  ;;  %10101 = vpow2.f32 %v7704_v10 }
 0x4fd   : > { %v12772_v15 = vpop.eup %10093  ;;  %8685 = vst [vmem:[#allocation12 + $0x118] sm:$0xff] %v8557_v27  ;;  %v8174_v53 = vmul.f32 %v8046_v47, %v5614_v24  ;;  %v5749_v44 = vand.u32 2147483647, %v12763_v59  ;;  %v7706_v6 = vmul.f32 1.442695, %v7538_v25  ;;  %v7539_v16 = vmul.f32 %v7411_v57, %v5747_v63  ;;  %v12785_v63 = vld [vmem:[#allocation3 + $0x1b8] sm:$0xff] }
 0x4fe   : > { %v6768_v31 = vmul.f32 %v12739_v54, %v6640_v61  ;;  %v6257_v28 = vmul.f32 1.0614054, %v12772_v15  ;;  %v6004_v13 = vadd.f32 1.0, %v5876_v14  ;;  %v7279_v8 = vmul.f32 %v12709_v1, %v7151_v52  ;;  %v12801_v61 = vld [vmem:[#allocation3 + $0x218] sm:$0xff] }
 0x4ff   : > { %v8302_v58 = vadd.f32 1.0, %v8174_v53  ;;  %v5877_v4 = vmul.f32 0.3275911, %v5749_v44  ;;  %v12778_v9 = vpop.eup %10095  ;;  %v7412_v23 = vsub.f32 0.0, %v5748_v2  ;;  %vm5489_vm7 = vcmp.ge.f32.partialorder %v12688_v50, 0.0 }
 0x500   : > { %v6896_v36 = vadd.f32 -0.28449672, %v6768_v31  ;;  %v6385_v24 = vadd.f32 -1.4531521, %v6257_v28  ;;  %10103 = vrcp.f32 %v6004_v13  ;;  %v7919_v46 = vmul.f32 %v10092_v35, %v7279_v8 }
 0x501   : > { %v8430_v45 = vmul.f32 %v8302_v58, %v12697_v37  ;;  %v6258_v40 = vmul.f32 1.0614054, %v12778_v9  ;;  %v6005_v34 = vadd.f32 1.0, %v5877_v4  ;;  %10105 = vpow2.f32 %v7706_v6 }
 0x502   : > { %v7024_v11 = vmul.f32 %v12739_v54, %v6896_v36  ;;  %v6513_v1 = vmul.f32 %v12772_v15, %v6385_v24  ;;  %v8047_v39 = vsub.f32 1.0, %v7919_v46  ;;  %v7708_v33 = vmul.f32 1.442695, %v7539_v16 }
 0x503   : > { %v8558_v42 = vmul.f32 %v8430_v45, %v4974_v32  ;;  %v6386_v41 = vadd.f32 -1.4531521, %v6258_v40  ;;  %10107 = vrcp.f32 %v6005_v34  ;;  %v10098_v21 = vpop.eup %10097  ;;  %v7540_v43 = vmul.f32 %v7412_v23, %v5748_v2  ;;  %v4976_v40 = vld [vmem:[#allocation2 + $0x8] sm:$0xff] }
 0x504   : > { %v7152_v17 = vadd.f32 0.2548296, %v7024_v11  ;;  %v6641_v37 = vadd.f32 1.4214138, %v6513_v1  ;;  %v8175_v20 = vmul.f32 %v8047_v39, %v12736_v19  ;;  %v12792_v5 = vmul.f32 0.70710677, %v12785_v63 }
 0x505   : > { %v12787_v0 = vpop.eup %10099  ;;  %8686 = vst [vmem:[#allocation12 + $0x120] sm:$0xff] %v8558_v42  ;;  %v6514_v62 = vmul.f32 %v12778_v9, %v6386_v41  ;;  %v7413_v18 = vsub.f32 0.0, %v5749_v44  ;;  %vm5490_vm8 = vcmp.ge.f32.partialorder %v12693_v26, 0.0  ;;  %v4975_v19 = vld [vmem:[#allocation2 + $0x3f8] sm:$0xff]  ;;  %10109 = vpow2.f32 %v7708_v33 }
 0x506   : > { %v7280_v56 = vmul.f32 %v12739_v54, %v7152_v17  ;;  %v6769_v10 = vmul.f32 %v12772_v15, %v6641_v37  ;;  %v6259_v35 = vmul.f32 1.0614054, %v12787_v0  ;;  %v8303_v25 = vadd.f32 1.0, %v8175_v20 }
 0x507   : > { %v6642_v27 = vadd.f32 1.4214138, %v6514_v62  ;;  %v12799_v47 = vand.u32 2147483647, %v12792_v5  ;;  %v7710_v53 = vmul.f32 1.442695, %v7540_v43  ;;  %v7541_v58 = vmul.f32 %v7413_v18, %v5749_v44 }
 0x508   : > { %v7920_v30 = vmul.f32 %v10098_v21, %v7280_v56  ;;  %v6897_v2 = vadd.f32 -0.28449672, %v6769_v10  ;;  %v6387_v57 = vadd.f32 -1.4531521, %v6259_v35  ;;  %v8431_v54 = vmul.f32 %v8303_v25, %v12731_v48  ;;  %v12832_v56 = vld [vmem:[#allocation3 + $0x2e8] sm:$0xff] }
 0x509   : > { %v6770_v14 = vmul.f32 %v12778_v9, %v6642_v27  ;;  %v5878_v52 = vmul.f32 0.3275911, %v12799_v47  ;;  %v10102_v31 = vpop.eup %10101  ;;  %v12809_v32 = vmul.f32 0.70710677, %v12801_v61  ;;  %v5617_v36 = vsel %vm5489_vm7, 1.0, %v10656_v51 }
 0x50a   : > { %v8048_v28 = vsub.f32 1.0, %v7920_v30  ;;  %v7025_v6 = vmul.f32 %v12772_v15, %v6897_v2  ;;  %v6515_v13 = vmul.f32 %v12787_v0, %v6387_v57  ;;  %v8559_v8 = vmul.f32 %v8431_v54, %v4975_v19 }
 0x50b   : > { %v6898_v16 = vadd.f32 -0.28449672, %v6770_v14  ;;  %v6006_v4 = vadd.f32 1.0, %v5878_v52  ;;  %v5618_v44 = vsel %vm5490_vm8, 1.0, %v10656_v51  ;;  %vm5491_vm9 = vcmp.ge.f32.partialorder %v12713_v60, 0.0 }
 0x50c   : > { %v8176_v48 = vmul.f32 %v8048_v28, %v12756_v12  ;;  %v7153_v24 = vadd.f32 0.2548296, %v7025_v6  ;;  %v6643_v23 = vadd.f32 1.4214138, %v6515_v13  ;;  %8687 = vst [vmem:[#allocation12 + $0x128] sm:$0xff] %v8559_v8  ;;  %v7414_v62 = vsub.f32 0.0, %v12799_v47 }
 0x50d   : > { %v12815_v45 = vpop.eup %10103  ;;  %v7026_v46 = vmul.f32 %v12778_v9, %v6898_v16  ;;  %10111 = vrcp.f32 %v6006_v4  ;;  %v7712_v39 = vmul.f32 1.442695, %v7541_v58  ;;  %v5751_v26 = vand.u32 2147483647, %v12809_v32  ;;  %v4977_v58 = vld [vmem:[#allocation2 + $0x128] sm:$0xff] }
 0x50e   : > { %v8304_v12 = vadd.f32 1.0, %v8176_v48  ;;  %v7281_v34 = vmul.f32 %v12772_v15, %v7153_v24  ;;  %v6771_v50 = vmul.f32 %v12787_v0, %v6643_v23  ;;  %v6260_v11 = vmul.f32 1.0614054, %v12815_v45  ;;  %v10106_v1 = vpop.eup %10105 }
 0x50f   : > { %v7154_v42 = vadd.f32 0.2548296, %v7026_v46  ;;  %10113 = vpow2.f32 %v7710_v53  ;;  %v5879_v43 = vmul.f32 0.3275911, %v5751_v26  ;;  %v12837_v57 = vmul.f32 0.70710677, %v12832_v56 }
 0x510   : > { %v12826_v41 = vpop.eup %10107  ;;  %v8432_v21 = vmul.f32 %v8304_v12, %v12751_v55  ;;  %v7921_v17 = vmul.f32 %v10102_v31, %v7281_v34  ;;  %v6899_v37 = vadd.f32 -0.28449672, %v6771_v50  ;;  %v6388_v33 = vadd.f32 -1.4531521, %v6260_v11  ;;  %v4978_v12 = vld [vmem:[#allocation2 + $0x2a0] sm:$0xff] }
 0x511   : > { %v7282_v20 = vmul.f32 %v12778_v9, %v7154_v42  ;;  %v6261_v15 = vmul.f32 1.0614054, %v12826_v41  ;;  %10115 = vpow2.f32 %v7712_v39  ;;  %v6007_v19 = vadd.f32 1.0, %v5879_v43 }
 0x512   : > { %v8560_v10 = vmul.f32 %v8432_v21, %v4976_v40  ;;  %v8049_v35 = vsub.f32 1.0, %v7921_v17  ;;  %v7027_v18 = vmul.f32 %v12787_v0, %v6899_v37  ;;  %v6516_v25 = vmul.f32 %v12815_v45, %v6388_v33  ;;  %v10110_v54 = vpop.eup %10109 }
 0x513   : > { %v7922_v27 = vmul.f32 %v10106_v1, %v7282_v20  ;;  %v6389_v55 = vadd.f32 -1.4531521, %v6261_v15  ;;  %v7542_v52 = vmul.f32 %v7414_v62, %v12799_v47  ;;  %10117 = vrcp.f32 %v6007_v19 }
 0x514   : > { %8688 = vst [vmem:[#allocation12 + $0x130] sm:$0xff] %v8560_v10  ;;  %v8177_v30 = vmul.f32 %v8049_v35, %v5617_v36  ;;  %v7155_v9 = vadd.f32 0.2548296, %v7027_v18  ;;  %v6644_v2 = vadd.f32 1.4214138, %v6516_v25  ;;  %v5235_v28 = vmul.f32 0.5, %v12705_v38 }
 0x515   : > { %v8050_v14 = vsub.f32 1.0, %v7922_v27  ;;  %v6517_v53 = vmul.f32 %v12826_v41, %v6389_v55  ;;  %v5619_v16 = vsel %vm5491_vm9, 1.0, %v10656_v51  ;;  %v7415_v48 = vsub.f32 0.0, %v5751_v26  ;;  %v12851_v38 = vld [vmem:[#allocation3 + $0x288] sm:$0xff]  ;;  %v12865_v10 = vld [vmem:[#allocation3 + $0x80] sm:$0xff]  ;;  %v4979_v18 = vld [vmem:[#allocation2 + $0x3f0] sm:$0xff] }
 0x516   : > { %v8305_v31 = vadd.f32 1.0, %v8177_v30  ;;  %v7283_v6 = vmul.f32 %v12787_v0, %v7155_v9  ;;  %v6772_v13 = vmul.f32 %v12815_v45, %v6644_v2  ;;  %v12849_v23 = vand.u32 2147483647, %v12837_v57 }
 0x517   : > { %v8178_v8 = vmul.f32 %v8050_v14, %v5618_v44  ;;  %v6645_v4 = vadd.f32 1.4214138, %v6517_v53  ;;  %vm5492_vm10 = vcmp.ge.f32.partialorder %v12744_v22, 0.0  ;;  %v7714_v46 = vmul.f32 1.442695, %v7542_v52 }
 0x518   : > { %v8433_v36 = vmul.f32 %v8305_v31, %v12767_v29  ;;  %v7923_v24 = vmul.f32 %v10110_v54, %v7283_v6  ;;  %v6900_v47 = vadd.f32 -0.28449672, %v6772_v13  ;;  %v5880_v50 = vmul.f32 0.3275911, %v12849_v23 }
 0x519   : > { %v8306_v0 = vadd.f32 1.0, %v8178_v8  ;;  %v6773_v44 = vmul.f32 %v12826_v41, %v6645_v4  ;;  %v12862_v39 = vmul.f32 0.70710677, %v12851_v38  ;;  %v7543_v33 = vmul.f32 %v7415_v48, %v5751_v26 }
 0x51a   : > { %v12855_v40 = vpop.eup %10111  ;;  %v8561_v60 = vmul.f32 %v8433_v36, %v4977_v58  ;;  %v8051_v34 = vsub.f32 1.0, %v7923_v24  ;;  %v7028_v29 = vmul.f32 %v12815_v45, %v6900_v47  ;;  %v6008_v20 = vadd.f32 1.0, %v5880_v50  ;;  %v12896_v50 = vld [vmem:[#allocation3 + $0x68] sm:$0xff] }
 0x51b   : > { %v8434_v11 = vmul.f32 %v8306_v0, %v12770_v3  ;;  %v6901_v1 = vadd.f32 -0.28449672, %v6773_v44  ;;  %v6262_v42 = vmul.f32 1.0614054, %v12855_v40  ;;  %10119 = vpow2.f32 %v7714_v46  ;;  %v4980_v46 = vld [vmem:[#allocation2 + $0xa0] sm:$0xff] }
 0x51c   : > { %v10114_v21 = vpop.eup %10113  ;;  %8689 = vst [vmem:[#allocation12 + $0x138] sm:$0xff] %v8561_v60  ;;  %v8179_v17 = vmul.f32 %v8051_v34, %v5619_v16  ;;  %v7156_v37 = vadd.f32 0.2548296, %v7028_v29  ;;  %10121 = vrcp.f32 %v6008_v20  ;;  %v5620_v25 = vsel %vm5492_vm10, 1.0, %v10656_v51  ;;  %v4981_v20 = vld [vmem:[#allocation2 + $0x2c0] sm:$0xff] }
 0x51d   : > { %v8562_v15 = vmul.f32 %v8434_v11, %v4978_v12  ;;  %v7029_v62 = vmul.f32 %v12826_v41, %v6901_v1  ;;  %v6390_v43 = vadd.f32 -1.4531521, %v6262_v42  ;;  %v5753_v55 = vand.u32 2147483647, %v12862_v39 }
 0x51e   : > { %v8307_v3 = vadd.f32 1.0, %v8179_v17  ;;  %v7284_v35 = vmul.f32 %v12815_v45, %v7156_v37  ;;  %v10116_v19 = vpop.eup %10115  ;;  %v7716_v2 = vmul.f32 1.442695, %v7543_v33  ;;  %v12874_v54 = vmul.f32 0.70710677, %v12865_v10 }
 0x51f   : > { %8690 = vst [vmem:[#allocation12 + $0x140] sm:$0xff] %v8562_v15  ;;  %v7157_v27 = vadd.f32 0.2548296, %v7029_v62  ;;  %v6518_v26 = vmul.f32 %v12855_v40, %v6390_v43  ;;  %vm5493_vm11 = vcmp.ge.f32.partialorder %v12763_v59, 0.0  ;;  %v5881_v53 = vmul.f32 0.3275911, %v5753_v55 }
 0x520   : > { %v8435_v30 = vmul.f32 %v8307_v3, %v5235_v28  ;;  %v7924_v9 = vmul.f32 %v10114_v21, %v7284_v35  ;;  %v12878_v22 = vpop.eup %10117  ;;  %v5236_v31 = vmul.f32 0.5, %v12728_v7  ;;  %v7416_v13 = vsub.f32 0.0, %v12849_v23 }
 0x521   : > { %v7285_v45 = vmul.f32 %v12826_v41, %v7157_v27  ;;  %v6646_v14 = vadd.f32 1.4214138, %v6518_v26  ;;  %v6263_v8 = vmul.f32 1.0614054, %v12878_v22  ;;  %v6009_v16 = vadd.f32 1.0, %v5881_v53 }
 0x522   : > { %v8563_v52 = vmul.f32 %v8435_v30, %v4979_v18  ;;  %v8052_v6 = vsub.f32 1.0, %v7924_v9  ;;  %v5621_v41 = vsel %vm5493_vm11, 1.0, %v10656_v51  ;;  %10123 = vpow2.f32 %v7716_v2 }
 0x523   : > { %v7925_v28 = vmul.f32 %v10116_v19, %v7285_v45  ;;  %v6774_v58 = vmul.f32 %v12855_v40, %v6646_v14  ;;  %v12886_v4 = vand.u32 2147483647, %v12874_v54  ;;  %v6391_v7 = vadd.f32 -1.4531521, %v6263_v8 }
 0x524   : > { %8691 = vst [vmem:[#allocation12 + $0x148] sm:$0xff] %v8563_v52  ;;  %v8180_v59 = vmul.f32 %v8052_v6, %v5620_v25  ;;  %10125 = vrcp.f32 %v6009_v16  ;;  %v5237_v47 = vmul.f32 0.5, %v12748_v49  ;;  %v7544_v0 = vmul.f32 %v7416_v13, %v12849_v23  ;;  %v12901_v23 = vld [vmem:[#allocation3 + $0x30] sm:$0xff] }
 0x525   : > { %v8053_v48 = vsub.f32 1.0, %v7925_v28  ;;  %v6902_v36 = vadd.f32 -0.28449672, %v6774_v58  ;;  %v5882_v44 = vmul.f32 0.3275911, %v12886_v4  ;;  %v12892_v12 = vmul.f32 0.5, %v12785_v63 }
 0x526   : > { %v8308_v24 = vadd.f32 1.0, %v8180_v59  ;;  %v6519_v29 = vmul.f32 %v12878_v22, %v6391_v7  ;;  %v12899_v1 = vmul.f32 0.5, %v12801_v61  ;;  %v7417_v49 = vsub.f32 0.0, %v5753_v55 }
 0x527   : > { %v8181_v60 = vmul.f32 %v8053_v48, %v5621_v41  ;;  %v7030_v34 = vmul.f32 %v12855_v40, %v6902_v36  ;;  %v6010_v42 = vadd.f32 1.0, %v5882_v44  ;;  %vm5494_vm12 = vcmp.ge.f32.partialorder %v12792_v5, 0.0  ;;  %v4982_v44 = vld [vmem:[#allocation2 + $0xb0] sm:$0xff] }
 0x528   : > { %v8436_v11 = vmul.f32 %v8308_v24, %v5236_v31  ;;  %v6647_v63 = vadd.f32 1.4214138, %v6519_v29  ;;  %v10120_v37 = vpop.eup %10119  ;;  %v7718_v15 = vmul.f32 1.442695, %v7544_v0  ;;  %v12905_v62 = vmul.f32 0.70710677, %v12896_v50 }
 0x529   : > { %v8309_v21 = vadd.f32 1.0, %v8181_v60  ;;  %v7158_v17 = vadd.f32 0.2548296, %v7030_v34  ;;  %10127 = vrcp.f32 %v6010_v42  ;;  %v12907_v43 = vpop.eup %10121  ;;  %v12912_v18 = vmul.f32 0.70710677, %v12901_v23  ;;  %v12926_v31 = vld [vmem:[#allocation3 + $0x58] sm:$0xff] }
 0x52a   : > { %v8564_v33 = vmul.f32 %v8436_v11, %v4980_v46  ;;  %v6775_v35 = vmul.f32 %v12878_v22, %v6647_v63  ;;  %vm5495_vm13 = vcmp.ge.f32.partialorder %v12809_v32, 0.0  ;;  %v6264_v25 = vmul.f32 1.0614054, %v12907_v43  ;;  %v12947_v11 = vld [vmem:[#allocation3 + $0x318] sm:$0xff] }
 0x52b   : > { %v8437_v61 = vmul.f32 %v8309_v21, %v5237_v47  ;;  %v7286_v3 = vmul.f32 %v12855_v40, %v7158_v17  ;;  %v7545_v27 = vmul.f32 %v7417_v49, %v5753_v55  ;;  %v5755_v26 = vand.u32 2147483647, %v12905_v62 }
 0x52c   : > { %8692 = vst [vmem:[#allocation12 + $0x150] sm:$0xff] %v8564_v33  ;;  %v5622_v30 = vsel %vm5494_vm12, 1.0, %v10656_v51  ;;  %v6903_v40 = vadd.f32 -0.28449672, %v6775_v35  ;;  %v6392_v2 = vadd.f32 -1.4531521, %v6264_v25  ;;  %10129 = vpow2.f32 %v7718_v15 }
 0x52d   : > { %v8565_v19 = vmul.f32 %v8437_v61, %v4981_v20  ;;  %v7926_v9 = vmul.f32 %v10120_v37, %v7286_v3  ;;  %v7418_v45 = vsub.f32 0.0, %v12886_v4  ;;  %v5883_v14 = vmul.f32 0.3275911, %v5755_v26 }
 0x52e   : > { %v5623_v32 = vsel %vm5495_vm13, 1.0, %v10656_v51  ;;  %v7031_v55 = vmul.f32 %v12878_v22, %v6903_v40  ;;  %v12924_v52 = vand.u32 2147483647, %v12912_v18  ;;  %v12929_v5 = vmul.f32 0.5, %v12832_v56 }
 0x52f   : > { %8693 = vst [vmem:[#allocation12 + $0x158] sm:$0xff] %v8565_v19  ;;  %v8054_v53 = vsub.f32 1.0, %v7926_v9  ;;  %v6520_v6 = vmul.f32 %v12907_v43, %v6392_v2  ;;  %v7720_v13 = vmul.f32 1.442695, %v7545_v27  ;;  %v6011_v28 = vadd.f32 1.0, %v5883_v14  ;;  %v10124_v58 = vpop.eup %10123  ;;  %v4983_v14 = vld [vmem:[#allocation2 + $0x1e0] sm:$0xff] }
 0x530   : > { %v7159_v16 = vadd.f32 0.2548296, %v7031_v55  ;;  %vm5496_vm14 = vcmp.ge.f32.partialorder %v12837_v57, 0.0  ;;  %v5884_v59 = vmul.f32 0.3275911, %v12924_v52  ;;  %v7546_v36 = vmul.f32 %v7418_v45, %v12886_v4 }
 0x531   : > { %v8182_v8 = vmul.f32 %v8054_v53, %v5622_v30  ;;  %v12934_v41 = vpop.eup %10125  ;;  %v6648_v48 = vadd.f32 1.4214138, %v6520_v6  ;;  %10131 = vrcp.f32 %v6011_v28  ;;  %v12938_v56 = vmul.f32 0.70710677, %v12926_v31  ;;  %v12975_v6 = vld [vmem:[#allocation3 + $0x1e8] sm:$0xff] }
 0x532   : > { %v7287_v24 = vmul.f32 %v12878_v22, %v7159_v16  ;;  %v6265_v47 = vmul.f32 1.0614054, %v12934_v41  ;;  %v6012_v0 = vadd.f32 1.0, %v5884_v59  ;;  %v12943_v57 = vsel %vm5496_vm14, 1.0, %v10656_v51 }
 0x533   : > { %v8310_v7 = vadd.f32 1.0, %v8182_v8  ;;  %v6776_v46 = vmul.f32 %v12907_v43, %v6648_v48  ;;  %10133 = vpow2.f32 %v7720_v13  ;;  %v7419_v60 = vsub.f32 0.0, %v5755_v26 }
 0x534   : > { %v7927_v34 = vmul.f32 %v10124_v58, %v7287_v24  ;;  %v6393_v29 = vadd.f32 -1.4531521, %v6265_v47  ;;  %10135 = vrcp.f32 %v6012_v0  ;;  %v12950_v22 = vmul.f32 0.5, %v12851_v38 }
 0x535   : > { %v8438_v4 = vmul.f32 %v8310_v7, %v12892_v12  ;;  %v6904_v49 = vadd.f32 -0.28449672, %v6776_v46  ;;  %vm5497_vm15 = vcmp.ge.f32.partialorder %v12862_v39, 0.0  ;;  %v7722_v42 = vmul.f32 1.442695, %v7546_v36 }
 0x536   : > { %v12953_v21 = vpop.eup %10127  ;;  %v8055_v63 = vsub.f32 1.0, %v7927_v34  ;;  %v6521_v37 = vmul.f32 %v12934_v41, %v6393_v29  ;;  %v5757_v12 = vand.u32 2147483647, %v12938_v56  ;;  %v7547_v15 = vmul.f32 %v7419_v60, %v5755_v26 }
 0x537   : > { %v8566_v17 = vmul.f32 %v8438_v4, %v4982_v44  ;;  %v7032_v33 = vmul.f32 %v12907_v43, %v6904_v49  ;;  %v6266_v20 = vmul.f32 1.0614054, %v12953_v21  ;;  %v12960_v61 = vmul.f32 0.70710677, %v12947_v11 }
 0x538   : > { %v8183_v38 = vmul.f32 %v8055_v63, %v5623_v32  ;;  %v6649_v3 = vadd.f32 1.4214138, %v6521_v37  ;;  %v7420_v35 = vsub.f32 0.0, %v12924_v52  ;;  %v5885_v25 = vmul.f32 0.3275911, %v5757_v12 }
 0x539   : > { %8694 = vst [vmem:[#allocation12 + $0x160] sm:$0xff] %v8566_v17  ;;  %v7160_v27 = vadd.f32 0.2548296, %v7032_v33  ;;  %v12966_v19 = vsel %vm5497_vm15, 1.0, %v10656_v51  ;;  %v6394_v30 = vadd.f32 -1.4531521, %v6266_v20  ;;  %10137 = vpow2.f32 %v7722_v42  ;;  %v10130_v9 = vpop.eup %10129 }
 0x53a   : > { %v8311_v40 = vadd.f32 1.0, %v8183_v38  ;;  %v6777_v26 = vmul.f32 %v12934_v41, %v6649_v3  ;;  %v12970_v2 = vmul.f32 0.5, %v12865_v10  ;;  %v6013_v45 = vadd.f32 1.0, %v5885_v25  ;;  %v4984_v3 = vld [vmem:[#allocation2 + $0x1f0] sm:$0xff] }
 0x53b   : > { %v7288_v53 = vmul.f32 %v12907_v43, %v7160_v27  ;;  %v6522_v32 = vmul.f32 %v12953_v21, %v6394_v30  ;;  %v7724_v55 = vmul.f32 1.442695, %v7547_v15  ;;  %v5758_v39 = vand.u32 2147483647, %v12960_v61 }
 0x53c   : > { %v8439_v13 = vmul.f32 %v8311_v40, %v12899_v1  ;;  %v6905_v28 = vadd.f32 -0.28449672, %v6777_v26  ;;  %v7548_v58 = vmul.f32 %v7420_v35, %v12924_v52  ;;  %10139 = vrcp.f32 %v6013_v45 }
 0x53d   : > { %v7928_v8 = vmul.f32 %v10130_v9, %v7288_v53  ;;  %vm5498_vm0 = vcmp.ge.f32.partialorder %v12874_v54, 0.0  ;;  %v6650_v10 = vadd.f32 1.4214138, %v6522_v32  ;;  %v5886_v16 = vmul.f32 0.3275911, %v5758_v39  ;;  %v13000_v9 = vld [vmem:[#allocation3 + $0x210] sm:$0xff] }
 0x53e   : > { %v12980_v59 = vpop.eup %10131  ;;  %v8567_v43 = vmul.f32 %v8439_v13, %v4983_v14  ;;  %v7033_v48 = vmul.f32 %v12934_v41, %v6905_v28  ;;  %v7421_v36 = vsub.f32 0.0, %v5757_v12  ;;  %v12984_v7 = vmul.f32 0.70710677, %v12975_v6 }
 0x53f   : > { %v8056_v24 = vsub.f32 1.0, %v7928_v8  ;;  %v6778_v1 = vmul.f32 %v12953_v21, %v6650_v10  ;;  %v6267_v52 = vmul.f32 1.0614054, %v12980_v59  ;;  %v6014_v47 = vadd.f32 1.0, %v5886_v16 }
 0x540   : > { %v10134_v0 = vpop.eup %10133  ;;  %8695 = vst [vmem:[#allocation12 + $0x168] sm:$0xff] %v8567_v43  ;;  %v7161_v44 = vadd.f32 0.2548296, %v7033_v48  ;;  %10141 = vpow2.f32 %v7724_v55  ;;  %v7726_v46 = vmul.f32 1.442695, %v7548_v58  ;;  %v7549_v63 = vmul.f32 %v7421_v36, %v5757_v12 }
 0x541   : > { %v5759_v60 = vand.u32 2147483647, %v12984_v7  ;;  %v12989_v4 = vpop.eup %10135  ;;  %v8184_v34 = vmul.f32 %v8056_v24, %v12943_v57  ;;  %v6906_v29 = vadd.f32 -0.28449672, %v6778_v1  ;;  %v6395_v49 = vadd.f32 -1.4531521, %v6267_v52 }
 0x542   : > { %10143 = vrcp.f32 %v6014_v47  ;;  %v7289_v42 = vmul.f32 %v12934_v41, %v7161_v44  ;;  %v6268_v17 = vmul.f32 1.0614054, %v12989_v4  ;;  %v7422_v37 = vsub.f32 0.0, %v5758_v39  ;;  %v13019_v47 = vld [vmem:[#allocation3 + $0x160] sm:$0xff] }
 0x543   : > { %v8312_v33 = vadd.f32 1.0, %v8184_v34  ;;  %v7034_v20 = vmul.f32 %v12953_v21, %v6906_v29  ;;  %v6523_v15 = vmul.f32 %v12980_v59, %v6395_v49  ;;  %v5887_v38 = vmul.f32 0.3275911, %v5759_v60 }
 0x544   : > { %v7929_v35 = vmul.f32 %v10134_v0, %v7289_v42  ;;  %v5626_v57 = vsel %vm5498_vm0, 1.0, %v10656_v51  ;;  %v6396_v25 = vadd.f32 -1.4531521, %v6268_v17  ;;  %10145 = vpow2.f32 %v7726_v46 }
 0x545   : > { %v8440_v41 = vmul.f32 %v8312_v33, %v12929_v5  ;;  %v7162_v27 = vadd.f32 0.2548296, %v7034_v20  ;;  %v6651_v30 = vadd.f32 1.4214138, %v6523_v15  ;;  %v6015_v12 = vadd.f32 1.0, %v5887_v38 }
 0x546   : > { %v10138_v40 = vpop.eup %10137  ;;  %v8057_v26 = vsub.f32 1.0, %v7929_v35  ;;  %v6524_v45 = vmul.f32 %v12989_v4, %v6396_v25  ;;  %v7728_v14 = vmul.f32 1.442695, %v7549_v63  ;;  %v7550_v53 = vmul.f32 %v7422_v37, %v5758_v39  ;;  %v4985_v39 = vld [vmem:[#allocation2 + $0x10] sm:$0xff] }
 0x547   : > { %v8568_v32 = vmul.f32 %v8440_v41, %v4984_v3  ;;  %v7290_v55 = vmul.f32 %v12953_v21, %v7162_v27  ;;  %v6779_v54 = vmul.f32 %v12980_v59, %v6651_v30  ;;  %10147 = vrcp.f32 %v6015_v12 }
 0x548   : > { %v8185_v13 = vmul.f32 %v8057_v26, %v12966_v19  ;;  %v6652_v5 = vadd.f32 1.4214138, %v6524_v45  ;;  %v7423_v28 = vsub.f32 0.0, %v5759_v60  ;;  %v13007_v58 = vmul.f32 0.70710677, %v13000_v9 }
 0x549   : > { %v13009_v8 = vpop.eup %10139  ;;  %8696 = vst [vmem:[#allocation12 + $0x170] sm:$0xff] %v8568_v32  ;;  %v7930_v10 = vmul.f32 %v10138_v40, %v7290_v55  ;;  %v13012_v16 = vmul.f32 0.5, %v12896_v50  ;;  %vm5499_vm1 = vcmp.ge.f32.partialorder %v12905_v62, 0.0  ;;  %v6907_v21 = vadd.f32 -0.28449672, %v6779_v54 }
 0x54a   : > { %v8313_v43 = vadd.f32 1.0, %v8185_v13  ;;  %v6780_v48 = vmul.f32 %v12989_v4, %v6652_v5  ;;  %v6269_v19 = vmul.f32 1.0614054, %v13009_v8  ;;  %10149 = vpow2.f32 %v7728_v14 }
 0x54b   : > { %v8058_v36 = vsub.f32 1.0, %v7930_v10  ;;  %v7035_v24 = vmul.f32 %v12980_v59, %v6907_v21  ;;  %v7730_v1 = vmul.f32 1.442695, %v7550_v53  ;;  %v5760_v52 = vand.u32 2147483647, %v13007_v58 }
 0x54c   : > { %v8441_v50 = vmul.f32 %v8313_v43, %v12950_v22  ;;  %v6908_v0 = vadd.f32 -0.28449672, %v6780_v48  ;;  %v6397_v44 = vadd.f32 -1.4531521, %v6269_v19  ;;  %v7551_v46 = vmul.f32 %v7423_v28, %v5759_v60  ;;  %v4986_v22 = vld [vmem:[#allocation2 + $0x230] sm:$0xff] }
 0x54d   : > { %v10142_v34 = vpop.eup %10141  ;;  %v8186_v29 = vmul.f32 %v8058_v36, %v5626_v57  ;;  %v7163_v49 = vadd.f32 0.2548296, %v7035_v24  ;;  %vm5500_vm2 = vcmp.ge.f32.partialorder %v12912_v18, 0.0  ;;  %v5888_v42 = vmul.f32 0.3275911, %v5760_v52 }
 0x54e   : > { %v8569_v63 = vmul.f32 %v8441_v50, %v4985_v39  ;;  %v7036_v37 = vmul.f32 %v12989_v4, %v6908_v0  ;;  %v6525_v33 = vmul.f32 %v13009_v8, %v6397_v44  ;;  %v13028_v20 = vmul.f32 0.70710677, %v13019_v47  ;;  %v4987_v0 = vld [vmem:[#allocation2 + $0x240] sm:$0xff] }
 0x54f   : > { %v13023_v17 = vpop.eup %10143  ;;  %v8314_v15 = vadd.f32 1.0, %v8186_v29  ;;  %v7291_v60 = vmul.f32 %v12980_v59, %v7163_v49  ;;  %v6016_v3 = vadd.f32 1.0, %v5888_v42  ;;  %10151 = vpow2.f32 %v7730_v1 }
 0x550   : > { %v6270_v38 = vmul.f32 1.0614054, %v13023_v17  ;;  %8697 = vst [vmem:[#allocation12 + $0x178] sm:$0xff] %v8569_v63  ;;  %v7164_v35 = vadd.f32 0.2548296, %v7036_v37  ;;  %v5627_v40 = vsel %vm5499_vm1, 1.0, %v10656_v51 }
 0x551   : > { %v6653_v57 = vadd.f32 1.4214138, %v6525_v33  ;;  %v7732_v25 = vmul.f32 1.442695, %v7551_v46  ;;  %v10146_v41 = vpop.eup %10145  ;;  %v8442_v27 = vmul.f32 %v8314_v15, %v12970_v2  ;;  %v7931_v30 = vmul.f32 %v10142_v34, %v7291_v60  ;;  %v13042_v2 = vld [vmem:[#allocation3 + $0x2d8] sm:$0xff]  ;;  %v4988_v15 = vld [vmem:[#allocation2 + $0x90] sm:$0xff] }
 0x552   : > { %v6398_v12 = vadd.f32 -1.4531521, %v6270_v38  ;;  %10153 = vrcp.f32 %v6016_v3  ;;  %v7292_v59 = vmul.f32 %v12989_v4, %v7164_v35  ;;  %v13039_v45 = vand.u32 2147483647, %v13028_v20 }
 0x553   : > { %v6781_v26 = vmul.f32 %v13009_v8, %v6653_v57  ;;  %v8570_v14 = vmul.f32 %v8442_v27, %v4986_v22  ;;  %v8059_v53 = vsub.f32 1.0, %v7931_v30  ;;  %v7424_v55 = vsub.f32 0.0, %v5760_v52  ;;  %v13065_v22 = vld [vmem:[#allocation3 + $0x130] sm:$0xff] }
 0x554   : > { %v6526_v32 = vmul.f32 %v13023_v17, %v6398_v12  ;;  %v13044_v54 = vpop.eup %10147  ;;  %v5628_v62 = vsel %vm5500_vm2, 1.0, %v10656_v51  ;;  %v7932_v13 = vmul.f32 %v10146_v41, %v7292_v59  ;;  %v5889_v5 = vmul.f32 0.3275911, %v13039_v45 }
 0x555   : > { %v6909_v4 = vadd.f32 -0.28449672, %v6781_v26  ;;  %8698 = vst [vmem:[#allocation12 + $0x180] sm:$0xff] %v8570_v14  ;;  %v8187_v28 = vmul.f32 %v8059_v53, %v5627_v40  ;;  %v6271_v21 = vmul.f32 1.0614054, %v13044_v54  ;;  %10155 = vpow2.f32 %v7732_v25 }
 0x556   : > { %v6654_v10 = vadd.f32 1.4214138, %v6526_v32  ;;  %v8060_v39 = vsub.f32 1.0, %v7932_v13  ;;  %v6017_v48 = vadd.f32 1.0, %v5889_v5  ;;  %v13053_v19 = vmul.f32 0.70710677, %v13042_v2 }
 0x557   : > { %v7037_v43 = vmul.f32 %v13009_v8, %v6909_v4  ;;  %v10150_v36 = vpop.eup %10149  ;;  %v8315_v18 = vadd.f32 1.0, %v8187_v28  ;;  %v6399_v1 = vadd.f32 -1.4531521, %v6271_v21  ;;  %v7552_v50 = vmul.f32 %v7424_v55, %v5760_v52  ;;  %v13080_v32 = vld [vmem:[#allocation3 + $0x2e0] sm:$0xff] }
 0x558   : > { %v6782_v24 = vmul.f32 %v13023_v17, %v6654_v10  ;;  %v5244_v44 = vmul.f32 0.5, %v12901_v23  ;;  %v8188_v46 = vmul.f32 %v8060_v39, %v5628_v62  ;;  %10157 = vrcp.f32 %v6017_v48 }
 0x559   : > { %v7165_v34 = vadd.f32 0.2548296, %v7037_v43  ;;  %v8443_v29 = vmul.f32 %v8315_v18, %v13012_v16  ;;  %v5245_v49 = vmul.f32 0.5, %v12926_v31  ;;  %v6527_v63 = vmul.f32 %v13044_v54, %v6399_v1 }
 0x55a   : > { %v6910_v42 = vadd.f32 -0.28449672, %v6782_v24  ;;  %v8316_v37 = vadd.f32 1.0, %v8188_v46  ;;  %vm5501_vm3 = vcmp.ge.f32.partialorder %v12938_v56, 0.0  ;;  %v13063_v52 = vand.u32 2147483647, %v13053_v19 }
 0x55b   : > { %v7293_v33 = vmul.f32 %v13009_v8, %v7165_v34  ;;  %v8571_v23 = vmul.f32 %v8443_v29, %v4987_v0  ;;  %v6655_v16 = vadd.f32 1.4214138, %v6527_v63  ;;  %v7734_v38 = vmul.f32 1.442695, %v7552_v50 }
 0x55c   : > { %v7038_v60 = vmul.f32 %v13023_v17, %v6910_v42  ;;  %v8444_v31 = vmul.f32 %v8316_v37, %v5244_v44  ;;  %v7425_v35 = vsub.f32 0.0, %v13039_v45  ;;  %v5890_v57 = vmul.f32 0.3275911, %v13063_v52  ;;  %v10152_v56 = vpop.eup %10151 }
 0x55d   : > { %v7933_v3 = vmul.f32 %v10150_v36, %v7293_v33  ;;  %8699 = vst [vmem:[#allocation12 + $0x188] sm:$0xff] %v8571_v23  ;;  %v5629_v8 = vsel %vm5501_vm3, 1.0, %v10656_v51  ;;  %v6783_v41 = vmul.f32 %v13044_v54, %v6655_v16  ;;  %v13073_v27 = vmul.f32 0.70710677, %v13065_v22 }
 0x55e   : > { %v7166_v25 = vadd.f32 0.2548296, %v7038_v60  ;;  %v8572_v12 = vmul.f32 %v8444_v31, %v4988_v15  ;;  %vm5502_vm4 = vcmp.ge.f32.partialorder %v12960_v61, 0.0  ;;  %v6018_v59 = vadd.f32 1.0, %v5890_v57  ;;  %v4990_v15 = vld [vmem:[#allocation2 + $0x208] sm:$0xff] }
 0x55f   : > { %v13075_v30 = vpop.eup %10153  ;;  %v8061_v40 = vsub.f32 1.0, %v7933_v3  ;;  %v6911_v14 = vadd.f32 -0.28449672, %v6783_v41  ;;  %10159 = vpow2.f32 %v7734_v38  ;;  %v5246_v62 = vmul.f32 0.5, %v12947_v11  ;;  %v4989_v11 = vld [vmem:[#allocation2 + $0x3a0] sm:$0xff] }
 0x560   : > { %v7294_v26 = vmul.f32 %v13023_v17, %v7166_v25  ;;  %v6272_v53 = vmul.f32 1.0614054, %v13075_v30  ;;  %8700 = vst [vmem:[#allocation12 + $0x190] sm:$0xff] %v8572_v12  ;;  %v7553_v13 = vmul.f32 %v7425_v35, %v13039_v45  ;;  %10161 = vrcp.f32 %v6018_v59 }
 0x561   : > { %v8189_v55 = vmul.f32 %v8061_v40, %v5629_v8  ;;  %v7039_v5 = vmul.f32 %v13044_v54, %v6911_v14  ;;  %v5763_v10 = vand.u32 2147483647, %v13073_v27  ;;  %v5630_v39 = vsel %vm5502_vm4, 1.0, %v10656_v51 }
 0x562   : > { %v7934_v4 = vmul.f32 %v10152_v56, %v7294_v26  ;;  %v6400_v28 = vadd.f32 -1.4531521, %v6272_v53  ;;  %v10156_v17 = vpop.eup %10155  ;;  %vm5503_vm5 = vcmp.ge.f32.partialorder %v12984_v7, 0.0  ;;  %v13091_v43 = vmul.f32 0.70710677, %v13080_v32  ;;  %v13108_v7 = vld [vmem:[#allocation3 + $0x3d8] sm:$0xff] }
 0x563   : > { %v8317_v21 = vadd.f32 1.0, %v8189_v55  ;;  %v7167_v48 = vadd.f32 0.2548296, %v7039_v5  ;;  %v5891_v18 = vmul.f32 0.3275911, %v5763_v10  ;;  %v7426_v50 = vsub.f32 0.0, %v13063_v52 }
 0x564   : > { %v8062_v45 = vsub.f32 1.0, %v7934_v4  ;;  %v6528_v36 = vmul.f32 %v13075_v30, %v6400_v28  ;;  %v7736_v1 = vmul.f32 1.442695, %v7553_v13  ;;  %v13096_v0 = vand.u32 2147483647, %v13091_v43 }
 0x565   : > { %v8445_v24 = vmul.f32 %v8317_v21, %v5245_v49  ;;  %v13098_v61 = vpop.eup %10157  ;;  %v7295_v46 = vmul.f32 %v13044_v54, %v7167_v48  ;;  %v6019_v29 = vadd.f32 1.0, %v5891_v18  ;;  %v5631_v63 = vsel %vm5503_vm5, 1.0, %v10656_v51 }
 0x566   : > { %v8190_v44 = vmul.f32 %v8062_v45, %v5630_v39  ;;  %v6656_v34 = vadd.f32 1.4214138, %v6528_v36  ;;  %v6273_v49 = vmul.f32 1.0614054, %v13098_v61  ;;  %v7554_v54 = vmul.f32 %v7426_v50, %v13063_v52 }
 0x567   : > { %v8573_v42 = vmul.f32 %v8445_v24, %v4989_v11  ;;  %v7935_v33 = vmul.f32 %v10156_v17, %v7295_v46  ;;  %10163 = vrcp.f32 %v6019_v29  ;;  %v5892_v16 = vmul.f32 0.3275911, %v13096_v0  ;;  %v13130_v17 = vld [vmem:[#allocation3 + $0x3d0] sm:$0xff]  ;;  %v13144_v46 = vld [vmem:[#allocation3 + $0x220] sm:$0xff] }
 0x568   : > { %v8318_v37 = vadd.f32 1.0, %v8190_v44  ;;  %v6784_v23 = vmul.f32 %v13075_v30, %v6656_v34  ;;  %v6401_v60 = vadd.f32 -1.4531521, %v6273_v49  ;;  %10165 = vpow2.f32 %v7736_v1 }
 0x569   : > { %8701 = vst [vmem:[#allocation12 + $0x198] sm:$0xff] %v8573_v42  ;;  %v8063_v31 = vsub.f32 1.0, %v7935_v33  ;;  %v5247_v35 = vmul.f32 0.5, %v12975_v6  ;;  %v7427_v56 = vsub.f32 0.0, %v5763_v10  ;;  %v6020_v8 = vadd.f32 1.0, %v5892_v16 }
 0x56a   : > { %v8446_v38 = vmul.f32 %v8318_v37, %v5246_v62  ;;  %v6912_v3 = vadd.f32 -0.28449672, %v6784_v23  ;;  %v6529_v57 = vmul.f32 %v13098_v61, %v6401_v60  ;;  %v13113_v12 = vmul.f32 0.5, %v13000_v9  ;;  %v4991_v9 = vld [vmem:[#allocation2 + $0xd0] sm:$0xff] }
 0x56b   : > { %v8191_v41 = vmul.f32 %v8063_v31, %v5631_v63  ;;  %v7738_v26 = vmul.f32 1.442695, %v7554_v54  ;;  %10167 = vrcp.f32 %v6020_v8  ;;  %v13117_v14 = vmul.f32 0.70710677, %v13108_v7 }
 0x56c   : > { %v8574_v25 = vmul.f32 %v8446_v38, %v4990_v15  ;;  %v7040_v52 = vmul.f32 %v13075_v30, %v6912_v3  ;;  %v10160_v40 = vpop.eup %10159  ;;  %v6657_v59 = vadd.f32 1.4214138, %v6529_v57  ;;  %vm5504_vm6 = vcmp.ge.f32.partialorder %v13007_v58, 0.0  ;;  %v4992_v57 = vld [vmem:[#allocation2 + $0x88] sm:$0xff] }
 0x56d   : > { %v13119_v53 = vpop.eup %10161  ;;  %v8319_v6 = vadd.f32 1.0, %v8191_v41  ;;  %v13123_v62 = vmul.f32 0.5, %v13019_v47  ;;  %v7555_v5 = vmul.f32 %v7427_v56, %v5763_v10  ;;  %v13128_v28 = vand.u32 2147483647, %v13117_v14 }
 0x56e   : > { %8702 = vst [vmem:[#allocation12 + $0x1a0] sm:$0xff] %v8574_v25  ;;  %v7168_v55 = vadd.f32 0.2548296, %v7040_v52  ;;  %v6785_v13 = vmul.f32 %v13098_v61, %v6657_v59  ;;  %v6274_v4 = vmul.f32 1.0614054, %v13119_v53  ;;  %vm5505_vm7 = vcmp.ge.f32.partialorder %v13028_v20, 0.0 }
 0x56f   : > { %v8447_v21 = vmul.f32 %v8319_v6, %v5247_v35  ;;  %v7428_v11 = vsub.f32 0.0, %v13096_v0  ;;  %10169 = vpow2.f32 %v7738_v26  ;;  %v5893_v48 = vmul.f32 0.3275911, %v13128_v28 }
 0x570   : > { %v7296_v39 = vmul.f32 %v13075_v30, %v7168_v55  ;;  %v6913_v47 = vadd.f32 -0.28449672, %v6785_v13  ;;  %v6402_v45 = vadd.f32 -1.4531521, %v6274_v4  ;;  %v5632_v10 = vsel %vm5504_vm6, 1.0, %v10656_v51  ;;  %v13180_v4 = vld [vmem:[#allocation3 + $0x3e8] sm:$0xff] }
 0x571   : > { %v8575_v36 = vmul.f32 %v8447_v21, %v4991_v9  ;;  %v13140_v24 = vmul.f32 0.70710677, %v13130_v17  ;;  %v7740_v50 = vmul.f32 1.442695, %v7555_v5  ;;  %v6021_v44 = vadd.f32 1.0, %v5893_v48 }
 0x572   : > { %v7936_v18 = vmul.f32 %v10160_v40, %v7296_v39  ;;  %v7041_v30 = vmul.f32 %v13098_v61, %v6913_v47  ;;  %v6530_v1 = vmul.f32 %v13119_v53, %v6402_v45  ;;  %v5633_v29 = vsel %vm5505_vm7, 1.0, %v10656_v51 }
 0x573   : > { %8703 = vst [vmem:[#allocation12 + $0x1a8] sm:$0xff] %v8575_v36  ;;  %v7556_v58 = vmul.f32 %v7428_v11, %v13096_v0  ;;  %v13151_v42 = vand.u32 2147483647, %v13140_v24  ;;  %vm5506_vm8 = vcmp.ge.f32.partialorder %v13053_v19, 0.0  ;;  %10171 = vrcp.f32 %v6021_v44 }
 0x574   : > { %v8064_v34 = vsub.f32 1.0, %v7936_v18  ;;  %v13153_v63 = vpop.eup %10163  ;;  %v7169_v49 = vadd.f32 0.2548296, %v7041_v30  ;;  %v6658_v37 = vadd.f32 1.4214138, %v6530_v1  ;;  %v13163_v54 = vmul.f32 0.5, %v13042_v2 }
 0x575   : > { %v10166_v33 = vpop.eup %10165  ;;  %v6275_v15 = vmul.f32 1.0614054, %v13153_v63  ;;  %v5894_v60 = vmul.f32 0.3275911, %v13151_v42  ;;  %v13159_v20 = vmul.f32 0.70710677, %v13144_v46  ;;  %10173 = vpow2.f32 %v7740_v50 }
 0x576   : > { %v8192_v23 = vmul.f32 %v8064_v34, %v5632_v10  ;;  %v7297_v0 = vmul.f32 %v13098_v61, %v7169_v49  ;;  %v6786_v16 = vmul.f32 %v13119_v53, %v6658_v37  ;;  %v7742_v3 = vmul.f32 1.442695, %v7556_v58  ;;  %v4993_v1 = vld [vmem:[#allocation2 + $0x2f0] sm:$0xff] }
 0x577   : > { %v6403_v31 = vadd.f32 -1.4531521, %v6275_v15  ;;  %v6022_v35 = vadd.f32 1.0, %v5894_v60  ;;  %v5634_v8 = vsel %vm5506_vm8, 1.0, %v10656_v51  ;;  %v7429_v41 = vsub.f32 0.0, %v13128_v28 }
 0x578   : > { %v8320_v38 = vadd.f32 1.0, %v8192_v23  ;;  %v7937_v56 = vmul.f32 %v10166_v33, %v7297_v0  ;;  %v6914_v25 = vadd.f32 -0.28449672, %v6786_v16  ;;  %v13170_v61 = vpop.eup %10167  ;;  %v5767_v40 = vand.u32 2147483647, %v13159_v20  ;;  %v13200_v16 = vld [vmem:[#allocation3 + $0x198] sm:$0xff] }
 0x579   : > { %v6531_v52 = vmul.f32 %v13153_v63, %v6403_v31  ;;  %10175 = vrcp.f32 %v6022_v35  ;;  %v13177_v6 = vmul.f32 0.5, %v13065_v22  ;;  %v6276_v19 = vmul.f32 1.0614054, %v13170_v61 }
 0x57a   : > { %v8448_v2 = vmul.f32 %v8320_v38, %v13113_v12  ;;  %v8065_v59 = vsub.f32 1.0, %v7937_v56  ;;  %v7042_v26 = vmul.f32 %v13119_v53, %v6914_v25  ;;  %10177 = vpow2.f32 %v7742_v3 }
 0x57b   : > { %v6659_v9 = vadd.f32 1.4214138, %v6531_v52  ;;  %v5895_v13 = vmul.f32 0.3275911, %v5767_v40  ;;  %v6404_v21 = vadd.f32 -1.4531521, %v6276_v19  ;;  %v7557_v39 = vmul.f32 %v7429_v41, %v13128_v28 }
 0x57c   : > { %v8576_v55 = vmul.f32 %v8448_v2, %v4992_v57  ;;  %v8193_v12 = vmul.f32 %v8065_v59, %v5633_v29  ;;  %v7170_v5 = vadd.f32 0.2548296, %v7042_v26  ;;  %v10170_v11 = vpop.eup %10169  ;;  %v7430_v22 = vsub.f32 0.0, %v13151_v42  ;;  %v4994_v19 = vld [vmem:[#allocation2 + $0x358] sm:$0xff] }
 0x57d   : > { %v6787_v47 = vmul.f32 %v13153_v63, %v6659_v9  ;;  %v6023_v45 = vadd.f32 1.0, %v5895_v13  ;;  %v7431_v48 = vsub.f32 0.0, %v5767_v40  ;;  %v6532_v18 = vmul.f32 %v13170_v61, %v6404_v21 }
 0x57e   : > { %8704 = vst [vmem:[#allocation12 + $0x1b0] sm:$0xff] %v8576_v55  ;;  %v8321_v36 = vadd.f32 1.0, %v8193_v12  ;;  %v7298_v10 = vmul.f32 %v13119_v53, %v7170_v5  ;;  %v13188_v30 = vmul.f32 0.70710677, %v13180_v4  ;;  %vm5507_vm9 = vcmp.ge.f32.partialorder %v13073_v27, 0.0  ;;  %v13212_v27 = vld [vmem:[#allocation3 + $0x2a0] sm:$0xff] }
 0x57f   : > { %v6915_v28 = vadd.f32 -0.28449672, %v6787_v47  ;;  %vm5508_vm10 = vcmp.ge.f32.partialorder %v13091_v43, 0.0  ;;  %10179 = vrcp.f32 %v6023_v45  ;;  %v6660_v34 = vadd.f32 1.4214138, %v6532_v18 }
 0x580   : > { %v8449_v50 = vmul.f32 %v8321_v36, %v13123_v62  ;;  %v7938_v44 = vmul.f32 %v10170_v11, %v7298_v10  ;;  %v7744_v29 = vmul.f32 1.442695, %v7557_v39  ;;  %v13193_v58 = vpop.eup %10171  ;;  %v7558_v49 = vmul.f32 %v7430_v22, %v13151_v42 }
 0x581   : > { %v7043_v53 = vmul.f32 %v13153_v63, %v6915_v28  ;;  %v7559_v37 = vmul.f32 %v7431_v48, %v5767_v40  ;;  %v5768_v33 = vand.u32 2147483647, %v13188_v30  ;;  %v6788_v60 = vmul.f32 %v13170_v61, %v6660_v34 }
 0x582   : > { %v8577_v23 = vmul.f32 %v8449_v50, %v4993_v1  ;;  %v8066_v15 = vsub.f32 1.0, %v7938_v44  ;;  %v6277_v0 = vmul.f32 1.0614054, %v13193_v58  ;;  %v10174_v62 = vpop.eup %10173  ;;  %v5635_v38 = vsel %vm5507_vm9, 1.0, %v10656_v51 }
 0x583   : > { %v7171_v31 = vadd.f32 0.2548296, %v7043_v53  ;;  %v5636_v42 = vsel %vm5508_vm10, 1.0, %v10656_v51  ;;  %v5896_v3 = vmul.f32 0.3275911, %v5768_v33  ;;  %10181 = vpow2.f32 %v7744_v29 }
 0x584   : > { %8705 = vst [vmem:[#allocation12 + $0x1b8] sm:$0xff] %v8577_v23  ;;  %v8194_v35 = vmul.f32 %v8066_v15, %v5634_v8  ;;  %v6916_v57 = vadd.f32 -0.28449672, %v6788_v60  ;;  %v6405_v56 = vadd.f32 -1.4531521, %v6277_v0  ;;  %vm5509_vm11 = vcmp.ge.f32.partialorder %v13117_v14, 0.0 }
 0x585   : > { %v7299_v25 = vmul.f32 %v13153_v63, %v7171_v31  ;;  %v7746_v41 = vmul.f32 1.442695, %v7558_v49  ;;  %v6024_v2 = vadd.f32 1.0, %v5896_v3  ;;  %v13210_v52 = vmul.f32 0.70710677, %v13200_v16 }
 0x586   : > { %v13214_v40 = vpop.eup %10175  ;;  %v8322_v59 = vadd.f32 1.0, %v8194_v35  ;;  %v7044_v43 = vmul.f32 %v13170_v61, %v6916_v57  ;;  %v6533_v26 = vmul.f32 %v13193_v58, %v6405_v56  ;;  %v7748_v8 = vmul.f32 1.442695, %v7559_v37  ;;  %v4995_v37 = vld [vmem:[#allocation2 + $0x268] sm:$0xff] }
 0x587   : > { %v7939_v55 = vmul.f32 %v10174_v62, %v7299_v25  ;;  %v6278_v9 = vmul.f32 1.0614054, %v13214_v40  ;;  %10183 = vrcp.f32 %v6024_v2  ;;  %v7432_v63 = vsub.f32 0.0, %v5768_v33  ;;  %v10178_v13 = vpop.eup %10177 }
 0x588   : > { %v8450_v12 = vmul.f32 %v8322_v59, %v13163_v54  ;;  %v7172_v5 = vadd.f32 0.2548296, %v7044_v43  ;;  %v6661_v21 = vadd.f32 1.4214138, %v6533_v26  ;;  %v13221_v39 = vmul.f32 0.70710677, %v13212_v27 }
 0x589   : > { %v8067_v11 = vsub.f32 1.0, %v7939_v55  ;;  %v6406_v47 = vadd.f32 -1.4531521, %v6278_v9  ;;  %10185 = vpow2.f32 %v7746_v41  ;;  %v5769_v22 = vand.u32 2147483647, %v13210_v52  ;;  %v13238_v43 = vld [vmem:[#allocation3 + $0x378] sm:$0xff] }
 0x58a   : > { %v8578_v45 = vmul.f32 %v8450_v12, %v4994_v19  ;;  %v7300_v48 = vmul.f32 %v13170_v61, %v7172_v5  ;;  %v6789_v36 = vmul.f32 %v13193_v58, %v6661_v21  ;;  %10187 = vpow2.f32 %v7748_v8 }
 0x58b   : > { %v8195_v10 = vmul.f32 %v8067_v11, %v5635_v38  ;;  %v6534_v54 = vmul.f32 %v13214_v40, %v6406_v47  ;;  %v5897_v18 = vmul.f32 0.3275911, %v5769_v22  ;;  %v7560_v44 = vmul.f32 %v7432_v63, %v5768_v33 }
 0x58c   : > { %v13228_v1 = vpop.eup %10179  ;;  %8706 = vst [vmem:[#allocation12 + $0x1c0] sm:$0xff] %v8578_v45  ;;  %v7940_v28 = vmul.f32 %v10178_v13, %v7300_v48  ;;  %v6917_v50 = vadd.f32 -0.28449672, %v6789_v36  ;;  %v5770_v34 = vand.u32 2147483647, %v13221_v39  ;;  %v7433_v60 = vsub.f32 0.0, %v5769_v22 }
 0x58d   : > { %v8323_v29 = vadd.f32 1.0, %v8195_v10  ;;  %v6662_v53 = vadd.f32 1.4214138, %v6534_v54  ;;  %v6279_v61 = vmul.f32 1.0614054, %v13228_v1  ;;  %v6025_v49 = vadd.f32 1.0, %v5897_v18 }
 0x58e   : > { %v8068_v23 = vsub.f32 1.0, %v7940_v28  ;;  %v7045_v15 = vmul.f32 %v13193_v58, %v6917_v50  ;;  %v5898_v0 = vmul.f32 0.3275911, %v5770_v34  ;;  %v5252_v33 = vmul.f32 0.5, %v13080_v32  ;;  %v13254_v48 = vld [vmem:[#allocation3 + $0x260] sm:$0xff] }
 0x58f   : > { %v8451_v62 = vmul.f32 %v8323_v29, %v13177_v6  ;;  %v6790_v38 = vmul.f32 %v13214_v40, %v6662_v53  ;;  %v6407_v31 = vadd.f32 -1.4531521, %v6279_v61  ;;  %10189 = vrcp.f32 %v6025_v49 }
 0x590   : > { %v8196_v3 = vmul.f32 %v8068_v23, %v5636_v42  ;;  %v7173_v35 = vadd.f32 0.2548296, %v7045_v15  ;;  %v6026_v57 = vadd.f32 1.0, %v5898_v0  ;;  %v10182_v56 = vpop.eup %10181  ;;  %v5253_v41 = vmul.f32 0.5, %v13108_v7  ;;  %v4996_v42 = vld [vmem:[#allocation2 + $0x350] sm:$0xff]  ;;  %v4997_v15 = vld [vmem:[#allocation2 + $0x188] sm:$0xff] }
 0x591   : > { %v8579_v25 = vmul.f32 %v8451_v62, %v4995_v37  ;;  %v6918_v2 = vadd.f32 -0.28449672, %v6790_v38  ;;  %v6535_v59 = vmul.f32 %v13228_v1, %v6407_v31  ;;  %v5637_v6 = vsel %vm5509_vm11, 1.0, %v10656_v51 }
 0x592   : > { %v8324_v26 = vadd.f32 1.0, %v8196_v3  ;;  %v7301_v8 = vmul.f32 %v13193_v58, %v7173_v35  ;;  %v7750_v32 = vmul.f32 1.442695, %v7560_v44  ;;  %v7561_v9 = vmul.f32 %v7433_v60, %v5769_v22 }
 0x593   : > { %8707 = vst [vmem:[#allocation12 + $0x1c8] sm:$0xff] %v8579_v25  ;;  %v7046_v19 = vmul.f32 %v13214_v40, %v6918_v2  ;;  %v6663_v55 = vadd.f32 1.4214138, %v6535_v59  ;;  %10191 = vrcp.f32 %v6026_v57  ;;  %v7434_v12 = vsub.f32 0.0, %v5770_v34 }
 0x594   : > { %v13245_v7 = vpop.eup %10183  ;;  %v8452_v63 = vmul.f32 %v8324_v26, %v5252_v33  ;;  %v7941_v13 = vmul.f32 %v10182_v56, %v7301_v8  ;;  %v13248_v5 = vmul.f32 0.70710677, %v13238_v43  ;;  %vm5510_vm12 = vcmp.ge.f32.partialorder %v13140_v24, 0.0 }
 0x595   : > { %v7174_v14 = vadd.f32 0.2548296, %v7046_v19  ;;  %v6791_v58 = vmul.f32 %v13228_v1, %v6663_v55  ;;  %v6280_v21 = vmul.f32 1.0614054, %v13245_v7  ;;  %10193 = vpow2.f32 %v7750_v32 }
 0x596   : > { %v10186_v11 = vpop.eup %10185  ;;  %v8580_v47 = vmul.f32 %v8452_v63, %v4996_v42  ;;  %v8069_v45 = vsub.f32 1.0, %v7941_v13  ;;  %v5771_v22 = vand.u32 2147483647, %v13248_v5  ;;  %v7752_v18 = vmul.f32 1.442695, %v7561_v9 }
 0x597   : > { %v7302_v36 = vmul.f32 %v13214_v40, %v7174_v14  ;;  %v6919_v10 = vadd.f32 -0.28449672, %v6791_v58  ;;  %v6408_v54 = vadd.f32 -1.4531521, %v6280_v21  ;;  %v10188_v28 = vpop.eup %10187  ;;  %v5254_v44 = vmul.f32 0.5, %v13130_v17 }
 0x598   : > { %8708 = vst [vmem:[#allocation12 + $0x1d0] sm:$0xff] %v8580_v47  ;;  %v8197_v50 = vmul.f32 %v8069_v45, %v5637_v6  ;;  %v7562_v29 = vmul.f32 %v7434_v12, %v5770_v34  ;;  %v5899_v53 = vmul.f32 0.3275911, %v5771_v22  ;;  %v13259_v49 = vmul.f32 0.5, %v13144_v46  ;;  %v13269_v46 = vld [vmem:[#allocation3 + $0x3f0] sm:$0xff] }
 0x599   : > { %v7942_v61 = vmul.f32 %v10186_v11, %v7302_v36  ;;  %v7047_v37 = vmul.f32 %v13228_v1, %v6919_v10  ;;  %v6536_v23 = vmul.f32 %v13245_v7, %v6408_v54  ;;  %v5638_v60 = vsel %vm5510_vm12, 1.0, %v10656_v51 }
 0x59a   : > { %v8325_v40 = vadd.f32 1.0, %v8197_v50  ;;  %v6027_v0 = vadd.f32 1.0, %v5899_v53  ;;  %v13267_v62 = vmul.f32 0.70710677, %v13254_v48  ;;  %10195 = vpow2.f32 %v7752_v18  ;;  %v13297_v53 = vld [vmem:[#allocation3 + $0x2b0] sm:$0xff] }
 0x59b   : > { %v8070_v17 = vsub.f32 1.0, %v7942_v61  ;;  %v7175_v34 = vadd.f32 0.2548296, %v7047_v37  ;;  %v6664_v38 = vadd.f32 1.4214138, %v6536_v23  ;;  %vm5511_vm13 = vcmp.ge.f32.partialorder %v13159_v20, 0.0 }
 0x59c   : > { %v13271_v31 = vpop.eup %10189  ;;  %v8453_v33 = vmul.f32 %v8325_v40, %v5253_v41  ;;  %v7754_v3 = vmul.f32 1.442695, %v7562_v29  ;;  %10197 = vrcp.f32 %v6027_v0  ;;  %v7435_v2 = vsub.f32 0.0, %v5771_v22  ;;  %v4998_v41 = vld [vmem:[#allocation2 + $0x1d8] sm:$0xff] }
 0x59d   : > { %v8198_v35 = vmul.f32 %v8070_v17, %v5638_v60  ;;  %v7303_v24 = vmul.f32 %v13228_v1, %v7175_v34  ;;  %v6792_v57 = vmul.f32 %v13245_v7, %v6664_v38  ;;  %v6281_v56 = vmul.f32 1.0614054, %v13271_v31 }
 0x59e   : > { %v8581_v25 = vmul.f32 %v8453_v33, %v4997_v15  ;;  %v13278_v59 = vand.u32 2147483647, %v13267_v62  ;;  %v13281_v26 = vmul.f32 0.70710677, %v13269_v46  ;;  %v5639_v1 = vsel %vm5511_vm13, 1.0, %v10656_v51 }
 0x59f   : > { %v8326_v6 = vadd.f32 1.0, %v8198_v35  ;;  %v7943_v8 = vmul.f32 %v10188_v28, %v7303_v24  ;;  %v6920_v32 = vadd.f32 -0.28449672, %v6792_v57  ;;  %v6409_v42 = vadd.f32 -1.4531521, %v6281_v56  ;;  %v13320_v56 = vld [vmem:[#allocation3 + $0xe0] sm:$0xff] }
 0x5a0   : > { %v13283_v19 = vpop.eup %10191  ;;  %8709 = vst [vmem:[#allocation12 + $0x1d8] sm:$0xff] %v8581_v25  ;;  %vm5512_vm14 = vcmp.ge.f32.partialorder %v13188_v30, 0.0  ;;  %v5900_v55 = vmul.f32 0.3275911, %v13278_v59  ;;  %v5773_v9 = vand.u32 2147483647, %v13281_v26  ;;  %10199 = vpow2.f32 %v7754_v3 }
 0x5a1   : > { %v8454_v63 = vmul.f32 %v8326_v6, %v5254_v44  ;;  %v8071_v13 = vsub.f32 1.0, %v7943_v8  ;;  %v7048_v12 = vmul.f32 %v13245_v7, %v6920_v32  ;;  %v6537_v14 = vmul.f32 %v13271_v31, %v6409_v42 }
 0x5a2   : > { %v6282_v58 = vmul.f32 1.0614054, %v13283_v19  ;;  %v7563_v21 = vmul.f32 %v7435_v2, %v5771_v22  ;;  %v6028_v11 = vadd.f32 1.0, %v5900_v55  ;;  %v10194_v47 = vpop.eup %10193  ;;  %v5901_v18 = vmul.f32 0.3275911, %v5773_v9  ;;  %v4999_v22 = vld [vmem:[#allocation2 + $0x30] sm:$0xff] }
 0x5a3   : > { %v8582_v20 = vmul.f32 %v8454_v63, %v4998_v41  ;;  %v8199_v45 = vmul.f32 %v8071_v13, %v5639_v1  ;;  %v7176_v36 = vadd.f32 0.2548296, %v7048_v12  ;;  %v6665_v10 = vadd.f32 1.4214138, %v6537_v14  ;;  %v5000_v13 = vld [vmem:[#allocation2 + $0x140] sm:$0xff] }
 0x5a4   : > { %v6410_v54 = vadd.f32 -1.4531521, %v6282_v58  ;;  %10201 = vrcp.f32 %v6028_v11  ;;  %v5256_v50 = vmul.f32 0.5, %v13180_v4  ;;  %v5640_v61 = vsel %vm5512_vm14, 1.0, %v10656_v51 }
 0x5a5   : > { %8710 = vst [vmem:[#allocation12 + $0x1e0] sm:$0xff] %v8582_v20  ;;  %v8327_v28 = vadd.f32 1.0, %v8199_v45  ;;  %v7304_v44 = vmul.f32 %v13245_v7, %v7176_v36  ;;  %v6793_v29 = vmul.f32 %v13271_v31, %v6665_v10  ;;  %v13303_v37 = vmul.f32 0.5, %v13200_v16  ;;  %v13340_v20 = vld [vmem:[#allocation3 + $0x88] sm:$0xff] }
 0x5a6   : > { %v6538_v23 = vmul.f32 %v13283_v19, %v6410_v54  ;;  %v6029_v15 = vadd.f32 1.0, %v5901_v18  ;;  %v7756_v7 = vmul.f32 1.442695, %v7563_v21  ;;  %v7436_v34 = vsub.f32 0.0, %v13278_v59 }
 0x5a7   : > { %v8455_v40 = vmul.f32 %v8327_v28, %v13259_v49  ;;  %v7944_v4 = vmul.f32 %v10194_v47, %v7304_v44  ;;  %v6921_v60 = vadd.f32 -0.28449672, %v6793_v29  ;;  %v10196_v0 = vpop.eup %10195  ;;  %v13309_v38 = vmul.f32 0.70710677, %v13297_v53 }
 0x5a8   : > { %v6666_v17 = vadd.f32 1.4214138, %v6538_v23  ;;  %10203 = vrcp.f32 %v6029_v15  ;;  %v7437_v35 = vsub.f32 0.0, %v5773_v9  ;;  %vm5513_vm15 = vcmp.ge.f32.partialorder %v13210_v52, 0.0 }
 0x5a9   : > { %v13311_v30 = vpop.eup %10197  ;;  %v8583_v16 = vmul.f32 %v8455_v40, %v4999_v22  ;;  %v8072_v33 = vsub.f32 1.0, %v7944_v4  ;;  %v7049_v3 = vmul.f32 %v13271_v31, %v6921_v60  ;;  %v13318_v57 = vand.u32 2147483647, %v13309_v38 }
 0x5aa   : > { %v6794_v49 = vmul.f32 %v13283_v19, %v6666_v17  ;;  %v6283_v24 = vmul.f32 1.0614054, %v13311_v30  ;;  %vm5514_vm0 = vcmp.ge.f32.partialorder %v13221_v39, 0.0  ;;  %10205 = vpow2.f32 %v7756_v7  ;;  %v5001_v17 = vld [vmem:[#allocation2 + $0x2a8] sm:$0xff] }
 0x5ab   : > { %8711 = vst [vmem:[#allocation12 + $0x1e8] sm:$0xff] %v8583_v16  ;;  %v8200_v25 = vmul.f32 %v8072_v33, %v5640_v61  ;;  %v7177_v2 = vadd.f32 0.2548296, %v7049_v3  ;;  %v7564_v8 = vmul.f32 %v7436_v34, %v13278_v59  ;;  %v5902_v32 = vmul.f32 0.3275911, %v13318_v57 }
 0x5ac   : > { %v6922_v41 = vadd.f32 -0.28449672, %v6794_v49  ;;  %v6411_v6 = vadd.f32 -1.4531521, %v6283_v24  ;;  %v7565_v55 = vmul.f32 %v7437_v35, %v5773_v9  ;;  %v13327_v63 = vmul.f32 0.70710677, %v13320_v56 }
 0x5ad   : > { %v8328_v42 = vadd.f32 1.0, %v8200_v25  ;;  %v7305_v1 = vmul.f32 %v13271_v31, %v7177_v2  ;;  %v13330_v12 = vmul.f32 0.5, %v13212_v27  ;;  %v6030_v21 = vadd.f32 1.0, %v5902_v32  ;;  %v10200_v11 = vpop.eup %10199  ;;  %v13366_v49 = vld [vmem:[#allocation3 + $0xd0] sm:$0xff] }
 0x5ae   : > { %v7050_v14 = vmul.f32 %v13283_v19, %v6922_v41  ;;  %v6539_v58 = vmul.f32 %v13311_v30, %v6411_v6  ;;  %v5641_v47 = vsel %vm5513_vm15, 1.0, %v10656_v51  ;;  %v5642_v9 = vsel %vm5514_vm0, 1.0, %v10656_v51 }
 0x5af   : > { %v8456_v59 = vmul.f32 %v8328_v42, %v5256_v50  ;;  %v7945_v31 = vmul.f32 %v10196_v0, %v7305_v1  ;;  %v7758_v36 = vmul.f32 1.442695, %v7564_v8  ;;  %10207 = vrcp.f32 %v6030_v21 }
 0x5b0   : > { %v7178_v27 = vadd.f32 0.2548296, %v7050_v14  ;;  %v6667_v45 = vadd.f32 1.4214138, %v6539_v58  ;;  %v7760_v28 = vmul.f32 1.442695, %v7565_v55 }
 0x5b1   : > { %v13342_v10 = vpop.eup %10201  ;;  %v8584_v54 = vmul.f32 %v8456_v59, %v5000_v13  ;;  %v8073_v18 = vsub.f32 1.0, %v7945_v31  ;;  %v5775_v50 = vand.u32 2147483647, %v13327_v63  ;;  %v13347_v44 = vmul.f32 0.5, %v13238_v43  ;;  %v5002_v58 = vld [vmem:[#allocation2 + $0x130] sm:$0xff] }
 0x5b2   : > { %v7306_v52 = vmul.f32 %v13283_v19, %v7178_v27  ;;  %v6795_v39 = vmul.f32 %v13311_v30, %v6667_v45  ;;  %v6284_v29 = vmul.f32 1.0614054, %v13342_v10  ;;  %v13352_v61 = vmul.f32 0.5, %v13254_v48 }
 0x5b3   : > { %8712 = vst [vmem:[#allocation12 + $0x1f0] sm:$0xff] %v8584_v54  ;;  %v8201_v22 = vmul.f32 %v8073_v18, %v5641_v47  ;;  %v5903_v23 = vmul.f32 0.3275911, %v5775_v50  ;;  %v13355_v15 = vmul.f32 0.70710677, %v13340_v20  ;;  %10209 = vpow2.f32 %v7758_v36 }
 0x5b4   : > { %v7946_v40 = vmul.f32 %v10200_v11, %v7306_v52  ;;  %v6923_v4 = vadd.f32 -0.28449672, %v6795_v39  ;;  %v6412_v60 = vadd.f32 -1.4531521, %v6284_v29  ;;  %10211 = vpow2.f32 %v7760_v28  ;;  %v13387_v52 = vld [vmem:[#allocation3 + $0x2d0] sm:$0xff] }
 0x5b5   : > { %v13357_v19 = vpop.eup %10203  ;;  %v8329_v43 = vadd.f32 1.0, %v8201_v22  ;;  %v7438_v7 = vsub.f32 0.0, %v13318_v57  ;;  %v6031_v0 = vadd.f32 1.0, %v5903_v23  ;;  %vm5515_vm1 = vcmp.ge.f32.partialorder %v13248_v5, 0.0 }
 0x5b6   : > { %v8074_v34 = vsub.f32 1.0, %v7946_v40  ;;  %v7051_v48 = vmul.f32 %v13311_v30, %v6923_v4  ;;  %v6540_v16 = vmul.f32 %v13342_v10, %v6412_v60  ;;  %v6285_v33 = vmul.f32 1.0614054, %v13357_v19 }
 0x5b7   : > { %v8457_v3 = vmul.f32 %v8329_v43, %v13303_v37  ;;  %10213 = vrcp.f32 %v6031_v0  ;;  %v5776_v35 = vand.u32 2147483647, %v13355_v15  ;;  %v10206_v24 = vpop.eup %10205  ;;  %v7566_v32 = vmul.f32 %v7438_v7, %v13318_v57 }
 0x5b8   : > { %v8202_v25 = vmul.f32 %v8074_v34, %v5642_v9  ;;  %v7179_v2 = vadd.f32 0.2548296, %v7051_v48  ;;  %v6668_v41 = vadd.f32 1.4214138, %v6540_v16  ;;  %v6413_v6 = vadd.f32 -1.4531521, %v6285_v33 }
 0x5b9   : > { %v8585_v8 = vmul.f32 %v8457_v3, %v5001_v17  ;;  %v7439_v42 = vsub.f32 0.0, %v5775_v50  ;;  %v5904_v1 = vmul.f32 0.3275911, %v5776_v35  ;;  %v5643_v21 = vsel %vm5515_vm1, 1.0, %v10656_v51  ;;  %v5003_v16 = vld [vmem:[#allocation2 + $0x200] sm:$0xff] }
 0x5ba   : > { %v8330_v55 = vadd.f32 1.0, %v8202_v25  ;;  %v7307_v37 = vmul.f32 %v13311_v30, %v7179_v2  ;;  %v6796_v13 = vmul.f32 %v13342_v10, %v6668_v41  ;;  %v6541_v14 = vmul.f32 %v13357_v19, %v6413_v6 }
 0x5bb   : > { %8713 = vst [vmem:[#allocation12 + $0x1f8] sm:$0xff] %v8585_v8  ;;  %v13376_v11 = vmul.f32 0.5, %v13269_v46  ;;  %v6032_v59 = vadd.f32 1.0, %v5904_v1  ;;  %v13379_v57 = vmul.f32 0.70710677, %v13366_v49  ;;  %v7567_v36 = vmul.f32 %v7439_v42, %v5775_v50 }
 0x5bc   : > { %v8458_v47 = vmul.f32 %v8330_v55, %v13330_v12  ;;  %v7947_v30 = vmul.f32 %v10206_v24, %v7307_v37  ;;  %v6924_v31 = vadd.f32 -0.28449672, %v6796_v13  ;;  %v6669_v9 = vadd.f32 1.4214138, %v6541_v14  ;;  %v13382_v27 = vpop.eup %10207 }
 0x5bd   : > { %v7762_v45 = vmul.f32 1.442695, %v7566_v32  ;;  %10215 = vrcp.f32 %v6032_v59  ;;  %v5777_v5 = vand.u32 2147483647, %v13379_v57  ;;  %vm5516_vm2 = vcmp.ge.f32.partialorder %v13267_v62, 0.0  ;;  %v13404_v32 = vld [vmem:[#allocation3 + $0x1d8] sm:$0xff] }
 0x5be   : > { %v8586_v54 = vmul.f32 %v8458_v47, %v5002_v58  ;;  %v8075_v18 = vsub.f32 1.0, %v7947_v30  ;;  %v7052_v46 = vmul.f32 %v13342_v10, %v6924_v31  ;;  %v6797_v28 = vmul.f32 %v13357_v19, %v6669_v9 }
 0x5bf   : > { %v6286_v12 = vmul.f32 1.0614054, %v13382_v27  ;;  %v7440_v39 = vsub.f32 0.0, %v5776_v35  ;;  %v5905_v29 = vmul.f32 0.3275911, %v5777_v5  ;;  %vm5517_vm3 = vcmp.ge.f32.partialorder %v13281_v26, 0.0 }
 0x5c0   : > { %8714 = vst [vmem:[#allocation12 + $0x200] sm:$0xff] %v8586_v54  ;;  %v8203_v22 = vmul.f32 %v8075_v18, %v5643_v21  ;;  %v7180_v50 = vadd.f32 0.2548296, %v7052_v46  ;;  %v6925_v23 = vadd.f32 -0.28449672, %v6797_v28  ;;  %v10210_v40 = vpop.eup %10209  ;;  %10217 = vpow2.f32 %v7762_v45 }
 0x5c1   : > { %v6414_v4 = vadd.f32 -1.4531521, %v6286_v12  ;;  %v6033_v60 = vadd.f32 1.0, %v5905_v29  ;;  %v13393_v43 = vmul.f32 0.70710677, %v13387_v52  ;;  %v10212_v7 = vpop.eup %10211  ;;  %v7568_v3 = vmul.f32 %v7440_v39, %v5776_v35 }
 0x5c2   : > { %v8331_v0 = vadd.f32 1.0, %v8203_v22  ;;  %v7308_v17 = vmul.f32 %v13342_v10, %v7180_v50  ;;  %v7053_v34 = vmul.f32 %v13357_v19, %v6925_v23  ;;  %v7764_v48 = vmul.f32 1.442695, %v7567_v36  ;;  %v13432_v22 = vld [vmem:[#allocation3 + $0x250] sm:$0xff] }
 0x5c3   : > { %v6542_v33 = vmul.f32 %v13382_v27, %v6414_v4  ;;  %10219 = vrcp.f32 %v6033_v60  ;;  %v13399_v24 = vand.u32 2147483647, %v13393_v43  ;;  %v7441_v8 = vsub.f32 0.0, %v5777_v5 }
 0x5c4   : > { %v13401_v25 = vpop.eup %10213  ;;  %v8459_v2 = vmul.f32 %v8331_v0, %v13347_v44  ;;  %v7948_v41 = vmul.f32 %v10210_v40, %v7308_v17  ;;  %v7181_v6 = vadd.f32 0.2548296, %v7053_v34  ;;  %v5644_v10 = vsel %vm5516_vm2, 1.0, %v10656_v51  ;;  %v5005_v34 = vld [vmem:[#allocation2 + $0x220] sm:$0xff] }
 0x5c5   : > { %v5645_v35 = vsel %vm5517_vm3, 1.0, %v10656_v51  ;;  %v6670_v42 = vadd.f32 1.4214138, %v6542_v33  ;;  %v6287_v1 = vmul.f32 1.0614054, %v13401_v25  ;;  %10221 = vpow2.f32 %v7764_v48 }
 0x5c6   : > { %v8587_v55 = vmul.f32 %v8459_v2, %v5003_v16  ;;  %v8076_v37 = vsub.f32 1.0, %v7948_v41  ;;  %v7309_v44 = vmul.f32 %v13357_v19, %v7181_v6  ;;  %v7766_v58 = vmul.f32 1.442695, %v7568_v3 }
 0x5c7   : > { %v6798_v13 = vmul.f32 %v13382_v27, %v6670_v42  ;;  %v6415_v14 = vadd.f32 -1.4531521, %v6287_v1  ;;  %v5906_v21 = vmul.f32 0.3275911, %v13399_v24  ;;  %v7569_v47 = vmul.f32 %v7441_v8, %v5777_v5  ;;  %v5004_v5 = vld [vmem:[#allocation2 + $0x318] sm:$0xff] }
 0x5c8   : > { %8715 = vst [vmem:[#allocation12 + $0x208] sm:$0xff] %v8587_v55  ;;  %v8204_v62 = vmul.f32 %v8076_v37, %v5644_v10  ;;  %v7949_v59 = vmul.f32 %v10212_v7, %v7309_v44  ;;  %v13417_v26 = vmul.f32 0.70710677, %v13404_v32  ;;  %v13420_v30 = vmul.f32 0.5, %v13297_v53 }
 0x5c9   : > { %v6926_v31 = vadd.f32 -0.28449672, %v6798_v13  ;;  %v6543_v19 = vmul.f32 %v13401_v25, %v6415_v14  ;;  %v6034_v9 = vadd.f32 1.0, %v5906_v21  ;;  %vm5518_vm4 = vcmp.ge.f32.partialorder %v13309_v38, 0.0 }
 0x5ca   : > { %v13423_v45 = vpop.eup %10215  ;;  %v8332_v36 = vadd.f32 1.0, %v8204_v62  ;;  %v8077_v54 = vsub.f32 1.0, %v7949_v59  ;;  %v13427_v18 = vand.u32 2147483647, %v13417_v26  ;;  %v7768_v29 = vmul.f32 1.442695, %v7569_v47 }
 0x5cb   : > { %v7054_v46 = vmul.f32 %v13382_v27, %v6926_v31  ;;  %v6671_v28 = vadd.f32 1.4214138, %v6543_v19  ;;  %v6288_v53 = vmul.f32 1.0614054, %v13423_v45  ;;  %10223 = vrcp.f32 %v6034_v9 }
 0x5cc   : > { %v8460_v12 = vmul.f32 %v8332_v36, %v13352_v61  ;;  %v8205_v39 = vmul.f32 %v8077_v54, %v5645_v35  ;;  %10225 = vpow2.f32 %v7766_v58  ;;  %v5907_v4 = vmul.f32 0.3275911, %v13427_v18  ;;  %v13453_v35 = vld [vmem:[#allocation3 + $0x300] sm:$0xff] }
 0x5cd   : > { %v7182_v50 = vadd.f32 0.2548296, %v7054_v46  ;;  %v6799_v23 = vmul.f32 %v13401_v25, %v6671_v28  ;;  %v6416_v40 = vadd.f32 -1.4531521, %v6288_v53  ;;  %v10218_v60 = vpop.eup %10217  ;;  %v5646_v17 = vsel %vm5518_vm4, 1.0, %v10656_v51 }
 0x5ce   : > { %v8588_v7 = vmul.f32 %v8460_v12, %v5004_v5  ;;  %v8333_v0 = vadd.f32 1.0, %v8205_v39  ;;  %v13440_v61 = vmul.f32 0.5, %v13320_v56  ;;  %v6035_v3 = vadd.f32 1.0, %v5907_v4 }
 0x5cf   : > { %v7310_v48 = vmul.f32 %v13382_v27, %v7182_v50  ;;  %v6927_v16 = vadd.f32 -0.28449672, %v6799_v23  ;;  %v6544_v33 = vmul.f32 %v13423_v45, %v6416_v40  ;;  %10227 = vpow2.f32 %v7768_v29 }
 0x5d0   : > { %v13444_v2 = vpop.eup %10219  ;;  %8716 = vst [vmem:[#allocation12 + $0x210] sm:$0xff] %v8588_v7  ;;  %v8461_v41 = vmul.f32 %v8333_v0, %v13376_v11  ;;  %v7442_v6 = vsub.f32 0.0, %v13399_v24  ;;  %v13449_v38 = vmul.f32 0.70710677, %v13432_v22  ;;  %vm5519_vm5 = vcmp.ge.f32.partialorder %v13327_v63, 0.0 }
 0x5d1   : > { %v7950_v56 = vmul.f32 %v10218_v60, %v7310_v48  ;;  %v7055_v8 = vmul.f32 %v13401_v25, %v6927_v16  ;;  %v6672_v10 = vadd.f32 1.4214138, %v6544_v33  ;;  %v6289_v27 = vmul.f32 1.0614054, %v13444_v2 }
 0x5d2   : > { %v8589_v42 = vmul.f32 %v8461_v41, %v5005_v34  ;;  %v13457_v1 = vmul.f32 0.5, %v13340_v20  ;;  %10229 = vrcp.f32 %v6035_v3  ;;  %v10222_v11 = vpop.eup %10221  ;;  %v7570_v14 = vmul.f32 %v7442_v6, %v13399_v24  ;;  %v13490_v3 = vld [vmem:[#allocation3 + $0x90] sm:$0xff] }
 0x5d3   : > { %v8078_v55 = vsub.f32 1.0, %v7950_v56  ;;  %v7183_v37 = vadd.f32 0.2548296, %v7055_v8  ;;  %v6800_v44 = vmul.f32 %v13423_v45, %v6672_v10  ;;  %v6417_v13 = vadd.f32 -1.4531521, %v6289_v27  ;;  %v5007_v10 = vld [vmem:[#allocation2 + $0x300] sm:$0xff] }
 0x5d4   : > { %8717 = vst [vmem:[#allocation12 + $0x218] sm:$0xff] %v8589_v42  ;;  %v7443_v58 = vsub.f32 0.0, %v13427_v18  ;;  %v5780_v21 = vand.u32 2147483647, %v13449_v38  ;;  %v13464_v62 = vmul.f32 0.70710677, %v13453_v35 }
 0x5d5   : > { %v8206_v59 = vmul.f32 %v8078_v55, %v5646_v17  ;;  %v7311_v20 = vmul.f32 %v13401_v25, %v7183_v37  ;;  %v6928_v47 = vadd.f32 -0.28449672, %v6800_v44  ;;  %v6545_v31 = vmul.f32 %v13444_v2, %v6417_v13  ;;  %v5006_v25 = vld [vmem:[#allocation2 + $0x70] sm:$0xff] }
 0x5d6   : > { %v5647_v19 = vsel %vm5519_vm5, 1.0, %v10656_v51  ;;  %vm5520_vm6 = vcmp.ge.f32.partialorder %v13355_v15, 0.0  ;;  %v5908_v24 = vmul.f32 0.3275911, %v5780_v21  ;;  %v13473_v9 = vand.u32 2147483647, %v13464_v62 }
 0x5d7   : > { %v8334_v36 = vadd.f32 1.0, %v8206_v59  ;;  %v7951_v54 = vmul.f32 %v10222_v11, %v7311_v20  ;;  %v7056_v5 = vmul.f32 %v13423_v45, %v6928_v47  ;;  %v6673_v46 = vadd.f32 1.4214138, %v6545_v31 }
 0x5d8   : > { %v13476_v28 = vpop.eup %10223  ;;  %v7770_v53 = vmul.f32 1.442695, %v7570_v14  ;;  %v7571_v12 = vmul.f32 %v7443_v58, %v13427_v18  ;;  %v6036_v39 = vadd.f32 1.0, %v5908_v24  ;;  %v5909_v63 = vmul.f32 0.3275911, %v13473_v9 }
 0x5d9   : > { %v10226_v29 = vpop.eup %10225  ;;  %v8462_v50 = vmul.f32 %v8334_v36, %v13420_v30  ;;  %v8079_v23 = vsub.f32 1.0, %v7951_v54  ;;  %v7184_v40 = vadd.f32 0.2548296, %v7056_v5  ;;  %v6801_v4 = vmul.f32 %v13444_v2, %v6673_v46  ;;  %v5008_v46 = vld [vmem:[#allocation2 + $0xe0] sm:$0xff] }
 0x5da   : > { %v6290_v60 = vmul.f32 1.0614054, %v13476_v28  ;;  %10231 = vrcp.f32 %v6036_v39  ;;  %v7444_v7 = vsub.f32 0.0, %v5780_v21  ;;  %v6037_v0 = vadd.f32 1.0, %v5909_v63 }
 0x5db   : > { %v8590_v17 = vmul.f32 %v8462_v50, %v5006_v25  ;;  %v8207_v34 = vmul.f32 %v8079_v23, %v5647_v19  ;;  %v7312_v48 = vmul.f32 %v13423_v45, %v7184_v40  ;;  %v6929_v18 = vadd.f32 -0.28449672, %v6801_v4  ;;  %v13493_v45 = vld [vmem:[#allocation3 + $0x3a0] sm:$0xff] }
 0x5dc   : > { %v5648_v16 = vsel %vm5520_vm6, 1.0, %v10656_v51  ;;  %v13488_v30 = vmul.f32 0.5, %v13366_v49  ;;  %v6418_v33 = vadd.f32 -1.4531521, %v6290_v60  ;;  %10233 = vpow2.f32 %v7770_v53  ;;  %v10228_v41 = vpop.eup %10227 }
 0x5dd   : > { %8718 = vst [vmem:[#allocation12 + $0x220] sm:$0xff] %v8590_v17  ;;  %v8335_v6 = vadd.f32 1.0, %v8207_v34  ;;  %v7952_v56 = vmul.f32 %v10226_v29, %v7312_v48  ;;  %v7057_v8 = vmul.f32 %v13444_v2, %v6929_v18  ;;  %10235 = vrcp.f32 %v6037_v0 }
 0x5de   : > { %vm5521_vm7 = vcmp.ge.f32.partialorder %v13379_v57, 0.0  ;;  %v6546_v15 = vmul.f32 %v13476_v28, %v6418_v33  ;;  %v7772_v49 = vmul.f32 1.442695, %v7571_v12  ;;  %v7572_v27 = vmul.f32 %v7444_v7, %v5780_v21 }
 0x5df   : > { %v13497_v42 = vpop.eup %10229  ;;  %v8463_v11 = vmul.f32 %v8335_v6, %v13440_v61  ;;  %v8080_v55 = vsub.f32 1.0, %v7952_v56  ;;  %v7185_v37 = vadd.f32 0.2548296, %v7057_v8  ;;  %v13501_v44 = vmul.f32 0.70710677, %v13490_v3 }
 0x5e0   : > { %v6674_v13 = vadd.f32 1.4214138, %v6546_v15  ;;  %v6291_v14 = vmul.f32 1.0614054, %v13497_v42  ;;  %v13505_v58 = vmul.f32 0.70710677, %v13493_v45  ;;  %10237 = vpow2.f32 %v7772_v49 }
 0x5e1   : > { %v8591_v59 = vmul.f32 %v8463_v11, %v5007_v10  ;;  %v8208_v20 = vmul.f32 %v8080_v55, %v5648_v16  ;;  %v7313_v47 = vmul.f32 %v13444_v2, %v7185_v37  ;;  %v7445_v21 = vsub.f32 0.0, %v13473_v9  ;;  %v13533_v10 = vld [vmem:[#allocation3 + $0x328] sm:$0xff] }
 0x5e2   : > { %v5649_v61 = vsel %vm5521_vm7, 1.0, %v10656_v51  ;;  %v6802_v31 = vmul.f32 %v13476_v28, %v6674_v13  ;;  %v6419_v19 = vadd.f32 -1.4531521, %v6291_v14  ;;  %v7774_v54 = vmul.f32 1.442695, %v7572_v27 }
 0x5e3   : > { %8719 = vst [vmem:[#allocation12 + $0x228] sm:$0xff] %v8591_v59  ;;  %v8336_v24 = vadd.f32 1.0, %v8208_v20  ;;  %v7953_v36 = vmul.f32 %v10228_v41, %v7313_v47  ;;  %v5782_v5 = vand.u32 2147483647, %v13501_v44  ;;  %v13515_v25 = vmul.f32 0.5, %v13387_v52  ;;  %v5009_v41 = vld [vmem:[#allocation2 + $0x178] sm:$0xff] }
 0x5e4   : > { %v6930_v2 = vadd.f32 -0.28449672, %v6802_v31  ;;  %v6547_v53 = vmul.f32 %v13497_v42, %v6419_v19  ;;  %v5783_v57 = vand.u32 2147483647, %v13505_v58  ;;  %v7573_v63 = vmul.f32 %v7445_v21, %v13473_v9 }
 0x5e5   : > { %v8464_v12 = vmul.f32 %v8336_v24, %v13457_v1  ;;  %v8081_v39 = vsub.f32 1.0, %v7953_v36  ;;  %v5910_v29 = vmul.f32 0.3275911, %v5782_v5  ;;  %vm5522_vm8 = vcmp.ge.f32.partialorder %v13393_v43, 0.0 }
 0x5e6   : > { %v7058_v50 = vmul.f32 %v13476_v28, %v6930_v2  ;;  %v6675_v23 = vadd.f32 1.4214138, %v6547_v53  ;;  %v5911_v40 = vmul.f32 0.3275911, %v5783_v57  ;;  %10239 = vpow2.f32 %v7774_v54 }
 0x5e7   : > { %v13523_v4 = vpop.eup %10231  ;;  %v8592_v52 = vmul.f32 %v8464_v12, %v5008_v46  ;;  %v8209_v60 = vmul.f32 %v8081_v39, %v5649_v61  ;;  %v6038_v7 = vadd.f32 1.0, %v5910_v29  ;;  %v5650_v18 = vsel %vm5522_vm8, 1.0, %v10656_v51 }
 0x5e8   : > { %v7186_v0 = vadd.f32 0.2548296, %v7058_v50  ;;  %v6803_v17 = vmul.f32 %v13497_v42, %v6675_v23  ;;  %v6292_v1 = vmul.f32 1.0614054, %v13523_v4  ;;  %v6039_v34 = vadd.f32 1.0, %v5911_v40  ;;  %v5010_v50 = vld [vmem:[#allocation2 + $0x328] sm:$0xff] }
 0x5e9   : > { %v10234_v9 = vpop.eup %10233  ;;  %8720 = vst [vmem:[#allocation12 + $0x230] sm:$0xff] %v8592_v52  ;;  %v8337_v48 = vadd.f32 1.0, %v8209_v60  ;;  %v7776_v16 = vmul.f32 1.442695, %v7573_v63  ;;  %10241 = vrcp.f32 %v6038_v7  ;;  %v13537_v49 = vmul.f32 0.5, %v13404_v32 }
 0x5ea   : > { %v13530_v33 = vpop.eup %10235  ;;  %v7314_v6 = vmul.f32 %v13476_v28, %v7186_v0  ;;  %v6931_v56 = vadd.f32 -0.28449672, %v6803_v17  ;;  %v6420_v8 = vadd.f32 -1.4531521, %v6292_v1  ;;  %10243 = vrcp.f32 %v6039_v34  ;;  %v13542_v28 = vld [vmem:[#allocation3 + $0x128] sm:$0xff] }
 0x5eb   : > { %v8465_v15 = vmul.f32 %v8337_v48, %v13488_v30  ;;  %v6293_v43 = vmul.f32 1.0614054, %v13530_v33  ;;  %v7446_v27 = vsub.f32 0.0, %v5782_v5  ;;  %v7447_v13 = vsub.f32 0.0, %v5783_v57 }
 0x5ec   : > { %v7954_v11 = vmul.f32 %v10234_v9, %v7314_v6  ;;  %v7059_v55 = vmul.f32 %v13497_v42, %v6931_v56  ;;  %v6548_v37 = vmul.f32 %v13523_v4, %v6420_v8  ;;  %10245 = vpow2.f32 %v7776_v16 }
 0x5ed   : > { %v8593_v14 = vmul.f32 %v8465_v15, %v5009_v41  ;;  %v6421_v59 = vadd.f32 -1.4531521, %v6293_v43  ;;  %v13545_v20 = vmul.f32 0.70710677, %v13533_v10  ;;  %vm5523_vm9 = vcmp.ge.f32.partialorder %v13417_v26, 0.0  ;;  %v10238_v21 = vpop.eup %10237  ;;  %v13567_v41 = vld [vmem:[#allocation3 + $0x108] sm:$0xff] }
 0x5ee   : > { %v8082_v30 = vsub.f32 1.0, %v7954_v11  ;;  %v7187_v32 = vadd.f32 0.2548296, %v7059_v55  ;;  %v6676_v47 = vadd.f32 1.4214138, %v6548_v37  ;;  %v7574_v31 = vmul.f32 %v7446_v27, %v5782_v5  ;;  %v5011_v15 = vld [vmem:[#allocation2 + $0x260] sm:$0xff] }
 0x5ef   : > { %8721 = vst [vmem:[#allocation12 + $0x238] sm:$0xff] %v8593_v14  ;;  %v6549_v61 = vmul.f32 %v13530_v33, %v6421_v59  ;;  %v5784_v19 = vand.u32 2147483647, %v13545_v20  ;;  %v13551_v24 = vmul.f32 0.70710677, %v13542_v28  ;;  %v7575_v2 = vmul.f32 %v7447_v13, %v5783_v57 }
 0x5f0   : > { %v8210_v36 = vmul.f32 %v8082_v30, %v5650_v18  ;;  %v7315_v54 = vmul.f32 %v13497_v42, %v7187_v32  ;;  %v6804_v46 = vmul.f32 %v13523_v4, %v6676_v47  ;;  %v5651_v26 = vsel %vm5523_vm9, 1.0, %v10656_v51 }
 0x5f1   : > { %v13557_v53 = vmul.f32 0.5, %v13432_v22  ;;  %v6677_v12 = vadd.f32 1.4214138, %v6549_v61  ;;  %v5912_v39 = vmul.f32 0.3275911, %v5784_v19  ;;  %vm5524_vm10 = vcmp.ge.f32.partialorder %v13449_v38, 0.0 }
 0x5f2   : > { %v8338_v63 = vadd.f32 1.0, %v8210_v36  ;;  %v7955_v5 = vmul.f32 %v10238_v21, %v7315_v54  ;;  %v6932_v29 = vadd.f32 -0.28449672, %v6804_v46  ;;  %v7778_v40 = vmul.f32 1.442695, %v7574_v31 }
 0x5f3   : > { %v6805_v23 = vmul.f32 %v13530_v33, %v6677_v12  ;;  %v6040_v42 = vadd.f32 1.0, %v5912_v39  ;;  %v5785_v52 = vand.u32 2147483647, %v13551_v24  ;;  %v10240_v57 = vpop.eup %10239  ;;  %v7780_v0 = vmul.f32 1.442695, %v7575_v2  ;;  %v13584_v2 = vld [vmem:[#allocation3 + $0x380] sm:$0xff] }
 0x5f4   : > { %v8466_v60 = vmul.f32 %v8338_v63, %v13515_v25  ;;  %v8083_v7 = vsub.f32 1.0, %v7955_v5  ;;  %v7060_v22 = vmul.f32 %v13523_v4, %v6932_v29  ;;  %v5652_v17 = vsel %vm5524_vm10, 1.0, %v10656_v51 }
 0x5f5   : > { %v6933_v1 = vadd.f32 -0.28449672, %v6805_v23  ;;  %10247 = vrcp.f32 %v6040_v42  ;;  %v5913_v38 = vmul.f32 0.3275911, %v5785_v52  ;;  %v7448_v16 = vsub.f32 0.0, %v5784_v19 }
 0x5f6   : > { %v13565_v34 = vpop.eup %10241  ;;  %v8594_v9 = vmul.f32 %v8466_v60, %v5010_v50  ;;  %v8211_v48 = vmul.f32 %v8083_v7, %v5651_v26  ;;  %v7188_v18 = vadd.f32 0.2548296, %v7060_v22  ;;  %10249 = vpow2.f32 %v7778_v40  ;;  %v5012_v60 = vld [vmem:[#allocation2 + $0x3b8] sm:$0xff] }
 0x5f7   : > { %v13569_v6 = vpop.eup %10243  ;;  %v7061_v25 = vmul.f32 %v13530_v33, %v6933_v1  ;;  %v6294_v56 = vmul.f32 1.0614054, %v13565_v34  ;;  %v6041_v8 = vadd.f32 1.0, %v5913_v38  ;;  %10251 = vpow2.f32 %v7780_v0  ;;  %v13597_v0 = vld [vmem:[#allocation3 + $0x138] sm:$0xff] }
 0x5f8   : > { %8722 = vst [vmem:[#allocation12 + $0x240] sm:$0xff] %v8594_v9  ;;  %v8339_v43 = vadd.f32 1.0, %v8211_v48  ;;  %v7316_v27 = vmul.f32 %v13523_v4, %v7188_v18  ;;  %v6295_v11 = vmul.f32 1.0614054, %v13569_v6  ;;  %v13576_v13 = vmul.f32 0.70710677, %v13567_v41 }
 0x5f9   : > { %v7189_v55 = vadd.f32 0.2548296, %v7061_v25  ;;  %v6422_v37 = vadd.f32 -1.4531521, %v6294_v56  ;;  %10253 = vrcp.f32 %v6041_v8  ;;  %v10246_v14 = vpop.eup %10245  ;;  %v7576_v47 = vmul.f32 %v7448_v16, %v5784_v19  ;;  %v5013_v56 = vld [vmem:[#allocation2 + $0x2b8] sm:$0xff] }
 0x5fa   : > { %v8467_v59 = vmul.f32 %v8339_v43, %v13537_v49  ;;  %v7956_v30 = vmul.f32 %v10240_v57, %v7316_v27  ;;  %v6423_v32 = vadd.f32 -1.4531521, %v6295_v11  ;;  %vm5525_vm11 = vcmp.ge.f32.partialorder %v13464_v62, 0.0 }
 0x5fb   : > { %v7317_v21 = vmul.f32 %v13530_v33, %v7189_v55  ;;  %v6550_v4 = vmul.f32 %v13565_v34, %v6422_v37  ;;  %v5786_v61 = vand.u32 2147483647, %v13576_v13  ;;  %v7449_v46 = vsub.f32 0.0, %v5785_v52 }
 0x5fc   : > { %v8595_v31 = vmul.f32 %v8467_v59, %v5011_v15  ;;  %v8084_v36 = vsub.f32 1.0, %v7956_v30  ;;  %v6551_v54 = vmul.f32 %v13569_v6, %v6423_v32  ;;  %v5269_v49 = vmul.f32 0.5, %v13453_v35 }
 0x5fd   : > { %v7957_v26 = vmul.f32 %v10246_v14, %v7317_v21  ;;  %v6678_v12 = vadd.f32 1.4214138, %v6550_v4  ;;  %v5914_v19 = vmul.f32 0.3275911, %v5786_v61  ;;  %v5653_v33 = vsel %vm5525_vm11, 1.0, %v10656_v51 }
 0x5fe   : > { %8723 = vst [vmem:[#allocation12 + $0x248] sm:$0xff] %v8595_v31  ;;  %v8212_v62 = vmul.f32 %v8084_v36, %v5652_v17  ;;  %v6679_v39 = vadd.f32 1.4214138, %v6551_v54  ;;  %v7782_v63 = vmul.f32 1.442695, %v7576_v47  ;;  %v13593_v42 = vmul.f32 0.5, %v13490_v3 }
 0x5ff   : > { %v8085_v5 = vsub.f32 1.0, %v7957_v26  ;;  %v6806_v29 = vmul.f32 %v13565_v34, %v6678_v12  ;;  %v6042_v50 = vadd.f32 1.0, %v5914_v19  ;;  %v13590_v23 = vmul.f32 0.70710677, %v13584_v2 }
 0x600   : > { %v8340_v40 = vadd.f32 1.0, %v8212_v62  ;;  %v6807_v35 = vmul.f32 %v13569_v6, %v6679_v39  ;;  %v7577_v57 = vmul.f32 %v7449_v46, %v5785_v52  ;;  %vm5526_vm12 = vcmp.ge.f32.partialorder %v13501_v44, 0.0 }
 0x601   : > { %v8213_v7 = vmul.f32 %v8085_v5, %v5653_v33  ;;  %v6934_v22 = vadd.f32 -0.28449672, %v6806_v29  ;;  %10255 = vrcp.f32 %v6042_v50  ;;  %v7450_v9 = vsub.f32 0.0, %v5786_v61 }
 0x602   : > { %v13599_v17 = vpop.eup %10247  ;;  %v8468_v1 = vmul.f32 %v8340_v40, %v13557_v53  ;;  %v6935_v38 = vadd.f32 -0.28449672, %v6807_v35  ;;  %10257 = vpow2.f32 %v7782_v63  ;;  %v5787_v18 = vand.u32 2147483647, %v13590_v23  ;;  %v13625_v63 = vld [vmem:[#allocation3 + $0x1f8] sm:$0xff] }
 0x603   : > { %v8341_v3 = vadd.f32 1.0, %v8213_v7  ;;  %v7062_v48 = vmul.f32 %v13565_v34, %v6934_v22  ;;  %v6296_v52 = vmul.f32 1.0614054, %v13599_v17  ;;  %v10250_v16 = vpop.eup %10249  ;;  %v7784_v15 = vmul.f32 1.442695, %v7577_v57 }
 0x604   : > { %v8596_v25 = vmul.f32 %v8468_v1, %v5012_v60  ;;  %v7063_v8 = vmul.f32 %v13569_v6, %v6935_v38  ;;  %v13607_v43 = vmul.f32 0.70710677, %v13597_v0  ;;  %v10252_v53 = vpop.eup %10251  ;;  %v5915_v37 = vmul.f32 0.3275911, %v5787_v18 }
 0x605   : > { %v8469_v27 = vmul.f32 %v8341_v3, %v5269_v49  ;;  %v7190_v11 = vadd.f32 0.2548296, %v7062_v48  ;;  %v6424_v55 = vadd.f32 -1.4531521, %v6296_v52  ;;  %vm5527_vm13 = vcmp.ge.f32.partialorder %v13505_v58, 0.0  ;;  %v5014_v52 = vld [vmem:[#allocation2 + $0x248] sm:$0xff] }
 0x606   : > { %v13609_v14 = vpop.eup %10253  ;;  %8724 = vst [vmem:[#allocation12 + $0x250] sm:$0xff] %v8596_v25  ;;  %v7191_v59 = vadd.f32 0.2548296, %v7063_v8  ;;  %v7578_v30 = vmul.f32 %v7450_v9, %v5786_v61  ;;  %v5788_v32 = vand.u32 2147483647, %v13607_v43  ;;  %v5654_v36 = vsel %vm5526_vm12, 1.0, %v10656_v51 }
 0x607   : > { %v8597_v47 = vmul.f32 %v8469_v27, %v5013_v56  ;;  %v7318_v21 = vmul.f32 %v13565_v34, %v7190_v11  ;;  %v6552_v4 = vmul.f32 %v13599_v17, %v6424_v55  ;;  %v6297_v31 = vmul.f32 1.0614054, %v13609_v14 }
 0x608   : > { %v7319_v54 = vmul.f32 %v13569_v6, %v7191_v59  ;;  %10259 = vpow2.f32 %v7784_v15  ;;  %v6043_v46 = vadd.f32 1.0, %v5915_v37  ;;  %v5916_v12 = vmul.f32 0.3275911, %v5788_v32  ;;  %v13642_v15 = vld [vmem:[#allocation3 + $0x278] sm:$0xff] }
 0x609   : > { %8725 = vst [vmem:[#allocation12 + $0x258] sm:$0xff] %v8597_v47  ;;  %v7958_v49 = vmul.f32 %v10250_v16, %v7318_v21  ;;  %v6680_v61 = vadd.f32 1.4214138, %v6552_v4  ;;  %v6425_v26 = vadd.f32 -1.4531521, %v6297_v31  ;;  %v5655_v34 = vsel %vm5527_vm13, 1.0, %v10656_v51 }
 0x60a   : > { %v7959_v19 = vmul.f32 %v10252_v53, %v7319_v54  ;;  %v7786_v62 = vmul.f32 1.442695, %v7578_v30  ;;  %10261 = vrcp.f32 %v6043_v46  ;;  %v6044_v6 = vadd.f32 1.0, %v5916_v12  ;;  %v5015_v16 = vld [vmem:[#allocation2 + $0x40] sm:$0xff] }
 0x60b   : > { %v8086_v33 = vsub.f32 1.0, %v7958_v49  ;;  %v6808_v44 = vmul.f32 %v13599_v17, %v6680_v61  ;;  %v6553_v39 = vmul.f32 %v13609_v14, %v6425_v26  ;;  %v5271_v5 = vmul.f32 0.5, %v13493_v45 }
 0x60c   : > { %v8087_v29 = vsub.f32 1.0, %v7959_v19  ;;  %v7451_v50 = vsub.f32 0.0, %v5787_v18  ;;  %v7452_v40 = vsub.f32 0.0, %v5788_v32  ;;  %10263 = vrcp.f32 %v6044_v6 }
 0x60d   : > { %v8214_v35 = vmul.f32 %v8086_v33, %v5654_v36  ;;  %v6936_v57 = vadd.f32 -0.28449672, %v6808_v44  ;;  %v6681_v58 = vadd.f32 1.4214138, %v6553_v39  ;;  %v13631_v22 = vmul.f32 0.5, %v13533_v10  ;;  %v13666_v39 = vld [vmem:[#allocation3 + $0x200] sm:$0xff] }
 0x60e   : > { %v13628_v60 = vpop.eup %10255  ;;  %v8215_v7 = vmul.f32 %v8087_v29, %v5655_v34  ;;  %10265 = vpow2.f32 %v7786_v62  ;;  %v13634_v1 = vmul.f32 0.70710677, %v13625_v63  ;;  %v7579_v56 = vmul.f32 %v7451_v50, %v5787_v18 }
 0x60f   : > { %v10258_v38 = vpop.eup %10257  ;;  %v8342_v9 = vadd.f32 1.0, %v8214_v35  ;;  %v7064_v45 = vmul.f32 %v13599_v17, %v6936_v57  ;;  %v6809_v3 = vmul.f32 %v13609_v14, %v6681_v58  ;;  %v6298_v48 = vmul.f32 1.0614054, %v13628_v60 }
 0x610   : > { %v8343_v25 = vadd.f32 1.0, %v8215_v7  ;;  %v7580_v8 = vmul.f32 %v7452_v40, %v5788_v32  ;;  %v13640_v10 = vand.u32 2147483647, %v13634_v1  ;;  %vm5528_vm14 = vcmp.ge.f32.partialorder %v13545_v20, 0.0 }
 0x611   : > { %v8470_v53 = vmul.f32 %v8342_v9, %v13593_v42  ;;  %v7192_v27 = vadd.f32 0.2548296, %v7064_v45  ;;  %v6937_v11 = vadd.f32 -0.28449672, %v6809_v3  ;;  %v6426_v55 = vadd.f32 -1.4531521, %v6298_v48 }
 0x612   : > { %v8471_v37 = vmul.f32 %v8343_v25, %v5271_v5  ;;  %vm5529_vm15 = vcmp.ge.f32.partialorder %v13551_v24, 0.0  ;;  %v5917_v59 = vmul.f32 0.3275911, %v13640_v10  ;;  %v7788_v4 = vmul.f32 1.442695, %v7579_v56  ;;  %v5016_v45 = vld [vmem:[#allocation2 + $0x20] sm:$0xff] }
 0x613   : > { %v8598_v30 = vmul.f32 %v8470_v53, %v5014_v52  ;;  %v7320_v18 = vmul.f32 %v13599_v17, %v7192_v27  ;;  %v7065_v32 = vmul.f32 %v13609_v14, %v6937_v11  ;;  %v6554_v47 = vmul.f32 %v13628_v60, %v6426_v55 }
 0x614   : > { %v8599_v21 = vmul.f32 %v8471_v37, %v5015_v16  ;;  %v6045_v42 = vadd.f32 1.0, %v5917_v59  ;;  %v13652_v31 = vmul.f32 0.70710677, %v13642_v15  ;;  %v7790_v61 = vmul.f32 1.442695, %v7580_v8  ;;  %v13686_v37 = vld [vmem:[#allocation3 + $0x150] sm:$0xff] }
 0x615   : > { %v10260_v36 = vpop.eup %10259  ;;  %8726 = vst [vmem:[#allocation12 + $0x260] sm:$0xff] %v8598_v30  ;;  %v7960_v54 = vmul.f32 %v10258_v38, %v7320_v18  ;;  %v7193_v46 = vadd.f32 0.2548296, %v7065_v32  ;;  %v6682_v49 = vadd.f32 1.4214138, %v6554_v47  ;;  %v5656_v17 = vsel %vm5528_vm14, 1.0, %v10656_v51 }
 0x616   : > { %8727 = vst [vmem:[#allocation12 + $0x268] sm:$0xff] %v8599_v21  ;;  %v5273_v26 = vmul.f32 0.5, %v13542_v28  ;;  %10267 = vrcp.f32 %v6045_v42  ;;  %v5790_v12 = vand.u32 2147483647, %v13652_v31  ;;  %v5657_v62 = vsel %vm5529_vm15, 1.0, %v10656_v51  ;;  %v5017_v18 = vld [vmem:[#allocation2 + $0xe8] sm:$0xff] }
 0x617   : > { %v13659_v34 = vpop.eup %10261  ;;  %v8088_v19 = vsub.f32 1.0, %v7960_v54  ;;  %v7321_v33 = vmul.f32 %v13609_v14, %v7193_v46  ;;  %v6810_v44 = vmul.f32 %v13628_v60, %v6682_v49  ;;  %vm5530_vm0 = vcmp.ge.f32.partialorder %v13576_v13, 0.0 }
 0x618   : > { %v6299_v28 = vmul.f32 1.0614054, %v13659_v34  ;;  %10269 = vpow2.f32 %v7788_v4  ;;  %v5918_v20 = vmul.f32 0.3275911, %v5790_v12  ;;  %v7453_v40 = vsub.f32 0.0, %v13640_v10 }
 0x619   : > { %v8216_v6 = vmul.f32 %v8088_v19, %v5656_v17  ;;  %v7961_v5 = vmul.f32 %v10260_v36, %v7321_v33  ;;  %v6938_v29 = vadd.f32 -0.28449672, %v6810_v44  ;;  %10271 = vpow2.f32 %v7790_v61  ;;  %v13670_v50 = vpop.eup %10263  ;;  %v13700_v61 = vld [vmem:[#allocation3 + $0x1c8] sm:$0xff] }
 0x61a   : > { %v6427_v24 = vadd.f32 -1.4531521, %v6299_v28  ;;  %v6046_v14 = vadd.f32 1.0, %v5918_v20  ;;  %v13674_v35 = vmul.f32 0.70710677, %v13666_v39  ;;  %v5274_v3 = vmul.f32 0.5, %v13567_v41 }
 0x61b   : > { %v10266_v57 = vpop.eup %10265  ;;  %v8344_v58 = vadd.f32 1.0, %v8216_v6  ;;  %v8089_v7 = vsub.f32 1.0, %v7961_v5  ;;  %v7066_v38 = vmul.f32 %v13628_v60, %v6938_v29  ;;  %v6300_v9 = vmul.f32 1.0614054, %v13670_v50 }
 0x61c   : > { %v5658_v48 = vsel %vm5530_vm0, 1.0, %v10656_v51  ;;  %v6555_v52 = vmul.f32 %v13659_v34, %v6427_v24  ;;  %10273 = vrcp.f32 %v6046_v14  ;;  %v7581_v27 = vmul.f32 %v7453_v40, %v13640_v10 }
 0x61d   : > { %v8472_v16 = vmul.f32 %v8344_v58, %v13631_v22  ;;  %v8217_v25 = vmul.f32 %v8089_v7, %v5657_v62  ;;  %v7194_v56 = vadd.f32 0.2548296, %v7066_v38  ;;  %v6428_v8 = vadd.f32 -1.4531521, %v6300_v9  ;;  %v5018_v38 = vld [vmem:[#allocation2 + $0x288] sm:$0xff] }
 0x61e   : > { %v6683_v53 = vadd.f32 1.4214138, %v6555_v52  ;;  %v7454_v11 = vsub.f32 0.0, %v5790_v12  ;;  %v5791_v55 = vand.u32 2147483647, %v13674_v35  ;;  %v13691_v22 = vmul.f32 0.5, %v13584_v2 }
 0x61f   : > { %v8600_v41 = vmul.f32 %v8472_v16, %v5016_v45  ;;  %v8345_v59 = vadd.f32 1.0, %v8217_v25  ;;  %v7322_v13 = vmul.f32 %v13628_v60, %v7194_v56  ;;  %v6556_v30 = vmul.f32 %v13670_v50, %v6428_v8 }
 0x620   : > { %v6811_v32 = vmul.f32 %v13659_v34, %v6683_v53  ;;  %v13695_v47 = vmul.f32 0.5, %v13597_v0  ;;  %v5919_v10 = vmul.f32 0.3275911, %v5791_v55  ;;  %v13698_v36 = vmul.f32 0.70710677, %v13686_v37 }
 0x621   : > { %8728 = vst [vmem:[#allocation12 + $0x270] sm:$0xff] %v8600_v41  ;;  %v8473_v21 = vmul.f32 %v8345_v59, %v5273_v26  ;;  %v7962_v4 = vmul.f32 %v10266_v57, %v7322_v13  ;;  %v6684_v42 = vadd.f32 1.4214138, %v6556_v30  ;;  %v7792_v54 = vmul.f32 1.442695, %v7581_v27 }
 0x622   : > { %v6939_v60 = vadd.f32 -0.28449672, %v6811_v32  ;;  %v7582_v46 = vmul.f32 %v7454_v11, %v5790_v12  ;;  %v6047_v49 = vadd.f32 1.0, %v5919_v10  ;;  %vm5531_vm1 = vcmp.ge.f32.partialorder %v13590_v23, 0.0  ;;  %v13726_v11 = vld [vmem:[#allocation3 + $0x38] sm:$0xff] }
 0x623   : > { %v13702_v2 = vpop.eup %10267  ;;  %v8601_v17 = vmul.f32 %v8473_v21, %v5017_v18  ;;  %v8090_v19 = vsub.f32 1.0, %v7962_v4  ;;  %v6812_v0 = vmul.f32 %v13670_v50, %v6684_v42  ;;  %v7455_v33 = vsub.f32 0.0, %v5791_v55 }
 0x624   : > { %v7067_v26 = vmul.f32 %v13659_v34, %v6939_v60  ;;  %v6301_v62 = vmul.f32 1.0614054, %v13702_v2  ;;  %10275 = vrcp.f32 %v6047_v49  ;;  %v13709_v20 = vand.u32 2147483647, %v13698_v36 }
 0x625   : > { %v10270_v44 = vpop.eup %10269  ;;  %8729 = vst [vmem:[#allocation12 + $0x278] sm:$0xff] %v8601_v17  ;;  %v8218_v12 = vmul.f32 %v8090_v19, %v5658_v48  ;;  %v6940_v28 = vadd.f32 -0.28449672, %v6812_v0  ;;  %v13712_v6 = vmul.f32 0.70710677, %v13700_v61  ;;  %10277 = vpow2.f32 %v7792_v54 }
 0x626   : > { %v10272_v5 = vpop.eup %10271  ;;  %v7195_v29 = vadd.f32 0.2548296, %v7067_v26  ;;  %v6429_v24 = vadd.f32 -1.4531521, %v6301_v62  ;;  %v7794_v40 = vmul.f32 1.442695, %v7582_v46  ;;  %v7583_v56 = vmul.f32 %v7455_v33, %v5791_v55 }
 0x627   : > { %v8346_v14 = vadd.f32 1.0, %v8218_v12  ;;  %v5659_v57 = vsel %vm5531_vm1, 1.0, %v10656_v51  ;;  %v7068_v58 = vmul.f32 %v13670_v50, %v6940_v28  ;;  %v5920_v7 = vmul.f32 0.3275911, %v13709_v20  ;;  %v5019_v26 = vld [vmem:[#allocation2 + $0x3a8] sm:$0xff] }
 0x628   : > { %v7323_v9 = vmul.f32 %v13659_v34, %v7195_v29  ;;  %vm5532_vm2 = vcmp.ge.f32.partialorder %v13607_v43, 0.0  ;;  %v6557_v45 = vmul.f32 %v13702_v2, %v6429_v24  ;;  %v5793_v48 = vand.u32 2147483647, %v13712_v6 }
 0x629   : > { %v13723_v52 = vpop.eup %10273  ;;  %v8474_v16 = vmul.f32 %v8346_v14, %v5274_v3  ;;  %v7196_v25 = vadd.f32 0.2548296, %v7068_v58  ;;  %v6048_v23 = vadd.f32 1.0, %v5920_v7  ;;  %10279 = vpow2.f32 %v7794_v40  ;;  %v13751_v58 = vld [vmem:[#allocation3 + $0x350] sm:$0xff] }
 0x62a   : > { %v7963_v8 = vmul.f32 %v10270_v44, %v7323_v9  ;;  %v6685_v53 = vadd.f32 1.4214138, %v6557_v45  ;;  %v6302_v27 = vmul.f32 1.0614054, %v13723_v52  ;;  %v5660_v43 = vsel %vm5532_vm2, 1.0, %v10656_v51 }
 0x62b   : > { %v8602_v34 = vmul.f32 %v8474_v16, %v5018_v38  ;;  %v7324_v41 = vmul.f32 %v13670_v50, %v7196_v25  ;;  %10281 = vrcp.f32 %v6048_v23  ;;  %v5921_v30 = vmul.f32 0.3275911, %v5793_v48  ;;  %v5020_v38 = vld [vmem:[#allocation2 + $0x3c8] sm:$0xff] }
 0x62c   : > { %v8091_v59 = vsub.f32 1.0, %v7963_v8  ;;  %v6813_v13 = vmul.f32 %v13702_v2, %v6685_v53  ;;  %v6430_v3 = vadd.f32 -1.4531521, %v6302_v27  ;;  %v13732_v18 = vmul.f32 0.5, %v13625_v63 }
 0x62d   : > { %8730 = vst [vmem:[#allocation12 + $0x280] sm:$0xff] %v8602_v34  ;;  %v7964_v55 = vmul.f32 %v10272_v5, %v7324_v41  ;;  %v7796_v32 = vmul.f32 1.442695, %v7583_v56  ;;  %v13735_v10 = vmul.f32 0.70710677, %v13726_v11  ;;  %v6049_v50 = vadd.f32 1.0, %v5921_v30 }
 0x62e   : > { %v8219_v21 = vmul.f32 %v8091_v59, %v5659_v57  ;;  %v6941_v4 = vadd.f32 -0.28449672, %v6813_v13  ;;  %v6558_v42 = vmul.f32 %v13723_v52, %v6430_v3  ;;  %v7456_v54 = vsub.f32 0.0, %v13709_v20 }
 0x62f   : > { %v8092_v60 = vsub.f32 1.0, %v7964_v55  ;;  %v7457_v46 = vsub.f32 0.0, %v5793_v48  ;;  %v13740_v49 = vand.u32 2147483647, %v13735_v10  ;;  %10283 = vrcp.f32 %v6049_v50 }
 0x630   : > { %v8347_v17 = vadd.f32 1.0, %v8219_v21  ;;  %v7069_v63 = vmul.f32 %v13702_v2, %v6941_v4  ;;  %v6686_v19 = vadd.f32 1.4214138, %v6558_v42  ;;  %vm5533_vm3 = vcmp.ge.f32.partialorder %v13634_v1, 0.0 }
 0x631   : > { %v13743_v0 = vpop.eup %10275  ;;  %v8220_v62 = vmul.f32 %v8092_v60, %v5660_v43  ;;  %10285 = vpow2.f32 %v7796_v32  ;;  %v5922_v33 = vmul.f32 0.3275911, %v13740_v49  ;;  %v7584_v40 = vmul.f32 %v7456_v54, %v13709_v20 }
 0x632   : > { %v8475_v44 = vmul.f32 %v8347_v17, %v13691_v22  ;;  %v7197_v12 = vadd.f32 0.2548296, %v7069_v63  ;;  %v6814_v28 = vmul.f32 %v13723_v52, %v6686_v19  ;;  %v6303_v5 = vmul.f32 1.0614054, %v13743_v0  ;;  %v10278_v29 = vpop.eup %10277  ;;  %v13754_v22 = vld [vmem:[#allocation3 + $0x20] sm:$0xff] }
 0x633   : > { %v8348_v24 = vadd.f32 1.0, %v8220_v62  ;;  %v7585_v14 = vmul.f32 %v7457_v46, %v5793_v48  ;;  %v6050_v57 = vadd.f32 1.0, %v5922_v33  ;;  %v5661_v56 = vsel %vm5533_vm3, 1.0, %v10656_v51  ;;  %v5021_v19 = vld [vmem:[#allocation2 + $0x160] sm:$0xff] }
 0x634   : > { %v8603_v7 = vmul.f32 %v8475_v44, %v5019_v26  ;;  %v7325_v9 = vmul.f32 %v13702_v2, %v7197_v12  ;;  %v6942_v45 = vadd.f32 -0.28449672, %v6814_v28  ;;  %v6431_v16 = vadd.f32 -1.4531521, %v6303_v5 }
 0x635   : > { %v8476_v25 = vmul.f32 %v8348_v24, %v13695_v47  ;;  %vm5534_vm4 = vcmp.ge.f32.partialorder %v13652_v31, 0.0  ;;  %10287 = vrcp.f32 %v6050_v57  ;;  %v13764_v2 = vmul.f32 0.70710677, %v13751_v58 }
 0x636   : > { %8731 = vst [vmem:[#allocation12 + $0x288] sm:$0xff] %v8603_v7  ;;  %v7965_v20 = vmul.f32 %v10278_v29, %v7325_v9  ;;  %v7070_v48 = vmul.f32 %v13723_v52, %v6942_v45  ;;  %v6559_v23 = vmul.f32 %v13743_v0, %v6431_v16  ;;  %v10280_v8 = vpop.eup %10279  ;;  %v7798_v27 = vmul.f32 1.442695, %v7584_v40  ;;  %v13798_v40 = vld [vmem:[#allocation3 + $0xa8] sm:$0xff] }
 0x637   : > { %v8604_v53 = vmul.f32 %v8476_v25, %v5020_v38  ;;  %v7800_v47 = vmul.f32 1.442695, %v7585_v14  ;;  %v13767_v34 = vmul.f32 0.70710677, %v13754_v22  ;;  %v5278_v41 = vmul.f32 0.5, %v13642_v15 }
 0x638   : > { %v13769_v1 = vpop.eup %10281  ;;  %v8093_v43 = vsub.f32 1.0, %v7965_v20  ;;  %v7198_v59 = vadd.f32 0.2548296, %v7070_v48  ;;  %v6687_v13 = vadd.f32 1.4214138, %v6559_v23  ;;  %v13773_v3 = vmul.f32 0.5, %v13666_v39 }
 0x639   : > { %8732 = vst [vmem:[#allocation12 + $0x290] sm:$0xff] %v8604_v53  ;;  %v6304_v30 = vmul.f32 1.0614054, %v13769_v1  ;;  %v7458_v55 = vsub.f32 0.0, %v13740_v49  ;;  %v13778_v32 = vand.u32 2147483647, %v13764_v2  ;;  %10289 = vpow2.f32 %v7798_v27 }
 0x63a   : > { %v8221_v21 = vmul.f32 %v8093_v43, %v5661_v56  ;;  %v5662_v4 = vsel %vm5534_vm4, 1.0, %v10656_v51  ;;  %v7326_v15 = vmul.f32 %v13723_v52, %v7198_v59  ;;  %v6815_v42 = vmul.f32 %v13743_v0, %v6687_v13  ;;  %v5022_v48 = vld [vmem:[#allocation2 + $0x2c8] sm:$0xff] }
 0x63b   : > { %vm5535_vm5 = vcmp.ge.f32.partialorder %v13674_v35, 0.0  ;;  %v6432_v39 = vadd.f32 -1.4531521, %v6304_v30  ;;  %v5923_v50 = vmul.f32 0.3275911, %v13778_v32  ;;  %10291 = vpow2.f32 %v7800_v47 }
 0x63c   : > { %v8349_v60 = vadd.f32 1.0, %v8221_v21  ;;  %v7966_v54 = vmul.f32 %v10280_v8, %v7326_v15  ;;  %v6943_v46 = vadd.f32 -0.28449672, %v6815_v42  ;;  %v5796_v17 = vand.u32 2147483647, %v13767_v34  ;;  %v13788_v63 = vpop.eup %10283 }
 0x63d   : > { %v6560_v31 = vmul.f32 %v13769_v1, %v6432_v39  ;;  %v7586_v52 = vmul.f32 %v7458_v55, %v13740_v49  ;;  %v6051_v26 = vadd.f32 1.0, %v5923_v50  ;;  %v6305_v28 = vmul.f32 1.0614054, %v13788_v63 }
 0x63e   : > { %v10286_v62 = vpop.eup %10285  ;;  %v8477_v33 = vmul.f32 %v8349_v60, %v13732_v18  ;;  %v8094_v44 = vsub.f32 1.0, %v7966_v54  ;;  %v7071_v12 = vmul.f32 %v13743_v0, %v6943_v46  ;;  %v13796_v5 = vmul.f32 0.5, %v13686_v37 }
 0x63f   : > { %v6688_v29 = vadd.f32 1.4214138, %v6560_v31  ;;  %10293 = vrcp.f32 %v6051_v26  ;;  %v5924_v24 = vmul.f32 0.3275911, %v5796_v17  ;;  %v6433_v7 = vadd.f32 -1.4531521, %v6305_v28 }
 0x640   : > { %v8605_v14 = vmul.f32 %v8477_v33, %v5021_v19  ;;  %v8222_v57 = vmul.f32 %v8094_v44, %v5662_v4  ;;  %v7199_v49 = vadd.f32 0.2548296, %v7071_v12  ;;  %v5663_v18 = vsel %vm5535_vm5, 1.0, %v10656_v51  ;;  %v13817_v4 = vld [vmem:[#allocation3 + $0x398] sm:$0xff]  ;;  %v5023_v12 = vld [vmem:[#allocation2 + $0x210] sm:$0xff] }
 0x641   : > { %v6816_v38 = vmul.f32 %v13769_v1, %v6688_v29  ;;  %v7802_v9 = vmul.f32 1.442695, %v7586_v52  ;;  %v6052_v45 = vadd.f32 1.0, %v5924_v24  ;;  %v6561_v56 = vmul.f32 %v13788_v63, %v6433_v7 }
 0x642   : > { %v13804_v16 = vpop.eup %10287  ;;  %8733 = vst [vmem:[#allocation12 + $0x298] sm:$0xff] %v8605_v14  ;;  %v8350_v37 = vadd.f32 1.0, %v8222_v57  ;;  %v7327_v25 = vmul.f32 %v13743_v0, %v7199_v49  ;;  %v13809_v20 = vmul.f32 0.70710677, %v13798_v40  ;;  %v7459_v8 = vsub.f32 0.0, %v13778_v32  ;;  %v13838_v49 = vld [vmem:[#allocation3 + $0xc0] sm:$0xff] }
 0x643   : > { %v6944_v23 = vadd.f32 -0.28449672, %v6816_v38  ;;  %v6306_v35 = vmul.f32 1.0614054, %v13804_v16  ;;  %10295 = vrcp.f32 %v6052_v45  ;;  %v6689_v47 = vadd.f32 1.4214138, %v6561_v56 }
 0x644   : > { %v8478_v53 = vmul.f32 %v8350_v37, %v5278_v41  ;;  %v7967_v27 = vmul.f32 %v10286_v62, %v7327_v25  ;;  %v7460_v43 = vsub.f32 0.0, %v5796_v17  ;;  %vm5536_vm6 = vcmp.ge.f32.partialorder %v13698_v36, 0.0 }
 0x645   : > { %v7072_v0 = vmul.f32 %v13769_v1, %v6944_v23  ;;  %v6434_v59 = vadd.f32 -1.4531521, %v6306_v35  ;;  %10297 = vpow2.f32 %v7802_v9  ;;  %v6817_v55 = vmul.f32 %v13788_v63, %v6689_v47 }
 0x646   : > { %v8606_v13 = vmul.f32 %v8478_v53, %v5022_v48  ;;  %v8095_v30 = vsub.f32 1.0, %v7967_v27  ;;  %v5797_v21 = vand.u32 2147483647, %v13809_v20  ;;  %v13820_v41 = vmul.f32 0.5, %v13700_v61  ;;  %v10290_v50 = vpop.eup %10289 }
 0x647   : > { %v7200_v15 = vadd.f32 0.2548296, %v7072_v0  ;;  %v6562_v42 = vmul.f32 %v13804_v16, %v6434_v59  ;;  %v7587_v39 = vmul.f32 %v7459_v8, %v13778_v32  ;;  %v6945_v54 = vadd.f32 -0.28449672, %v6817_v55  ;;  %v5024_v59 = vld [vmem:[#allocation2 + $0x3d8] sm:$0xff] }
 0x648   : > { %8734 = vst [vmem:[#allocation12 + $0x2a0] sm:$0xff] %v8606_v13  ;;  %v8223_v60 = vmul.f32 %v8095_v30, %v5663_v18  ;;  %v7588_v46 = vmul.f32 %v7460_v43, %v5796_v17  ;;  %v5925_v19 = vmul.f32 0.3275911, %v5797_v21  ;;  %v5664_v31 = vsel %vm5536_vm6, 1.0, %v10656_v51  ;;  %v10292_v62 = vpop.eup %10291 }
 0x649   : > { %v7328_v52 = vmul.f32 %v13769_v1, %v7200_v15  ;;  %v6690_v26 = vadd.f32 1.4214138, %v6562_v42  ;;  %v13829_v61 = vmul.f32 0.70710677, %v13817_v4  ;;  %vm5537_vm7 = vcmp.ge.f32.partialorder %v13712_v6, 0.0 }
 0x64a   : > { %v8351_v33 = vadd.f32 1.0, %v8223_v60  ;;  %v7073_v32 = vmul.f32 %v13788_v63, %v6945_v54  ;;  %v6053_v44 = vadd.f32 1.0, %v5925_v19  ;;  %v7804_v29 = vmul.f32 1.442695, %v7587_v39 }
 0x64b   : > { %v7968_v17 = vmul.f32 %v10290_v50, %v7328_v52  ;;  %v6818_v28 = vmul.f32 %v13804_v16, %v6690_v26  ;;  %v5798_v36 = vand.u32 2147483647, %v13829_v61  ;;  %v7806_v57 = vmul.f32 1.442695, %v7588_v46 }
 0x64c   : > { %v13835_v24 = vpop.eup %10293  ;;  %v8479_v1 = vmul.f32 %v8351_v33, %v13773_v3  ;;  %v7201_v14 = vadd.f32 0.2548296, %v7073_v32  ;;  %10299 = vrcp.f32 %v6053_v44  ;;  %v5665_v7 = vsel %vm5537_vm7, 1.0, %v10656_v51 }
 0x64d   : > { %v8096_v6 = vsub.f32 1.0, %v7968_v17  ;;  %v6946_v18 = vadd.f32 -0.28449672, %v6818_v28  ;;  %v6307_v38 = vmul.f32 1.0614054, %v13835_v24  ;;  %v7461_v37 = vsub.f32 0.0, %v5797_v21 }
 0x64e   : > { %v8607_v9 = vmul.f32 %v8479_v1, %v5023_v12  ;;  %v7329_v45 = vmul.f32 %v13788_v63, %v7201_v14  ;;  %v5926_v25 = vmul.f32 0.3275911, %v5798_v36  ;;  %10301 = vpow2.f32 %v7804_v29 }
 0x64f   : > { %v8224_v56 = vmul.f32 %v8096_v6, %v5664_v31  ;;  %v7074_v48 = vmul.f32 %v13804_v16, %v6946_v18  ;;  %v6435_v3 = vadd.f32 -1.4531521, %v6307_v38  ;;  %10303 = vpow2.f32 %v7806_v57  ;;  %v5025_v31 = vld [vmem:[#allocation2 + $0x1e8] sm:$0xff] }
 0x650   : > { %v13844_v23 = vpop.eup %10295  ;;  %8735 = vst [vmem:[#allocation12 + $0x2a8] sm:$0xff] %v8607_v9  ;;  %v7969_v35 = vmul.f32 %v10292_v62, %v7329_v45  ;;  %v6054_v8 = vadd.f32 1.0, %v5926_v25  ;;  %v13847_v53 = vmul.f32 0.70710677, %v13838_v49  ;;  %vm5538_vm8 = vcmp.ge.f32.partialorder %v13735_v10, 0.0  ;;  %v13858_v62 = vld [vmem:[#allocation3 + $0x48] sm:$0xff] }
 0x651   : > { %v8352_v27 = vadd.f32 1.0, %v8224_v56  ;;  %v7202_v47 = vadd.f32 0.2548296, %v7074_v48  ;;  %v6563_v63 = vmul.f32 %v13835_v24, %v6435_v3  ;;  %v6308_v43 = vmul.f32 1.0614054, %v13844_v23  ;;  %v5026_v56 = vld [vmem:[#allocation2 + $0x1b0] sm:$0xff] }
 0x652   : > { %v10298_v0 = vpop.eup %10297  ;;  %v8097_v13 = vsub.f32 1.0, %v7969_v35  ;;  %v7589_v30 = vmul.f32 %v7461_v37, %v5797_v21  ;;  %10305 = vrcp.f32 %v6054_v8  ;;  %v5282_v60 = vmul.f32 0.5, %v13726_v11 }
 0x653   : > { %v8480_v55 = vmul.f32 %v8352_v27, %v13796_v5  ;;  %v7330_v15 = vmul.f32 %v13804_v16, %v7202_v47  ;;  %v6691_v42 = vadd.f32 1.4214138, %v6563_v63  ;;  %v6436_v39 = vadd.f32 -1.4531521, %v6308_v43  ;;  %v13860_v5 = vld [vmem:[#allocation3 + $0x360] sm:$0xff] }
 0x654   : > { %v8225_v50 = vmul.f32 %v8097_v13, %v5665_v7  ;;  %v7462_v54 = vsub.f32 0.0, %v5798_v36  ;;  %v5799_v46 = vand.u32 2147483647, %v13847_v53  ;;  %v5666_v33 = vsel %vm5538_vm8, 1.0, %v10656_v51 }
 0x655   : > { %v8608_v19 = vmul.f32 %v8480_v55, %v5024_v59  ;;  %v7970_v52 = vmul.f32 %v10298_v0, %v7330_v15  ;;  %v6819_v26 = vmul.f32 %v13835_v24, %v6691_v42  ;;  %v6564_v21 = vmul.f32 %v13844_v23, %v6436_v39 }
 0x656   : > { %v8353_v16 = vadd.f32 1.0, %v8225_v50  ;;  %v7808_v11 = vmul.f32 1.442695, %v7589_v30  ;;  %v5927_v32 = vmul.f32 0.3275911, %v5799_v46  ;;  %v13866_v12 = vmul.f32 0.5, %v13751_v58 }
 0x657   : > { %8736 = vst [vmem:[#allocation12 + $0x2b0] sm:$0xff] %v8608_v19  ;;  %v8098_v44 = vsub.f32 1.0, %v7970_v52  ;;  %v6947_v17 = vadd.f32 -0.28449672, %v6819_v26  ;;  %v6692_v28 = vadd.f32 1.4214138, %v6564_v21  ;;  %v7590_v1 = vmul.f32 %v7462_v54, %v5798_v36 }
 0x658   : > { %v8481_v29 = vmul.f32 %v8353_v16, %v13820_v41  ;;  %v6055_v14 = vadd.f32 1.0, %v5927_v32  ;;  %v13870_v57 = vmul.f32 0.70710677, %v13858_v62  ;;  %v7463_v38 = vsub.f32 0.0, %v5799_v46 }
 0x659   : > { %v13872_v6 = vpop.eup %10299  ;;  %v8226_v10 = vmul.f32 %v8098_v44, %v5666_v33  ;;  %v7075_v7 = vmul.f32 %v13835_v24, %v6947_v17  ;;  %v6820_v18 = vmul.f32 %v13844_v23, %v6692_v28  ;;  %v13878_v45 = vmul.f32 0.70710677, %v13860_v5 }
 0x65a   : > { %v8609_v9 = vmul.f32 %v8481_v29, %v5025_v31  ;;  %v6309_v58 = vmul.f32 1.0614054, %v13872_v6  ;;  %10307 = vrcp.f32 %v6055_v14  ;;  %vm5539_vm9 = vcmp.ge.f32.partialorder %v13764_v2, 0.0  ;;  %v13905_v14 = vld [vmem:[#allocation3 + $0x240] sm:$0xff] }
 0x65b   : > { %v8354_v41 = vadd.f32 1.0, %v8226_v10  ;;  %v7203_v36 = vadd.f32 0.2548296, %v7075_v7  ;;  %v6948_v37 = vadd.f32 -0.28449672, %v6820_v18  ;;  %v10302_v25 = vpop.eup %10301  ;;  %v13882_v48 = vmul.f32 0.5, %v13754_v22 }
 0x65c   : > { %8737 = vst [vmem:[#allocation12 + $0x2b8] sm:$0xff] %v8609_v9  ;;  %v6437_v3 = vadd.f32 -1.4531521, %v6309_v58  ;;  %10309 = vpow2.f32 %v7808_v11  ;;  %v5800_v35 = vand.u32 2147483647, %v13870_v57  ;;  %v10304_v8 = vpop.eup %10303  ;;  %v5667_v2 = vsel %vm5539_vm9, 1.0, %v10656_v51 }
 0x65d   : > { %v8482_v27 = vmul.f32 %v8354_v41, %v5282_v60  ;;  %v7331_v47 = vmul.f32 %v13835_v24, %v7203_v36  ;;  %v7076_v63 = vmul.f32 %v13844_v23, %v6948_v37  ;;  %v7810_v43 = vmul.f32 1.442695, %v7590_v1  ;;  %v13896_v11 = vld [vmem:[#allocation3 + $0x118] sm:$0xff]  ;;  %v5027_v10 = vld [vmem:[#allocation2 + $0x1c8] sm:$0xff] }
 0x65e   : > { %v6565_v0 = vmul.f32 %v13872_v6, %v6437_v3  ;;  %v7591_v59 = vmul.f32 %v7463_v38, %v5799_v46  ;;  %v5928_v13 = vmul.f32 0.3275911, %v5800_v35  ;;  %v5801_v42 = vand.u32 2147483647, %v13878_v45 }
 0x65f   : > { %v13889_v30 = vpop.eup %10305  ;;  %v8610_v22 = vmul.f32 %v8482_v27, %v5026_v56  ;;  %v7971_v55 = vmul.f32 %v10302_v25, %v7331_v47  ;;  %v7204_v15 = vadd.f32 0.2548296, %v7076_v63  ;;  %vm5540_vm10 = vcmp.ge.f32.partialorder %v13767_v34, 0.0 }
 0x660   : > { %v6693_v39 = vadd.f32 1.4214138, %v6565_v0  ;;  %v6310_v24 = vmul.f32 1.0614054, %v13889_v30  ;;  %v6056_v50 = vadd.f32 1.0, %v5928_v13  ;;  %10311 = vpow2.f32 %v7810_v43 }
 0x661   : > { %8738 = vst [vmem:[#allocation12 + $0x2c0] sm:$0xff] %v8610_v22  ;;  %v8099_v60 = vsub.f32 1.0, %v7971_v55  ;;  %v7332_v54 = vmul.f32 %v13844_v23, %v7204_v15  ;;  %v5929_v46 = vmul.f32 0.3275911, %v5801_v42  ;;  %v7464_v52 = vsub.f32 0.0, %v5800_v35 }
 0x662   : > { %v6821_v19 = vmul.f32 %v13872_v6, %v6693_v39  ;;  %v6438_v31 = vadd.f32 -1.4531521, %v6310_v24  ;;  %10313 = vrcp.f32 %v6056_v50  ;;  %v7812_v16 = vmul.f32 1.442695, %v7591_v59 }
 0x663   : > { %v8227_v26 = vmul.f32 %v8099_v60, %v5667_v2  ;;  %v7972_v21 = vmul.f32 %v10304_v8, %v7332_v54  ;;  %v6057_v33 = vadd.f32 1.0, %v5929_v46  ;;  %v5668_v32 = vsel %vm5540_vm10, 1.0, %v10656_v51  ;;  %v13933_v46 = vld [vmem:[#allocation3 + $0x1d0] sm:$0xff] }
 0x664   : > { %v13902_v44 = vmul.f32 0.5, %v13798_v40  ;;  %v6949_v23 = vadd.f32 -0.28449672, %v6821_v19  ;;  %v6566_v17 = vmul.f32 %v13889_v30, %v6438_v31  ;;  %v7465_v1 = vsub.f32 0.0, %v5801_v42 }
 0x665   : > { %v8355_v28 = vadd.f32 1.0, %v8227_v26  ;;  %v8100_v29 = vsub.f32 1.0, %v7972_v21  ;;  %10315 = vrcp.f32 %v6057_v33  ;;  %v7592_v38 = vmul.f32 %v7464_v52, %v5800_v35  ;;  %v5028_v35 = vld [vmem:[#allocation2 + $0x2d0] sm:$0xff] }
 0x666   : > { %v7077_v7 = vmul.f32 %v13872_v6, %v6949_v23  ;;  %v6694_v18 = vadd.f32 1.4214138, %v6566_v17  ;;  %v13909_v34 = vmul.f32 0.70710677, %v13896_v11  ;;  %vm5541_vm11 = vcmp.ge.f32.partialorder %v13809_v20, 0.0 }
 0x667   : > { %v13911_v9 = vpop.eup %10307  ;;  %v8483_v40 = vmul.f32 %v8355_v28, %v13866_v12  ;;  %v8228_v58 = vmul.f32 %v8100_v29, %v5668_v32  ;;  %10317 = vpow2.f32 %v7812_v16  ;;  %v13918_v25 = vmul.f32 0.70710677, %v13905_v14 }
 0x668   : > { %v7205_v41 = vadd.f32 0.2548296, %v7077_v7  ;;  %v6822_v36 = vmul.f32 %v13889_v30, %v6694_v18  ;;  %v6311_v37 = vmul.f32 1.0614054, %v13911_v9  ;;  %v7593_v27 = vmul.f32 %v7465_v1, %v5801_v42 }
 0x669   : > { %v10310_v56 = vpop.eup %10309  ;;  %v8611_v3 = vmul.f32 %v8483_v40, %v5027_v10  ;;  %v8356_v8 = vadd.f32 1.0, %v8228_v58  ;;  %v5802_v47 = vand.u32 2147483647, %v13909_v34  ;;  %v7814_v2 = vmul.f32 1.442695, %v7592_v38  ;;  %v5029_v10 = vld [vmem:[#allocation2 + $0x1d0] sm:$0xff] }
 0x66a   : > { %v7333_v12 = vmul.f32 %v13872_v6, %v7205_v41  ;;  %v6950_v63 = vadd.f32 -0.28449672, %v6822_v36  ;;  %v6439_v43 = vadd.f32 -1.4531521, %v6311_v37  ;;  %v5669_v59 = vsel %vm5541_vm11, 1.0, %v10656_v51  ;;  %v13958_v41 = vld [vmem:[#allocation3 + $0x248] sm:$0xff] }
 0x66b   : > { %8739 = vst [vmem:[#allocation12 + $0x2c8] sm:$0xff] %v8611_v3  ;;  %v8484_v0 = vmul.f32 %v8356_v8, %v13882_v48  ;;  %vm5542_vm12 = vcmp.ge.f32.partialorder %v13829_v61, 0.0  ;;  %v5930_v13 = vmul.f32 0.3275911, %v5802_v47  ;;  %v13930_v6 = vand.u32 2147483647, %v13918_v25 }
 0x66c   : > { %v7973_v22 = vmul.f32 %v10310_v56, %v7333_v12  ;;  %v7078_v55 = vmul.f32 %v13889_v30, %v6950_v63  ;;  %v6567_v15 = vmul.f32 %v13911_v9, %v6439_v43  ;;  %v5286_v39 = vmul.f32 0.5, %v13817_v4 }
 0x66d   : > { %v8612_v42 = vmul.f32 %v8484_v0, %v5028_v35  ;;  %v7816_v24 = vmul.f32 1.442695, %v7593_v27  ;;  %v6058_v48 = vadd.f32 1.0, %v5930_v13  ;;  %v10312_v50 = vpop.eup %10311  ;;  %10319 = vpow2.f32 %v7814_v2  ;;  %v5030_v0 = vld [vmem:[#allocation2 + $0x58] sm:$0xff] }
 0x66e   : > { %v8101_v60 = vsub.f32 1.0, %v7973_v22  ;;  %v7206_v20 = vadd.f32 0.2548296, %v7078_v55  ;;  %v6695_v54 = vadd.f32 1.4214138, %v6567_v15  ;;  %v5670_v31 = vsel %vm5542_vm12, 1.0, %v10656_v51 }
 0x66f   : > { %v13935_v19 = vpop.eup %10313  ;;  %8740 = vst [vmem:[#allocation12 + $0x2d0] sm:$0xff] %v8612_v42  ;;  %v13941_v52 = vmul.f32 0.5, %v13838_v49  ;;  %10321 = vrcp.f32 %v6058_v48  ;;  %v5931_v4 = vmul.f32 0.3275911, %v13930_v6  ;;  %v7466_v32 = vsub.f32 0.0, %v5802_v47  ;;  %v13974_v55 = vld [vmem:[#allocation3 + $0x370] sm:$0xff] }
 0x670   : > { %v8229_v26 = vmul.f32 %v8101_v60, %v5669_v59  ;;  %v7334_v21 = vmul.f32 %v13889_v30, %v7206_v20  ;;  %v6823_v16 = vmul.f32 %v13911_v9, %v6695_v54  ;;  %v6312_v33 = vmul.f32 1.0614054, %v13935_v19 }
 0x671   : > { %10323 = vpow2.f32 %v7816_v24  ;;  %v6059_v23 = vadd.f32 1.0, %v5931_v4  ;;  %v13948_v17 = vmul.f32 0.70710677, %v13933_v46  ;;  %vm5543_vm13 = vcmp.ge.f32.partialorder %v13847_v53, 0.0 }
 0x672   : > { %v13950_v61 = vpop.eup %10315  ;;  %v8357_v49 = vadd.f32 1.0, %v8229_v26  ;;  %v7974_v28 = vmul.f32 %v10312_v50, %v7334_v21  ;;  %v6951_v29 = vadd.f32 -0.28449672, %v6823_v16  ;;  %v6440_v1 = vadd.f32 -1.4531521, %v6312_v33 }
 0x673   : > { %vm5544_vm14 = vcmp.ge.f32.partialorder %v13870_v57, 0.0  ;;  %v6313_v30 = vmul.f32 1.0614054, %v13950_v61  ;;  %10325 = vrcp.f32 %v6059_v23  ;;  %v7594_v37 = vmul.f32 %v7466_v32, %v5802_v47 }
 0x674   : > { %v10318_v7 = vpop.eup %10317  ;;  %v8485_v18 = vmul.f32 %v8357_v49, %v13902_v44  ;;  %v8102_v38 = vsub.f32 1.0, %v7974_v28  ;;  %v7079_v40 = vmul.f32 %v13911_v9, %v6951_v29  ;;  %v6568_v58 = vmul.f32 %v13935_v19, %v6440_v1 }
 0x675   : > { %v6441_v36 = vadd.f32 -1.4531521, %v6313_v30  ;;  %v7467_v56 = vsub.f32 0.0, %v13930_v6  ;;  %v5804_v3 = vand.u32 2147483647, %v13948_v17  ;;  %v13963_v63 = vmul.f32 0.5, %v13858_v62 }
 0x676   : > { %v8613_v35 = vmul.f32 %v8485_v18, %v5029_v10  ;;  %v8230_v8 = vmul.f32 %v8102_v38, %v5670_v31  ;;  %v7207_v27 = vadd.f32 0.2548296, %v7079_v40  ;;  %v6696_v12 = vadd.f32 1.4214138, %v6568_v58  ;;  %v5031_v58 = vld [vmem:[#allocation2 + $0x120] sm:$0xff] }
 0x677   : > { %v6569_v44 = vmul.f32 %v13950_v61, %v6441_v36  ;;  %v5932_v43 = vmul.f32 0.3275911, %v5804_v3  ;;  %v13967_v2 = vmul.f32 0.70710677, %v13958_v41  ;;  %v5671_v59 = vsel %vm5543_vm13, 1.0, %v10656_v51 }
 0x678   : > { %8741 = vst [vmem:[#allocation12 + $0x2d8] sm:$0xff] %v8613_v35  ;;  %v8358_v47 = vadd.f32 1.0, %v8230_v8  ;;  %v7335_v13 = vmul.f32 %v13911_v9, %v7207_v27  ;;  %v6824_v22 = vmul.f32 %v13935_v19, %v6696_v12  ;;  %v5672_v62 = vsel %vm5544_vm14, 1.0, %v10656_v51 }
 0x679   : > { %v6697_v15 = vadd.f32 1.4214138, %v6569_v44  ;;  %v7818_v42 = vmul.f32 1.442695, %v7594_v37  ;;  %v6060_v24 = vadd.f32 1.0, %v5932_v43  ;;  %v7595_v20 = vmul.f32 %v7467_v56, %v13930_v6  ;;  %v14002_v43 = vld [vmem:[#allocation3 + $0x28] sm:$0xff] }
 0x67a   : > { %v8486_v48 = vmul.f32 %v8358_v47, %v5286_v39  ;;  %v7975_v50 = vmul.f32 %v10318_v7, %v7335_v13  ;;  %v6952_v60 = vadd.f32 -0.28449672, %v6824_v22  ;;  %v10320_v53 = vpop.eup %10319  ;;  %v7468_v9 = vsub.f32 0.0, %v5804_v3 }
 0x67b   : > { %v6825_v54 = vmul.f32 %v13950_v61, %v6697_v15  ;;  %10327 = vrcp.f32 %v6060_v24  ;;  %v5805_v31 = vand.u32 2147483647, %v13967_v2  ;;  %v13986_v16 = vmul.f32 0.70710677, %v13974_v55 }
 0x67c   : > { %v13982_v4 = vpop.eup %10321  ;;  %v8614_v26 = vmul.f32 %v8486_v48, %v5030_v0  ;;  %v8103_v57 = vsub.f32 1.0, %v7975_v50  ;;  %v7080_v21 = vmul.f32 %v13935_v19, %v6952_v60  ;;  %vm5545_vm15 = vcmp.ge.f32.partialorder %v13878_v45, 0.0 }
 0x67d   : > { %v6953_v39 = vadd.f32 -0.28449672, %v6825_v54  ;;  %v6314_v33 = vmul.f32 1.0614054, %v13982_v4  ;;  %v5933_v6 = vmul.f32 0.3275911, %v5805_v31  ;;  %10329 = vpow2.f32 %v7818_v42 }
 0x67e   : > { %v10324_v32 = vpop.eup %10323  ;;  %8742 = vst [vmem:[#allocation12 + $0x2e0] sm:$0xff] %v8614_v26  ;;  %v8231_v23 = vmul.f32 %v8103_v57, %v5671_v59  ;;  %v7208_v49 = vadd.f32 0.2548296, %v7080_v21  ;;  %v7820_v1 = vmul.f32 1.442695, %v7595_v20  ;;  %v7596_v38 = vmul.f32 %v7468_v9, %v5804_v3 }
 0x67f   : > { %v7081_v28 = vmul.f32 %v13950_v61, %v6953_v39  ;;  %v6442_v29 = vadd.f32 -1.4531521, %v6314_v33  ;;  %v6061_v10 = vadd.f32 1.0, %v5933_v6  ;;  %v13995_v40 = vand.u32 2147483647, %v13986_v16  ;;  %v14023_v39 = vld [vmem:[#allocation3 + $0x3c0] sm:$0xff] }
 0x680   : > { %v13991_v30 = vpop.eup %10325  ;;  %v8359_v7 = vadd.f32 1.0, %v8231_v23  ;;  %v7336_v18 = vmul.f32 %v13935_v19, %v7208_v49  ;;  %v7469_v27 = vsub.f32 0.0, %v5805_v31  ;;  %v5673_v59 = vsel %vm5545_vm15, 1.0, %v10656_v51 }
 0x681   : > { %v7209_v36 = vadd.f32 0.2548296, %v7081_v28  ;;  %v6570_v37 = vmul.f32 %v13982_v4, %v6442_v29  ;;  %v6315_v56 = vmul.f32 1.0614054, %v13991_v30  ;;  %10331 = vrcp.f32 %v6061_v10  ;;  %v5033_v10 = vld [vmem:[#allocation2 + $0x2e8] sm:$0xff] }
 0x682   : > { %v8487_v35 = vmul.f32 %v8359_v7, %v13941_v52  ;;  %v7976_v8 = vmul.f32 %v10320_v53, %v7336_v18  ;;  %v5934_v12 = vmul.f32 0.3275911, %v13995_v40  ;;  %10333 = vpow2.f32 %v7820_v1 }
 0x683   : > { %v7337_v44 = vmul.f32 %v13950_v61, %v7209_v36  ;;  %v6698_v19 = vadd.f32 1.4214138, %v6570_v37  ;;  %v6443_v3 = vadd.f32 -1.4531521, %v6315_v56  ;;  %v7822_v42 = vmul.f32 1.442695, %v7596_v38 }
 0x684   : > { %v8615_v0 = vmul.f32 %v8487_v35, %v5031_v58  ;;  %v8104_v47 = vsub.f32 1.0, %v7976_v8  ;;  %v6062_v13 = vadd.f32 1.0, %v5934_v12  ;;  %v7597_v24 = vmul.f32 %v7469_v27, %v5805_v31  ;;  %v5032_v31 = vld [vmem:[#allocation2 + $0x198] sm:$0xff] }
 0x685   : > { %v7977_v22 = vmul.f32 %v10324_v32, %v7337_v44  ;;  %v6826_v52 = vmul.f32 %v13982_v4, %v6698_v19  ;;  %v6571_v15 = vmul.f32 %v13991_v30, %v6443_v3  ;;  %v14010_v48 = vmul.f32 0.70710677, %v14002_v43 }
 0x686   : > { %8743 = vst [vmem:[#allocation12 + $0x2e8] sm:$0xff] %v8615_v0  ;;  %v8232_v61 = vmul.f32 %v8104_v47, %v5672_v62  ;;  %10335 = vrcp.f32 %v6062_v13  ;;  %v5289_v50 = vmul.f32 0.5, %v13860_v5  ;;  %v14016_v9 = vmul.f32 0.5, %v13896_v11 }
 0x687   : > { %v8105_v60 = vsub.f32 1.0, %v7977_v22  ;;  %v6954_v20 = vadd.f32 -0.28449672, %v6826_v52  ;;  %v6699_v45 = vadd.f32 1.4214138, %v6571_v15  ;;  %vm5546_vm0 = vcmp.ge.f32.partialorder %v13909_v34, 0.0 }
 0x688   : > { %v14013_v53 = vpop.eup %10327  ;;  %v8360_v54 = vadd.f32 1.0, %v8232_v61  ;;  %v5807_v62 = vand.u32 2147483647, %v14010_v48  ;;  %v7824_v6 = vmul.f32 1.442695, %v7597_v24  ;;  %v7470_v11 = vsub.f32 0.0, %v13995_v40 }
 0x689   : > { %v8233_v26 = vmul.f32 %v8105_v60, %v5673_v59  ;;  %v7082_v57 = vmul.f32 %v13982_v4, %v6954_v20  ;;  %v6827_v21 = vmul.f32 %v13991_v30, %v6699_v45  ;;  %v6316_v5 = vmul.f32 1.0614054, %v14013_v53  ;;  %v14051_v45 = vld [vmem:[#allocation3 + $0x3b0] sm:$0xff] }
 0x68a   : > { %v8488_v33 = vmul.f32 %v8360_v54, %v13963_v63  ;;  %v5935_v32 = vmul.f32 0.3275911, %v5807_v62  ;;  %v10330_v23 = vpop.eup %10329  ;;  %10337 = vpow2.f32 %v7822_v42  ;;  %v14028_v38 = vmul.f32 0.70710677, %v14023_v39 }
 0x68b   : > { %v8361_v49 = vadd.f32 1.0, %v8233_v26  ;;  %v7210_v28 = vadd.f32 0.2548296, %v7082_v57  ;;  %v6955_v29 = vadd.f32 -0.28449672, %v6827_v21  ;;  %vm5547_vm1 = vcmp.ge.f32.partialorder %v13918_v25, 0.0 }
 0x68c   : > { %v8616_v1 = vmul.f32 %v8488_v33, %v5032_v31  ;;  %v6444_v7 = vadd.f32 -1.4531521, %v6316_v5  ;;  %v6063_v18 = vadd.f32 1.0, %v5935_v32  ;;  %v7598_v35 = vmul.f32 %v7470_v11, %v13995_v40  ;;  %v5034_v57 = vld [vmem:[#allocation2 + $0x1f8] sm:$0xff] }
 0x68d   : > { %v8489_v58 = vmul.f32 %v8361_v49, %v5289_v50  ;;  %v7338_v36 = vmul.f32 %v13982_v4, %v7210_v28  ;;  %v7083_v63 = vmul.f32 %v13991_v30, %v6955_v29  ;;  %v5808_v8 = vand.u32 2147483647, %v14028_v38 }
 0x68e   : > { %v14033_v37 = vpop.eup %10331  ;;  %8744 = vst [vmem:[#allocation12 + $0x2f0] sm:$0xff] %v8616_v1  ;;  %v6572_v56 = vmul.f32 %v14013_v53, %v6444_v7  ;;  %10339 = vrcp.f32 %v6063_v18  ;;  %v5674_v3 = vsel %vm5546_vm0, 1.0, %v10656_v51  ;;  %v7471_v47 = vsub.f32 0.0, %v5807_v62  ;;  %v14063_v1 = vld [vmem:[#allocation3 + $0x390] sm:$0xff] }
 0x68f   : > { %v8617_v27 = vmul.f32 %v8489_v58, %v5033_v10  ;;  %v7978_v12 = vmul.f32 %v10330_v23, %v7338_v36  ;;  %v7211_v44 = vadd.f32 0.2548296, %v7083_v63  ;;  %v6317_v19 = vmul.f32 1.0614054, %v14033_v37  ;;  %v10334_v4 = vpop.eup %10333  ;;  %v5035_v36 = vld [vmem:[#allocation2 + $0x238] sm:$0xff] }
 0x690   : > { %v6700_v0 = vadd.f32 1.4214138, %v6572_v56  ;;  %10341 = vpow2.f32 %v7824_v6  ;;  %v5936_v22 = vmul.f32 0.3275911, %v5808_v8  ;;  %v5291_v52 = vmul.f32 0.5, %v13905_v14 }
 0x691   : > { %8745 = vst [vmem:[#allocation12 + $0x2f8] sm:$0xff] %v8617_v27  ;;  %v8106_v59 = vsub.f32 1.0, %v7978_v12  ;;  %v7339_v40 = vmul.f32 %v13991_v30, %v7211_v44  ;;  %v6445_v13 = vadd.f32 -1.4531521, %v6317_v19  ;;  %v5675_v15 = vsel %vm5547_vm1, 1.0, %v10656_v51 }
 0x692   : > { %v6828_v42 = vmul.f32 %v14013_v53, %v6700_v0  ;;  %v7826_v61 = vmul.f32 1.442695, %v7598_v35  ;;  %v6064_v20 = vadd.f32 1.0, %v5936_v22  ;;  %vm5548_vm2 = vcmp.ge.f32.partialorder %v13948_v17, 0.0 }
 0x693   : > { %v14048_v34 = vpop.eup %10335  ;;  %v8234_v24 = vmul.f32 %v8106_v59, %v5674_v3  ;;  %v7979_v50 = vmul.f32 %v10334_v4, %v7339_v40  ;;  %v6573_v60 = vmul.f32 %v14033_v37, %v6445_v13  ;;  %v7599_v54 = vmul.f32 %v7471_v47, %v5807_v62 }
 0x694   : > { %v6956_v30 = vadd.f32 -0.28449672, %v6828_v42  ;;  %v6318_v14 = vmul.f32 1.0614054, %v14048_v34  ;;  %10343 = vrcp.f32 %v6064_v20  ;;  %v14057_v33 = vmul.f32 0.70710677, %v14051_v45 }
 0x695   : > { %v8362_v25 = vadd.f32 1.0, %v8234_v24  ;;  %v8107_v31 = vsub.f32 1.0, %v7979_v50  ;;  %v6701_v26 = vadd.f32 1.4214138, %v6573_v60  ;;  %10345 = vpow2.f32 %v7826_v61 }
 0x696   : > { %v7084_v21 = vmul.f32 %v14013_v53, %v6956_v30  ;;  %v6446_v5 = vadd.f32 -1.4531521, %v6318_v14  ;;  %v7472_v23 = vsub.f32 0.0, %v5808_v8  ;;  %v5809_v29 = vand.u32 2147483647, %v14057_v33 }
 0x697   : > { %v8490_v6 = vmul.f32 %v8362_v25, %v14016_v9  ;;  %v8235_v11 = vmul.f32 %v8107_v31, %v5675_v15  ;;  %v6829_v32 = vmul.f32 %v14033_v37, %v6701_v26  ;;  %v10338_v49 = vpop.eup %10337  ;;  %v7828_v58 = vmul.f32 1.442695, %v7599_v54 }
 0x698   : > { %v7212_v62 = vadd.f32 0.2548296, %v7084_v21  ;;  %v6574_v28 = vmul.f32 %v14048_v34, %v6446_v5  ;;  %v5676_v9 = vsel %vm5548_vm2, 1.0, %v10656_v51  ;;  %v5937_v35 = vmul.f32 0.3275911, %v5809_v29  ;;  %v5036_v5 = vld [vmem:[#allocation2 + $0x398] sm:$0xff] }
 0x699   : > { %v8618_v10 = vmul.f32 %v8490_v6, %v5034_v57  ;;  %v8363_v7 = vadd.f32 1.0, %v8235_v11  ;;  %v6957_v18 = vadd.f32 -0.28449672, %v6829_v32  ;;  %v7600_v19 = vmul.f32 %v7472_v23, %v5808_v8  ;;  %v14078_v8 = vld [vmem:[#allocation3 + $0x70] sm:$0xff] }
 0x69a   : > { %v7340_v63 = vmul.f32 %v14013_v53, %v7212_v62  ;;  %v6702_v56 = vadd.f32 1.4214138, %v6574_v28  ;;  %v14073_v4 = vmul.f32 0.70710677, %v14063_v1  ;;  %v6065_v47 = vadd.f32 1.0, %v5937_v35 }
 0x69b   : > { %v14069_v27 = vpop.eup %10339  ;;  %8746 = vst [vmem:[#allocation12 + $0x300] sm:$0xff] %v8618_v10  ;;  %v8491_v12 = vmul.f32 %v8363_v7, %v5291_v52  ;;  %v7085_v44 = vmul.f32 %v14033_v37, %v6957_v18  ;;  %vm5549_vm3 = vcmp.ge.f32.partialorder %v13967_v2, 0.0  ;;  %10347 = vpow2.f32 %v7828_v58 }
 0x69c   : > { %v7980_v3 = vmul.f32 %v10338_v49, %v7340_v63  ;;  %v6830_v0 = vmul.f32 %v14048_v34, %v6702_v56  ;;  %v6319_v17 = vmul.f32 1.0614054, %v14069_v27  ;;  %10349 = vrcp.f32 %v6065_v47  ;;  %v14102_v63 = vld [vmem:[#allocation3 + $0x178] sm:$0xff] }
 0x69d   : > { %v10342_v59 = vpop.eup %10341  ;;  %v8619_v53 = vmul.f32 %v8491_v12, %v5035_v36  ;;  %v7213_v40 = vadd.f32 0.2548296, %v7085_v44  ;;  %v5292_v15 = vmul.f32 0.5, %v13933_v46  ;;  %v7830_v61 = vmul.f32 1.442695, %v7600_v19 }
 0x69e   : > { %v8108_v13 = vsub.f32 1.0, %v7980_v3  ;;  %v6958_v22 = vadd.f32 -0.28449672, %v6830_v0  ;;  %v6447_v52 = vadd.f32 -1.4531521, %v6319_v17  ;;  %v7473_v30 = vsub.f32 0.0, %v5809_v29 }
 0x69f   : > { %8747 = vst [vmem:[#allocation12 + $0x308] sm:$0xff] %v8619_v53  ;;  %v7341_v42 = vmul.f32 %v14033_v37, %v7213_v40  ;;  %v14083_v24 = vand.u32 2147483647, %v14073_v4  ;;  %v5677_v14 = vsel %vm5549_vm3, 1.0, %v10656_v51  ;;  %v14092_v46 = vmul.f32 0.70710677, %v14078_v8 }
 0x6a0   : > { %v8236_v50 = vmul.f32 %v8108_v13, %v5676_v9  ;;  %v7086_v60 = vmul.f32 %v14048_v34, %v6958_v22  ;;  %v6575_v20 = vmul.f32 %v14069_v27, %v6447_v52  ;;  %vm5550_vm4 = vcmp.ge.f32.partialorder %v13986_v16, 0.0 }
 0x6a1   : > { %v7981_v54 = vmul.f32 %v10342_v59, %v7341_v42  ;;  %v5938_v25 = vmul.f32 0.3275911, %v14083_v24  ;;  %v14094_v37 = vpop.eup %10343  ;;  %10351 = vpow2.f32 %v7830_v61  ;;  %v7601_v62 = vmul.f32 %v7473_v30, %v5809_v29 }
 0x6a2   : > { %v8364_v31 = vadd.f32 1.0, %v8236_v50  ;;  %v7214_v26 = vadd.f32 0.2548296, %v7086_v60  ;;  %v6703_v57 = vadd.f32 1.4214138, %v6575_v20  ;;  %v10346_v21 = vpop.eup %10345  ;;  %v5293_v28 = vmul.f32 0.5, %v13958_v41 }
 0x6a3   : > { %v8109_v6 = vsub.f32 1.0, %v7981_v54  ;;  %v6320_v11 = vmul.f32 1.0614054, %v14094_v37  ;;  %v6066_v2 = vadd.f32 1.0, %v5938_v25  ;;  %v5811_v9 = vand.u32 2147483647, %v14092_v46 }
 0x6a4   : > { %v8492_v32 = vmul.f32 %v8364_v31, %v5292_v15  ;;  %v7342_v23 = vmul.f32 %v14048_v34, %v7214_v26  ;;  %v6831_v49 = vmul.f32 %v14069_v27, %v6703_v57  ;;  %v5294_v35 = vmul.f32 0.5, %v13974_v55  ;;  %v5037_v41 = vld [vmem:[#allocation2 + $0x390] sm:$0xff]  ;;  %v14122_v60 = vld [vmem:[#allocation3 + $0x2c8] sm:$0xff]  ;;  %v5038_v20 = vld [vmem:[#allocation2 + $0x1a0] sm:$0xff] }
 0x6a5   : > { %v8237_v10 = vmul.f32 %v8109_v6, %v5677_v14  ;;  %v6448_v7 = vadd.f32 -1.4531521, %v6320_v11  ;;  %10353 = vrcp.f32 %v6066_v2  ;;  %v5678_v34 = vsel %vm5550_vm4, 1.0, %v10656_v51 }
 0x6a6   : > { %v8620_v18 = vmul.f32 %v8492_v32, %v5036_v5  ;;  %v7982_v58 = vmul.f32 %v10346_v21, %v7342_v23  ;;  %v6959_v36 = vadd.f32 -0.28449672, %v6831_v49  ;;  %v7832_v19 = vmul.f32 1.442695, %v7601_v62  ;;  %v14134_v49 = vld [vmem:[#allocation3 + $0x40] sm:$0xff] }
 0x6a7   : > { %v8365_v56 = vadd.f32 1.0, %v8237_v10  ;;  %v6576_v29 = vmul.f32 %v14094_v37, %v6448_v7  ;;  %v5939_v3 = vmul.f32 0.3275911, %v5811_v9  ;;  %v7474_v47 = vsub.f32 0.0, %v14083_v24 }
 0x6a8   : > { %8748 = vst [vmem:[#allocation12 + $0x310] sm:$0xff] %v8620_v18  ;;  %v8110_v12 = vsub.f32 1.0, %v7982_v58  ;;  %v7087_v44 = vmul.f32 %v14069_v27, %v6959_v36  ;;  %v14112_v59 = vmul.f32 0.70710677, %v14102_v63  ;;  %v10348_v55 = vpop.eup %10347  ;;  %vm5551_vm5 = vcmp.ge.f32.partialorder %v14010_v48, 0.0 }
 0x6a9   : > { %v8493_v0 = vmul.f32 %v8365_v56, %v5293_v28  ;;  %v6704_v17 = vadd.f32 1.4214138, %v6576_v29  ;;  %v6067_v40 = vadd.f32 1.0, %v5939_v3  ;;  %v14115_v13 = vpop.eup %10349  ;;  %vm5552_vm6 = vcmp.ge.f32.partialorder %v14028_v38, 0.0 }
 0x6aa   : > { %v8238_v53 = vmul.f32 %v8110_v12, %v5678_v34  ;;  %v7215_v16 = vadd.f32 0.2548296, %v7087_v44  ;;  %v5812_v15 = vand.u32 2147483647, %v14112_v59  ;;  %v6321_v50 = vmul.f32 1.0614054, %v14115_v13 }
 0x6ab   : > { %v8621_v22 = vmul.f32 %v8493_v0, %v5037_v41  ;;  %v6832_v52 = vmul.f32 %v14094_v37, %v6704_v17  ;;  %10355 = vrcp.f32 %v6067_v40  ;;  %v7602_v14 = vmul.f32 %v7474_v47, %v14083_v24  ;;  %v5039_v12 = vld [vmem:[#allocation2 + $0xa8] sm:$0xff] }
 0x6ac   : > { %v8366_v42 = vadd.f32 1.0, %v8238_v53  ;;  %v7343_v61 = vmul.f32 %v14069_v27, %v7215_v16  ;;  %10357 = vpow2.f32 %v7832_v19  ;;  %v7475_v54 = vsub.f32 0.0, %v5811_v9 }
 0x6ad   : > { %8749 = vst [vmem:[#allocation12 + $0x318] sm:$0xff] %v8621_v22  ;;  %v6960_v30 = vadd.f32 -0.28449672, %v6832_v52  ;;  %v6449_v26 = vadd.f32 -1.4531521, %v6321_v50  ;;  %v5295_v21 = vmul.f32 0.5, %v14002_v43 }
 0x6ae   : > { %v8494_v25 = vmul.f32 %v8366_v42, %v5294_v35  ;;  %v7983_v31 = vmul.f32 %v10348_v55, %v7343_v61  ;;  %v5940_v57 = vmul.f32 0.3275911, %v5812_v15  ;;  %v5679_v27 = vsel %vm5551_vm5, 1.0, %v10656_v51  ;;  %v10352_v11 = vpop.eup %10351  ;;  %v14158_v42 = vld [vmem:[#allocation3 + $0x230] sm:$0xff] }
 0x6af   : > { %v7088_v5 = vmul.f32 %v14094_v37, %v6960_v30  ;;  %v14131_v6 = vmul.f32 0.70710677, %v14122_v60  ;;  %v6577_v24 = vmul.f32 %v14115_v13, %v6449_v26  ;;  %v5296_v62 = vmul.f32 0.5, %v14023_v39 }
 0x6b0   : > { %v8622_v2 = vmul.f32 %v8494_v25, %v5038_v20  ;;  %v8111_v32 = vsub.f32 1.0, %v7983_v31  ;;  %v6068_v23 = vadd.f32 1.0, %v5940_v57  ;;  %v5680_v43 = vsel %vm5552_vm6, 1.0, %v10656_v51  ;;  %v5040_v57 = vld [vmem:[#allocation2 + $0x258] sm:$0xff] }
 0x6b1   : > { %v7216_v48 = vadd.f32 0.2548296, %v7088_v5  ;;  %v7834_v28 = vmul.f32 1.442695, %v7602_v14  ;;  %v6705_v18 = vadd.f32 1.4214138, %v6577_v24  ;;  %v7603_v58 = vmul.f32 %v7475_v54, %v5811_v9 }
 0x6b2   : > { %v14140_v10 = vpop.eup %10353  ;;  %8750 = vst [vmem:[#allocation12 + $0x320] sm:$0xff] %v8622_v2  ;;  %v8239_v7 = vmul.f32 %v8111_v32, %v5679_v27  ;;  %10359 = vrcp.f32 %v6068_v23  ;;  %v14144_v56 = vmul.f32 0.5, %v14051_v45  ;;  %v5813_v35 = vand.u32 2147483647, %v14131_v6 }
 0x6b3   : > { %v7344_v36 = vmul.f32 %v14094_v37, %v7216_v48  ;;  %v6322_v39 = vmul.f32 1.0614054, %v14140_v10  ;;  %v6833_v34 = vmul.f32 %v14115_v13, %v6705_v18  ;;  %v7476_v29 = vsub.f32 0.0, %v5812_v15 }
 0x6b4   : > { %v8367_v38 = vadd.f32 1.0, %v8239_v7  ;;  %v14150_v41 = vmul.f32 0.70710677, %v14134_v49  ;;  %10361 = vpow2.f32 %v7834_v28  ;;  %v5941_v19 = vmul.f32 0.3275911, %v5813_v35 }
 0x6b5   : > { %v7984_v44 = vmul.f32 %v10352_v11, %v7344_v36  ;;  %v6450_v9 = vadd.f32 -1.4531521, %v6322_v39  ;;  %v6961_v3 = vadd.f32 -0.28449672, %v6833_v34  ;;  %v7836_v45 = vmul.f32 1.442695, %v7603_v58 }
 0x6b6   : > { %v8495_v37 = vmul.f32 %v8367_v38, %v5295_v21  ;;  %v5814_v0 = vand.u32 2147483647, %v14150_v41  ;;  %v14154_v47 = vmul.f32 0.5, %v14063_v1  ;;  %v6069_v53 = vadd.f32 1.0, %v5941_v19  ;;  %v14178_v58 = vld [vmem:[#allocation3 + $0x340] sm:$0xff] }
 0x6b7   : > { %v8112_v17 = vsub.f32 1.0, %v7984_v44  ;;  %v6578_v55 = vmul.f32 %v14140_v10, %v6450_v9  ;;  %v7089_v40 = vmul.f32 %v14115_v13, %v6961_v3  ;;  %v7604_v22 = vmul.f32 %v7476_v29, %v5812_v15 }
 0x6b8   : > { %v8623_v16 = vmul.f32 %v8495_v37, %v5039_v12  ;;  %v5942_v52 = vmul.f32 0.3275911, %v5814_v0  ;;  %v14160_v61 = vpop.eup %10355  ;;  %vm5553_vm7 = vcmp.ge.f32.partialorder %v14057_v33, 0.0  ;;  %10363 = vrcp.f32 %v6069_v53 }
 0x6b9   : > { %v8240_v50 = vmul.f32 %v8112_v17, %v5680_v43  ;;  %v6706_v20 = vadd.f32 1.4214138, %v6578_v55  ;;  %v10358_v30 = vpop.eup %10357  ;;  %v7217_v1 = vadd.f32 0.2548296, %v7089_v40  ;;  %v6323_v14 = vmul.f32 1.0614054, %v14160_v61 }
 0x6ba   : > { %8751 = vst [vmem:[#allocation12 + $0x328] sm:$0xff] %v8623_v16  ;;  %10365 = vpow2.f32 %v7836_v45  ;;  %v6070_v54 = vadd.f32 1.0, %v5942_v52  ;;  %v7477_v31 = vsub.f32 0.0, %v5813_v35  ;;  %v14166_v26 = vmul.f32 0.70710677, %v14158_v42  ;;  %v5041_v16 = vld [vmem:[#allocation2 + $0x2d8] sm:$0xff] }
 0x6bb   : > { %v8368_v25 = vadd.f32 1.0, %v8240_v50  ;;  %v6834_v15 = vmul.f32 %v14140_v10, %v6706_v20  ;;  %v7345_v21 = vmul.f32 %v14115_v13, %v7217_v1  ;;  %v6451_v27 = vadd.f32 -1.4531521, %v6323_v14  ;;  %v14200_v52 = vld [vmem:[#allocation3 + $0x180] sm:$0xff] }
 0x6bc   : > { %v7838_v5 = vmul.f32 1.442695, %v7604_v22  ;;  %10367 = vrcp.f32 %v6070_v54  ;;  %v7478_v32 = vsub.f32 0.0, %v5814_v0  ;;  %v5815_v24 = vand.u32 2147483647, %v14166_v26 }
 0x6bd   : > { %v8496_v11 = vmul.f32 %v8368_v25, %v5296_v62  ;;  %v6962_v2 = vadd.f32 -0.28449672, %v6834_v15  ;;  %v5681_v23 = vsel %vm5553_vm7, 1.0, %v10656_v51  ;;  %v7985_v43 = vmul.f32 %v10358_v30, %v7345_v21 }
 0x6be   : > { %vm5554_vm8 = vcmp.ge.f32.partialorder %v14073_v4, 0.0  ;;  %v6579_v48 = vmul.f32 %v14160_v61, %v6451_v27  ;;  %v7605_v18 = vmul.f32 %v7477_v31, %v5813_v35  ;;  %v5943_v62 = vmul.f32 0.3275911, %v5815_v24 }
 0x6bf   : > { %v14175_v28 = vpop.eup %10359  ;;  %v8624_v13 = vmul.f32 %v8496_v11, %v5040_v57  ;;  %v7090_v7 = vmul.f32 %v14140_v10, %v6962_v2  ;;  %v8113_v36 = vsub.f32 1.0, %v7985_v43  ;;  %vm5555_vm9 = vcmp.ge.f32.partialorder %v14092_v46, 0.0 }
 0x6c0   : > { %v6707_v39 = vadd.f32 1.4214138, %v6579_v48  ;;  %v6324_v33 = vmul.f32 1.0614054, %v14175_v28  ;;  %10369 = vpow2.f32 %v7838_v5  ;;  %v7606_v34 = vmul.f32 %v7478_v32, %v5814_v0 }
 0x6c1   : > { %8752 = vst [vmem:[#allocation12 + $0x330] sm:$0xff] %v8624_v13  ;;  %v7218_v38 = vadd.f32 0.2548296, %v7090_v7  ;;  %v6071_v29 = vadd.f32 1.0, %v5943_v62  ;;  %v10362_v12 = vpop.eup %10361  ;;  %v8241_v44 = vmul.f32 %v8113_v36, %v5681_v23  ;;  %v14184_v35 = vmul.f32 0.70710677, %v14178_v58 }
 0x6c2   : > { %v6835_v9 = vmul.f32 %v14160_v61, %v6707_v39  ;;  %v6452_v19 = vadd.f32 -1.4531521, %v6324_v33  ;;  %v14188_v3 = vmul.f32 0.5, %v14078_v8  ;;  %v7840_v45 = vmul.f32 1.442695, %v7605_v18  ;;  %v5042_v18 = vld [vmem:[#allocation2 + $0xf0] sm:$0xff] }
 0x6c3   : > { %v7346_v37 = vmul.f32 %v14140_v10, %v7218_v38  ;;  %10371 = vrcp.f32 %v6071_v29  ;;  %v8369_v17 = vadd.f32 1.0, %v8241_v44  ;;  %v5682_v0 = vsel %vm5554_vm8, 1.0, %v10656_v51 }
 0x6c4   : > { %v6963_v55 = vadd.f32 -0.28449672, %v6835_v9  ;;  %v6580_v53 = vmul.f32 %v14175_v28, %v6452_v19  ;;  %v5683_v22 = vsel %vm5555_vm9, 1.0, %v10656_v51  ;;  %v7479_v10 = vsub.f32 0.0, %v5815_v24 }
 0x6c5   : > { %v7986_v40 = vmul.f32 %v10362_v12, %v7346_v37  ;;  %v14198_v8 = vand.u32 2147483647, %v14184_v35  ;;  %v14202_v50 = vpop.eup %10363  ;;  %v8497_v4 = vmul.f32 %v8369_v17, %v14144_v56  ;;  %v7842_v1 = vmul.f32 1.442695, %v7606_v34 }
 0x6c6   : > { %v7091_v20 = vmul.f32 %v14160_v61, %v6963_v55  ;;  %v6708_v30 = vadd.f32 1.4214138, %v6580_v53  ;;  %v6325_v25 = vmul.f32 1.0614054, %v14202_v50  ;;  %10373 = vpow2.f32 %v7840_v45 }
 0x6c7   : > { %v10366_v14 = vpop.eup %10365  ;;  %v8114_v54 = vsub.f32 1.0, %v7986_v40  ;;  %v5944_v46 = vmul.f32 0.3275911, %v14198_v8  ;;  %v8625_v15 = vmul.f32 %v8497_v4, %v5041_v16  ;;  %v14210_v21 = vmul.f32 0.70710677, %v14200_v52 }
 0x6c8   : > { %v7219_v31 = vadd.f32 0.2548296, %v7091_v20  ;;  %v6836_v57 = vmul.f32 %v14175_v28, %v6708_v30  ;;  %v6453_v5 = vadd.f32 -1.4531521, %v6325_v25  ;;  %v7607_v11 = vmul.f32 %v7479_v10, %v5815_v24 }
 0x6c9   : > { %v14212_v27 = vpop.eup %10367  ;;  %v8242_v56 = vmul.f32 %v8114_v54, %v5682_v0  ;;  %v6072_v2 = vadd.f32 1.0, %v5944_v46  ;;  %8753 = vst [vmem:[#allocation12 + $0x338] sm:$0xff] %v8625_v15  ;;  %10375 = vpow2.f32 %v7842_v1  ;;  %v14217_v13 = vmul.f32 0.5, %v14102_v63 }
 0x6ca   : > { %v7347_v32 = vmul.f32 %v14160_v61, %v7219_v31  ;;  %v6964_v23 = vadd.f32 -0.28449672, %v6836_v57  ;;  %v6326_v43 = vmul.f32 1.0614054, %v14212_v27  ;;  %v6581_v7 = vmul.f32 %v14202_v50, %v6453_v5  ;;  %v14224_v61 = vld [vmem:[#allocation3 + $0x2a8] sm:$0xff] }
 0x6cb   : > { %v8370_v48 = vadd.f32 1.0, %v8242_v56  ;;  %10377 = vrcp.f32 %v6072_v2  ;;  %v14222_v39 = vand.u32 2147483647, %v14210_v21  ;;  %vm5556_vm10 = vcmp.ge.f32.partialorder %v14112_v59, 0.0 }
 0x6cc   : > { %v7987_v62 = vmul.f32 %v10366_v14, %v7347_v32  ;;  %v7092_v36 = vmul.f32 %v14175_v28, %v6964_v23  ;;  %v6454_v24 = vadd.f32 -1.4531521, %v6326_v43  ;;  %v6709_v38 = vadd.f32 1.4214138, %v6581_v7 }
 0x6cd   : > { %v8498_v33 = vmul.f32 %v8370_v48, %v14154_v47  ;;  %v7844_v63 = vmul.f32 1.442695, %v7607_v11  ;;  %v10370_v34 = vpop.eup %10369  ;;  %v5945_v9 = vmul.f32 0.3275911, %v14222_v39  ;;  %v7480_v45 = vsub.f32 0.0, %v14198_v8  ;;  %v14255_v11 = vld [vmem:[#allocation3 + $0x1a0] sm:$0xff] }
 0x6ce   : > { %v8115_v29 = vsub.f32 1.0, %v7987_v62  ;;  %v7220_v12 = vadd.f32 0.2548296, %v7092_v36  ;;  %v6582_v44 = vmul.f32 %v14212_v27, %v6454_v24  ;;  %v6837_v37 = vmul.f32 %v14202_v50, %v6709_v38  ;;  %v5044_v38 = vld [vmem:[#allocation2 + $0x170] sm:$0xff] }
 0x6cf   : > { %v8626_v19 = vmul.f32 %v8498_v33, %v5042_v18  ;;  %v14233_v17 = vmul.f32 0.70710677, %v14224_v61  ;;  %v6073_v16 = vadd.f32 1.0, %v5945_v9  ;;  %v5684_v40 = vsel %vm5556_vm10, 1.0, %v10656_v51 }
 0x6d0   : > { %v14235_v47 = vpop.eup %10371  ;;  %v8243_v0 = vmul.f32 %v8115_v29, %v5683_v22  ;;  %v7348_v55 = vmul.f32 %v14175_v28, %v7220_v12  ;;  %v6710_v53 = vadd.f32 1.4214138, %v6582_v44  ;;  %v14242_v10 = vmul.f32 0.5, %v14122_v60  ;;  %v5043_v22 = vld [vmem:[#allocation2 + $0x180] sm:$0xff] }
 0x6d1   : > { %8754 = vst [vmem:[#allocation12 + $0x340] sm:$0xff] %v8626_v19  ;;  %v6965_v4 = vadd.f32 -0.28449672, %v6837_v37  ;;  %v6327_v20 = vmul.f32 1.0614054, %v14235_v47  ;;  %10379 = vrcp.f32 %v6073_v16  ;;  %v7608_v25 = vmul.f32 %v7480_v45, %v14198_v8 }
 0x6d2   : > { %v8371_v30 = vadd.f32 1.0, %v8243_v0  ;;  %v7988_v1 = vmul.f32 %v10370_v34, %v7348_v55  ;;  %v6838_v14 = vmul.f32 %v14212_v27, %v6710_v53  ;;  %10381 = vpow2.f32 %v7844_v63  ;;  %v14274_v0 = vld [vmem:[#allocation3 + $0x3a8] sm:$0xff] }
 0x6d3   : > { %v7093_v28 = vmul.f32 %v14202_v50, %v6965_v4  ;;  %v6455_v54 = vadd.f32 -1.4531521, %v6327_v20  ;;  %v10374_v59 = vpop.eup %10373  ;;  %v14250_v31 = vand.u32 2147483647, %v14233_v17  ;;  %vm5557_vm11 = vcmp.ge.f32.partialorder %v14131_v6, 0.0 }
 0x6d4   : > { %v8499_v46 = vmul.f32 %v8371_v30, %v14188_v3  ;;  %v8116_v60 = vsub.f32 1.0, %v7988_v1  ;;  %v6966_v15 = vadd.f32 -0.28449672, %v6838_v14  ;;  %v7481_v5 = vsub.f32 0.0, %v14222_v39 }
 0x6d5   : > { %v7221_v57 = vadd.f32 0.2548296, %v7093_v28  ;;  %v6583_v56 = vmul.f32 %v14235_v47, %v6455_v54  ;;  %v5946_v3 = vmul.f32 0.3275911, %v14250_v31  ;;  %vm5558_vm12 = vcmp.ge.f32.partialorder %v14150_v41, 0.0 }
 0x6d6   : > { %v8627_v2 = vmul.f32 %v8499_v46, %v5043_v22  ;;  %v8244_v32 = vmul.f32 %v8116_v60, %v5684_v40  ;;  %v7094_v8 = vmul.f32 %v14212_v27, %v6966_v15  ;;  %v10376_v23 = vpop.eup %10375  ;;  %v7846_v7 = vmul.f32 1.442695, %v7608_v25 }
 0x6d7   : > { %v7349_v43 = vmul.f32 %v14202_v50, %v7221_v57  ;;  %v6711_v48 = vadd.f32 1.4214138, %v6583_v56  ;;  %v6074_v24 = vadd.f32 1.0, %v5946_v3  ;;  %v14264_v33 = vmul.f32 0.70710677, %v14255_v11  ;;  %v5046_v3 = vld [vmem:[#allocation2 + $0x250] sm:$0xff] }
 0x6d8   : > { %v14261_v18 = vpop.eup %10377  ;;  %8755 = vst [vmem:[#allocation12 + $0x348] sm:$0xff] %v8627_v2  ;;  %v8372_v62 = vadd.f32 1.0, %v8244_v32  ;;  %v7222_v36 = vadd.f32 0.2548296, %v7094_v8  ;;  %v7609_v50 = vmul.f32 %v7481_v5, %v14222_v39  ;;  %v5685_v44 = vsel %vm5557_vm11, 1.0, %v10656_v51 }
 0x6d9   : > { %v7989_v63 = vmul.f32 %v10374_v59, %v7349_v43  ;;  %v6839_v34 = vmul.f32 %v14235_v47, %v6711_v48  ;;  %v6328_v29 = vmul.f32 1.0614054, %v14261_v18  ;;  %10383 = vrcp.f32 %v6074_v24  ;;  %v5045_v59 = vld [vmem:[#allocation2 + $0x3d0] sm:$0xff] }
 0x6da   : > { %v8500_v12 = vmul.f32 %v8372_v62, %v14217_v13  ;;  %v7350_v9 = vmul.f32 %v14212_v27, %v7222_v36  ;;  %10385 = vpow2.f32 %v7846_v7  ;;  %v5686_v39 = vsel %vm5558_vm12, 1.0, %v10656_v51  ;;  %v14298_v7 = vld [vmem:[#allocation3 + $0xe8] sm:$0xff] }
 0x6db   : > { %v8117_v19 = vsub.f32 1.0, %v7989_v63  ;;  %v6967_v37 = vadd.f32 -0.28449672, %v6839_v34  ;;  %v6456_v45 = vadd.f32 -1.4531521, %v6328_v29  ;;  %v7482_v20 = vsub.f32 0.0, %v14250_v31 }
 0x6dc   : > { %v8628_v55 = vmul.f32 %v8500_v12, %v5044_v38  ;;  %v7990_v53 = vmul.f32 %v10376_v23, %v7350_v9  ;;  %v5819_v13 = vand.u32 2147483647, %v14264_v33  ;;  %v7848_v40 = vmul.f32 1.442695, %v7609_v50 }
 0x6dd   : > { %v8245_v16 = vmul.f32 %v8117_v19, %v5685_v44  ;;  %v7095_v6 = vmul.f32 %v14235_v47, %v6967_v37  ;;  %v6584_v27 = vmul.f32 %v14261_v18, %v6456_v45  ;;  %v14284_v1 = vmul.f32 0.70710677, %v14274_v0 }
 0x6de   : > { %8756 = vst [vmem:[#allocation12 + $0x350] sm:$0xff] %v8628_v55  ;;  %v8118_v4 = vsub.f32 1.0, %v7990_v53  ;;  %v5947_v30 = vmul.f32 0.3275911, %v5819_v13  ;;  %v14286_v14 = vpop.eup %10379  ;;  %v5302_v22 = vmul.f32 0.5, %v14134_v49  ;;  %vm5559_vm13 = vcmp.ge.f32.partialorder %v14166_v26, 0.0 }
 0x6df   : > { %v8373_v41 = vadd.f32 1.0, %v8245_v16  ;;  %v7223_v28 = vadd.f32 0.2548296, %v7095_v6  ;;  %v6712_v54 = vadd.f32 1.4214138, %v6584_v27  ;;  %v10382_v25 = vpop.eup %10381  ;;  %10387 = vpow2.f32 %v7848_v40  ;;  %v14320_v27 = vld [vmem:[#allocation3 + $0xb8] sm:$0xff] }
 0x6e0   : > { %v8246_v46 = vmul.f32 %v8118_v4, %v5686_v39  ;;  %v6329_v60 = vmul.f32 1.0614054, %v14286_v14  ;;  %v6075_v15 = vadd.f32 1.0, %v5947_v30  ;;  %v7610_v49 = vmul.f32 %v7482_v20, %v14250_v31 }
 0x6e1   : > { %v8501_v57 = vmul.f32 %v8373_v41, %v14242_v10  ;;  %v7351_v56 = vmul.f32 %v14235_v47, %v7223_v28  ;;  %v6840_v5 = vmul.f32 %v14261_v18, %v6712_v54  ;;  %v14296_v48 = vand.u32 2147483647, %v14284_v1 }
 0x6e2   : > { %v8374_v2 = vadd.f32 1.0, %v8246_v46  ;;  %v6457_v32 = vadd.f32 -1.4531521, %v6329_v60  ;;  %10389 = vrcp.f32 %v6075_v15  ;;  %v5687_v47 = vsel %vm5559_vm13, 1.0, %v10656_v51 }
 0x6e3   : > { %v8629_v8 = vmul.f32 %v8501_v57, %v5045_v59  ;;  %v7991_v23 = vmul.f32 %v10382_v25, %v7351_v56  ;;  %v6968_v43 = vadd.f32 -0.28449672, %v6840_v5  ;;  %v7483_v36 = vsub.f32 0.0, %v5819_v13 }
 0x6e4   : > { %v8502_v10 = vmul.f32 %v8374_v2, %v5302_v22  ;;  %v6585_v62 = vmul.f32 %v14286_v14, %v6457_v32  ;;  %v5303_v31 = vmul.f32 0.5, %v14158_v42  ;;  %v5948_v63 = vmul.f32 0.3275911, %v14296_v48 }
 0x6e5   : > { %8757 = vst [vmem:[#allocation12 + $0x358] sm:$0xff] %v8629_v8  ;;  %v8119_v24 = vsub.f32 1.0, %v7991_v23  ;;  %v7096_v38 = vmul.f32 %v14261_v18, %v6968_v43  ;;  %v7850_v50 = vmul.f32 1.442695, %v7610_v49  ;;  %v14308_v12 = vmul.f32 0.70710677, %v14298_v7 }
 0x6e6   : > { %v8630_v34 = vmul.f32 %v8502_v10, %v5046_v3  ;;  %v6713_v29 = vadd.f32 1.4214138, %v6585_v62  ;;  %v14310_v44 = vpop.eup %10383  ;;  %vm5560_vm14 = vcmp.ge.f32.partialorder %v14184_v35, 0.0  ;;  %v6076_v19 = vadd.f32 1.0, %v5948_v63  ;;  %v5047_v35 = vld [vmem:[#allocation2 + $0x378] sm:$0xff]  ;;  %v14339_v8 = vld [vmem:[#allocation3 + $0x1b0] sm:$0xff] }
 0x6e7   : > { %v8247_v26 = vmul.f32 %v8119_v24, %v5687_v47  ;;  %v7224_v9 = vadd.f32 0.2548296, %v7096_v38  ;;  %v10386_v37 = vpop.eup %10385  ;;  %v6330_v45 = vmul.f32 1.0614054, %v14310_v44  ;;  %v7611_v55 = vmul.f32 %v7483_v36, %v5819_v13  ;;  %v5048_v43 = vld [vmem:[#allocation2 + $0xb8] sm:$0xff] }
 0x6e8   : > { %8758 = vst [vmem:[#allocation12 + $0x360] sm:$0xff] %v8630_v34  ;;  %v6841_v42 = vmul.f32 %v14286_v14, %v6713_v29  ;;  %v14316_v39 = vand.u32 2147483647, %v14308_v12  ;;  %v5304_v16 = vmul.f32 0.5, %v14178_v58  ;;  %10391 = vrcp.f32 %v6076_v19 }
 0x6e9   : > { %v8375_v53 = vadd.f32 1.0, %v8247_v26  ;;  %v7352_v6 = vmul.f32 %v14261_v18, %v7224_v9  ;;  %v5688_v40 = vsel %vm5560_vm14, 1.0, %v10656_v51  ;;  %v6458_v20 = vadd.f32 -1.4531521, %v6330_v45  ;;  %v14356_v26 = vld [vmem:[#allocation3] sm:$0xff] }
 0x6ea   : > { %v6969_v4 = vadd.f32 -0.28449672, %v6841_v42  ;;  %10393 = vpow2.f32 %v7850_v50  ;;  %vm5561_vm15 = vcmp.ge.f32.partialorder %v14210_v21, 0.0  ;;  %v5949_v13 = vmul.f32 0.3275911, %v14316_v39 }
 0x6eb   : > { %v8503_v30 = vmul.f32 %v8375_v53, %v5303_v31  ;;  %v7992_v41 = vmul.f32 %v10386_v37, %v7352_v6  ;;  %v6586_v58 = vmul.f32 %v14310_v44, %v6458_v20  ;;  %v7852_v18 = vmul.f32 1.442695, %v7611_v55 }
 0x6ec   : > { %v7097_v22 = vmul.f32 %v14286_v14, %v6969_v4  ;;  %v14328_v28 = vmul.f32 0.70710677, %v14320_v27  ;;  %v7484_v59 = vsub.f32 0.0, %v14296_v48  ;;  %v6077_v46 = vadd.f32 1.0, %v5949_v13  ;;  %v10388_v60 = vpop.eup %10387  ;;  %v5049_v13 = vld [vmem:[#allocation2 + $0x38] sm:$0xff] }
 0x6ed   : > { %v8631_v54 = vmul.f32 %v8503_v30, %v5047_v35  ;;  %v8120_v25 = vsub.f32 1.0, %v7992_v41  ;;  %v5305_v15 = vmul.f32 0.5, %v14200_v52  ;;  %v5689_v21 = vsel %vm5561_vm15, 1.0, %v10656_v51 }
 0x6ee   : > { %v7225_v57 = vadd.f32 0.2548296, %v7097_v22  ;;  %v6714_v56 = vadd.f32 1.4214138, %v6586_v58  ;;  %v14336_v32 = vmul.f32 0.5, %v14224_v61  ;;  %10395 = vrcp.f32 %v6077_v46 }
 0x6ef   : > { %v14333_v5 = vpop.eup %10389  ;;  %8759 = vst [vmem:[#allocation12 + $0x368] sm:$0xff] %v8631_v54  ;;  %v8248_v2 = vmul.f32 %v8120_v25, %v5688_v40  ;;  %v5822_v49 = vand.u32 2147483647, %v14328_v28  ;;  %vm5562_vm0 = vcmp.ge.f32.partialorder %v14233_v17, 0.0  ;;  %10397 = vpow2.f32 %v7852_v18 }
 0x6f0   : > { %v7353_v3 = vmul.f32 %v14286_v14, %v7225_v57  ;;  %v6842_v52 = vmul.f32 %v14310_v44, %v6714_v56  ;;  %v6331_v23 = vmul.f32 1.0614054, %v14333_v5  ;;  %v7612_v47 = vmul.f32 %v7484_v59, %v14296_v48 }
 0x6f1   : > { %v8376_v10 = vadd.f32 1.0, %v8248_v2  ;;  %v5950_v61 = vmul.f32 0.3275911, %v5822_v49  ;;  %v14347_v24 = vmul.f32 0.70710677, %v14339_v8  ;;  %v5690_v14 = vsel %vm5562_vm0, 1.0, %v10656_v51 }
 0x6f2   : > { %v7993_v62 = vmul.f32 %v10388_v60, %v7353_v3  ;;  %v6970_v36 = vadd.f32 -0.28449672, %v6842_v52  ;;  %v6459_v31 = vadd.f32 -1.4531521, %v6331_v23  ;;  %v7485_v17 = vsub.f32 0.0, %v14316_v39  ;;  %v14380_v3 = vld [vmem:[#allocation3 + $0x1e0] sm:$0xff] }
 0x6f3   : > { %v8504_v38 = vmul.f32 %v8376_v10, %v5304_v16  ;;  %v6078_v63 = vadd.f32 1.0, %v5950_v61  ;;  %v14353_v50 = vmul.f32 0.5, %v14255_v11  ;;  %v14359_v19 = vmul.f32 0.5, %v14274_v0 }
 0x6f4   : > { %v8121_v34 = vsub.f32 1.0, %v7993_v62  ;;  %v7098_v29 = vmul.f32 %v14310_v44, %v6970_v36  ;;  %v6587_v48 = vmul.f32 %v14333_v5, %v6459_v31  ;;  %v7854_v37 = vmul.f32 1.442695, %v7612_v47 }
 0x6f5   : > { %v8632_v9 = vmul.f32 %v8504_v38, %v5048_v43  ;;  %10399 = vrcp.f32 %v6078_v63  ;;  %v14361_v42 = vpop.eup %10391  ;;  %v5823_v16 = vand.u32 2147483647, %v14347_v24  ;;  %v7613_v35 = vmul.f32 %v7485_v17, %v14316_v39  ;;  %v5050_v63 = vld [vmem:[#allocation2 + $0x78] sm:$0xff] }
 0x6f6   : > { %v8249_v45 = vmul.f32 %v8121_v34, %v5689_v21  ;;  %v7226_v55 = vadd.f32 0.2548296, %v7098_v29  ;;  %v6715_v53 = vadd.f32 1.4214138, %v6587_v48  ;;  %v6332_v11 = vmul.f32 1.0614054, %v14361_v42 }
 0x6f7   : > { %v10394_v6 = vpop.eup %10393  ;;  %8760 = vst [vmem:[#allocation12 + $0x370] sm:$0xff] %v8632_v9  ;;  %v7486_v40 = vsub.f32 0.0, %v5822_v49  ;;  %v14367_v4 = vmul.f32 0.70710677, %v14356_v26  ;;  %v5951_v41 = vmul.f32 0.3275911, %v5823_v16  ;;  %10401 = vpow2.f32 %v7854_v37 }
 0x6f8   : > { %v8377_v0 = vadd.f32 1.0, %v8249_v45  ;;  %v7354_v20 = vmul.f32 %v14310_v44, %v7226_v55  ;;  %v6843_v30 = vmul.f32 %v14333_v5, %v6715_v53  ;;  %vm5563_vm1 = vcmp.ge.f32.partialorder %v14264_v33, 0.0  ;;  %v14405_v53 = vld [vmem:[#allocation3 + $0x100] sm:$0xff] }
 0x6f9   : > { %v6460_v22 = vadd.f32 -1.4531521, %v6332_v11  ;;  %v14373_v58 = vand.u32 2147483647, %v14367_v4  ;;  %v6079_v25 = vadd.f32 1.0, %v5951_v41  ;;  %v7614_v60 = vmul.f32 %v7486_v40, %v5822_v49 }
 0x6fa   : > { %v8505_v18 = vmul.f32 %v8377_v0, %v5305_v15  ;;  %v7994_v39 = vmul.f32 %v10394_v6, %v7354_v20  ;;  %v6971_v54 = vadd.f32 -0.28449672, %v6843_v30  ;;  %v7856_v46 = vmul.f32 1.442695, %v7613_v35 }
 0x6fb   : > { %v6588_v59 = vmul.f32 %v14361_v42, %v6460_v22  ;;  %v5952_v44 = vmul.f32 0.3275911, %v14373_v58  ;;  %v14377_v21 = vpop.eup %10395  ;;  %10403 = vrcp.f32 %v6079_v25  ;;  %v5691_v15 = vsel %vm5563_vm1, 1.0, %v10656_v51 }
 0x6fc   : > { %v8633_v57 = vmul.f32 %v8505_v18, %v5049_v13  ;;  %v8122_v56 = vsub.f32 1.0, %v7994_v39  ;;  %v7099_v2 = vmul.f32 %v14333_v5, %v6971_v54  ;;  %vm5564_vm2 = vcmp.ge.f32.partialorder %v14284_v1, 0.0  ;;  %v10398_v23 = vpop.eup %10397 }
 0x6fd   : > { %v6716_v52 = vadd.f32 1.4214138, %v6588_v59  ;;  %v6333_v49 = vmul.f32 1.0614054, %v14377_v21  ;;  %v7487_v47 = vsub.f32 0.0, %v5823_v16  ;;  %v6080_v61 = vadd.f32 1.0, %v5952_v44 }
 0x6fe   : > { %8761 = vst [vmem:[#allocation12 + $0x378] sm:$0xff] %v8633_v57  ;;  %v8250_v43 = vmul.f32 %v8122_v56, %v5690_v14  ;;  %v7227_v10 = vadd.f32 0.2548296, %v7099_v2  ;;  %10405 = vpow2.f32 %v7856_v46  ;;  %v14389_v31 = vmul.f32 0.70710677, %v14380_v3 }
 0x6ff   : > { %v6844_v62 = vmul.f32 %v14361_v42, %v6716_v52  ;;  %v6461_v36 = vadd.f32 -1.4531521, %v6333_v49  ;;  %v7858_v17 = vmul.f32 1.442695, %v7614_v60  ;;  %10407 = vrcp.f32 %v6080_v61 }
 0x700   : > { %v8378_v33 = vadd.f32 1.0, %v8250_v43  ;;  %v7355_v38 = vmul.f32 %v14333_v5, %v7227_v10  ;;  %v5692_v14 = vsel %vm5564_vm2, 1.0, %v10656_v51  ;;  %v14397_v48 = vand.u32 2147483647, %v14389_v31 }
 0x701   : > { %v6972_v34 = vadd.f32 -0.28449672, %v6844_v62  ;;  %v6589_v29 = vmul.f32 %v14377_v21, %v6461_v36  ;;  %v14403_v5 = vmul.f32 0.5, %v14298_v7  ;;  %v7615_v55 = vmul.f32 %v7487_v47, %v5823_v16  ;;  %v14431_v47 = vld [vmem:[#allocation3 + $0xa0] sm:$0xff] }
 0x702   : > { %v14399_v9 = vpop.eup %10399  ;;  %v8506_v37 = vmul.f32 %v8378_v33, %v14336_v32  ;;  %v7995_v45 = vmul.f32 %v10398_v23, %v7355_v38  ;;  %v5953_v35 = vmul.f32 0.3275911, %v14397_v48  ;;  %10409 = vpow2.f32 %v7858_v17 }
 0x703   : > { %v7100_v1 = vmul.f32 %v14361_v42, %v6972_v34  ;;  %v6717_v6 = vadd.f32 1.4214138, %v6589_v29  ;;  %v6334_v11 = vmul.f32 1.0614054, %v14399_v9  ;;  %v7488_v20 = vsub.f32 0.0, %v14373_v58 }
 0x704   : > { %v8634_v40 = vmul.f32 %v8506_v37, %v5050_v63  ;;  %v8123_v0 = vsub.f32 1.0, %v7995_v45  ;;  %v6081_v41 = vadd.f32 1.0, %v5953_v35  ;;  %v10402_v16 = vpop.eup %10401  ;;  %vm5565_vm3 = vcmp.ge.f32.partialorder %v14308_v12, 0.0  ;;  %v5051_v12 = vld [vmem:[#allocation2 + $0x308] sm:$0xff] }
 0x705   : > { %v7228_v32 = vadd.f32 0.2548296, %v7100_v1  ;;  %v6845_v30 = vmul.f32 %v14377_v21, %v6717_v6  ;;  %v6462_v7 = vadd.f32 -1.4531521, %v6334_v11  ;;  %v7860_v22 = vmul.f32 1.442695, %v7615_v55 }
 0x706   : > { %8762 = vst [vmem:[#allocation12 + $0x380] sm:$0xff] %v8634_v40  ;;  %v8251_v13 = vmul.f32 %v8123_v0, %v5691_v15  ;;  %v14414_v18 = vmul.f32 0.70710677, %v14405_v53  ;;  %10411 = vrcp.f32 %v6081_v41  ;;  %v14419_v46 = vmul.f32 0.5, %v14320_v27  ;;  %v5052_v11 = vld [vmem:[#allocation2 + $0x370] sm:$0xff] }
 0x707   : > { %v7356_v39 = vmul.f32 %v14361_v42, %v7228_v32  ;;  %v6973_v54 = vadd.f32 -0.28449672, %v6845_v30  ;;  %v6590_v25 = vmul.f32 %v14399_v9, %v6462_v7  ;;  %v7616_v60 = vmul.f32 %v7488_v20, %v14373_v58 }
 0x708   : > { %v8379_v59 = vadd.f32 1.0, %v8251_v13  ;;  %v5826_v44 = vand.u32 2147483647, %v14414_v18  ;;  %v14423_v57 = vpop.eup %10403  ;;  %v5693_v2 = vsel %vm5565_vm3, 1.0, %v10656_v51  ;;  %10413 = vpow2.f32 %v7860_v22 }
 0x709   : > { %v7996_v56 = vmul.f32 %v10402_v16, %v7356_v39  ;;  %v7101_v42 = vmul.f32 %v14377_v21, %v6973_v54  ;;  %v6718_v15 = vadd.f32 1.4214138, %v6590_v25  ;;  %v6335_v49 = vmul.f32 1.0614054, %v14423_v57  ;;  %v14451_v54 = vld [vmem:[#allocation3 + $0x258] sm:$0xff] }
 0x70a   : > { %v8507_v52 = vmul.f32 %v8379_v59, %v14353_v50  ;;  %v5954_v27 = vmul.f32 0.3275911, %v5826_v44  ;;  %v7489_v10 = vsub.f32 0.0, %v14397_v48  ;;  %v7862_v33 = vmul.f32 1.442695, %v7616_v60 }
 0x70b   : > { %v8124_v23 = vsub.f32 1.0, %v7996_v56  ;;  %v7229_v43 = vadd.f32 0.2548296, %v7101_v42  ;;  %v6846_v58 = vmul.f32 %v14399_v9, %v6718_v15  ;;  %v10406_v61 = vpop.eup %10405  ;;  %v6463_v36 = vadd.f32 -1.4531521, %v6335_v49 }
 0x70c   : > { %v8635_v62 = vmul.f32 %v8507_v52, %v5051_v12  ;;  %v6082_v38 = vadd.f32 1.0, %v5954_v27  ;;  %v14433_v17 = vpop.eup %10407  ;;  %vm5566_vm4 = vcmp.ge.f32.partialorder %v14328_v28, 0.0  ;;  %v14440_v45 = vmul.f32 0.70710677, %v14431_v47  ;;  %v5053_v52 = vld [vmem:[#allocation2 + $0xc8] sm:$0xff] }
 0x70d   : > { %v8252_v50 = vmul.f32 %v8124_v23, %v5692_v14  ;;  %v7357_v63 = vmul.f32 %v14377_v21, %v7229_v43  ;;  %v6974_v34 = vadd.f32 -0.28449672, %v6846_v58  ;;  %v6591_v29 = vmul.f32 %v14423_v57, %v6463_v36 }
 0x70e   : > { %8763 = vst [vmem:[#allocation12 + $0x388] sm:$0xff] %v8635_v62  ;;  %v6336_v37 = vmul.f32 1.0614054, %v14433_v17  ;;  %10415 = vrcp.f32 %v6082_v38  ;;  %v7617_v14 = vmul.f32 %v7489_v10, %v14397_v48  ;;  %v5694_v21 = vsel %vm5566_vm4, 1.0, %v10656_v51 }
 0x70f   : > { %v8380_v55 = vadd.f32 1.0, %v8252_v50  ;;  %v7997_v1 = vmul.f32 %v10406_v61, %v7357_v63  ;;  %v7102_v6 = vmul.f32 %v14399_v9, %v6974_v34  ;;  %v6719_v28 = vadd.f32 1.4214138, %v6591_v29  ;;  %v10410_v40 = vpop.eup %10409 }
 0x710   : > { %v6464_v35 = vadd.f32 -1.4531521, %v6336_v37  ;;  %10417 = vpow2.f32 %v7862_v33  ;;  %v7490_v30 = vsub.f32 0.0, %v5826_v44  ;;  %vm5567_vm5 = vcmp.ge.f32.partialorder %v14347_v24, 0.0  ;;  %v14470_v37 = vld [vmem:[#allocation3 + $0x1a8] sm:$0xff] }
 0x711   : > { %v8508_v0 = vmul.f32 %v8380_v55, %v14359_v19  ;;  %v8125_v20 = vsub.f32 1.0, %v7997_v1  ;;  %v7230_v32 = vadd.f32 0.2548296, %v7102_v6  ;;  %v6847_v7 = vmul.f32 %v14423_v57, %v6719_v28  ;;  %v5054_v55 = vld [vmem:[#allocation2 + $0x278] sm:$0xff] }
 0x712   : > { %v6592_v41 = vmul.f32 %v14433_v17, %v6464_v35  ;;  %v5827_v48 = vand.u32 2147483647, %v14440_v45  ;;  %v7864_v39 = vmul.f32 1.442695, %v7617_v14  ;;  %v7618_v15 = vmul.f32 %v7490_v30, %v5826_v44 }
 0x713   : > { %v8636_v16 = vmul.f32 %v8508_v0, %v5052_v11  ;;  %v8253_v13 = vmul.f32 %v8125_v20, %v5693_v2  ;;  %v7358_v22 = vmul.f32 %v14399_v9, %v7230_v32  ;;  %v14453_v25 = vpop.eup %10411  ;;  %v6975_v19 = vadd.f32 -0.28449672, %v6847_v7 }
 0x714   : > { %v6720_v59 = vadd.f32 1.4214138, %v6592_v41  ;;  %v5955_v60 = vmul.f32 0.3275911, %v5827_v48  ;;  %v6337_v42 = vmul.f32 1.0614054, %v14453_v25  ;;  %10419 = vpow2.f32 %v7864_v39 }
 0x715   : > { %8764 = vst [vmem:[#allocation12 + $0x390] sm:$0xff] %v8636_v16  ;;  %v8381_v12 = vadd.f32 1.0, %v8253_v13  ;;  %v7998_v56 = vmul.f32 %v10410_v40, %v7358_v22  ;;  %v7103_v49 = vmul.f32 %v14423_v57, %v6975_v19  ;;  %v14459_v27 = vmul.f32 0.70710677, %v14451_v54  ;;  %v10414_v23 = vpop.eup %10413 }
 0x716   : > { %v6848_v2 = vmul.f32 %v14433_v17, %v6720_v59  ;;  %v6083_v9 = vadd.f32 1.0, %v5955_v60  ;;  %v6465_v10 = vadd.f32 -1.4531521, %v6337_v42  ;;  %v5311_v61 = vmul.f32 0.5, %v14339_v8  ;;  %v14484_v59 = vld [vmem:[#allocation3 + $0x110] sm:$0xff] }
 0x717   : > { %v8509_v43 = vmul.f32 %v8381_v12, %v14403_v5  ;;  %v8126_v58 = vsub.f32 1.0, %v7998_v56  ;;  %v7231_v62 = vadd.f32 0.2548296, %v7103_v49  ;;  %v7866_v50 = vmul.f32 1.442695, %v7618_v15  ;;  %v5055_v12 = vld [vmem:[#allocation2 + $0x360] sm:$0xff] }
 0x718   : > { %v6976_v36 = vadd.f32 -0.28449672, %v6848_v2  ;;  %10421 = vrcp.f32 %v6083_v9  ;;  %v6593_v38 = vmul.f32 %v14453_v25, %v6465_v10  ;;  %v5695_v63 = vsel %vm5567_vm5, 1.0, %v10656_v51 }
 0x719   : > { %v8637_v44 = vmul.f32 %v8509_v43, %v5053_v52  ;;  %v8254_v33 = vmul.f32 %v8126_v58, %v5694_v21  ;;  %v7359_v34 = vmul.f32 %v14423_v57, %v7231_v62  ;;  %v5828_v29 = vand.u32 2147483647, %v14459_v27 }
 0x71a   : > { %v7104_v5 = vmul.f32 %v14433_v17, %v6976_v36  ;;  %vm5568_vm6 = vcmp.ge.f32.partialorder %v14367_v4, 0.0  ;;  %v6721_v6 = vadd.f32 1.4214138, %v6593_v38  ;;  %v7491_v14 = vsub.f32 0.0, %v5827_v48 }
 0x71b   : > { %v14472_v8 = vpop.eup %10415  ;;  %8765 = vst [vmem:[#allocation12 + $0x398] sm:$0xff] %v8637_v44  ;;  %v8382_v1 = vadd.f32 1.0, %v8254_v33  ;;  %v7999_v11 = vmul.f32 %v10414_v23, %v7359_v34  ;;  %v5956_v57 = vmul.f32 0.3275911, %v5828_v29  ;;  %10423 = vpow2.f32 %v7866_v50  ;;  %v5056_v34 = vld [vmem:[#allocation2 + $0x228] sm:$0xff] }
 0x71c   : > { %v7232_v24 = vadd.f32 0.2548296, %v7104_v5  ;;  %v6338_v21 = vmul.f32 1.0614054, %v14472_v8  ;;  %v6849_v40 = vmul.f32 %v14453_v25, %v6721_v6  ;;  %v14479_v0 = vmul.f32 0.70710677, %v14470_v37 }
 0x71d   : > { %v10418_v28 = vpop.eup %10417  ;;  %v8510_v35 = vmul.f32 %v8382_v1, %v14419_v46  ;;  %v8127_v20 = vsub.f32 1.0, %v7999_v11  ;;  %v6084_v7 = vadd.f32 1.0, %v5956_v57  ;;  %v5312_v16 = vmul.f32 0.5, %v14356_v26  ;;  %v14504_v1 = vld [vmem:[#allocation3 + $0x2c0] sm:$0xff] }
 0x71e   : > { %v7360_v32 = vmul.f32 %v14433_v17, %v7232_v24  ;;  %v6466_v30 = vadd.f32 -1.4531521, %v6338_v21  ;;  %v6977_v13 = vadd.f32 -0.28449672, %v6849_v40  ;;  %v7619_v22 = vmul.f32 %v7491_v14, %v5827_v48 }
 0x71f   : > { %v8638_v41 = vmul.f32 %v8510_v35, %v5054_v55  ;;  %v8255_v39 = vmul.f32 %v8127_v20, %v5695_v63  ;;  %10425 = vrcp.f32 %v6084_v7  ;;  %v5696_v60 = vsel %vm5568_vm6, 1.0, %v10656_v51 }
 0x720   : > { %v8000_v19 = vmul.f32 %v10418_v28, %v7360_v32  ;;  %v6594_v46 = vmul.f32 %v14472_v8, %v6466_v30  ;;  %vm5569_vm7 = vcmp.ge.f32.partialorder %v14389_v31, 0.0  ;;  %v7105_v17 = vmul.f32 %v14453_v25, %v6977_v13  ;;  %v14515_v13 = vld [vmem:[#allocation3 + $0x298] sm:$0xff] }
 0x721   : > { %8766 = vst [vmem:[#allocation12 + $0x3a0] sm:$0xff] %v8638_v41  ;;  %v5829_v26 = vand.u32 2147483647, %v14479_v0  ;;  %v8383_v48 = vadd.f32 1.0, %v8255_v39  ;;  %v7492_v15 = vsub.f32 0.0, %v5828_v29  ;;  %v10420_v9 = vpop.eup %10419  ;;  %v5697_v62 = vsel %vm5569_vm7, 1.0, %v10656_v51 }
 0x722   : > { %v8128_v56 = vsub.f32 1.0, %v8000_v19  ;;  %v6722_v42 = vadd.f32 1.4214138, %v6594_v46  ;;  %v7233_v52 = vadd.f32 0.2548296, %v7105_v17  ;;  %vm5570_vm8 = vcmp.ge.f32.partialorder %v14414_v18, 0.0 }
 0x723   : > { %v5957_v49 = vmul.f32 0.3275911, %v5829_v26  ;;  %v14493_v2 = vmul.f32 0.70710677, %v14484_v59  ;;  %v8511_v23 = vmul.f32 %v8383_v48, %v5311_v61  ;;  %v7868_v58 = vmul.f32 1.442695, %v7619_v22 }
 0x724   : > { %v8256_v4 = vmul.f32 %v8128_v56, %v5696_v60  ;;  %v6850_v43 = vmul.f32 %v14472_v8, %v6722_v42  ;;  %v7361_v36 = vmul.f32 %v14453_v25, %v7233_v52  ;;  %v7620_v5 = vmul.f32 %v7492_v15, %v5828_v29 }
 0x725   : > { %v14496_v10 = vpop.eup %10421  ;;  %v6085_v44 = vadd.f32 1.0, %v5957_v49  ;;  %v8639_v33 = vmul.f32 %v8511_v23, %v5055_v12  ;;  %v5830_v55 = vand.u32 2147483647, %v14493_v2  ;;  %v7493_v11 = vsub.f32 0.0, %v5829_v26 }
 0x726   : > { %v8384_v38 = vadd.f32 1.0, %v8256_v4  ;;  %v6978_v50 = vadd.f32 -0.28449672, %v6850_v43  ;;  %v6339_v63 = vmul.f32 1.0614054, %v14496_v10  ;;  %v8001_v61 = vmul.f32 %v10420_v9, %v7361_v36 }
 0x727   : > { %10427 = vrcp.f32 %v6085_v44  ;;  %8767 = vst [vmem:[#allocation12 + $0x3a8] sm:$0xff] %v8639_v33  ;;  %v5958_v24 = vmul.f32 0.3275911, %v5830_v55  ;;  %v14510_v35 = vmul.f32 0.70710677, %v14504_v1  ;;  %v5313_v40 = vmul.f32 0.5, %v14380_v3 }
 0x728   : > { %v8512_v6 = vmul.f32 %v8384_v38, %v5312_v16  ;;  %v7106_v31 = vmul.f32 %v14472_v8, %v6978_v50  ;;  %v6467_v14 = vadd.f32 -1.4531521, %v6339_v63  ;;  %10429 = vpow2.f32 %v7868_v58  ;;  %v10424_v21 = vpop.eup %10423  ;;  %v5057_v3 = vld [vmem:[#allocation2 + $0x348] sm:$0xff] }
 0x729   : > { %v8129_v25 = vsub.f32 1.0, %v8001_v61  ;;  %v7870_v32 = vmul.f32 1.442695, %v7620_v5  ;;  %v6086_v30 = vadd.f32 1.0, %v5958_v24  ;;  %v5831_v16 = vand.u32 2147483647, %v14510_v35 }
 0x72a   : > { %v8640_v57 = vmul.f32 %v8512_v6, %v5056_v34  ;;  %v7234_v28 = vadd.f32 0.2548296, %v7106_v31  ;;  %v6595_v29 = vmul.f32 %v14496_v10, %v6467_v14  ;;  %v5698_v19 = vsel %vm5570_vm8, 1.0, %v10656_v51  ;;  %v14532_v44 = vld [vmem:[#allocation3 + $0xc8] sm:$0xff] }
 0x72b   : > { %v8257_v20 = vmul.f32 %v8129_v25, %v5697_v62  ;;  %v7621_v46 = vmul.f32 %v7493_v11, %v5829_v26  ;;  %10431 = vrcp.f32 %v6086_v30  ;;  %v5959_v12 = vmul.f32 0.3275911, %v5831_v16  ;;  %v5058_v61 = vld [vmem:[#allocation2 + $0x148] sm:$0xff] }
 0x72c   : > { %8768 = vst [vmem:[#allocation12 + $0x3b0] sm:$0xff] %v8640_v57  ;;  %v7362_v7 = vmul.f32 %v14472_v8, %v7234_v28  ;;  %v6723_v41 = vadd.f32 1.4214138, %v6595_v29  ;;  %v14517_v22 = vpop.eup %10425  ;;  %10433 = vpow2.f32 %v7870_v32  ;;  %v7494_v56 = vsub.f32 0.0, %v5830_v55 }
 0x72d   : > { %v8385_v39 = vadd.f32 1.0, %v8257_v20  ;;  %v6340_v8 = vmul.f32 1.0614054, %v14517_v22  ;;  %v14525_v42 = vmul.f32 0.70710677, %v14515_v13  ;;  %v6087_v18 = vadd.f32 1.0, %v5959_v12 }
 0x72e   : > { %v8002_v60 = vmul.f32 %v10424_v21, %v7362_v7  ;;  %v6851_v17 = vmul.f32 %v14496_v10, %v6723_v41  ;;  %v5314_v26 = vmul.f32 0.5, %v14405_v53  ;;  %v7872_v23 = vmul.f32 1.442695, %v7621_v46 }
 0x72f   : > { %v8513_v48 = vmul.f32 %v8385_v39, %v5313_v40  ;;  %v6468_v49 = vadd.f32 -1.4531521, %v6340_v8  ;;  %v5832_v4 = vand.u32 2147483647, %v14525_v42  ;;  %10435 = vrcp.f32 %v6087_v18  ;;  %v5059_v18 = vld [vmem:[#allocation2 + $0xf8] sm:$0xff] }
 0x730   : > { %v8130_v15 = vsub.f32 1.0, %v8002_v60  ;;  %v6979_v52 = vadd.f32 -0.28449672, %v6851_v17  ;;  %vm5571_vm9 = vcmp.ge.f32.partialorder %v14440_v45, 0.0  ;;  %v7622_v63 = vmul.f32 %v7494_v56, %v5830_v55 }
 0x731   : > { %v8641_v9 = vmul.f32 %v8513_v48, %v5057_v3  ;;  %v6596_v62 = vmul.f32 %v14517_v22, %v6468_v49  ;;  %v5960_v36 = vmul.f32 0.3275911, %v5832_v4  ;;  %10437 = vpow2.f32 %v7872_v23 }
 0x732   : > { %v8258_v43 = vmul.f32 %v8130_v15, %v5698_v19  ;;  %v7107_v58 = vmul.f32 %v14496_v10, %v6979_v52  ;;  %v7495_v6 = vsub.f32 0.0, %v5831_v16  ;;  %v14540_v24 = vmul.f32 0.70710677, %v14532_v44 }
 0x733   : > { %8769 = vst [vmem:[#allocation12 + $0x3b8] sm:$0xff] %v8641_v9  ;;  %v6724_v53 = vadd.f32 1.4214138, %v6596_v62  ;;  %v6088_v31 = vadd.f32 1.0, %v5960_v36  ;;  %v7874_v29 = vmul.f32 1.442695, %v7622_v63 }
 0x734   : > { %v14534_v33 = vpop.eup %10427  ;;  %v8386_v38 = vadd.f32 1.0, %v8258_v43  ;;  %v7235_v50 = vadd.f32 0.2548296, %v7107_v58  ;;  %v5699_v40 = vsel %vm5571_vm9, 1.0, %v10656_v51  ;;  %v7623_v32 = vmul.f32 %v7495_v6, %v5831_v16 }
 0x735   : > { %v10430_v34 = vpop.eup %10429  ;;  %v6341_v5 = vmul.f32 1.0614054, %v14534_v33  ;;  %v6852_v11 = vmul.f32 %v14517_v22, %v6724_v53  ;;  %10439 = vrcp.f32 %v6088_v31  ;;  %v7496_v39 = vsub.f32 0.0, %v5832_v4 }
 0x736   : > { %v8514_v14 = vmul.f32 %v8386_v38, %v5314_v26  ;;  %v7363_v25 = vmul.f32 %v14496_v10, %v7235_v50  ;;  %v5833_v10 = vand.u32 2147483647, %v14540_v24  ;;  %v5315_v45 = vmul.f32 0.5, %v14431_v47 }
 0x737   : > { %v6469_v21 = vadd.f32 -1.4531521, %v6341_v5  ;;  %v6980_v55 = vadd.f32 -0.28449672, %v6852_v11  ;;  %10441 = vpow2.f32 %v7874_v29  ;;  %v7876_v48 = vmul.f32 1.442695, %v7623_v32 }
 0x738   : > { %v8642_v57 = vmul.f32 %v8514_v14, %v5058_v61  ;;  %v8003_v28 = vmul.f32 %v10430_v34, %v7363_v25  ;;  %v14547_v30 = vpop.eup %10431  ;;  %v5961_v3 = vmul.f32 0.3275911, %v5833_v10  ;;  %vm5572_vm10 = vcmp.ge.f32.partialorder %v14459_v27, 0.0  ;;  %v5060_v29 = vld [vmem:[#allocation2 + $0x68] sm:$0xff] }
 0x739   : > { %v6597_v20 = vmul.f32 %v14534_v33, %v6469_v21  ;;  %v7108_v41 = vmul.f32 %v14517_v22, %v6980_v55  ;;  %v6342_v46 = vmul.f32 1.0614054, %v14547_v30  ;;  %v10434_v60 = vpop.eup %10433  ;;  %v7624_v47 = vmul.f32 %v7496_v39, %v5832_v4 }
 0x73a   : > { %8770 = vst [vmem:[#allocation12 + $0x3c0] sm:$0xff] %v8642_v57  ;;  %v8131_v7 = vsub.f32 1.0, %v8003_v28  ;;  %v6089_v56 = vadd.f32 1.0, %v5961_v3  ;;  %v5700_v62 = vsel %vm5572_vm10, 1.0, %v10656_v51  ;;  %v7497_v63 = vsub.f32 0.0, %v5833_v10 }
 0x73b   : > { %v6725_v19 = vadd.f32 1.4214138, %v6597_v20  ;;  %v7236_v8 = vadd.f32 0.2548296, %v7108_v41  ;;  %v6470_v12 = vadd.f32 -1.4531521, %v6342_v46 }
 0x73c   : > { %v8259_v17 = vmul.f32 %v8131_v7, %v5699_v40  ;;  %v14555_v49 = vpop.eup %10435  ;;  %10443 = vrcp.f32 %v6089_v56  ;;  %v7878_v4 = vmul.f32 1.442695, %v7624_v47  ;;  %v5316_v6 = vmul.f32 0.5, %v14451_v54 }
 0x73d   : > { %v6853_v16 = vmul.f32 %v14534_v33, %v6725_v19  ;;  %v7364_v52 = vmul.f32 %v14517_v22, %v7236_v8  ;;  %v6598_v26 = vmul.f32 %v14547_v30, %v6470_v12  ;;  %v6343_v58 = vmul.f32 1.0614054, %v14555_v49 }
 0x73e   : > { %v8387_v15 = vadd.f32 1.0, %v8259_v17  ;;  %10445 = vpow2.f32 %v7876_v48  ;;  %v10438_v27 = vpop.eup %10437  ;;  %vm5573_vm11 = vcmp.ge.f32.partialorder %v14479_v0, 0.0  ;;  %v7625_v55 = vmul.f32 %v7497_v63, %v5833_v10 }
 0x73f   : > { %v6981_v9 = vadd.f32 -0.28449672, %v6853_v16  ;;  %v8004_v43 = vmul.f32 %v10434_v60, %v7364_v52  ;;  %v6726_v38 = vadd.f32 1.4214138, %v6598_v26  ;;  %v6471_v53 = vadd.f32 -1.4531521, %v6343_v58 }
 0x740   : > { %v8515_v23 = vmul.f32 %v8387_v15, %v5315_v45  ;;  %10447 = vpow2.f32 %v7878_v4  ;;  %v5701_v7 = vsel %vm5573_vm11, 1.0, %v10656_v51  ;;  %v5317_v3 = vmul.f32 0.5, %v14470_v37  ;;  %v5062_v4 = vld [vmem:[#allocation2 + $0x298] sm:$0xff] }
 0x741   : > { %v7109_v36 = vmul.f32 %v14534_v33, %v6981_v9  ;;  %v8132_v50 = vsub.f32 1.0, %v8004_v43  ;;  %v6854_v61 = vmul.f32 %v14547_v30, %v6726_v38  ;;  %v6599_v14 = vmul.f32 %v14555_v49, %v6471_v53  ;;  %v5061_v9 = vld [vmem:[#allocation2] sm:$0xff] }
 0x742   : > { %v8643_v22 = vmul.f32 %v8515_v23, %v5059_v18  ;;  %v14562_v5 = vpop.eup %10439  ;;  %v7880_v60 = vmul.f32 1.442695, %v7625_v55  ;;  %vm5574_vm12 = vcmp.ge.f32.partialorder %v14493_v2, 0.0  ;;  %v5318_v43 = vmul.f32 0.5, %v14484_v59  ;;  %v5063_v55 = vld [vmem:[#allocation2 + $0x270] sm:$0xff] }
 0x743   : > { %v7237_v34 = vadd.f32 0.2548296, %v7109_v36  ;;  %v8260_v31 = vmul.f32 %v8132_v50, %v5700_v62  ;;  %v6982_v11 = vadd.f32 -0.28449672, %v6854_v61  ;;  %v6344_v21 = vmul.f32 1.0614054, %v14562_v5 }
 0x744   : > { %8771 = vst [vmem:[#allocation12 + $0x3c8] sm:$0xff] %v8643_v22  ;;  %v6727_v28 = vadd.f32 1.4214138, %v6599_v14  ;;  %v10442_v0 = vpop.eup %10441  ;;  %v5702_v37 = vsel %vm5574_vm12, 1.0, %v10656_v51  ;;  %10449 = vpow2.f32 %v7880_v60  ;;  %vm5575_vm13 = vcmp.ge.f32.partialorder %v14510_v35, 0.0 }
 0x745   : > { %v7365_v25 = vmul.f32 %v14534_v33, %v7237_v34  ;;  %v8388_v57 = vadd.f32 1.0, %v8260_v31  ;;  %v7110_v20 = vmul.f32 %v14547_v30, %v6982_v11  ;;  %v6472_v32 = vadd.f32 -1.4531521, %v6344_v21 }
 0x746   : > { %v6855_v41 = vmul.f32 %v14555_v49, %v6727_v28  ;;  %v5703_v53 = vsel %vm5575_vm13, 1.0, %v10656_v51  ;;  %vm5576_vm14 = vcmp.ge.f32.partialorder %v14525_v42, 0.0  ;;  %v5319_v31 = vmul.f32 0.5, %v14504_v1 }
 0x747   : > { %v8005_v40 = vmul.f32 %v10438_v27, %v7365_v25  ;;  %v8516_v54 = vmul.f32 %v8388_v57, %v5316_v6  ;;  %v7238_v33 = vadd.f32 0.2548296, %v7110_v20  ;;  %v6600_v19 = vmul.f32 %v14562_v5, %v6472_v32 }
 0x748   : > { %v6983_v10 = vadd.f32 -0.28449672, %v6855_v41  ;;  %v5704_v28 = vsel %vm5576_vm14, 1.0, %v10656_v51  ;;  %v5320_v42 = vmul.f32 0.5, %v14515_v13  ;;  %vm5577_vm15 = vcmp.ge.f32.partialorder %v14540_v24, 0.0 }
 0x749   : > { %v8133_v39 = vsub.f32 1.0, %v8005_v40  ;;  %v8644_v46 = vmul.f32 %v8516_v54, %v5060_v29  ;;  %v7366_v17 = vmul.f32 %v14547_v30, %v7238_v33  ;;  %v6728_v8 = vadd.f32 1.4214138, %v6600_v19  ;;  %v10444_v16 = vpop.eup %10443 }
 0x74a   : > { %v7111_v12 = vmul.f32 %v14555_v49, %v6983_v10  ;;  %v6345_v52 = vmul.f32 1.0614054, %v10444_v16  ;;  %v5705_v19 = vsel %vm5577_vm15, 1.0, %v10656_v51  ;;  %v5321_v10 = vmul.f32 0.5, %v14532_v44 }
 0x74b   : > { %v8261_v45 = vmul.f32 %v8133_v39, %v5701_v7  ;;  %8772 = vst [vmem:[#allocation12 + $0x3d0] sm:$0xff] %v8644_v46  ;;  %v8006_v56 = vmul.f32 %v10442_v0, %v7366_v17  ;;  %v6856_v15 = vmul.f32 %v14562_v5, %v6728_v8  ;;  %v10446_v18 = vpop.eup %10445  ;;  %v5064_v0 = vld [vmem:[#allocation2 + $0x310] sm:$0xff] }
 0x74c   : > { %v7239_v26 = vadd.f32 0.2548296, %v7111_v12  ;;  %v6473_v30 = vadd.f32 -1.4531521, %v6345_v52 }
 0x74d   : > { %v8389_v48 = vadd.f32 1.0, %v8261_v45  ;;  %v8134_v2 = vsub.f32 1.0, %v8006_v56  ;;  %v6984_v23 = vadd.f32 -0.28449672, %v6856_v15  ;;  %v10448_v61 = vpop.eup %10447  ;;  %v5065_v45 = vld [vmem:[#allocation2 + $0x190] sm:$0xff] }
 0x74e   : > { %v7367_v58 = vmul.f32 %v14555_v49, %v7239_v26  ;;  %v6601_v27 = vmul.f32 %v10444_v16, %v6473_v30 }
 0x74f   : > { %v8517_v47 = vmul.f32 %v8389_v48, %v5317_v3  ;;  %v8262_v36 = vmul.f32 %v8134_v2, %v5702_v37  ;;  %v7112_v38 = vmul.f32 %v14562_v5, %v6984_v23 }
 0x750   : > { %v8007_v22 = vmul.f32 %v10446_v18, %v7367_v58  ;;  %v6729_v34 = vadd.f32 1.4214138, %v6601_v27 }
 0x751   : > { %v8645_v62 = vmul.f32 %v8517_v47, %v5061_v9  ;;  %v8390_v50 = vadd.f32 1.0, %v8262_v36  ;;  %v7240_v63 = vadd.f32 0.2548296, %v7112_v38  ;;  %v10450_v32 = vpop.eup %10449 }
 0x752   : > { %v8135_v6 = vsub.f32 1.0, %v8007_v22  ;;  %v6857_v49 = vmul.f32 %v10444_v16, %v6729_v34 }
 0x753   : > { %8773 = vst [vmem:[#allocation12 + $0x3d8] sm:$0xff] %v8645_v62  ;;  %v8518_v59 = vmul.f32 %v8390_v50, %v5318_v43  ;;  %v7368_v35 = vmul.f32 %v14562_v5, %v7240_v63 }
 0x754   : > { %v8263_v14 = vmul.f32 %v8135_v6, %v5703_v53  ;;  %v6985_v21 = vadd.f32 -0.28449672, %v6857_v49 }
 0x755   : > { %v8646_v25 = vmul.f32 %v8518_v59, %v5062_v4  ;;  %v8008_v11 = vmul.f32 %v10448_v61, %v7368_v35 }
 0x756   : > { %v8391_v57 = vadd.f32 1.0, %v8263_v14  ;;  %v7113_v40 = vmul.f32 %v10444_v16, %v6985_v21 }
 0x757   : > { %8774 = vst [vmem:[#allocation12 + $0x3e0] sm:$0xff] %v8646_v25  ;;  %v8136_v29 = vsub.f32 1.0, %v8008_v11 }
 0x758   : > { %v8519_v20 = vmul.f32 %v8391_v57, %v5319_v31  ;;  %v7241_v5 = vadd.f32 0.2548296, %v7113_v40 }
 0x759   : > { %v8264_v54 = vmul.f32 %v8136_v29, %v5704_v28 }
 0x75a   : > { %v8647_v7 = vmul.f32 %v8519_v20, %v5063_v55  ;;  %v7369_v1 = vmul.f32 %v10444_v16, %v7241_v5 }
 0x75b   : > { %v8392_v41 = vadd.f32 1.0, %v8264_v54 }
 0x75c   : > { %8775 = vst [vmem:[#allocation12 + $0x3e8] sm:$0xff] %v8647_v7  ;;  %v8009_v33 = vmul.f32 %v10450_v32, %v7369_v1 }
 0x75d   : > { %v8520_v39 = vmul.f32 %v8392_v41, %v5320_v42 }
 0x75e   : > { %v8137_v3 = vsub.f32 1.0, %v8009_v33 }
 0x75f   : > { %v8648_v46 = vmul.f32 %v8520_v39, %v5064_v0 }
 0x760   : > { %v8265_v60 = vmul.f32 %v8137_v3, %v5705_v19 }
 0x761   : > { %8776 = vst [vmem:[#allocation12 + $0x3f0] sm:$0xff] %v8648_v46 }
 0x762   : > { %v8393_v13 = vadd.f32 1.0, %v8265_v60 }
 0x764   : > { %v8521_v17 = vmul.f32 %v8393_v13, %v5321_v10 }
 0x766   : > { %v8649_v8 = vmul.f32 %v8521_v17, %v5065_v45 }
 0x768   : > { %8777 = vst [vmem:[#allocation12 + $0x3f8] sm:$0xff] %v8649_v8 }
 0x769 PF: > { %p9319_p2 = scmp.eq.s32.totalorder %s10767_s15, 1  ;;  %s10657_s21 = smov [#allocation12]  }
 0x76a   : > { %s8790_s10 = sshll.u32 %s10657_s21, 4  ;;  %s8791_s10 = int_to_ptr.vmem [resolvable:$true] %s8790_s10 }
 0x76b   : > { %s10561_s27 = scalar_lea.vmem %s8791_s10, 16384  ;;  %p10568_p4 = scmp.lt.s32.totalorder %s8791_s10, %s8791_s10 }
 0x76c   : > { %p10562_p5 = scmp.ne.s32.totalorder %s8791_s10, %s10561_s27  ;;  %p10569_p10 = scmp.lt.s32.totalorder %s10561_s27, %s10561_s27 }
 0x76e   : > { %p10563_p8 = pnand %p10562_p5, %p9319_p2  ;;  %p10570_p9 = por %p10569_p10, %p10568_p4 }
 0x770   : > { %p10564_p3 = pneg %p10563_p8 }
 0x772   : > { %p10571_p11 = pnand %p10570_p9, %p10564_p3 }
 0x774   : > { %10574 = shalt.err (!%p10571_p11)
}
 0x775   : > { %s10658_s18 = smov 512   ;;  %s10659_s16 = smov 32  }
 0x776   : > { %9299 = dma.vmem_to_hbm [thread:$0]  (%p9319_p2), %s8791_s10, 16384, %s14627_s5, [#allocation6], %s10658_s18, %s10658_s18, %s10659_s16  }
 0x777   : > { %10622 = dma.done.wait (%p9319_p2), [#allocation6], 16384  }
 0x778   : > { %10624 = vsyncadd (%p9319_p2), [#allocation6], 4294950912 }
 0x779 PF: > { %s23_s23 = sadd.s32 1, %s10647_s23   ;;  %s14671_s18 = smov %s10631_s19 }
 0x77a   : > { %p20_p12 = scmp.ge.s32.totalorder %s23_s23, 4   ;;  %s14672_s19 = smov %s10635_s20 }
 0x77b   : > { %s14673_s20 = smov %s10738_s29  ;;  %s14674_s21 = smov %s10643_s22 }
 0x77c   : > { %s14675_s22 = smov %s14677_s24  ;;  %22 = sbr.rel (!%p20_p12) target bundleno = 8 (0x8), region = 118 }
 0x781   :  { %8806 = vsyncpa [#allocation5], 1 }
 0x782   :  { %8808 = vsyncpa [#allocation5 + $0x1], 1 }
 0x783   :  { %8809 = vsyncpa [#allocation8], 1 }
 0x784   :  { %8811 = vsyncpa [#allocation8 + $0x1], 1 }
 0x785   :  { %8812 = vsyncpa [#allocation11], 1 }
 0x786   :  { %8813 = vsyncpa [#allocation6], 1 }
 0x787   :  { %8815 = vsyncpa [#allocation6 + $0x1], 1 }

</bundles_post_ra>
